<compile_context>
chip_gen: v5e
topology: v5e:2x2
jax: 0.10.0
libtpu: 0.0.40
codegen_flags: <defaults>
</compile_context>

<pallas_src>
import math

import numpy as np
import jax
import jax.numpy as jnp
from jax.experimental import pallas as pl
from jax.experimental.pallas import tpu as pltpu

INV_SQRT2 = 1.0 / math.sqrt(2.0)
EPS = 1e-5
LRELU_SLOPE = 0.2
OP_DTYPE = jnp.bfloat16          # MXU operand dtype (0 / 1 / 0.25 entries are exact)
LANE = 128


# ---------------------------- operator matrices (built once, host/numpy) ----------------------------

def _shift_mats_np(H, W):
    """G[t] (HW, HW): (v @ G[t])[y*W+x] = v[(y+dy)*W+(x+dx)] (0 outside), t=(dy+1)*3+(dx+1)."""
    HW = H * W
    y, x = np.meshgrid(np.arange(H), np.arange(W), indexing="ij")
    dst = (y * W + x).reshape(-1)
    G = np.zeros((9, HW, HW), np.float32)
    t = 0
    for dy in (-1, 0, 1):
        for dx in (-1, 0, 1):
            yy, xx = y + dy, x + dx
            valid = ((yy >= 0) & (yy < H) & (xx >= 0) & (xx < W)).reshape(-1)
            src = (np.clip(yy, 0, H - 1) * W + np.clip(xx, 0, W - 1)).reshape(-1)
            G[t, src[valid], dst[valid]] = 1.0
            t += 1
    return G


def _pool_mat_np(H, W):
    """P (HW, HW/4): x @ P == 2x2 average pooling of the (H, W) grid."""
    Ho, Wo = H // 2, W // 2
    P = np.zeros((H * W, Ho * Wo), np.float32)
    y, x = np.meshgrid(np.arange(H), np.arange(W), indexing="ij")
    P[(y * W + x).reshape(-1), ((y // 2) * Wo + (x // 2)).reshape(-1)] = 0.25
    return P


def _up_mat_np(H, W):
    """U (HW, 4*HW): x @ U == nearest-neighbor 2x upsample of the (H, W) grid."""
    Ho, Wo = 2 * H, 2 * W
    U = np.zeros((H * W, Ho * Wo), np.float32)
    yo, xo = np.meshgrid(np.arange(Ho), np.arange(Wo), indexing="ij")
    U[((yo // 2) * W + (xo // 2)).reshape(-1), (yo * Wo + xo).reshape(-1)] = 1.0
    return U


def _make_consts(H, W):
    """Conv/pool/upsample operator matrices, bf16.

    G{hw}  : plain 3x3 shift taps at resolution hw              (conv2)
    GP{hw} : shift taps fused with 2x2 avg-pool                 (down conv1)
    UG{hw} : 2x nearest upsample fused with shift taps          (up conv1)
    P{hw}  : avg-pool        (down shortcut)
    U{hw}  : 2x upsample     (up shortcut)

    Tap sets whose conv-input resolution is lane aligned (hw % 128 == 0) are stored
    row-stacked as (9*hw, hw_out) for the single-dot path; the rest stay (9, hw, hw_out).
    """
    consts = {}
    sizes = [(H, W), (H // 2, W // 2), (H // 4, W // 4), (H // 8, W // 8)]
    G = {h * w: _shift_mats_np(h, w) for (h, w) in sizes}

    def store(name, taps):
        hw_in = taps.shape[1]
        if hw_in % LANE == 0:
            consts[name] = taps.reshape(9 * hw_in, taps.shape[2])
        else:
            consts[name] = taps

    for (h, w) in sizes:
        store(f"G{h * w}", G[h * w])
    for (h, w) in sizes[:3]:                                    # encoder input resolutions
        hw = h * w
        P = _pool_mat_np(h, w)
        store(f"GP{hw}", np.einsum("tij,jk->tik", G[hw], P))
        consts[f"P{hw}"] = P
    for (h, w) in sizes[1:]:                                    # decoder input resolutions
        hw = h * w
        U = _up_mat_np(h, w)
        store(f"UG{hw}", np.einsum("ij,tjk->tik", U, G[4 * hw]))
        consts[f"U{hw}"] = U
    return {k: jnp.asarray(v, OP_DTYPE) for k, v in consts.items()}


# ---------------------------- static plan (Python ints / strings, kernel closure) ----------------------------

def _make_plan(channel_in, H, W):
    HW = H * W
    cfg = [("down", 2 * channel_in, channel_in, HW),
           ("down", channel_in, channel_in, HW // 4),
           ("down", channel_in, channel_in, HW // 16),
           ("up", channel_in, channel_in, HW // 64),
           ("up", channel_in, channel_in, HW // 16),
           ("up", channel_in, channel_in, HW // 4)]
    plan = []
    for kind, ind, outd, hw in cfg:
        if kind == "down":
            c1o, c1i, c2o, c2i, n2 = ind, ind, outd, ind, ind
            op1, op2, scop = f"GP{hw}", f"G{hw // 4}", f"P{hw}"
        else:
            c1o, c1i, c2o, c2i, n2 = outd, ind, outd, outd, outd
            op1, op2, scop = f"UG{hw}", f"G{hw * 4}", f"U{hw}"
        lens = (ind, ind, c1o, n2, n2, c2o)          # g1, b1(IN), conv1 bias, g2, b2(IN), conv2 bias
        voff = [0]
        for l in lens:
            voff.append(voff[-1] + l)
        plan.append(dict(kind=kind, in_dim=ind, out_dim=outd, hw=hw,
                         c1_out=c1o, c1_in=c1i, c2_out=c2o, c2_in=c2i, n2=n2,
                         op1=op1, op2=op2, sc_op=scop, voff=tuple(voff)))
    return plan


def _const_names(plan):
    names = []
    for p in plan:
        for k in ("op1", "op2", "sc_op"):
            if p[k] not in names:
                names.append(p[k])
    return names


# ---------------------------- fused Pallas kernel ----------------------------

def _dot(a, b):
    return jnp.dot(a, b, preferred_element_type=jnp.float32)


def _bf16(x):
    return x.astype(OP_DTYPE)


def _make_kernel(plan, const_names):
    n_consts = len(const_names)
    n_blocks = len(plan)

    def kernel(*refs):
        x_ref = refs[0]
        cref = dict(zip(const_names, refs[1:1 + n_consts]))
        wrefs = refs[1 + n_consts:1 + n_consts + n_blocks]
        vrefs = refs[1 + n_consts + n_blocks:1 + n_consts + 2 * n_blocks]
        out_ref = refs[1 + n_consts + 2 * n_blocks]

        def in_lrelu(h, g, b):
            # InstanceNorm (torch.std semantics: unbiased var, eps added to std) + LeakyReLU(0.2).
            hw = h.shape[-1]
            mean = jnp.mean(h, axis=-1, keepdims=True)
            d = h - mean
            var = jnp.sum(d * d, axis=-1, keepdims=True) * (1.0 / (hw - 1))
            y = d * (g / (jnp.sqrt(var) + EPS)) + b
            return jnp.where(y > 0, y, LRELU_SLOPE * y)

        def conv(h, w_taps, bias, g_ref):
            # 3x3 conv (optionally fused with pool/upsample via g_ref).
            # h: (cin, hw_in) f32; w_taps: (9*cout, cin) bf16; bias: (cout, 1) f32.
            cout = w_taps.shape[0] // 9
            s1 = _dot(w_taps, _bf16(h))                              # one stage-1 dot
            if len(g_ref.shape) == 2:
                # lane-aligned resolution: relayout to (cout, 9*hw_in) with aligned lane
                # concats and do ONE stage-2 dot against the row-stacked operator.
                wide = jnp.concatenate(
                    [s1[t * cout:(t + 1) * cout, :] for t in range(9)], axis=1)
                return _dot(_bf16(wide), g_ref[...]) + bias
            # small resolutions: per-tap accumulation (tiny matmuls).
            out = jnp.zeros((cout, g_ref.shape[2]), jnp.float32)
            for t in range(9):
                out = out + _dot(_bf16(s1[t * cout:(t + 1) * cout, :]), g_ref[t])
            return out + bias

        def block(h, p, w_ref, v_ref):
            w = w_ref[...]                                           # bf16 weight slab
            v = v_ref[...]                                           # f32 (L, 1) vector slab
            c1o, c2o, cout = p["c1_out"], p["c2_out"], p["out_dim"]
            r1, r2 = 9 * c1o, 9 * c1o + 9 * c2o
            w1 = w[0:r1, 0:p["c1_in"]]
            w2 = w[r1:r2, 0:p["c2_in"]]
            wsc = w[r2:r2 + cout, 0:p["in_dim"]]
            o = p["voff"]
            g1, ib1, b1 = v[o[0]:o[1]], v[o[1]:o[2]], v[o[2]:o[3]]
            g2, ib2, b2 = v[o[3]:o[4]], v[o[4]:o[5]], v[o[5]:o[6]]

            # shortcut: 1x1 conv then pool / upsample
            res = _dot(_bf16(_dot(wsc, _bf16(h))), cref[p["sc_op"]][...])
            # main path
            y = in_lrelu(h, g1, ib1)
            y = conv(y, w1, b1, cref[p["op1"]])       # conv1 (+ fused pool / upsample)
            y = in_lrelu(y, g2, ib2)
            y = conv(y, w2, b2, cref[p["op2"]])       # conv2 at the new resolution
            return (res + y) * INV_SQRT2

        x = x_ref[...]                                # (C_in, H*W) for this sample, f32
        f1 = block(x, plan[0], wrefs[0], vrefs[0])
        f2 = block(f1, plan[1], wrefs[1], vrefs[1])
        f3 = block(f2, plan[2], wrefs[2], vrefs[2])
        o = block(f3, plan[3], wrefs[3], vrefs[3]) + f2          # decoder skip adds
        o = block(o, plan[4], wrefs[4], vrefs[4]) + f1
        o = block(o, plan[5], wrefs[5], vrefs[5])
        out_ref[...] = jax.nn.sigmoid(o)

    return kernel


# ---------------------------- deterministic parameter init (PyTorch-style) + packing ----------------------------

def _conv3_init(key, cout, cin):
    kw, kb = jax.random.split(key)
    bound = 1.0 / math.sqrt(cin * 9)                 # PyTorch default Conv2d init range
    w = jax.random.uniform(kw, (cout, cin, 3, 3), jnp.float32, -bound, bound)
    b = jax.random.uniform(kb, (cout,), jnp.float32, -bound, bound)
    return w.transpose(2, 3, 0, 1).reshape(9 * cout, cin), b      # rows: (tap, cout)


def _init_block(key, p):
    k1, k2, k3 = jax.random.split(key, 3)
    w1, b1 = _conv3_init(k1, p["c1_out"], p["c1_in"])
    w2, b2 = _conv3_init(k2, p["c2_out"], p["c2_in"])
    bound = 1.0 / math.sqrt(p["in_dim"])
    wsc = jax.random.uniform(k3, (p["out_dim"], p["in_dim"]), jnp.float32, -bound, bound)
    maxc = max(p["c1_in"], p["c2_in"], p["in_dim"])
    pad = lambda m: jnp.pad(m, ((0, 0), (0, maxc - m.shape[1])))
    wslab = jnp.concatenate([pad(w1), pad(w2), pad(wsc)], axis=0).astype(OP_DTYPE)
    ones, zeros = jnp.ones, jnp.zeros
    vslab = jnp.concatenate([
        ones((p["in_dim"],), jnp.float32), zeros((p["in_dim"],), jnp.float32), b1,
        ones((p["n2"],), jnp.float32), zeros((p["n2"],), jnp.float32), b2,
    ]).reshape(-1, 1)
    return wslab, vslab


# ---------------------------- builder + host wrapper ----------------------------

def build_skipnet(key, channel_in, H, W):
    """Returns (params, forward).  params holds only arrays (jit-safe pytree)."""
    plan = _make_plan(channel_in, H, W)
    const_names = _const_names(plan)
    consts = _make_consts(H, W)
    keys = jax.random.split(key, len(plan))
    wslabs, vslabs = [], []
    for k, p in zip(keys, plan):
        w, v = _init_block(k, p)
        wslabs.append(w)
        vslabs.append(v)
    params = dict(consts=[consts[n] for n in const_names], wslabs=wslabs, vslabs=vslabs)

    kernel = _make_kernel(plan, const_names)
    out_ch = plan[-1]["out_dim"]

    def forward(params, x):
        N, C0, Hx, Wx = x.shape
        HW = Hx * Wx
        flat = ([x.reshape(N, C0, HW)] + list(params["consts"])
                + list(params["wslabs"]) + list(params["vslabs"]))

        in_specs = [pl.BlockSpec((None, C0, HW), lambda n: (n, 0, 0))]
        for a in flat[1:]:
            # grid-invariant operands: full-array blocks, resident in VMEM across the batch grid
            in_specs.append(pl.BlockSpec(a.shape, lambda n, _nd=a.ndim: (0,) * _nd))

        out = pl.pallas_call(
            kernel,
            grid=(N,),
            in_specs=in_specs,
            out_specs=pl.BlockSpec((None, out_ch, HW), lambda n: (n, 0, 0)),
            out_shape=jax.ShapeDtypeStruct((N, out_ch, HW), jnp.float32),
            compiler_params=pltpu.CompilerParams(
                dimension_semantics=("parallel",),        # both TensorCores on v7x
                vmem_limit_bytes=32 * 1024 * 1024,
            ),
        )(*flat)
        return out.reshape(N, out_ch, Hx, Wx)

    return params, forward


# ---------------------------- main ----------------------------

if __name__ == "__main__":
    key = jax.random.PRNGKey(0)
    channel_in = 4
    N, H, W = 2, 16, 16                              # SkipNet input has 2*channel_in channels
    kx, kp = jax.random.split(key)
    x = jax.random.normal(kx, (N, 2 * channel_in, H, W), jnp.float32)

    params, forward = build_skipnet(kp, channel_in, H, W)
    fwd = jax.jit(forward)
    out = jax.block_until_ready(fwd(params, x))

    assert out.shape == (N, channel_in, H, W)
    assert bool(jnp.all(jnp.isfinite(out)))
    assert bool(jnp.all((out >= 0.0) & (out <= 1.0)))    # sigmoid output range
    print("KERNEL_OK")
</pallas_src>

<mosaic_0001>
module attributes {stable_mosaic.version = 11 : i64} {
  func.func @kernel(%arg0: i32, %arg1: memref<1x8x256xf32, #tpu.memory_space<vmem>>, %arg2: memref<2304x64xbf16, #tpu.memory_space<vmem>>, %arg3: memref<9x64x64xbf16, #tpu.memory_space<vmem>>, %arg4: memref<256x64xbf16, #tpu.memory_space<vmem>>, %arg5: memref<9x64x16xbf16, #tpu.memory_space<vmem>>, %arg6: memref<9x16x16xbf16, #tpu.memory_space<vmem>>, %arg7: memref<64x16xbf16, #tpu.memory_space<vmem>>, %arg8: memref<9x16x4xbf16, #tpu.memory_space<vmem>>, %arg9: memref<9x4x4xbf16, #tpu.memory_space<vmem>>, %arg10: memref<16x4xbf16, #tpu.memory_space<vmem>>, %arg11: memref<9x4x16xbf16, #tpu.memory_space<vmem>>, %arg12: memref<4x16xbf16, #tpu.memory_space<vmem>>, %arg13: memref<9x16x64xbf16, #tpu.memory_space<vmem>>, %arg14: memref<16x64xbf16, #tpu.memory_space<vmem>>, %arg15: memref<9x64x256xbf16, #tpu.memory_space<vmem>>, %arg16: memref<2304x256xbf16, #tpu.memory_space<vmem>>, %arg17: memref<64x256xbf16, #tpu.memory_space<vmem>>, %arg18: memref<112x8xbf16, #tpu.memory_space<vmem>>, %arg19: memref<76x4xbf16, #tpu.memory_space<vmem>>, %arg20: memref<76x4xbf16, #tpu.memory_space<vmem>>, %arg21: memref<76x4xbf16, #tpu.memory_space<vmem>>, %arg22: memref<76x4xbf16, #tpu.memory_space<vmem>>, %arg23: memref<76x4xbf16, #tpu.memory_space<vmem>>, %arg24: memref<44x1xf32, #tpu.memory_space<vmem>>, %arg25: memref<24x1xf32, #tpu.memory_space<vmem>>, %arg26: memref<24x1xf32, #tpu.memory_space<vmem>>, %arg27: memref<24x1xf32, #tpu.memory_space<vmem>>, %arg28: memref<24x1xf32, #tpu.memory_space<vmem>>, %arg29: memref<24x1xf32, #tpu.memory_space<vmem>>, %arg30: memref<1x4x256xf32, #tpu.memory_space<vmem>>) attributes {dimension_semantics = [#tpu.dimension_semantics<parallel>], iteration_bounds = array<i64: 2>, scalar_prefetch = 0 : i64, scratch_operands = 0 : i64, tpu.core_type = #tpu.core_type<tc>, window_params = [{transform_indices = @transform_0, window_bounds = array<i64: 1, 8, 256>}, {pipeline_mode = #tpu.pipeline_mode<synchronous>, transform_indices = @transform_1, window_bounds = array<i64: 2304, 64>}, {pipeline_mode = #tpu.pipeline_mode<synchronous>, transform_indices = @transform_2, window_bounds = array<i64: 9, 64, 64>}, {pipeline_mode = #tpu.pipeline_mode<synchronous>, transform_indices = @transform_3, window_bounds = array<i64: 256, 64>}, {pipeline_mode = #tpu.pipeline_mode<synchronous>, transform_indices = @transform_4, window_bounds = array<i64: 9, 64, 16>}, {pipeline_mode = #tpu.pipeline_mode<synchronous>, transform_indices = @transform_5, window_bounds = array<i64: 9, 16, 16>}, {pipeline_mode = #tpu.pipeline_mode<synchronous>, transform_indices = @transform_6, window_bounds = array<i64: 64, 16>}, {pipeline_mode = #tpu.pipeline_mode<synchronous>, transform_indices = @transform_7, window_bounds = array<i64: 9, 16, 4>}, {pipeline_mode = #tpu.pipeline_mode<synchronous>, transform_indices = @transform_8, window_bounds = array<i64: 9, 4, 4>}, {pipeline_mode = #tpu.pipeline_mode<synchronous>, transform_indices = @transform_9, window_bounds = array<i64: 16, 4>}, {pipeline_mode = #tpu.pipeline_mode<synchronous>, transform_indices = @transform_10, window_bounds = array<i64: 9, 4, 16>}, {pipeline_mode = #tpu.pipeline_mode<synchronous>, transform_indices = @transform_11, window_bounds = array<i64: 4, 16>}, {pipeline_mode = #tpu.pipeline_mode<synchronous>, transform_indices = @transform_12, window_bounds = array<i64: 9, 16, 64>}, {pipeline_mode = #tpu.pipeline_mode<synchronous>, transform_indices = @transform_13, window_bounds = array<i64: 16, 64>}, {pipeline_mode = #tpu.pipeline_mode<synchronous>, transform_indices = @transform_14, window_bounds = array<i64: 9, 64, 256>}, {pipeline_mode = #tpu.pipeline_mode<synchronous>, transform_indices = @transform_15, window_bounds = array<i64: 2304, 256>}, {pipeline_mode = #tpu.pipeline_mode<synchronous>, transform_indices = @transform_16, window_bounds = array<i64: 64, 256>}, {pipeline_mode = #tpu.pipeline_mode<synchronous>, transform_indices = @transform_17, window_bounds = array<i64: 112, 8>}, {pipeline_mode = #tpu.pipeline_mode<synchronous>, transform_indices = @transform_18, window_bounds = array<i64: 76, 4>}, {pipeline_mode = #tpu.pipeline_mode<synchronous>, transform_indices = @transform_19, window_bounds = array<i64: 76, 4>}, {pipeline_mode = #tpu.pipeline_mode<synchronous>, transform_indices = @transform_20, window_bounds = array<i64: 76, 4>}, {pipeline_mode = #tpu.pipeline_mode<synchronous>, transform_indices = @transform_21, window_bounds = array<i64: 76, 4>}, {pipeline_mode = #tpu.pipeline_mode<synchronous>, transform_indices = @transform_22, window_bounds = array<i64: 76, 4>}, {pipeline_mode = #tpu.pipeline_mode<synchronous>, transform_indices = @transform_23, window_bounds = array<i64: 44, 1>}, {pipeline_mode = #tpu.pipeline_mode<synchronous>, transform_indices = @transform_24, window_bounds = array<i64: 24, 1>}, {pipeline_mode = #tpu.pipeline_mode<synchronous>, transform_indices = @transform_25, window_bounds = array<i64: 24, 1>}, {pipeline_mode = #tpu.pipeline_mode<synchronous>, transform_indices = @transform_26, window_bounds = array<i64: 24, 1>}, {pipeline_mode = #tpu.pipeline_mode<synchronous>, transform_indices = @transform_27, window_bounds = array<i64: 24, 1>}, {pipeline_mode = #tpu.pipeline_mode<synchronous>, transform_indices = @transform_28, window_bounds = array<i64: 24, 1>}, {transform_indices = @transform_29, window_bounds = array<i64: 1, 4, 256>}]} {
    %c0 = arith.constant 0 : index
    %c0_0 = arith.constant 0 : index
    %c0_1 = arith.constant 0 : index
    %0 = vector.load %arg1[%c0, %c0_0, %c0_1] : memref<1x8x256xf32, #tpu.memory_space<vmem>>, vector<1x8x256xf32>
    %1 = vector.shape_cast %0 : vector<1x8x256xf32> to vector<8x256xf32>
    %c0_2 = arith.constant 0 : index
    %c0_3 = arith.constant 0 : index
    %2 = vector.load %arg18[%c0_2, %c0_3] : memref<112x8xbf16, #tpu.memory_space<vmem>>, vector<112x8xbf16>
    %c0_4 = arith.constant 0 : index
    %c0_5 = arith.constant 0 : index
    %3 = vector.load %arg24[%c0_4, %c0_5] : memref<44x1xf32, #tpu.memory_space<vmem>>, vector<44x1xf32>
    %4 = vector.extract_strided_slice %2 {offsets = [0, 0], sizes = [72, 8], strides = [1, 1]} : vector<112x8xbf16> to vector<72x8xbf16>
    %5 = vector.extract_strided_slice %2 {offsets = [72, 0], sizes = [36, 8], strides = [1, 1]} : vector<112x8xbf16> to vector<36x8xbf16>
    %6 = vector.extract_strided_slice %2 {offsets = [108, 0], sizes = [4, 8], strides = [1, 1]} : vector<112x8xbf16> to vector<4x8xbf16>
    %7 = vector.extract_strided_slice %3 {offsets = [0, 0], sizes = [8, 1], strides = [1, 1]} : vector<44x1xf32> to vector<8x1xf32>
    %8 = vector.extract_strided_slice %3 {offsets = [8, 0], sizes = [8, 1], strides = [1, 1]} : vector<44x1xf32> to vector<8x1xf32>
    %9 = vector.extract_strided_slice %3 {offsets = [16, 0], sizes = [8, 1], strides = [1, 1]} : vector<44x1xf32> to vector<8x1xf32>
    %10 = vector.extract_strided_slice %3 {offsets = [24, 0], sizes = [8, 1], strides = [1, 1]} : vector<44x1xf32> to vector<8x1xf32>
    %11 = vector.extract_strided_slice %3 {offsets = [32, 0], sizes = [8, 1], strides = [1, 1]} : vector<44x1xf32> to vector<8x1xf32>
    %12 = vector.extract_strided_slice %3 {offsets = [40, 0], sizes = [4, 1], strides = [1, 1]} : vector<44x1xf32> to vector<4x1xf32>
    %13 = arith.truncf %1 : vector<8x256xf32> to vector<8x256xbf16>
    %cst = arith.constant dense<0.000000e+00> : vector<4x256xf32>
    %14 = tpu.matmul %6, %13, %cst {dimension_numbers = #tpu.dot_dimension_numbers<[1], [0], [0], [1], [0, 0, 1, 1], [], []>} : vector<4x8xbf16>, vector<8x256xbf16>, vector<4x256xf32> -> vector<4x256xf32>
    %15 = arith.truncf %14 : vector<4x256xf32> to vector<4x256xbf16>
    %c0_6 = arith.constant 0 : index
    %c0_7 = arith.constant 0 : index
    %16 = vector.load %arg4[%c0_6, %c0_7] : memref<256x64xbf16, #tpu.memory_space<vmem>>, vector<256x64xbf16>
    %cst_8 = arith.constant dense<0.000000e+00> : vector<4x64xf32>
    %17 = tpu.matmul %15, %16, %cst_8 {dimension_numbers = #tpu.dot_dimension_numbers<[1], [0], [0], [1], [0, 0, 1, 1], [], []>} : vector<4x256xbf16>, vector<256x64xbf16>, vector<4x64xf32> -> vector<4x64xf32>
    %cst_9 = arith.constant dense<0.000000e+00> : vector<8xf32>
    %18 = vector.multi_reduction <add>, %1, %cst_9 [1] : vector<8x256xf32> to vector<8xf32>
    %19 = vector.shape_cast %18 : vector<8xf32> to vector<8x1xf32>
    %cst_10 = arith.constant 2.560000e+02 : f32
    %20 = vector.broadcast %cst_10 : f32 to vector<8x1xf32>
    %21 = arith.divf %19, %20 : vector<8x1xf32>
    %22 = vector.broadcast %21 : vector<8x1xf32> to vector<8x256xf32>
    %23 = arith.subf %1, %22 : vector<8x256xf32>
    %24 = arith.mulf %23, %23 : vector<8x256xf32>
    %cst_11 = arith.constant dense<0.000000e+00> : vector<8xf32>
    %25 = vector.multi_reduction <add>, %24, %cst_11 [1] : vector<8x256xf32> to vector<8xf32>
    %26 = vector.shape_cast %25 : vector<8xf32> to vector<8x1xf32>
    %cst_12 = arith.constant 0.00392156886 : f32
    %27 = vector.broadcast %cst_12 : f32 to vector<8x1xf32>
    %28 = arith.mulf %26, %27 : vector<8x1xf32>
    %29 = math.sqrt %28 : vector<8x1xf32>
    %cst_13 = arith.constant 9.99999974E-6 : f32
    %30 = vector.broadcast %cst_13 : f32 to vector<8x1xf32>
    %31 = arith.addf %29, %30 : vector<8x1xf32>
    %32 = arith.divf %7, %31 : vector<8x1xf32>
    %33 = vector.broadcast %32 : vector<8x1xf32> to vector<8x256xf32>
    %34 = arith.mulf %23, %33 : vector<8x256xf32>
    %35 = vector.broadcast %8 : vector<8x1xf32> to vector<8x256xf32>
    %36 = arith.addf %34, %35 : vector<8x256xf32>
    %cst_14 = arith.constant 0.000000e+00 : f32
    %37 = vector.broadcast %cst_14 : f32 to vector<8x256xf32>
    %38 = arith.cmpf ogt, %36, %37 : vector<8x256xf32>
    %cst_15 = arith.constant 2.000000e-01 : f32
    %39 = vector.broadcast %cst_15 : f32 to vector<8x256xf32>
    %40 = arith.mulf %39, %36 : vector<8x256xf32>
    %41 = arith.select %38, %36, %40 : vector<8x256xi1>, vector<8x256xf32>
    %42 = arith.truncf %41 : vector<8x256xf32> to vector<8x256xbf16>
    %cst_16 = arith.constant dense<0.000000e+00> : vector<72x256xf32>
    %43 = tpu.matmul %4, %42, %cst_16 {dimension_numbers = #tpu.dot_dimension_numbers<[1], [0], [0], [1], [0, 0, 1, 1], [], []>} : vector<72x8xbf16>, vector<8x256xbf16>, vector<72x256xf32> -> vector<72x256xf32>
    %44 = vector.extract_strided_slice %43 {offsets = [0, 0], sizes = [8, 256], strides = [1, 1]} : vector<72x256xf32> to vector<8x256xf32>
    %45 = vector.extract_strided_slice %43 {offsets = [8, 0], sizes = [8, 256], strides = [1, 1]} : vector<72x256xf32> to vector<8x256xf32>
    %46 = vector.extract_strided_slice %43 {offsets = [16, 0], sizes = [8, 256], strides = [1, 1]} : vector<72x256xf32> to vector<8x256xf32>
    %47 = vector.extract_strided_slice %43 {offsets = [24, 0], sizes = [8, 256], strides = [1, 1]} : vector<72x256xf32> to vector<8x256xf32>
    %48 = vector.extract_strided_slice %43 {offsets = [32, 0], sizes = [8, 256], strides = [1, 1]} : vector<72x256xf32> to vector<8x256xf32>
    %49 = vector.extract_strided_slice %43 {offsets = [40, 0], sizes = [8, 256], strides = [1, 1]} : vector<72x256xf32> to vector<8x256xf32>
    %50 = vector.extract_strided_slice %43 {offsets = [48, 0], sizes = [8, 256], strides = [1, 1]} : vector<72x256xf32> to vector<8x256xf32>
    %51 = vector.extract_strided_slice %43 {offsets = [56, 0], sizes = [8, 256], strides = [1, 1]} : vector<72x256xf32> to vector<8x256xf32>
    %52 = vector.extract_strided_slice %43 {offsets = [64, 0], sizes = [8, 256], strides = [1, 1]} : vector<72x256xf32> to vector<8x256xf32>
    %53 = tpu.concatenate %44, %45, %46, %47, %48, %49, %50, %51, %52 in 1 : vector<8x256xf32>, vector<8x256xf32>, vector<8x256xf32>, vector<8x256xf32>, vector<8x256xf32>, vector<8x256xf32>, vector<8x256xf32>, vector<8x256xf32>, vector<8x256xf32> -> vector<8x2304xf32>
    %54 = arith.truncf %53 : vector<8x2304xf32> to vector<8x2304xbf16>
    %c0_17 = arith.constant 0 : index
    %c0_18 = arith.constant 0 : index
    %55 = vector.load %arg2[%c0_17, %c0_18] : memref<2304x64xbf16, #tpu.memory_space<vmem>>, vector<2304x64xbf16>
    %cst_19 = arith.constant dense<0.000000e+00> : vector<8x64xf32>
    %56 = tpu.matmul %54, %55, %cst_19 {dimension_numbers = #tpu.dot_dimension_numbers<[1], [0], [0], [1], [0, 0, 1, 1], [], []>} : vector<8x2304xbf16>, vector<2304x64xbf16>, vector<8x64xf32> -> vector<8x64xf32>
    %57 = vector.broadcast %9 : vector<8x1xf32> to vector<8x64xf32>
    %58 = arith.addf %56, %57 : vector<8x64xf32>
    %cst_20 = arith.constant dense<0.000000e+00> : vector<8xf32>
    %59 = vector.multi_reduction <add>, %58, %cst_20 [1] : vector<8x64xf32> to vector<8xf32>
    %60 = vector.shape_cast %59 : vector<8xf32> to vector<8x1xf32>
    %cst_21 = arith.constant 6.400000e+01 : f32
    %61 = vector.broadcast %cst_21 : f32 to vector<8x1xf32>
    %62 = arith.divf %60, %61 : vector<8x1xf32>
    %63 = vector.broadcast %62 : vector<8x1xf32> to vector<8x64xf32>
    %64 = arith.subf %58, %63 : vector<8x64xf32>
    %65 = arith.mulf %64, %64 : vector<8x64xf32>
    %cst_22 = arith.constant dense<0.000000e+00> : vector<8xf32>
    %66 = vector.multi_reduction <add>, %65, %cst_22 [1] : vector<8x64xf32> to vector<8xf32>
    %67 = vector.shape_cast %66 : vector<8xf32> to vector<8x1xf32>
    %cst_23 = arith.constant 0.0158730168 : f32
    %68 = vector.broadcast %cst_23 : f32 to vector<8x1xf32>
    %69 = arith.mulf %67, %68 : vector<8x1xf32>
    %70 = math.sqrt %69 : vector<8x1xf32>
    %cst_24 = arith.constant 9.99999974E-6 : f32
    %71 = vector.broadcast %cst_24 : f32 to vector<8x1xf32>
    %72 = arith.addf %70, %71 : vector<8x1xf32>
    %73 = arith.divf %10, %72 : vector<8x1xf32>
    %74 = vector.broadcast %73 : vector<8x1xf32> to vector<8x64xf32>
    %75 = arith.mulf %64, %74 : vector<8x64xf32>
    %76 = vector.broadcast %11 : vector<8x1xf32> to vector<8x64xf32>
    %77 = arith.addf %75, %76 : vector<8x64xf32>
    %cst_25 = arith.constant 0.000000e+00 : f32
    %78 = vector.broadcast %cst_25 : f32 to vector<8x64xf32>
    %79 = arith.cmpf ogt, %77, %78 : vector<8x64xf32>
    %cst_26 = arith.constant 2.000000e-01 : f32
    %80 = vector.broadcast %cst_26 : f32 to vector<8x64xf32>
    %81 = arith.mulf %80, %77 : vector<8x64xf32>
    %82 = arith.select %79, %77, %81 : vector<8x64xi1>, vector<8x64xf32>
    %83 = arith.truncf %82 : vector<8x64xf32> to vector<8x64xbf16>
    %cst_27 = arith.constant dense<0.000000e+00> : vector<36x64xf32>
    %84 = tpu.matmul %5, %83, %cst_27 {dimension_numbers = #tpu.dot_dimension_numbers<[1], [0], [0], [1], [0, 0, 1, 1], [], []>} : vector<36x8xbf16>, vector<8x64xbf16>, vector<36x64xf32> -> vector<36x64xf32>
    %cst_28 = arith.constant 0.000000e+00 : f32
    %85 = vector.broadcast %cst_28 : f32 to vector<4x64xf32>
    %86 = vector.extract_strided_slice %84 {offsets = [0, 0], sizes = [4, 64], strides = [1, 1]} : vector<36x64xf32> to vector<4x64xf32>
    %87 = arith.truncf %86 : vector<4x64xf32> to vector<4x64xbf16>
    %c0_29 = arith.constant 0 : index
    %c0_30 = arith.constant 0 : index
    %c0_31 = arith.constant 0 : index
    %88 = vector.load %arg3[%c0_29, %c0_30, %c0_31] : memref<9x64x64xbf16, #tpu.memory_space<vmem>>, vector<1x64x64xbf16>
    %89 = vector.shape_cast %88 : vector<1x64x64xbf16> to vector<64x64xbf16>
    %cst_32 = arith.constant dense<0.000000e+00> : vector<4x64xf32>
    %90 = tpu.matmul %87, %89, %cst_32 {dimension_numbers = #tpu.dot_dimension_numbers<[1], [0], [0], [1], [0, 0, 1, 1], [], []>} : vector<4x64xbf16>, vector<64x64xbf16>, vector<4x64xf32> -> vector<4x64xf32>
    %91 = arith.addf %85, %90 : vector<4x64xf32>
    %92 = vector.extract_strided_slice %84 {offsets = [4, 0], sizes = [4, 64], strides = [1, 1]} : vector<36x64xf32> to vector<4x64xf32>
    %93 = arith.truncf %92 : vector<4x64xf32> to vector<4x64xbf16>
    %c1 = arith.constant 1 : index
    %c0_33 = arith.constant 0 : index
    %c0_34 = arith.constant 0 : index
    %94 = vector.load %arg3[%c1, %c0_33, %c0_34] : memref<9x64x64xbf16, #tpu.memory_space<vmem>>, vector<1x64x64xbf16>
    %95 = vector.shape_cast %94 : vector<1x64x64xbf16> to vector<64x64xbf16>
    %cst_35 = arith.constant dense<0.000000e+00> : vector<4x64xf32>
    %96 = tpu.matmul %93, %95, %cst_35 {dimension_numbers = #tpu.dot_dimension_numbers<[1], [0], [0], [1], [0, 0, 1, 1], [], []>} : vector<4x64xbf16>, vector<64x64xbf16>, vector<4x64xf32> -> vector<4x64xf32>
    %97 = arith.addf %91, %96 : vector<4x64xf32>
    %98 = vector.extract_strided_slice %84 {offsets = [8, 0], sizes = [4, 64], strides = [1, 1]} : vector<36x64xf32> to vector<4x64xf32>
    %99 = arith.truncf %98 : vector<4x64xf32> to vector<4x64xbf16>
    %c2 = arith.constant 2 : index
    %c0_36 = arith.constant 0 : index
    %c0_37 = arith.constant 0 : index
    %100 = vector.load %arg3[%c2, %c0_36, %c0_37] : memref<9x64x64xbf16, #tpu.memory_space<vmem>>, vector<1x64x64xbf16>
    %101 = vector.shape_cast %100 : vector<1x64x64xbf16> to vector<64x64xbf16>
    %cst_38 = arith.constant dense<0.000000e+00> : vector<4x64xf32>
    %102 = tpu.matmul %99, %101, %cst_38 {dimension_numbers = #tpu.dot_dimension_numbers<[1], [0], [0], [1], [0, 0, 1, 1], [], []>} : vector<4x64xbf16>, vector<64x64xbf16>, vector<4x64xf32> -> vector<4x64xf32>
    %103 = arith.addf %97, %102 : vector<4x64xf32>
    %104 = vector.extract_strided_slice %84 {offsets = [12, 0], sizes = [4, 64], strides = [1, 1]} : vector<36x64xf32> to vector<4x64xf32>
    %105 = arith.truncf %104 : vector<4x64xf32> to vector<4x64xbf16>
    %c3 = arith.constant 3 : index
    %c0_39 = arith.constant 0 : index
    %c0_40 = arith.constant 0 : index
    %106 = vector.load %arg3[%c3, %c0_39, %c0_40] : memref<9x64x64xbf16, #tpu.memory_space<vmem>>, vector<1x64x64xbf16>
    %107 = vector.shape_cast %106 : vector<1x64x64xbf16> to vector<64x64xbf16>
    %cst_41 = arith.constant dense<0.000000e+00> : vector<4x64xf32>
    %108 = tpu.matmul %105, %107, %cst_41 {dimension_numbers = #tpu.dot_dimension_numbers<[1], [0], [0], [1], [0, 0, 1, 1], [], []>} : vector<4x64xbf16>, vector<64x64xbf16>, vector<4x64xf32> -> vector<4x64xf32>
    %109 = arith.addf %103, %108 : vector<4x64xf32>
    %110 = vector.extract_strided_slice %84 {offsets = [16, 0], sizes = [4, 64], strides = [1, 1]} : vector<36x64xf32> to vector<4x64xf32>
    %111 = arith.truncf %110 : vector<4x64xf32> to vector<4x64xbf16>
    %c4 = arith.constant 4 : index
    %c0_42 = arith.constant 0 : index
    %c0_43 = arith.constant 0 : index
    %112 = vector.load %arg3[%c4, %c0_42, %c0_43] : memref<9x64x64xbf16, #tpu.memory_space<vmem>>, vector<1x64x64xbf16>
    %113 = vector.shape_cast %112 : vector<1x64x64xbf16> to vector<64x64xbf16>
    %cst_44 = arith.constant dense<0.000000e+00> : vector<4x64xf32>
    %114 = tpu.matmul %111, %113, %cst_44 {dimension_numbers = #tpu.dot_dimension_numbers<[1], [0], [0], [1], [0, 0, 1, 1], [], []>} : vector<4x64xbf16>, vector<64x64xbf16>, vector<4x64xf32> -> vector<4x64xf32>
    %115 = arith.addf %109, %114 : vector<4x64xf32>
    %116 = vector.extract_strided_slice %84 {offsets = [20, 0], sizes = [4, 64], strides = [1, 1]} : vector<36x64xf32> to vector<4x64xf32>
    %117 = arith.truncf %116 : vector<4x64xf32> to vector<4x64xbf16>
    %c5 = arith.constant 5 : index
    %c0_45 = arith.constant 0 : index
    %c0_46 = arith.constant 0 : index
    %118 = vector.load %arg3[%c5, %c0_45, %c0_46] : memref<9x64x64xbf16, #tpu.memory_space<vmem>>, vector<1x64x64xbf16>
    %119 = vector.shape_cast %118 : vector<1x64x64xbf16> to vector<64x64xbf16>
    %cst_47 = arith.constant dense<0.000000e+00> : vector<4x64xf32>
    %120 = tpu.matmul %117, %119, %cst_47 {dimension_numbers = #tpu.dot_dimension_numbers<[1], [0], [0], [1], [0, 0, 1, 1], [], []>} : vector<4x64xbf16>, vector<64x64xbf16>, vector<4x64xf32> -> vector<4x64xf32>
    %121 = arith.addf %115, %120 : vector<4x64xf32>
    %122 = vector.extract_strided_slice %84 {offsets = [24, 0], sizes = [4, 64], strides = [1, 1]} : vector<36x64xf32> to vector<4x64xf32>
    %123 = arith.truncf %122 : vector<4x64xf32> to vector<4x64xbf16>
    %c6 = arith.constant 6 : index
    %c0_48 = arith.constant 0 : index
    %c0_49 = arith.constant 0 : index
    %124 = vector.load %arg3[%c6, %c0_48, %c0_49] : memref<9x64x64xbf16, #tpu.memory_space<vmem>>, vector<1x64x64xbf16>
    %125 = vector.shape_cast %124 : vector<1x64x64xbf16> to vector<64x64xbf16>
    %cst_50 = arith.constant dense<0.000000e+00> : vector<4x64xf32>
    %126 = tpu.matmul %123, %125, %cst_50 {dimension_numbers = #tpu.dot_dimension_numbers<[1], [0], [0], [1], [0, 0, 1, 1], [], []>} : vector<4x64xbf16>, vector<64x64xbf16>, vector<4x64xf32> -> vector<4x64xf32>
    %127 = arith.addf %121, %126 : vector<4x64xf32>
    %128 = vector.extract_strided_slice %84 {offsets = [28, 0], sizes = [4, 64], strides = [1, 1]} : vector<36x64xf32> to vector<4x64xf32>
    %129 = arith.truncf %128 : vector<4x64xf32> to vector<4x64xbf16>
    %c7 = arith.constant 7 : index
    %c0_51 = arith.constant 0 : index
    %c0_52 = arith.constant 0 : index
    %130 = vector.load %arg3[%c7, %c0_51, %c0_52] : memref<9x64x64xbf16, #tpu.memory_space<vmem>>, vector<1x64x64xbf16>
    %131 = vector.shape_cast %130 : vector<1x64x64xbf16> to vector<64x64xbf16>
    %cst_53 = arith.constant dense<0.000000e+00> : vector<4x64xf32>
    %132 = tpu.matmul %129, %131, %cst_53 {dimension_numbers = #tpu.dot_dimension_numbers<[1], [0], [0], [1], [0, 0, 1, 1], [], []>} : vector<4x64xbf16>, vector<64x64xbf16>, vector<4x64xf32> -> vector<4x64xf32>
    %133 = arith.addf %127, %132 : vector<4x64xf32>
    %134 = vector.extract_strided_slice %84 {offsets = [32, 0], sizes = [4, 64], strides = [1, 1]} : vector<36x64xf32> to vector<4x64xf32>
    %135 = arith.truncf %134 : vector<4x64xf32> to vector<4x64xbf16>
    %c8 = arith.constant 8 : index
    %c0_54 = arith.constant 0 : index
    %c0_55 = arith.constant 0 : index
    %136 = vector.load %arg3[%c8, %c0_54, %c0_55] : memref<9x64x64xbf16, #tpu.memory_space<vmem>>, vector<1x64x64xbf16>
    %137 = vector.shape_cast %136 : vector<1x64x64xbf16> to vector<64x64xbf16>
    %cst_56 = arith.constant dense<0.000000e+00> : vector<4x64xf32>
    %138 = tpu.matmul %135, %137, %cst_56 {dimension_numbers = #tpu.dot_dimension_numbers<[1], [0], [0], [1], [0, 0, 1, 1], [], []>} : vector<4x64xbf16>, vector<64x64xbf16>, vector<4x64xf32> -> vector<4x64xf32>
    %139 = arith.addf %133, %138 : vector<4x64xf32>
    %140 = vector.broadcast %12 : vector<4x1xf32> to vector<4x64xf32>
    %141 = arith.addf %139, %140 : vector<4x64xf32>
    %142 = arith.addf %17, %141 : vector<4x64xf32>
    %cst_57 = arith.constant 0.707106769 : f32
    %143 = vector.broadcast %cst_57 : f32 to vector<4x64xf32>
    %144 = arith.mulf %142, %143 : vector<4x64xf32>
    %c0_58 = arith.constant 0 : index
    %c0_59 = arith.constant 0 : index
    %145 = vector.load %arg19[%c0_58, %c0_59] : memref<76x4xbf16, #tpu.memory_space<vmem>>, vector<76x4xbf16>
    %c0_60 = arith.constant 0 : index
    %c0_61 = arith.constant 0 : index
    %146 = vector.load %arg25[%c0_60, %c0_61] : memref<24x1xf32, #tpu.memory_space<vmem>>, vector<24x1xf32>
    %147 = vector.extract_strided_slice %145 {offsets = [0, 0], sizes = [36, 4], strides = [1, 1]} : vector<76x4xbf16> to vector<36x4xbf16>
    %148 = vector.extract_strided_slice %145 {offsets = [36, 0], sizes = [36, 4], strides = [1, 1]} : vector<76x4xbf16> to vector<36x4xbf16>
    %149 = vector.extract_strided_slice %145 {offsets = [72, 0], sizes = [4, 4], strides = [1, 1]} : vector<76x4xbf16> to vector<4x4xbf16>
    %150 = vector.extract_strided_slice %146 {offsets = [0, 0], sizes = [4, 1], strides = [1, 1]} : vector<24x1xf32> to vector<4x1xf32>
    %151 = vector.extract_strided_slice %146 {offsets = [4, 0], sizes = [4, 1], strides = [1, 1]} : vector<24x1xf32> to vector<4x1xf32>
    %152 = vector.extract_strided_slice %146 {offsets = [8, 0], sizes = [4, 1], strides = [1, 1]} : vector<24x1xf32> to vector<4x1xf32>
    %153 = vector.extract_strided_slice %146 {offsets = [12, 0], sizes = [4, 1], strides = [1, 1]} : vector<24x1xf32> to vector<4x1xf32>
    %154 = vector.extract_strided_slice %146 {offsets = [16, 0], sizes = [4, 1], strides = [1, 1]} : vector<24x1xf32> to vector<4x1xf32>
    %155 = vector.extract_strided_slice %146 {offsets = [20, 0], sizes = [4, 1], strides = [1, 1]} : vector<24x1xf32> to vector<4x1xf32>
    %156 = arith.truncf %144 : vector<4x64xf32> to vector<4x64xbf16>
    %cst_62 = arith.constant dense<0.000000e+00> : vector<4x64xf32>
    %157 = tpu.matmul %149, %156, %cst_62 {dimension_numbers = #tpu.dot_dimension_numbers<[1], [0], [0], [1], [0, 0, 1, 1], [], []>} : vector<4x4xbf16>, vector<4x64xbf16>, vector<4x64xf32> -> vector<4x64xf32>
    %158 = arith.truncf %157 : vector<4x64xf32> to vector<4x64xbf16>
    %c0_63 = arith.constant 0 : index
    %c0_64 = arith.constant 0 : index
    %159 = vector.load %arg7[%c0_63, %c0_64] : memref<64x16xbf16, #tpu.memory_space<vmem>>, vector<64x16xbf16>
    %cst_65 = arith.constant dense<0.000000e+00> : vector<4x16xf32>
    %160 = tpu.matmul %158, %159, %cst_65 {dimension_numbers = #tpu.dot_dimension_numbers<[1], [0], [0], [1], [0, 0, 1, 1], [], []>} : vector<4x64xbf16>, vector<64x16xbf16>, vector<4x16xf32> -> vector<4x16xf32>
    %cst_66 = arith.constant dense<0.000000e+00> : vector<4xf32>
    %161 = vector.multi_reduction <add>, %144, %cst_66 [1] : vector<4x64xf32> to vector<4xf32>
    %162 = vector.shape_cast %161 : vector<4xf32> to vector<4x1xf32>
    %cst_67 = arith.constant 6.400000e+01 : f32
    %163 = vector.broadcast %cst_67 : f32 to vector<4x1xf32>
    %164 = arith.divf %162, %163 : vector<4x1xf32>
    %165 = vector.broadcast %164 : vector<4x1xf32> to vector<4x64xf32>
    %166 = arith.subf %144, %165 : vector<4x64xf32>
    %167 = arith.mulf %166, %166 : vector<4x64xf32>
    %cst_68 = arith.constant dense<0.000000e+00> : vector<4xf32>
    %168 = vector.multi_reduction <add>, %167, %cst_68 [1] : vector<4x64xf32> to vector<4xf32>
    %169 = vector.shape_cast %168 : vector<4xf32> to vector<4x1xf32>
    %cst_69 = arith.constant 0.0158730168 : f32
    %170 = vector.broadcast %cst_69 : f32 to vector<4x1xf32>
    %171 = arith.mulf %169, %170 : vector<4x1xf32>
    %172 = math.sqrt %171 : vector<4x1xf32>
    %cst_70 = arith.constant 9.99999974E-6 : f32
    %173 = vector.broadcast %cst_70 : f32 to vector<4x1xf32>
    %174 = arith.addf %172, %173 : vector<4x1xf32>
    %175 = arith.divf %150, %174 : vector<4x1xf32>
    %176 = vector.broadcast %175 : vector<4x1xf32> to vector<4x64xf32>
    %177 = arith.mulf %166, %176 : vector<4x64xf32>
    %178 = vector.broadcast %151 : vector<4x1xf32> to vector<4x64xf32>
    %179 = arith.addf %177, %178 : vector<4x64xf32>
    %cst_71 = arith.constant 0.000000e+00 : f32
    %180 = vector.broadcast %cst_71 : f32 to vector<4x64xf32>
    %181 = arith.cmpf ogt, %179, %180 : vector<4x64xf32>
    %cst_72 = arith.constant 2.000000e-01 : f32
    %182 = vector.broadcast %cst_72 : f32 to vector<4x64xf32>
    %183 = arith.mulf %182, %179 : vector<4x64xf32>
    %184 = arith.select %181, %179, %183 : vector<4x64xi1>, vector<4x64xf32>
    %185 = arith.truncf %184 : vector<4x64xf32> to vector<4x64xbf16>
    %cst_73 = arith.constant dense<0.000000e+00> : vector<36x64xf32>
    %186 = tpu.matmul %147, %185, %cst_73 {dimension_numbers = #tpu.dot_dimension_numbers<[1], [0], [0], [1], [0, 0, 1, 1], [], []>} : vector<36x4xbf16>, vector<4x64xbf16>, vector<36x64xf32> -> vector<36x64xf32>
    %cst_74 = arith.constant 0.000000e+00 : f32
    %187 = vector.broadcast %cst_74 : f32 to vector<4x16xf32>
    %188 = vector.extract_strided_slice %186 {offsets = [0, 0], sizes = [4, 64], strides = [1, 1]} : vector<36x64xf32> to vector<4x64xf32>
    %189 = arith.truncf %188 : vector<4x64xf32> to vector<4x64xbf16>
    %c0_75 = arith.constant 0 : index
    %c0_76 = arith.constant 0 : index
    %c0_77 = arith.constant 0 : index
    %190 = vector.load %arg5[%c0_75, %c0_76, %c0_77] : memref<9x64x16xbf16, #tpu.memory_space<vmem>>, vector<1x64x16xbf16>
    %191 = vector.shape_cast %190 : vector<1x64x16xbf16> to vector<64x16xbf16>
    %cst_78 = arith.constant dense<0.000000e+00> : vector<4x16xf32>
    %192 = tpu.matmul %189, %191, %cst_78 {dimension_numbers = #tpu.dot_dimension_numbers<[1], [0], [0], [1], [0, 0, 1, 1], [], []>} : vector<4x64xbf16>, vector<64x16xbf16>, vector<4x16xf32> -> vector<4x16xf32>
    %193 = arith.addf %187, %192 : vector<4x16xf32>
    %194 = vector.extract_strided_slice %186 {offsets = [4, 0], sizes = [4, 64], strides = [1, 1]} : vector<36x64xf32> to vector<4x64xf32>
    %195 = arith.truncf %194 : vector<4x64xf32> to vector<4x64xbf16>
    %c1_79 = arith.constant 1 : index
    %c0_80 = arith.constant 0 : index
    %c0_81 = arith.constant 0 : index
    %196 = vector.load %arg5[%c1_79, %c0_80, %c0_81] : memref<9x64x16xbf16, #tpu.memory_space<vmem>>, vector<1x64x16xbf16>
    %197 = vector.shape_cast %196 : vector<1x64x16xbf16> to vector<64x16xbf16>
    %cst_82 = arith.constant dense<0.000000e+00> : vector<4x16xf32>
    %198 = tpu.matmul %195, %197, %cst_82 {dimension_numbers = #tpu.dot_dimension_numbers<[1], [0], [0], [1], [0, 0, 1, 1], [], []>} : vector<4x64xbf16>, vector<64x16xbf16>, vector<4x16xf32> -> vector<4x16xf32>
    %199 = arith.addf %193, %198 : vector<4x16xf32>
    %200 = vector.extract_strided_slice %186 {offsets = [8, 0], sizes = [4, 64], strides = [1, 1]} : vector<36x64xf32> to vector<4x64xf32>
    %201 = arith.truncf %200 : vector<4x64xf32> to vector<4x64xbf16>
    %c2_83 = arith.constant 2 : index
    %c0_84 = arith.constant 0 : index
    %c0_85 = arith.constant 0 : index
    %202 = vector.load %arg5[%c2_83, %c0_84, %c0_85] : memref<9x64x16xbf16, #tpu.memory_space<vmem>>, vector<1x64x16xbf16>
    %203 = vector.shape_cast %202 : vector<1x64x16xbf16> to vector<64x16xbf16>
    %cst_86 = arith.constant dense<0.000000e+00> : vector<4x16xf32>
    %204 = tpu.matmul %201, %203, %cst_86 {dimension_numbers = #tpu.dot_dimension_numbers<[1], [0], [0], [1], [0, 0, 1, 1], [], []>} : vector<4x64xbf16>, vector<64x16xbf16>, vector<4x16xf32> -> vector<4x16xf32>
    %205 = arith.addf %199, %204 : vector<4x16xf32>
    %206 = vector.extract_strided_slice %186 {offsets = [12, 0], sizes = [4, 64], strides = [1, 1]} : vector<36x64xf32> to vector<4x64xf32>
    %207 = arith.truncf %206 : vector<4x64xf32> to vector<4x64xbf16>
    %c3_87 = arith.constant 3 : index
    %c0_88 = arith.constant 0 : index
    %c0_89 = arith.constant 0 : index
    %208 = vector.load %arg5[%c3_87, %c0_88, %c0_89] : memref<9x64x16xbf16, #tpu.memory_space<vmem>>, vector<1x64x16xbf16>
    %209 = vector.shape_cast %208 : vector<1x64x16xbf16> to vector<64x16xbf16>
    %cst_90 = arith.constant dense<0.000000e+00> : vector<4x16xf32>
    %210 = tpu.matmul %207, %209, %cst_90 {dimension_numbers = #tpu.dot_dimension_numbers<[1], [0], [0], [1], [0, 0, 1, 1], [], []>} : vector<4x64xbf16>, vector<64x16xbf16>, vector<4x16xf32> -> vector<4x16xf32>
    %211 = arith.addf %205, %210 : vector<4x16xf32>
    %212 = vector.extract_strided_slice %186 {offsets = [16, 0], sizes = [4, 64], strides = [1, 1]} : vector<36x64xf32> to vector<4x64xf32>
    %213 = arith.truncf %212 : vector<4x64xf32> to vector<4x64xbf16>
    %c4_91 = arith.constant 4 : index
    %c0_92 = arith.constant 0 : index
    %c0_93 = arith.constant 0 : index
    %214 = vector.load %arg5[%c4_91, %c0_92, %c0_93] : memref<9x64x16xbf16, #tpu.memory_space<vmem>>, vector<1x64x16xbf16>
    %215 = vector.shape_cast %214 : vector<1x64x16xbf16> to vector<64x16xbf16>
    %cst_94 = arith.constant dense<0.000000e+00> : vector<4x16xf32>
    %216 = tpu.matmul %213, %215, %cst_94 {dimension_numbers = #tpu.dot_dimension_numbers<[1], [0], [0], [1], [0, 0, 1, 1], [], []>} : vector<4x64xbf16>, vector<64x16xbf16>, vector<4x16xf32> -> vector<4x16xf32>
    %217 = arith.addf %211, %216 : vector<4x16xf32>
    %218 = vector.extract_strided_slice %186 {offsets = [20, 0], sizes = [4, 64], strides = [1, 1]} : vector<36x64xf32> to vector<4x64xf32>
    %219 = arith.truncf %218 : vector<4x64xf32> to vector<4x64xbf16>
    %c5_95 = arith.constant 5 : index
    %c0_96 = arith.constant 0 : index
    %c0_97 = arith.constant 0 : index
    %220 = vector.load %arg5[%c5_95, %c0_96, %c0_97] : memref<9x64x16xbf16, #tpu.memory_space<vmem>>, vector<1x64x16xbf16>
    %221 = vector.shape_cast %220 : vector<1x64x16xbf16> to vector<64x16xbf16>
    %cst_98 = arith.constant dense<0.000000e+00> : vector<4x16xf32>
    %222 = tpu.matmul %219, %221, %cst_98 {dimension_numbers = #tpu.dot_dimension_numbers<[1], [0], [0], [1], [0, 0, 1, 1], [], []>} : vector<4x64xbf16>, vector<64x16xbf16>, vector<4x16xf32> -> vector<4x16xf32>
    %223 = arith.addf %217, %222 : vector<4x16xf32>
    %224 = vector.extract_strided_slice %186 {offsets = [24, 0], sizes = [4, 64], strides = [1, 1]} : vector<36x64xf32> to vector<4x64xf32>
    %225 = arith.truncf %224 : vector<4x64xf32> to vector<4x64xbf16>
    %c6_99 = arith.constant 6 : index
    %c0_100 = arith.constant 0 : index
    %c0_101 = arith.constant 0 : index
    %226 = vector.load %arg5[%c6_99, %c0_100, %c0_101] : memref<9x64x16xbf16, #tpu.memory_space<vmem>>, vector<1x64x16xbf16>
    %227 = vector.shape_cast %226 : vector<1x64x16xbf16> to vector<64x16xbf16>
    %cst_102 = arith.constant dense<0.000000e+00> : vector<4x16xf32>
    %228 = tpu.matmul %225, %227, %cst_102 {dimension_numbers = #tpu.dot_dimension_numbers<[1], [0], [0], [1], [0, 0, 1, 1], [], []>} : vector<4x64xbf16>, vector<64x16xbf16>, vector<4x16xf32> -> vector<4x16xf32>
    %229 = arith.addf %223, %228 : vector<4x16xf32>
    %230 = vector.extract_strided_slice %186 {offsets = [28, 0], sizes = [4, 64], strides = [1, 1]} : vector<36x64xf32> to vector<4x64xf32>
    %231 = arith.truncf %230 : vector<4x64xf32> to vector<4x64xbf16>
    %c7_103 = arith.constant 7 : index
    %c0_104 = arith.constant 0 : index
    %c0_105 = arith.constant 0 : index
    %232 = vector.load %arg5[%c7_103, %c0_104, %c0_105] : memref<9x64x16xbf16, #tpu.memory_space<vmem>>, vector<1x64x16xbf16>
    %233 = vector.shape_cast %232 : vector<1x64x16xbf16> to vector<64x16xbf16>
    %cst_106 = arith.constant dense<0.000000e+00> : vector<4x16xf32>
    %234 = tpu.matmul %231, %233, %cst_106 {dimension_numbers = #tpu.dot_dimension_numbers<[1], [0], [0], [1], [0, 0, 1, 1], [], []>} : vector<4x64xbf16>, vector<64x16xbf16>, vector<4x16xf32> -> vector<4x16xf32>
    %235 = arith.addf %229, %234 : vector<4x16xf32>
    %236 = vector.extract_strided_slice %186 {offsets = [32, 0], sizes = [4, 64], strides = [1, 1]} : vector<36x64xf32> to vector<4x64xf32>
    %237 = arith.truncf %236 : vector<4x64xf32> to vector<4x64xbf16>
    %c8_107 = arith.constant 8 : index
    %c0_108 = arith.constant 0 : index
    %c0_109 = arith.constant 0 : index
    %238 = vector.load %arg5[%c8_107, %c0_108, %c0_109] : memref<9x64x16xbf16, #tpu.memory_space<vmem>>, vector<1x64x16xbf16>
    %239 = vector.shape_cast %238 : vector<1x64x16xbf16> to vector<64x16xbf16>
    %cst_110 = arith.constant dense<0.000000e+00> : vector<4x16xf32>
    %240 = tpu.matmul %237, %239, %cst_110 {dimension_numbers = #tpu.dot_dimension_numbers<[1], [0], [0], [1], [0, 0, 1, 1], [], []>} : vector<4x64xbf16>, vector<64x16xbf16>, vector<4x16xf32> -> vector<4x16xf32>
    %241 = arith.addf %235, %240 : vector<4x16xf32>
    %242 = vector.broadcast %152 : vector<4x1xf32> to vector<4x16xf32>
    %243 = arith.addf %241, %242 : vector<4x16xf32>
    %cst_111 = arith.constant dense<0.000000e+00> : vector<4xf32>
    %244 = vector.multi_reduction <add>, %243, %cst_111 [1] : vector<4x16xf32> to vector<4xf32>
    %245 = vector.shape_cast %244 : vector<4xf32> to vector<4x1xf32>
    %cst_112 = arith.constant 1.600000e+01 : f32
    %246 = vector.broadcast %cst_112 : f32 to vector<4x1xf32>
    %247 = arith.divf %245, %246 : vector<4x1xf32>
    %248 = vector.broadcast %247 : vector<4x1xf32> to vector<4x16xf32>
    %249 = arith.subf %243, %248 : vector<4x16xf32>
    %250 = arith.mulf %249, %249 : vector<4x16xf32>
    %cst_113 = arith.constant dense<0.000000e+00> : vector<4xf32>
    %251 = vector.multi_reduction <add>, %250, %cst_113 [1] : vector<4x16xf32> to vector<4xf32>
    %252 = vector.shape_cast %251 : vector<4xf32> to vector<4x1xf32>
    %cst_114 = arith.constant 0.0666666701 : f32
    %253 = vector.broadcast %cst_114 : f32 to vector<4x1xf32>
    %254 = arith.mulf %252, %253 : vector<4x1xf32>
    %255 = math.sqrt %254 : vector<4x1xf32>
    %cst_115 = arith.constant 9.99999974E-6 : f32
    %256 = vector.broadcast %cst_115 : f32 to vector<4x1xf32>
    %257 = arith.addf %255, %256 : vector<4x1xf32>
    %258 = arith.divf %153, %257 : vector<4x1xf32>
    %259 = vector.broadcast %258 : vector<4x1xf32> to vector<4x16xf32>
    %260 = arith.mulf %249, %259 : vector<4x16xf32>
    %261 = vector.broadcast %154 : vector<4x1xf32> to vector<4x16xf32>
    %262 = arith.addf %260, %261 : vector<4x16xf32>
    %cst_116 = arith.constant 0.000000e+00 : f32
    %263 = vector.broadcast %cst_116 : f32 to vector<4x16xf32>
    %264 = arith.cmpf ogt, %262, %263 : vector<4x16xf32>
    %cst_117 = arith.constant 2.000000e-01 : f32
    %265 = vector.broadcast %cst_117 : f32 to vector<4x16xf32>
    %266 = arith.mulf %265, %262 : vector<4x16xf32>
    %267 = arith.select %264, %262, %266 : vector<4x16xi1>, vector<4x16xf32>
    %268 = arith.truncf %267 : vector<4x16xf32> to vector<4x16xbf16>
    %cst_118 = arith.constant dense<0.000000e+00> : vector<36x16xf32>
    %269 = tpu.matmul %148, %268, %cst_118 {dimension_numbers = #tpu.dot_dimension_numbers<[1], [0], [0], [1], [0, 0, 1, 1], [], []>} : vector<36x4xbf16>, vector<4x16xbf16>, vector<36x16xf32> -> vector<36x16xf32>
    %cst_119 = arith.constant 0.000000e+00 : f32
    %270 = vector.broadcast %cst_119 : f32 to vector<4x16xf32>
    %271 = vector.extract_strided_slice %269 {offsets = [0, 0], sizes = [4, 16], strides = [1, 1]} : vector<36x16xf32> to vector<4x16xf32>
    %272 = arith.truncf %271 : vector<4x16xf32> to vector<4x16xbf16>
    %c0_120 = arith.constant 0 : index
    %c0_121 = arith.constant 0 : index
    %c0_122 = arith.constant 0 : index
    %273 = vector.load %arg6[%c0_120, %c0_121, %c0_122] : memref<9x16x16xbf16, #tpu.memory_space<vmem>>, vector<1x16x16xbf16>
    %274 = vector.shape_cast %273 : vector<1x16x16xbf16> to vector<16x16xbf16>
    %cst_123 = arith.constant dense<0.000000e+00> : vector<4x16xf32>
    %275 = tpu.matmul %272, %274, %cst_123 {dimension_numbers = #tpu.dot_dimension_numbers<[1], [0], [0], [1], [0, 0, 1, 1], [], []>} : vector<4x16xbf16>, vector<16x16xbf16>, vector<4x16xf32> -> vector<4x16xf32>
    %276 = arith.addf %270, %275 : vector<4x16xf32>
    %277 = vector.extract_strided_slice %269 {offsets = [4, 0], sizes = [4, 16], strides = [1, 1]} : vector<36x16xf32> to vector<4x16xf32>
    %278 = arith.truncf %277 : vector<4x16xf32> to vector<4x16xbf16>
    %c1_124 = arith.constant 1 : index
    %c0_125 = arith.constant 0 : index
    %c0_126 = arith.constant 0 : index
    %279 = vector.load %arg6[%c1_124, %c0_125, %c0_126] : memref<9x16x16xbf16, #tpu.memory_space<vmem>>, vector<1x16x16xbf16>
    %280 = vector.shape_cast %279 : vector<1x16x16xbf16> to vector<16x16xbf16>
    %cst_127 = arith.constant dense<0.000000e+00> : vector<4x16xf32>
    %281 = tpu.matmul %278, %280, %cst_127 {dimension_numbers = #tpu.dot_dimension_numbers<[1], [0], [0], [1], [0, 0, 1, 1], [], []>} : vector<4x16xbf16>, vector<16x16xbf16>, vector<4x16xf32> -> vector<4x16xf32>
    %282 = arith.addf %276, %281 : vector<4x16xf32>
    %283 = vector.extract_strided_slice %269 {offsets = [8, 0], sizes = [4, 16], strides = [1, 1]} : vector<36x16xf32> to vector<4x16xf32>
    %284 = arith.truncf %283 : vector<4x16xf32> to vector<4x16xbf16>
    %c2_128 = arith.constant 2 : index
    %c0_129 = arith.constant 0 : index
    %c0_130 = arith.constant 0 : index
    %285 = vector.load %arg6[%c2_128, %c0_129, %c0_130] : memref<9x16x16xbf16, #tpu.memory_space<vmem>>, vector<1x16x16xbf16>
    %286 = vector.shape_cast %285 : vector<1x16x16xbf16> to vector<16x16xbf16>
    %cst_131 = arith.constant dense<0.000000e+00> : vector<4x16xf32>
    %287 = tpu.matmul %284, %286, %cst_131 {dimension_numbers = #tpu.dot_dimension_numbers<[1], [0], [0], [1], [0, 0, 1, 1], [], []>} : vector<4x16xbf16>, vector<16x16xbf16>, vector<4x16xf32> -> vector<4x16xf32>
    %288 = arith.addf %282, %287 : vector<4x16xf32>
    %289 = vector.extract_strided_slice %269 {offsets = [12, 0], sizes = [4, 16], strides = [1, 1]} : vector<36x16xf32> to vector<4x16xf32>
    %290 = arith.truncf %289 : vector<4x16xf32> to vector<4x16xbf16>
    %c3_132 = arith.constant 3 : index
    %c0_133 = arith.constant 0 : index
    %c0_134 = arith.constant 0 : index
    %291 = vector.load %arg6[%c3_132, %c0_133, %c0_134] : memref<9x16x16xbf16, #tpu.memory_space<vmem>>, vector<1x16x16xbf16>
    %292 = vector.shape_cast %291 : vector<1x16x16xbf16> to vector<16x16xbf16>
    %cst_135 = arith.constant dense<0.000000e+00> : vector<4x16xf32>
    %293 = tpu.matmul %290, %292, %cst_135 {dimension_numbers = #tpu.dot_dimension_numbers<[1], [0], [0], [1], [0, 0, 1, 1], [], []>} : vector<4x16xbf16>, vector<16x16xbf16>, vector<4x16xf32> -> vector<4x16xf32>
    %294 = arith.addf %288, %293 : vector<4x16xf32>
    %295 = vector.extract_strided_slice %269 {offsets = [16, 0], sizes = [4, 16], strides = [1, 1]} : vector<36x16xf32> to vector<4x16xf32>
    %296 = arith.truncf %295 : vector<4x16xf32> to vector<4x16xbf16>
    %c4_136 = arith.constant 4 : index
    %c0_137 = arith.constant 0 : index
    %c0_138 = arith.constant 0 : index
    %297 = vector.load %arg6[%c4_136, %c0_137, %c0_138] : memref<9x16x16xbf16, #tpu.memory_space<vmem>>, vector<1x16x16xbf16>
    %298 = vector.shape_cast %297 : vector<1x16x16xbf16> to vector<16x16xbf16>
    %cst_139 = arith.constant dense<0.000000e+00> : vector<4x16xf32>
    %299 = tpu.matmul %296, %298, %cst_139 {dimension_numbers = #tpu.dot_dimension_numbers<[1], [0], [0], [1], [0, 0, 1, 1], [], []>} : vector<4x16xbf16>, vector<16x16xbf16>, vector<4x16xf32> -> vector<4x16xf32>
    %300 = arith.addf %294, %299 : vector<4x16xf32>
    %301 = vector.extract_strided_slice %269 {offsets = [20, 0], sizes = [4, 16], strides = [1, 1]} : vector<36x16xf32> to vector<4x16xf32>
    %302 = arith.truncf %301 : vector<4x16xf32> to vector<4x16xbf16>
    %c5_140 = arith.constant 5 : index
    %c0_141 = arith.constant 0 : index
    %c0_142 = arith.constant 0 : index
    %303 = vector.load %arg6[%c5_140, %c0_141, %c0_142] : memref<9x16x16xbf16, #tpu.memory_space<vmem>>, vector<1x16x16xbf16>
    %304 = vector.shape_cast %303 : vector<1x16x16xbf16> to vector<16x16xbf16>
    %cst_143 = arith.constant dense<0.000000e+00> : vector<4x16xf32>
    %305 = tpu.matmul %302, %304, %cst_143 {dimension_numbers = #tpu.dot_dimension_numbers<[1], [0], [0], [1], [0, 0, 1, 1], [], []>} : vector<4x16xbf16>, vector<16x16xbf16>, vector<4x16xf32> -> vector<4x16xf32>
    %306 = arith.addf %300, %305 : vector<4x16xf32>
    %307 = vector.extract_strided_slice %269 {offsets = [24, 0], sizes = [4, 16], strides = [1, 1]} : vector<36x16xf32> to vector<4x16xf32>
    %308 = arith.truncf %307 : vector<4x16xf32> to vector<4x16xbf16>
    %c6_144 = arith.constant 6 : index
    %c0_145 = arith.constant 0 : index
    %c0_146 = arith.constant 0 : index
    %309 = vector.load %arg6[%c6_144, %c0_145, %c0_146] : memref<9x16x16xbf16, #tpu.memory_space<vmem>>, vector<1x16x16xbf16>
    %310 = vector.shape_cast %309 : vector<1x16x16xbf16> to vector<16x16xbf16>
    %cst_147 = arith.constant dense<0.000000e+00> : vector<4x16xf32>
    %311 = tpu.matmul %308, %310, %cst_147 {dimension_numbers = #tpu.dot_dimension_numbers<[1], [0], [0], [1], [0, 0, 1, 1], [], []>} : vector<4x16xbf16>, vector<16x16xbf16>, vector<4x16xf32> -> vector<4x16xf32>
    %312 = arith.addf %306, %311 : vector<4x16xf32>
    %313 = vector.extract_strided_slice %269 {offsets = [28, 0], sizes = [4, 16], strides = [1, 1]} : vector<36x16xf32> to vector<4x16xf32>
    %314 = arith.truncf %313 : vector<4x16xf32> to vector<4x16xbf16>
    %c7_148 = arith.constant 7 : index
    %c0_149 = arith.constant 0 : index
    %c0_150 = arith.constant 0 : index
    %315 = vector.load %arg6[%c7_148, %c0_149, %c0_150] : memref<9x16x16xbf16, #tpu.memory_space<vmem>>, vector<1x16x16xbf16>
    %316 = vector.shape_cast %315 : vector<1x16x16xbf16> to vector<16x16xbf16>
    %cst_151 = arith.constant dense<0.000000e+00> : vector<4x16xf32>
    %317 = tpu.matmul %314, %316, %cst_151 {dimension_numbers = #tpu.dot_dimension_numbers<[1], [0], [0], [1], [0, 0, 1, 1], [], []>} : vector<4x16xbf16>, vector<16x16xbf16>, vector<4x16xf32> -> vector<4x16xf32>
    %318 = arith.addf %312, %317 : vector<4x16xf32>
    %319 = vector.extract_strided_slice %269 {offsets = [32, 0], sizes = [4, 16], strides = [1, 1]} : vector<36x16xf32> to vector<4x16xf32>
    %320 = arith.truncf %319 : vector<4x16xf32> to vector<4x16xbf16>
    %c8_152 = arith.constant 8 : index
    %c0_153 = arith.constant 0 : index
    %c0_154 = arith.constant 0 : index
    %321 = vector.load %arg6[%c8_152, %c0_153, %c0_154] : memref<9x16x16xbf16, #tpu.memory_space<vmem>>, vector<1x16x16xbf16>
    %322 = vector.shape_cast %321 : vector<1x16x16xbf16> to vector<16x16xbf16>
    %cst_155 = arith.constant dense<0.000000e+00> : vector<4x16xf32>
    %323 = tpu.matmul %320, %322, %cst_155 {dimension_numbers = #tpu.dot_dimension_numbers<[1], [0], [0], [1], [0, 0, 1, 1], [], []>} : vector<4x16xbf16>, vector<16x16xbf16>, vector<4x16xf32> -> vector<4x16xf32>
    %324 = arith.addf %318, %323 : vector<4x16xf32>
    %325 = vector.broadcast %155 : vector<4x1xf32> to vector<4x16xf32>
    %326 = arith.addf %324, %325 : vector<4x16xf32>
    %327 = arith.addf %160, %326 : vector<4x16xf32>
    %cst_156 = arith.constant 0.707106769 : f32
    %328 = vector.broadcast %cst_156 : f32 to vector<4x16xf32>
    %329 = arith.mulf %327, %328 : vector<4x16xf32>
    %c0_157 = arith.constant 0 : index
    %c0_158 = arith.constant 0 : index
    %330 = vector.load %arg20[%c0_157, %c0_158] : memref<76x4xbf16, #tpu.memory_space<vmem>>, vector<76x4xbf16>
    %c0_159 = arith.constant 0 : index
    %c0_160 = arith.constant 0 : index
    %331 = vector.load %arg26[%c0_159, %c0_160] : memref<24x1xf32, #tpu.memory_space<vmem>>, vector<24x1xf32>
    %332 = vector.extract_strided_slice %330 {offsets = [0, 0], sizes = [36, 4], strides = [1, 1]} : vector<76x4xbf16> to vector<36x4xbf16>
    %333 = vector.extract_strided_slice %330 {offsets = [36, 0], sizes = [36, 4], strides = [1, 1]} : vector<76x4xbf16> to vector<36x4xbf16>
    %334 = vector.extract_strided_slice %330 {offsets = [72, 0], sizes = [4, 4], strides = [1, 1]} : vector<76x4xbf16> to vector<4x4xbf16>
    %335 = vector.extract_strided_slice %331 {offsets = [0, 0], sizes = [4, 1], strides = [1, 1]} : vector<24x1xf32> to vector<4x1xf32>
    %336 = vector.extract_strided_slice %331 {offsets = [4, 0], sizes = [4, 1], strides = [1, 1]} : vector<24x1xf32> to vector<4x1xf32>
    %337 = vector.extract_strided_slice %331 {offsets = [8, 0], sizes = [4, 1], strides = [1, 1]} : vector<24x1xf32> to vector<4x1xf32>
    %338 = vector.extract_strided_slice %331 {offsets = [12, 0], sizes = [4, 1], strides = [1, 1]} : vector<24x1xf32> to vector<4x1xf32>
    %339 = vector.extract_strided_slice %331 {offsets = [16, 0], sizes = [4, 1], strides = [1, 1]} : vector<24x1xf32> to vector<4x1xf32>
    %340 = vector.extract_strided_slice %331 {offsets = [20, 0], sizes = [4, 1], strides = [1, 1]} : vector<24x1xf32> to vector<4x1xf32>
    %341 = arith.truncf %329 : vector<4x16xf32> to vector<4x16xbf16>
    %cst_161 = arith.constant dense<0.000000e+00> : vector<4x16xf32>
    %342 = tpu.matmul %334, %341, %cst_161 {dimension_numbers = #tpu.dot_dimension_numbers<[1], [0], [0], [1], [0, 0, 1, 1], [], []>} : vector<4x4xbf16>, vector<4x16xbf16>, vector<4x16xf32> -> vector<4x16xf32>
    %343 = arith.truncf %342 : vector<4x16xf32> to vector<4x16xbf16>
    %c0_162 = arith.constant 0 : index
    %c0_163 = arith.constant 0 : index
    %344 = vector.load %arg10[%c0_162, %c0_163] : memref<16x4xbf16, #tpu.memory_space<vmem>>, vector<16x4xbf16>
    %cst_164 = arith.constant dense<0.000000e+00> : vector<4x4xf32>
    %345 = tpu.matmul %343, %344, %cst_164 {dimension_numbers = #tpu.dot_dimension_numbers<[1], [0], [0], [1], [0, 0, 1, 1], [], []>} : vector<4x16xbf16>, vector<16x4xbf16>, vector<4x4xf32> -> vector<4x4xf32>
    %cst_165 = arith.constant dense<0.000000e+00> : vector<4xf32>
    %346 = vector.multi_reduction <add>, %329, %cst_165 [1] : vector<4x16xf32> to vector<4xf32>
    %347 = vector.shape_cast %346 : vector<4xf32> to vector<4x1xf32>
    %cst_166 = arith.constant 1.600000e+01 : f32
    %348 = vector.broadcast %cst_166 : f32 to vector<4x1xf32>
    %349 = arith.divf %347, %348 : vector<4x1xf32>
    %350 = vector.broadcast %349 : vector<4x1xf32> to vector<4x16xf32>
    %351 = arith.subf %329, %350 : vector<4x16xf32>
    %352 = arith.mulf %351, %351 : vector<4x16xf32>
    %cst_167 = arith.constant dense<0.000000e+00> : vector<4xf32>
    %353 = vector.multi_reduction <add>, %352, %cst_167 [1] : vector<4x16xf32> to vector<4xf32>
    %354 = vector.shape_cast %353 : vector<4xf32> to vector<4x1xf32>
    %cst_168 = arith.constant 0.0666666701 : f32
    %355 = vector.broadcast %cst_168 : f32 to vector<4x1xf32>
    %356 = arith.mulf %354, %355 : vector<4x1xf32>
    %357 = math.sqrt %356 : vector<4x1xf32>
    %cst_169 = arith.constant 9.99999974E-6 : f32
    %358 = vector.broadcast %cst_169 : f32 to vector<4x1xf32>
    %359 = arith.addf %357, %358 : vector<4x1xf32>
    %360 = arith.divf %335, %359 : vector<4x1xf32>
    %361 = vector.broadcast %360 : vector<4x1xf32> to vector<4x16xf32>
    %362 = arith.mulf %351, %361 : vector<4x16xf32>
    %363 = vector.broadcast %336 : vector<4x1xf32> to vector<4x16xf32>
    %364 = arith.addf %362, %363 : vector<4x16xf32>
    %cst_170 = arith.constant 0.000000e+00 : f32
    %365 = vector.broadcast %cst_170 : f32 to vector<4x16xf32>
    %366 = arith.cmpf ogt, %364, %365 : vector<4x16xf32>
    %cst_171 = arith.constant 2.000000e-01 : f32
    %367 = vector.broadcast %cst_171 : f32 to vector<4x16xf32>
    %368 = arith.mulf %367, %364 : vector<4x16xf32>
    %369 = arith.select %366, %364, %368 : vector<4x16xi1>, vector<4x16xf32>
    %370 = arith.truncf %369 : vector<4x16xf32> to vector<4x16xbf16>
    %cst_172 = arith.constant dense<0.000000e+00> : vector<36x16xf32>
    %371 = tpu.matmul %332, %370, %cst_172 {dimension_numbers = #tpu.dot_dimension_numbers<[1], [0], [0], [1], [0, 0, 1, 1], [], []>} : vector<36x4xbf16>, vector<4x16xbf16>, vector<36x16xf32> -> vector<36x16xf32>
    %cst_173 = arith.constant 0.000000e+00 : f32
    %372 = vector.broadcast %cst_173 : f32 to vector<4x4xf32>
    %373 = vector.extract_strided_slice %371 {offsets = [0, 0], sizes = [4, 16], strides = [1, 1]} : vector<36x16xf32> to vector<4x16xf32>
    %374 = arith.truncf %373 : vector<4x16xf32> to vector<4x16xbf16>
    %c0_174 = arith.constant 0 : index
    %c0_175 = arith.constant 0 : index
    %c0_176 = arith.constant 0 : index
    %375 = vector.load %arg8[%c0_174, %c0_175, %c0_176] : memref<9x16x4xbf16, #tpu.memory_space<vmem>>, vector<1x16x4xbf16>
    %376 = vector.shape_cast %375 : vector<1x16x4xbf16> to vector<16x4xbf16>
    %cst_177 = arith.constant dense<0.000000e+00> : vector<4x4xf32>
    %377 = tpu.matmul %374, %376, %cst_177 {dimension_numbers = #tpu.dot_dimension_numbers<[1], [0], [0], [1], [0, 0, 1, 1], [], []>} : vector<4x16xbf16>, vector<16x4xbf16>, vector<4x4xf32> -> vector<4x4xf32>
    %378 = arith.addf %372, %377 : vector<4x4xf32>
    %379 = vector.extract_strided_slice %371 {offsets = [4, 0], sizes = [4, 16], strides = [1, 1]} : vector<36x16xf32> to vector<4x16xf32>
    %380 = arith.truncf %379 : vector<4x16xf32> to vector<4x16xbf16>
    %c1_178 = arith.constant 1 : index
    %c0_179 = arith.constant 0 : index
    %c0_180 = arith.constant 0 : index
    %381 = vector.load %arg8[%c1_178, %c0_179, %c0_180] : memref<9x16x4xbf16, #tpu.memory_space<vmem>>, vector<1x16x4xbf16>
    %382 = vector.shape_cast %381 : vector<1x16x4xbf16> to vector<16x4xbf16>
    %cst_181 = arith.constant dense<0.000000e+00> : vector<4x4xf32>
    %383 = tpu.matmul %380, %382, %cst_181 {dimension_numbers = #tpu.dot_dimension_numbers<[1], [0], [0], [1], [0, 0, 1, 1], [], []>} : vector<4x16xbf16>, vector<16x4xbf16>, vector<4x4xf32> -> vector<4x4xf32>
    %384 = arith.addf %378, %383 : vector<4x4xf32>
    %385 = vector.extract_strided_slice %371 {offsets = [8, 0], sizes = [4, 16], strides = [1, 1]} : vector<36x16xf32> to vector<4x16xf32>
    %386 = arith.truncf %385 : vector<4x16xf32> to vector<4x16xbf16>
    %c2_182 = arith.constant 2 : index
    %c0_183 = arith.constant 0 : index
    %c0_184 = arith.constant 0 : index
    %387 = vector.load %arg8[%c2_182, %c0_183, %c0_184] : memref<9x16x4xbf16, #tpu.memory_space<vmem>>, vector<1x16x4xbf16>
    %388 = vector.shape_cast %387 : vector<1x16x4xbf16> to vector<16x4xbf16>
    %cst_185 = arith.constant dense<0.000000e+00> : vector<4x4xf32>
    %389 = tpu.matmul %386, %388, %cst_185 {dimension_numbers = #tpu.dot_dimension_numbers<[1], [0], [0], [1], [0, 0, 1, 1], [], []>} : vector<4x16xbf16>, vector<16x4xbf16>, vector<4x4xf32> -> vector<4x4xf32>
    %390 = arith.addf %384, %389 : vector<4x4xf32>
    %391 = vector.extract_strided_slice %371 {offsets = [12, 0], sizes = [4, 16], strides = [1, 1]} : vector<36x16xf32> to vector<4x16xf32>
    %392 = arith.truncf %391 : vector<4x16xf32> to vector<4x16xbf16>
    %c3_186 = arith.constant 3 : index
    %c0_187 = arith.constant 0 : index
    %c0_188 = arith.constant 0 : index
    %393 = vector.load %arg8[%c3_186, %c0_187, %c0_188] : memref<9x16x4xbf16, #tpu.memory_space<vmem>>, vector<1x16x4xbf16>
    %394 = vector.shape_cast %393 : vector<1x16x4xbf16> to vector<16x4xbf16>
    %cst_189 = arith.constant dense<0.000000e+00> : vector<4x4xf32>
    %395 = tpu.matmul %392, %394, %cst_189 {dimension_numbers = #tpu.dot_dimension_numbers<[1], [0], [0], [1], [0, 0, 1, 1], [], []>} : vector<4x16xbf16>, vector<16x4xbf16>, vector<4x4xf32> -> vector<4x4xf32>
    %396 = arith.addf %390, %395 : vector<4x4xf32>
    %397 = vector.extract_strided_slice %371 {offsets = [16, 0], sizes = [4, 16], strides = [1, 1]} : vector<36x16xf32> to vector<4x16xf32>
    %398 = arith.truncf %397 : vector<4x16xf32> to vector<4x16xbf16>
    %c4_190 = arith.constant 4 : index
    %c0_191 = arith.constant 0 : index
    %c0_192 = arith.constant 0 : index
    %399 = vector.load %arg8[%c4_190, %c0_191, %c0_192] : memref<9x16x4xbf16, #tpu.memory_space<vmem>>, vector<1x16x4xbf16>
    %400 = vector.shape_cast %399 : vector<1x16x4xbf16> to vector<16x4xbf16>
    %cst_193 = arith.constant dense<0.000000e+00> : vector<4x4xf32>
    %401 = tpu.matmul %398, %400, %cst_193 {dimension_numbers = #tpu.dot_dimension_numbers<[1], [0], [0], [1], [0, 0, 1, 1], [], []>} : vector<4x16xbf16>, vector<16x4xbf16>, vector<4x4xf32> -> vector<4x4xf32>
    %402 = arith.addf %396, %401 : vector<4x4xf32>
    %403 = vector.extract_strided_slice %371 {offsets = [20, 0], sizes = [4, 16], strides = [1, 1]} : vector<36x16xf32> to vector<4x16xf32>
    %404 = arith.truncf %403 : vector<4x16xf32> to vector<4x16xbf16>
    %c5_194 = arith.constant 5 : index
    %c0_195 = arith.constant 0 : index
    %c0_196 = arith.constant 0 : index
    %405 = vector.load %arg8[%c5_194, %c0_195, %c0_196] : memref<9x16x4xbf16, #tpu.memory_space<vmem>>, vector<1x16x4xbf16>
    %406 = vector.shape_cast %405 : vector<1x16x4xbf16> to vector<16x4xbf16>
    %cst_197 = arith.constant dense<0.000000e+00> : vector<4x4xf32>
    %407 = tpu.matmul %404, %406, %cst_197 {dimension_numbers = #tpu.dot_dimension_numbers<[1], [0], [0], [1], [0, 0, 1, 1], [], []>} : vector<4x16xbf16>, vector<16x4xbf16>, vector<4x4xf32> -> vector<4x4xf32>
    %408 = arith.addf %402, %407 : vector<4x4xf32>
    %409 = vector.extract_strided_slice %371 {offsets = [24, 0], sizes = [4, 16], strides = [1, 1]} : vector<36x16xf32> to vector<4x16xf32>
    %410 = arith.truncf %409 : vector<4x16xf32> to vector<4x16xbf16>
    %c6_198 = arith.constant 6 : index
    %c0_199 = arith.constant 0 : index
    %c0_200 = arith.constant 0 : index
    %411 = vector.load %arg8[%c6_198, %c0_199, %c0_200] : memref<9x16x4xbf16, #tpu.memory_space<vmem>>, vector<1x16x4xbf16>
    %412 = vector.shape_cast %411 : vector<1x16x4xbf16> to vector<16x4xbf16>
    %cst_201 = arith.constant dense<0.000000e+00> : vector<4x4xf32>
    %413 = tpu.matmul %410, %412, %cst_201 {dimension_numbers = #tpu.dot_dimension_numbers<[1], [0], [0], [1], [0, 0, 1, 1], [], []>} : vector<4x16xbf16>, vector<16x4xbf16>, vector<4x4xf32> -> vector<4x4xf32>
    %414 = arith.addf %408, %413 : vector<4x4xf32>
    %415 = vector.extract_strided_slice %371 {offsets = [28, 0], sizes = [4, 16], strides = [1, 1]} : vector<36x16xf32> to vector<4x16xf32>
    %416 = arith.truncf %415 : vector<4x16xf32> to vector<4x16xbf16>
    %c7_202 = arith.constant 7 : index
    %c0_203 = arith.constant 0 : index
    %c0_204 = arith.constant 0 : index
    %417 = vector.load %arg8[%c7_202, %c0_203, %c0_204] : memref<9x16x4xbf16, #tpu.memory_space<vmem>>, vector<1x16x4xbf16>
    %418 = vector.shape_cast %417 : vector<1x16x4xbf16> to vector<16x4xbf16>
    %cst_205 = arith.constant dense<0.000000e+00> : vector<4x4xf32>
    %419 = tpu.matmul %416, %418, %cst_205 {dimension_numbers = #tpu.dot_dimension_numbers<[1], [0], [0], [1], [0, 0, 1, 1], [], []>} : vector<4x16xbf16>, vector<16x4xbf16>, vector<4x4xf32> -> vector<4x4xf32>
    %420 = arith.addf %414, %419 : vector<4x4xf32>
    %421 = vector.extract_strided_slice %371 {offsets = [32, 0], sizes = [4, 16], strides = [1, 1]} : vector<36x16xf32> to vector<4x16xf32>
    %422 = arith.truncf %421 : vector<4x16xf32> to vector<4x16xbf16>
    %c8_206 = arith.constant 8 : index
    %c0_207 = arith.constant 0 : index
    %c0_208 = arith.constant 0 : index
    %423 = vector.load %arg8[%c8_206, %c0_207, %c0_208] : memref<9x16x4xbf16, #tpu.memory_space<vmem>>, vector<1x16x4xbf16>
    %424 = vector.shape_cast %423 : vector<1x16x4xbf16> to vector<16x4xbf16>
    %cst_209 = arith.constant dense<0.000000e+00> : vector<4x4xf32>
    %425 = tpu.matmul %422, %424, %cst_209 {dimension_numbers = #tpu.dot_dimension_numbers<[1], [0], [0], [1], [0, 0, 1, 1], [], []>} : vector<4x16xbf16>, vector<16x4xbf16>, vector<4x4xf32> -> vector<4x4xf32>
    %426 = arith.addf %420, %425 : vector<4x4xf32>
    %427 = vector.broadcast %337 : vector<4x1xf32> to vector<4x4xf32>
    %428 = arith.addf %426, %427 : vector<4x4xf32>
    %cst_210 = arith.constant dense<0.000000e+00> : vector<4xf32>
    %429 = vector.multi_reduction <add>, %428, %cst_210 [1] : vector<4x4xf32> to vector<4xf32>
    %430 = vector.shape_cast %429 : vector<4xf32> to vector<4x1xf32>
    %cst_211 = arith.constant 4.000000e+00 : f32
    %431 = vector.broadcast %cst_211 : f32 to vector<4x1xf32>
    %432 = arith.divf %430, %431 : vector<4x1xf32>
    %433 = vector.broadcast %432 : vector<4x1xf32> to vector<4x4xf32>
    %434 = arith.subf %428, %433 : vector<4x4xf32>
    %435 = arith.mulf %434, %434 : vector<4x4xf32>
    %cst_212 = arith.constant dense<0.000000e+00> : vector<4xf32>
    %436 = vector.multi_reduction <add>, %435, %cst_212 [1] : vector<4x4xf32> to vector<4xf32>
    %437 = vector.shape_cast %436 : vector<4xf32> to vector<4x1xf32>
    %cst_213 = arith.constant 0.333333343 : f32
    %438 = vector.broadcast %cst_213 : f32 to vector<4x1xf32>
    %439 = arith.mulf %437, %438 : vector<4x1xf32>
    %440 = math.sqrt %439 : vector<4x1xf32>
    %cst_214 = arith.constant 9.99999974E-6 : f32
    %441 = vector.broadcast %cst_214 : f32 to vector<4x1xf32>
    %442 = arith.addf %440, %441 : vector<4x1xf32>
    %443 = arith.divf %338, %442 : vector<4x1xf32>
    %444 = vector.broadcast %443 : vector<4x1xf32> to vector<4x4xf32>
    %445 = arith.mulf %434, %444 : vector<4x4xf32>
    %446 = vector.broadcast %339 : vector<4x1xf32> to vector<4x4xf32>
    %447 = arith.addf %445, %446 : vector<4x4xf32>
    %cst_215 = arith.constant 0.000000e+00 : f32
    %448 = vector.broadcast %cst_215 : f32 to vector<4x4xf32>
    %449 = arith.cmpf ogt, %447, %448 : vector<4x4xf32>
    %cst_216 = arith.constant 2.000000e-01 : f32
    %450 = vector.broadcast %cst_216 : f32 to vector<4x4xf32>
    %451 = arith.mulf %450, %447 : vector<4x4xf32>
    %452 = arith.select %449, %447, %451 : vector<4x4xi1>, vector<4x4xf32>
    %453 = arith.truncf %452 : vector<4x4xf32> to vector<4x4xbf16>
    %cst_217 = arith.constant dense<0.000000e+00> : vector<36x4xf32>
    %454 = tpu.matmul %333, %453, %cst_217 {dimension_numbers = #tpu.dot_dimension_numbers<[1], [0], [0], [1], [0, 0, 1, 1], [], []>} : vector<36x4xbf16>, vector<4x4xbf16>, vector<36x4xf32> -> vector<36x4xf32>
    %cst_218 = arith.constant 0.000000e+00 : f32
    %455 = vector.broadcast %cst_218 : f32 to vector<4x4xf32>
    %456 = vector.extract_strided_slice %454 {offsets = [0, 0], sizes = [4, 4], strides = [1, 1]} : vector<36x4xf32> to vector<4x4xf32>
    %457 = arith.truncf %456 : vector<4x4xf32> to vector<4x4xbf16>
    %c0_219 = arith.constant 0 : index
    %c0_220 = arith.constant 0 : index
    %c0_221 = arith.constant 0 : index
    %458 = vector.load %arg9[%c0_219, %c0_220, %c0_221] : memref<9x4x4xbf16, #tpu.memory_space<vmem>>, vector<1x4x4xbf16>
    %459 = vector.shape_cast %458 : vector<1x4x4xbf16> to vector<4x4xbf16>
    %cst_222 = arith.constant dense<0.000000e+00> : vector<4x4xf32>
    %460 = tpu.matmul %457, %459, %cst_222 {dimension_numbers = #tpu.dot_dimension_numbers<[1], [0], [0], [1], [0, 0, 1, 1], [], []>} : vector<4x4xbf16>, vector<4x4xbf16>, vector<4x4xf32> -> vector<4x4xf32>
    %461 = arith.addf %455, %460 : vector<4x4xf32>
    %462 = vector.extract_strided_slice %454 {offsets = [4, 0], sizes = [4, 4], strides = [1, 1]} : vector<36x4xf32> to vector<4x4xf32>
    %463 = arith.truncf %462 : vector<4x4xf32> to vector<4x4xbf16>
    %c1_223 = arith.constant 1 : index
    %c0_224 = arith.constant 0 : index
    %c0_225 = arith.constant 0 : index
    %464 = vector.load %arg9[%c1_223, %c0_224, %c0_225] : memref<9x4x4xbf16, #tpu.memory_space<vmem>>, vector<1x4x4xbf16>
    %465 = vector.shape_cast %464 : vector<1x4x4xbf16> to vector<4x4xbf16>
    %cst_226 = arith.constant dense<0.000000e+00> : vector<4x4xf32>
    %466 = tpu.matmul %463, %465, %cst_226 {dimension_numbers = #tpu.dot_dimension_numbers<[1], [0], [0], [1], [0, 0, 1, 1], [], []>} : vector<4x4xbf16>, vector<4x4xbf16>, vector<4x4xf32> -> vector<4x4xf32>
    %467 = arith.addf %461, %466 : vector<4x4xf32>
    %468 = vector.extract_strided_slice %454 {offsets = [8, 0], sizes = [4, 4], strides = [1, 1]} : vector<36x4xf32> to vector<4x4xf32>
    %469 = arith.truncf %468 : vector<4x4xf32> to vector<4x4xbf16>
    %c2_227 = arith.constant 2 : index
    %c0_228 = arith.constant 0 : index
    %c0_229 = arith.constant 0 : index
    %470 = vector.load %arg9[%c2_227, %c0_228, %c0_229] : memref<9x4x4xbf16, #tpu.memory_space<vmem>>, vector<1x4x4xbf16>
    %471 = vector.shape_cast %470 : vector<1x4x4xbf16> to vector<4x4xbf16>
    %cst_230 = arith.constant dense<0.000000e+00> : vector<4x4xf32>
    %472 = tpu.matmul %469, %471, %cst_230 {dimension_numbers = #tpu.dot_dimension_numbers<[1], [0], [0], [1], [0, 0, 1, 1], [], []>} : vector<4x4xbf16>, vector<4x4xbf16>, vector<4x4xf32> -> vector<4x4xf32>
    %473 = arith.addf %467, %472 : vector<4x4xf32>
    %474 = vector.extract_strided_slice %454 {offsets = [12, 0], sizes = [4, 4], strides = [1, 1]} : vector<36x4xf32> to vector<4x4xf32>
    %475 = arith.truncf %474 : vector<4x4xf32> to vector<4x4xbf16>
    %c3_231 = arith.constant 3 : index
    %c0_232 = arith.constant 0 : index
    %c0_233 = arith.constant 0 : index
    %476 = vector.load %arg9[%c3_231, %c0_232, %c0_233] : memref<9x4x4xbf16, #tpu.memory_space<vmem>>, vector<1x4x4xbf16>
    %477 = vector.shape_cast %476 : vector<1x4x4xbf16> to vector<4x4xbf16>
    %cst_234 = arith.constant dense<0.000000e+00> : vector<4x4xf32>
    %478 = tpu.matmul %475, %477, %cst_234 {dimension_numbers = #tpu.dot_dimension_numbers<[1], [0], [0], [1], [0, 0, 1, 1], [], []>} : vector<4x4xbf16>, vector<4x4xbf16>, vector<4x4xf32> -> vector<4x4xf32>
    %479 = arith.addf %473, %478 : vector<4x4xf32>
    %480 = vector.extract_strided_slice %454 {offsets = [16, 0], sizes = [4, 4], strides = [1, 1]} : vector<36x4xf32> to vector<4x4xf32>
    %481 = arith.truncf %480 : vector<4x4xf32> to vector<4x4xbf16>
    %c4_235 = arith.constant 4 : index
    %c0_236 = arith.constant 0 : index
    %c0_237 = arith.constant 0 : index
    %482 = vector.load %arg9[%c4_235, %c0_236, %c0_237] : memref<9x4x4xbf16, #tpu.memory_space<vmem>>, vector<1x4x4xbf16>
    %483 = vector.shape_cast %482 : vector<1x4x4xbf16> to vector<4x4xbf16>
    %cst_238 = arith.constant dense<0.000000e+00> : vector<4x4xf32>
    %484 = tpu.matmul %481, %483, %cst_238 {dimension_numbers = #tpu.dot_dimension_numbers<[1], [0], [0], [1], [0, 0, 1, 1], [], []>} : vector<4x4xbf16>, vector<4x4xbf16>, vector<4x4xf32> -> vector<4x4xf32>
    %485 = arith.addf %479, %484 : vector<4x4xf32>
    %486 = vector.extract_strided_slice %454 {offsets = [20, 0], sizes = [4, 4], strides = [1, 1]} : vector<36x4xf32> to vector<4x4xf32>
    %487 = arith.truncf %486 : vector<4x4xf32> to vector<4x4xbf16>
    %c5_239 = arith.constant 5 : index
    %c0_240 = arith.constant 0 : index
    %c0_241 = arith.constant 0 : index
    %488 = vector.load %arg9[%c5_239, %c0_240, %c0_241] : memref<9x4x4xbf16, #tpu.memory_space<vmem>>, vector<1x4x4xbf16>
    %489 = vector.shape_cast %488 : vector<1x4x4xbf16> to vector<4x4xbf16>
    %cst_242 = arith.constant dense<0.000000e+00> : vector<4x4xf32>
    %490 = tpu.matmul %487, %489, %cst_242 {dimension_numbers = #tpu.dot_dimension_numbers<[1], [0], [0], [1], [0, 0, 1, 1], [], []>} : vector<4x4xbf16>, vector<4x4xbf16>, vector<4x4xf32> -> vector<4x4xf32>
    %491 = arith.addf %485, %490 : vector<4x4xf32>
    %492 = vector.extract_strided_slice %454 {offsets = [24, 0], sizes = [4, 4], strides = [1, 1]} : vector<36x4xf32> to vector<4x4xf32>
    %493 = arith.truncf %492 : vector<4x4xf32> to vector<4x4xbf16>
    %c6_243 = arith.constant 6 : index
    %c0_244 = arith.constant 0 : index
    %c0_245 = arith.constant 0 : index
    %494 = vector.load %arg9[%c6_243, %c0_244, %c0_245] : memref<9x4x4xbf16, #tpu.memory_space<vmem>>, vector<1x4x4xbf16>
    %495 = vector.shape_cast %494 : vector<1x4x4xbf16> to vector<4x4xbf16>
    %cst_246 = arith.constant dense<0.000000e+00> : vector<4x4xf32>
    %496 = tpu.matmul %493, %495, %cst_246 {dimension_numbers = #tpu.dot_dimension_numbers<[1], [0], [0], [1], [0, 0, 1, 1], [], []>} : vector<4x4xbf16>, vector<4x4xbf16>, vector<4x4xf32> -> vector<4x4xf32>
    %497 = arith.addf %491, %496 : vector<4x4xf32>
    %498 = vector.extract_strided_slice %454 {offsets = [28, 0], sizes = [4, 4], strides = [1, 1]} : vector<36x4xf32> to vector<4x4xf32>
    %499 = arith.truncf %498 : vector<4x4xf32> to vector<4x4xbf16>
    %c7_247 = arith.constant 7 : index
    %c0_248 = arith.constant 0 : index
    %c0_249 = arith.constant 0 : index
    %500 = vector.load %arg9[%c7_247, %c0_248, %c0_249] : memref<9x4x4xbf16, #tpu.memory_space<vmem>>, vector<1x4x4xbf16>
    %501 = vector.shape_cast %500 : vector<1x4x4xbf16> to vector<4x4xbf16>
    %cst_250 = arith.constant dense<0.000000e+00> : vector<4x4xf32>
    %502 = tpu.matmul %499, %501, %cst_250 {dimension_numbers = #tpu.dot_dimension_numbers<[1], [0], [0], [1], [0, 0, 1, 1], [], []>} : vector<4x4xbf16>, vector<4x4xbf16>, vector<4x4xf32> -> vector<4x4xf32>
    %503 = arith.addf %497, %502 : vector<4x4xf32>
    %504 = vector.extract_strided_slice %454 {offsets = [32, 0], sizes = [4, 4], strides = [1, 1]} : vector<36x4xf32> to vector<4x4xf32>
    %505 = arith.truncf %504 : vector<4x4xf32> to vector<4x4xbf16>
    %c8_251 = arith.constant 8 : index
    %c0_252 = arith.constant 0 : index
    %c0_253 = arith.constant 0 : index
    %506 = vector.load %arg9[%c8_251, %c0_252, %c0_253] : memref<9x4x4xbf16, #tpu.memory_space<vmem>>, vector<1x4x4xbf16>
    %507 = vector.shape_cast %506 : vector<1x4x4xbf16> to vector<4x4xbf16>
    %cst_254 = arith.constant dense<0.000000e+00> : vector<4x4xf32>
    %508 = tpu.matmul %505, %507, %cst_254 {dimension_numbers = #tpu.dot_dimension_numbers<[1], [0], [0], [1], [0, 0, 1, 1], [], []>} : vector<4x4xbf16>, vector<4x4xbf16>, vector<4x4xf32> -> vector<4x4xf32>
    %509 = arith.addf %503, %508 : vector<4x4xf32>
    %510 = vector.broadcast %340 : vector<4x1xf32> to vector<4x4xf32>
    %511 = arith.addf %509, %510 : vector<4x4xf32>
    %512 = arith.addf %345, %511 : vector<4x4xf32>
    %cst_255 = arith.constant 0.707106769 : f32
    %513 = vector.broadcast %cst_255 : f32 to vector<4x4xf32>
    %514 = arith.mulf %512, %513 : vector<4x4xf32>
    %c0_256 = arith.constant 0 : index
    %c0_257 = arith.constant 0 : index
    %515 = vector.load %arg21[%c0_256, %c0_257] : memref<76x4xbf16, #tpu.memory_space<vmem>>, vector<76x4xbf16>
    %c0_258 = arith.constant 0 : index
    %c0_259 = arith.constant 0 : index
    %516 = vector.load %arg27[%c0_258, %c0_259] : memref<24x1xf32, #tpu.memory_space<vmem>>, vector<24x1xf32>
    %517 = vector.extract_strided_slice %515 {offsets = [0, 0], sizes = [36, 4], strides = [1, 1]} : vector<76x4xbf16> to vector<36x4xbf16>
    %518 = vector.extract_strided_slice %515 {offsets = [36, 0], sizes = [36, 4], strides = [1, 1]} : vector<76x4xbf16> to vector<36x4xbf16>
    %519 = vector.extract_strided_slice %515 {offsets = [72, 0], sizes = [4, 4], strides = [1, 1]} : vector<76x4xbf16> to vector<4x4xbf16>
    %520 = vector.extract_strided_slice %516 {offsets = [0, 0], sizes = [4, 1], strides = [1, 1]} : vector<24x1xf32> to vector<4x1xf32>
    %521 = vector.extract_strided_slice %516 {offsets = [4, 0], sizes = [4, 1], strides = [1, 1]} : vector<24x1xf32> to vector<4x1xf32>
    %522 = vector.extract_strided_slice %516 {offsets = [8, 0], sizes = [4, 1], strides = [1, 1]} : vector<24x1xf32> to vector<4x1xf32>
    %523 = vector.extract_strided_slice %516 {offsets = [12, 0], sizes = [4, 1], strides = [1, 1]} : vector<24x1xf32> to vector<4x1xf32>
    %524 = vector.extract_strided_slice %516 {offsets = [16, 0], sizes = [4, 1], strides = [1, 1]} : vector<24x1xf32> to vector<4x1xf32>
    %525 = vector.extract_strided_slice %516 {offsets = [20, 0], sizes = [4, 1], strides = [1, 1]} : vector<24x1xf32> to vector<4x1xf32>
    %526 = arith.truncf %514 : vector<4x4xf32> to vector<4x4xbf16>
    %cst_260 = arith.constant dense<0.000000e+00> : vector<4x4xf32>
    %527 = tpu.matmul %519, %526, %cst_260 {dimension_numbers = #tpu.dot_dimension_numbers<[1], [0], [0], [1], [0, 0, 1, 1], [], []>} : vector<4x4xbf16>, vector<4x4xbf16>, vector<4x4xf32> -> vector<4x4xf32>
    %528 = arith.truncf %527 : vector<4x4xf32> to vector<4x4xbf16>
    %c0_261 = arith.constant 0 : index
    %c0_262 = arith.constant 0 : index
    %529 = vector.load %arg12[%c0_261, %c0_262] : memref<4x16xbf16, #tpu.memory_space<vmem>>, vector<4x16xbf16>
    %cst_263 = arith.constant dense<0.000000e+00> : vector<4x16xf32>
    %530 = tpu.matmul %528, %529, %cst_263 {dimension_numbers = #tpu.dot_dimension_numbers<[1], [0], [0], [1], [0, 0, 1, 1], [], []>} : vector<4x4xbf16>, vector<4x16xbf16>, vector<4x16xf32> -> vector<4x16xf32>
    %cst_264 = arith.constant dense<0.000000e+00> : vector<4xf32>
    %531 = vector.multi_reduction <add>, %514, %cst_264 [1] : vector<4x4xf32> to vector<4xf32>
    %532 = vector.shape_cast %531 : vector<4xf32> to vector<4x1xf32>
    %cst_265 = arith.constant 4.000000e+00 : f32
    %533 = vector.broadcast %cst_265 : f32 to vector<4x1xf32>
    %534 = arith.divf %532, %533 : vector<4x1xf32>
    %535 = vector.broadcast %534 : vector<4x1xf32> to vector<4x4xf32>
    %536 = arith.subf %514, %535 : vector<4x4xf32>
    %537 = arith.mulf %536, %536 : vector<4x4xf32>
    %cst_266 = arith.constant dense<0.000000e+00> : vector<4xf32>
    %538 = vector.multi_reduction <add>, %537, %cst_266 [1] : vector<4x4xf32> to vector<4xf32>
    %539 = vector.shape_cast %538 : vector<4xf32> to vector<4x1xf32>
    %cst_267 = arith.constant 0.333333343 : f32
    %540 = vector.broadcast %cst_267 : f32 to vector<4x1xf32>
    %541 = arith.mulf %539, %540 : vector<4x1xf32>
    %542 = math.sqrt %541 : vector<4x1xf32>
    %cst_268 = arith.constant 9.99999974E-6 : f32
    %543 = vector.broadcast %cst_268 : f32 to vector<4x1xf32>
    %544 = arith.addf %542, %543 : vector<4x1xf32>
    %545 = arith.divf %520, %544 : vector<4x1xf32>
    %546 = vector.broadcast %545 : vector<4x1xf32> to vector<4x4xf32>
    %547 = arith.mulf %536, %546 : vector<4x4xf32>
    %548 = vector.broadcast %521 : vector<4x1xf32> to vector<4x4xf32>
    %549 = arith.addf %547, %548 : vector<4x4xf32>
    %cst_269 = arith.constant 0.000000e+00 : f32
    %550 = vector.broadcast %cst_269 : f32 to vector<4x4xf32>
    %551 = arith.cmpf ogt, %549, %550 : vector<4x4xf32>
    %cst_270 = arith.constant 2.000000e-01 : f32
    %552 = vector.broadcast %cst_270 : f32 to vector<4x4xf32>
    %553 = arith.mulf %552, %549 : vector<4x4xf32>
    %554 = arith.select %551, %549, %553 : vector<4x4xi1>, vector<4x4xf32>
    %555 = arith.truncf %554 : vector<4x4xf32> to vector<4x4xbf16>
    %cst_271 = arith.constant dense<0.000000e+00> : vector<36x4xf32>
    %556 = tpu.matmul %517, %555, %cst_271 {dimension_numbers = #tpu.dot_dimension_numbers<[1], [0], [0], [1], [0, 0, 1, 1], [], []>} : vector<36x4xbf16>, vector<4x4xbf16>, vector<36x4xf32> -> vector<36x4xf32>
    %cst_272 = arith.constant 0.000000e+00 : f32
    %557 = vector.broadcast %cst_272 : f32 to vector<4x16xf32>
    %558 = vector.extract_strided_slice %556 {offsets = [0, 0], sizes = [4, 4], strides = [1, 1]} : vector<36x4xf32> to vector<4x4xf32>
    %559 = arith.truncf %558 : vector<4x4xf32> to vector<4x4xbf16>
    %c0_273 = arith.constant 0 : index
    %c0_274 = arith.constant 0 : index
    %c0_275 = arith.constant 0 : index
    %560 = vector.load %arg11[%c0_273, %c0_274, %c0_275] : memref<9x4x16xbf16, #tpu.memory_space<vmem>>, vector<1x4x16xbf16>
    %561 = vector.shape_cast %560 : vector<1x4x16xbf16> to vector<4x16xbf16>
    %cst_276 = arith.constant dense<0.000000e+00> : vector<4x16xf32>
    %562 = tpu.matmul %559, %561, %cst_276 {dimension_numbers = #tpu.dot_dimension_numbers<[1], [0], [0], [1], [0, 0, 1, 1], [], []>} : vector<4x4xbf16>, vector<4x16xbf16>, vector<4x16xf32> -> vector<4x16xf32>
    %563 = arith.addf %557, %562 : vector<4x16xf32>
    %564 = vector.extract_strided_slice %556 {offsets = [4, 0], sizes = [4, 4], strides = [1, 1]} : vector<36x4xf32> to vector<4x4xf32>
    %565 = arith.truncf %564 : vector<4x4xf32> to vector<4x4xbf16>
    %c1_277 = arith.constant 1 : index
    %c0_278 = arith.constant 0 : index
    %c0_279 = arith.constant 0 : index
    %566 = vector.load %arg11[%c1_277, %c0_278, %c0_279] : memref<9x4x16xbf16, #tpu.memory_space<vmem>>, vector<1x4x16xbf16>
    %567 = vector.shape_cast %566 : vector<1x4x16xbf16> to vector<4x16xbf16>
    %cst_280 = arith.constant dense<0.000000e+00> : vector<4x16xf32>
    %568 = tpu.matmul %565, %567, %cst_280 {dimension_numbers = #tpu.dot_dimension_numbers<[1], [0], [0], [1], [0, 0, 1, 1], [], []>} : vector<4x4xbf16>, vector<4x16xbf16>, vector<4x16xf32> -> vector<4x16xf32>
    %569 = arith.addf %563, %568 : vector<4x16xf32>
    %570 = vector.extract_strided_slice %556 {offsets = [8, 0], sizes = [4, 4], strides = [1, 1]} : vector<36x4xf32> to vector<4x4xf32>
    %571 = arith.truncf %570 : vector<4x4xf32> to vector<4x4xbf16>
    %c2_281 = arith.constant 2 : index
    %c0_282 = arith.constant 0 : index
    %c0_283 = arith.constant 0 : index
    %572 = vector.load %arg11[%c2_281, %c0_282, %c0_283] : memref<9x4x16xbf16, #tpu.memory_space<vmem>>, vector<1x4x16xbf16>
    %573 = vector.shape_cast %572 : vector<1x4x16xbf16> to vector<4x16xbf16>
    %cst_284 = arith.constant dense<0.000000e+00> : vector<4x16xf32>
    %574 = tpu.matmul %571, %573, %cst_284 {dimension_numbers = #tpu.dot_dimension_numbers<[1], [0], [0], [1], [0, 0, 1, 1], [], []>} : vector<4x4xbf16>, vector<4x16xbf16>, vector<4x16xf32> -> vector<4x16xf32>
    %575 = arith.addf %569, %574 : vector<4x16xf32>
    %576 = vector.extract_strided_slice %556 {offsets = [12, 0], sizes = [4, 4], strides = [1, 1]} : vector<36x4xf32> to vector<4x4xf32>
    %577 = arith.truncf %576 : vector<4x4xf32> to vector<4x4xbf16>
    %c3_285 = arith.constant 3 : index
    %c0_286 = arith.constant 0 : index
    %c0_287 = arith.constant 0 : index
    %578 = vector.load %arg11[%c3_285, %c0_286, %c0_287] : memref<9x4x16xbf16, #tpu.memory_space<vmem>>, vector<1x4x16xbf16>
    %579 = vector.shape_cast %578 : vector<1x4x16xbf16> to vector<4x16xbf16>
    %cst_288 = arith.constant dense<0.000000e+00> : vector<4x16xf32>
    %580 = tpu.matmul %577, %579, %cst_288 {dimension_numbers = #tpu.dot_dimension_numbers<[1], [0], [0], [1], [0, 0, 1, 1], [], []>} : vector<4x4xbf16>, vector<4x16xbf16>, vector<4x16xf32> -> vector<4x16xf32>
    %581 = arith.addf %575, %580 : vector<4x16xf32>
    %582 = vector.extract_strided_slice %556 {offsets = [16, 0], sizes = [4, 4], strides = [1, 1]} : vector<36x4xf32> to vector<4x4xf32>
    %583 = arith.truncf %582 : vector<4x4xf32> to vector<4x4xbf16>
    %c4_289 = arith.constant 4 : index
    %c0_290 = arith.constant 0 : index
    %c0_291 = arith.constant 0 : index
    %584 = vector.load %arg11[%c4_289, %c0_290, %c0_291] : memref<9x4x16xbf16, #tpu.memory_space<vmem>>, vector<1x4x16xbf16>
    %585 = vector.shape_cast %584 : vector<1x4x16xbf16> to vector<4x16xbf16>
    %cst_292 = arith.constant dense<0.000000e+00> : vector<4x16xf32>
    %586 = tpu.matmul %583, %585, %cst_292 {dimension_numbers = #tpu.dot_dimension_numbers<[1], [0], [0], [1], [0, 0, 1, 1], [], []>} : vector<4x4xbf16>, vector<4x16xbf16>, vector<4x16xf32> -> vector<4x16xf32>
    %587 = arith.addf %581, %586 : vector<4x16xf32>
    %588 = vector.extract_strided_slice %556 {offsets = [20, 0], sizes = [4, 4], strides = [1, 1]} : vector<36x4xf32> to vector<4x4xf32>
    %589 = arith.truncf %588 : vector<4x4xf32> to vector<4x4xbf16>
    %c5_293 = arith.constant 5 : index
    %c0_294 = arith.constant 0 : index
    %c0_295 = arith.constant 0 : index
    %590 = vector.load %arg11[%c5_293, %c0_294, %c0_295] : memref<9x4x16xbf16, #tpu.memory_space<vmem>>, vector<1x4x16xbf16>
    %591 = vector.shape_cast %590 : vector<1x4x16xbf16> to vector<4x16xbf16>
    %cst_296 = arith.constant dense<0.000000e+00> : vector<4x16xf32>
    %592 = tpu.matmul %589, %591, %cst_296 {dimension_numbers = #tpu.dot_dimension_numbers<[1], [0], [0], [1], [0, 0, 1, 1], [], []>} : vector<4x4xbf16>, vector<4x16xbf16>, vector<4x16xf32> -> vector<4x16xf32>
    %593 = arith.addf %587, %592 : vector<4x16xf32>
    %594 = vector.extract_strided_slice %556 {offsets = [24, 0], sizes = [4, 4], strides = [1, 1]} : vector<36x4xf32> to vector<4x4xf32>
    %595 = arith.truncf %594 : vector<4x4xf32> to vector<4x4xbf16>
    %c6_297 = arith.constant 6 : index
    %c0_298 = arith.constant 0 : index
    %c0_299 = arith.constant 0 : index
    %596 = vector.load %arg11[%c6_297, %c0_298, %c0_299] : memref<9x4x16xbf16, #tpu.memory_space<vmem>>, vector<1x4x16xbf16>
    %597 = vector.shape_cast %596 : vector<1x4x16xbf16> to vector<4x16xbf16>
    %cst_300 = arith.constant dense<0.000000e+00> : vector<4x16xf32>
    %598 = tpu.matmul %595, %597, %cst_300 {dimension_numbers = #tpu.dot_dimension_numbers<[1], [0], [0], [1], [0, 0, 1, 1], [], []>} : vector<4x4xbf16>, vector<4x16xbf16>, vector<4x16xf32> -> vector<4x16xf32>
    %599 = arith.addf %593, %598 : vector<4x16xf32>
    %600 = vector.extract_strided_slice %556 {offsets = [28, 0], sizes = [4, 4], strides = [1, 1]} : vector<36x4xf32> to vector<4x4xf32>
    %601 = arith.truncf %600 : vector<4x4xf32> to vector<4x4xbf16>
    %c7_301 = arith.constant 7 : index
    %c0_302 = arith.constant 0 : index
    %c0_303 = arith.constant 0 : index
    %602 = vector.load %arg11[%c7_301, %c0_302, %c0_303] : memref<9x4x16xbf16, #tpu.memory_space<vmem>>, vector<1x4x16xbf16>
    %603 = vector.shape_cast %602 : vector<1x4x16xbf16> to vector<4x16xbf16>
    %cst_304 = arith.constant dense<0.000000e+00> : vector<4x16xf32>
    %604 = tpu.matmul %601, %603, %cst_304 {dimension_numbers = #tpu.dot_dimension_numbers<[1], [0], [0], [1], [0, 0, 1, 1], [], []>} : vector<4x4xbf16>, vector<4x16xbf16>, vector<4x16xf32> -> vector<4x16xf32>
    %605 = arith.addf %599, %604 : vector<4x16xf32>
    %606 = vector.extract_strided_slice %556 {offsets = [32, 0], sizes = [4, 4], strides = [1, 1]} : vector<36x4xf32> to vector<4x4xf32>
    %607 = arith.truncf %606 : vector<4x4xf32> to vector<4x4xbf16>
    %c8_305 = arith.constant 8 : index
    %c0_306 = arith.constant 0 : index
    %c0_307 = arith.constant 0 : index
    %608 = vector.load %arg11[%c8_305, %c0_306, %c0_307] : memref<9x4x16xbf16, #tpu.memory_space<vmem>>, vector<1x4x16xbf16>
    %609 = vector.shape_cast %608 : vector<1x4x16xbf16> to vector<4x16xbf16>
    %cst_308 = arith.constant dense<0.000000e+00> : vector<4x16xf32>
    %610 = tpu.matmul %607, %609, %cst_308 {dimension_numbers = #tpu.dot_dimension_numbers<[1], [0], [0], [1], [0, 0, 1, 1], [], []>} : vector<4x4xbf16>, vector<4x16xbf16>, vector<4x16xf32> -> vector<4x16xf32>
    %611 = arith.addf %605, %610 : vector<4x16xf32>
    %612 = vector.broadcast %522 : vector<4x1xf32> to vector<4x16xf32>
    %613 = arith.addf %611, %612 : vector<4x16xf32>
    %cst_309 = arith.constant dense<0.000000e+00> : vector<4xf32>
    %614 = vector.multi_reduction <add>, %613, %cst_309 [1] : vector<4x16xf32> to vector<4xf32>
    %615 = vector.shape_cast %614 : vector<4xf32> to vector<4x1xf32>
    %cst_310 = arith.constant 1.600000e+01 : f32
    %616 = vector.broadcast %cst_310 : f32 to vector<4x1xf32>
    %617 = arith.divf %615, %616 : vector<4x1xf32>
    %618 = vector.broadcast %617 : vector<4x1xf32> to vector<4x16xf32>
    %619 = arith.subf %613, %618 : vector<4x16xf32>
    %620 = arith.mulf %619, %619 : vector<4x16xf32>
    %cst_311 = arith.constant dense<0.000000e+00> : vector<4xf32>
    %621 = vector.multi_reduction <add>, %620, %cst_311 [1] : vector<4x16xf32> to vector<4xf32>
    %622 = vector.shape_cast %621 : vector<4xf32> to vector<4x1xf32>
    %cst_312 = arith.constant 0.0666666701 : f32
    %623 = vector.broadcast %cst_312 : f32 to vector<4x1xf32>
    %624 = arith.mulf %622, %623 : vector<4x1xf32>
    %625 = math.sqrt %624 : vector<4x1xf32>
    %cst_313 = arith.constant 9.99999974E-6 : f32
    %626 = vector.broadcast %cst_313 : f32 to vector<4x1xf32>
    %627 = arith.addf %625, %626 : vector<4x1xf32>
    %628 = arith.divf %523, %627 : vector<4x1xf32>
    %629 = vector.broadcast %628 : vector<4x1xf32> to vector<4x16xf32>
    %630 = arith.mulf %619, %629 : vector<4x16xf32>
    %631 = vector.broadcast %524 : vector<4x1xf32> to vector<4x16xf32>
    %632 = arith.addf %630, %631 : vector<4x16xf32>
    %cst_314 = arith.constant 0.000000e+00 : f32
    %633 = vector.broadcast %cst_314 : f32 to vector<4x16xf32>
    %634 = arith.cmpf ogt, %632, %633 : vector<4x16xf32>
    %cst_315 = arith.constant 2.000000e-01 : f32
    %635 = vector.broadcast %cst_315 : f32 to vector<4x16xf32>
    %636 = arith.mulf %635, %632 : vector<4x16xf32>
    %637 = arith.select %634, %632, %636 : vector<4x16xi1>, vector<4x16xf32>
    %638 = arith.truncf %637 : vector<4x16xf32> to vector<4x16xbf16>
    %cst_316 = arith.constant dense<0.000000e+00> : vector<36x16xf32>
    %639 = tpu.matmul %518, %638, %cst_316 {dimension_numbers = #tpu.dot_dimension_numbers<[1], [0], [0], [1], [0, 0, 1, 1], [], []>} : vector<36x4xbf16>, vector<4x16xbf16>, vector<36x16xf32> -> vector<36x16xf32>
    %cst_317 = arith.constant 0.000000e+00 : f32
    %640 = vector.broadcast %cst_317 : f32 to vector<4x16xf32>
    %641 = vector.extract_strided_slice %639 {offsets = [0, 0], sizes = [4, 16], strides = [1, 1]} : vector<36x16xf32> to vector<4x16xf32>
    %642 = arith.truncf %641 : vector<4x16xf32> to vector<4x16xbf16>
    %c0_318 = arith.constant 0 : index
    %c0_319 = arith.constant 0 : index
    %c0_320 = arith.constant 0 : index
    %643 = vector.load %arg6[%c0_318, %c0_319, %c0_320] : memref<9x16x16xbf16, #tpu.memory_space<vmem>>, vector<1x16x16xbf16>
    %644 = vector.shape_cast %643 : vector<1x16x16xbf16> to vector<16x16xbf16>
    %cst_321 = arith.constant dense<0.000000e+00> : vector<4x16xf32>
    %645 = tpu.matmul %642, %644, %cst_321 {dimension_numbers = #tpu.dot_dimension_numbers<[1], [0], [0], [1], [0, 0, 1, 1], [], []>} : vector<4x16xbf16>, vector<16x16xbf16>, vector<4x16xf32> -> vector<4x16xf32>
    %646 = arith.addf %640, %645 : vector<4x16xf32>
    %647 = vector.extract_strided_slice %639 {offsets = [4, 0], sizes = [4, 16], strides = [1, 1]} : vector<36x16xf32> to vector<4x16xf32>
    %648 = arith.truncf %647 : vector<4x16xf32> to vector<4x16xbf16>
    %c1_322 = arith.constant 1 : index
    %c0_323 = arith.constant 0 : index
    %c0_324 = arith.constant 0 : index
    %649 = vector.load %arg6[%c1_322, %c0_323, %c0_324] : memref<9x16x16xbf16, #tpu.memory_space<vmem>>, vector<1x16x16xbf16>
    %650 = vector.shape_cast %649 : vector<1x16x16xbf16> to vector<16x16xbf16>
    %cst_325 = arith.constant dense<0.000000e+00> : vector<4x16xf32>
    %651 = tpu.matmul %648, %650, %cst_325 {dimension_numbers = #tpu.dot_dimension_numbers<[1], [0], [0], [1], [0, 0, 1, 1], [], []>} : vector<4x16xbf16>, vector<16x16xbf16>, vector<4x16xf32> -> vector<4x16xf32>
    %652 = arith.addf %646, %651 : vector<4x16xf32>
    %653 = vector.extract_strided_slice %639 {offsets = [8, 0], sizes = [4, 16], strides = [1, 1]} : vector<36x16xf32> to vector<4x16xf32>
    %654 = arith.truncf %653 : vector<4x16xf32> to vector<4x16xbf16>
    %c2_326 = arith.constant 2 : index
    %c0_327 = arith.constant 0 : index
    %c0_328 = arith.constant 0 : index
    %655 = vector.load %arg6[%c2_326, %c0_327, %c0_328] : memref<9x16x16xbf16, #tpu.memory_space<vmem>>, vector<1x16x16xbf16>
    %656 = vector.shape_cast %655 : vector<1x16x16xbf16> to vector<16x16xbf16>
    %cst_329 = arith.constant dense<0.000000e+00> : vector<4x16xf32>
    %657 = tpu.matmul %654, %656, %cst_329 {dimension_numbers = #tpu.dot_dimension_numbers<[1], [0], [0], [1], [0, 0, 1, 1], [], []>} : vector<4x16xbf16>, vector<16x16xbf16>, vector<4x16xf32> -> vector<4x16xf32>
    %658 = arith.addf %652, %657 : vector<4x16xf32>
    %659 = vector.extract_strided_slice %639 {offsets = [12, 0], sizes = [4, 16], strides = [1, 1]} : vector<36x16xf32> to vector<4x16xf32>
    %660 = arith.truncf %659 : vector<4x16xf32> to vector<4x16xbf16>
    %c3_330 = arith.constant 3 : index
    %c0_331 = arith.constant 0 : index
    %c0_332 = arith.constant 0 : index
    %661 = vector.load %arg6[%c3_330, %c0_331, %c0_332] : memref<9x16x16xbf16, #tpu.memory_space<vmem>>, vector<1x16x16xbf16>
    %662 = vector.shape_cast %661 : vector<1x16x16xbf16> to vector<16x16xbf16>
    %cst_333 = arith.constant dense<0.000000e+00> : vector<4x16xf32>
    %663 = tpu.matmul %660, %662, %cst_333 {dimension_numbers = #tpu.dot_dimension_numbers<[1], [0], [0], [1], [0, 0, 1, 1], [], []>} : vector<4x16xbf16>, vector<16x16xbf16>, vector<4x16xf32> -> vector<4x16xf32>
    %664 = arith.addf %658, %663 : vector<4x16xf32>
    %665 = vector.extract_strided_slice %639 {offsets = [16, 0], sizes = [4, 16], strides = [1, 1]} : vector<36x16xf32> to vector<4x16xf32>
    %666 = arith.truncf %665 : vector<4x16xf32> to vector<4x16xbf16>
    %c4_334 = arith.constant 4 : index
    %c0_335 = arith.constant 0 : index
    %c0_336 = arith.constant 0 : index
    %667 = vector.load %arg6[%c4_334, %c0_335, %c0_336] : memref<9x16x16xbf16, #tpu.memory_space<vmem>>, vector<1x16x16xbf16>
    %668 = vector.shape_cast %667 : vector<1x16x16xbf16> to vector<16x16xbf16>
    %cst_337 = arith.constant dense<0.000000e+00> : vector<4x16xf32>
    %669 = tpu.matmul %666, %668, %cst_337 {dimension_numbers = #tpu.dot_dimension_numbers<[1], [0], [0], [1], [0, 0, 1, 1], [], []>} : vector<4x16xbf16>, vector<16x16xbf16>, vector<4x16xf32> -> vector<4x16xf32>
    %670 = arith.addf %664, %669 : vector<4x16xf32>
    %671 = vector.extract_strided_slice %639 {offsets = [20, 0], sizes = [4, 16], strides = [1, 1]} : vector<36x16xf32> to vector<4x16xf32>
    %672 = arith.truncf %671 : vector<4x16xf32> to vector<4x16xbf16>
    %c5_338 = arith.constant 5 : index
    %c0_339 = arith.constant 0 : index
    %c0_340 = arith.constant 0 : index
    %673 = vector.load %arg6[%c5_338, %c0_339, %c0_340] : memref<9x16x16xbf16, #tpu.memory_space<vmem>>, vector<1x16x16xbf16>
    %674 = vector.shape_cast %673 : vector<1x16x16xbf16> to vector<16x16xbf16>
    %cst_341 = arith.constant dense<0.000000e+00> : vector<4x16xf32>
    %675 = tpu.matmul %672, %674, %cst_341 {dimension_numbers = #tpu.dot_dimension_numbers<[1], [0], [0], [1], [0, 0, 1, 1], [], []>} : vector<4x16xbf16>, vector<16x16xbf16>, vector<4x16xf32> -> vector<4x16xf32>
    %676 = arith.addf %670, %675 : vector<4x16xf32>
    %677 = vector.extract_strided_slice %639 {offsets = [24, 0], sizes = [4, 16], strides = [1, 1]} : vector<36x16xf32> to vector<4x16xf32>
    %678 = arith.truncf %677 : vector<4x16xf32> to vector<4x16xbf16>
    %c6_342 = arith.constant 6 : index
    %c0_343 = arith.constant 0 : index
    %c0_344 = arith.constant 0 : index
    %679 = vector.load %arg6[%c6_342, %c0_343, %c0_344] : memref<9x16x16xbf16, #tpu.memory_space<vmem>>, vector<1x16x16xbf16>
    %680 = vector.shape_cast %679 : vector<1x16x16xbf16> to vector<16x16xbf16>
    %cst_345 = arith.constant dense<0.000000e+00> : vector<4x16xf32>
    %681 = tpu.matmul %678, %680, %cst_345 {dimension_numbers = #tpu.dot_dimension_numbers<[1], [0], [0], [1], [0, 0, 1, 1], [], []>} : vector<4x16xbf16>, vector<16x16xbf16>, vector<4x16xf32> -> vector<4x16xf32>
    %682 = arith.addf %676, %681 : vector<4x16xf32>
    %683 = vector.extract_strided_slice %639 {offsets = [28, 0], sizes = [4, 16], strides = [1, 1]} : vector<36x16xf32> to vector<4x16xf32>
    %684 = arith.truncf %683 : vector<4x16xf32> to vector<4x16xbf16>
    %c7_346 = arith.constant 7 : index
    %c0_347 = arith.constant 0 : index
    %c0_348 = arith.constant 0 : index
    %685 = vector.load %arg6[%c7_346, %c0_347, %c0_348] : memref<9x16x16xbf16, #tpu.memory_space<vmem>>, vector<1x16x16xbf16>
    %686 = vector.shape_cast %685 : vector<1x16x16xbf16> to vector<16x16xbf16>
    %cst_349 = arith.constant dense<0.000000e+00> : vector<4x16xf32>
    %687 = tpu.matmul %684, %686, %cst_349 {dimension_numbers = #tpu.dot_dimension_numbers<[1], [0], [0], [1], [0, 0, 1, 1], [], []>} : vector<4x16xbf16>, vector<16x16xbf16>, vector<4x16xf32> -> vector<4x16xf32>
    %688 = arith.addf %682, %687 : vector<4x16xf32>
    %689 = vector.extract_strided_slice %639 {offsets = [32, 0], sizes = [4, 16], strides = [1, 1]} : vector<36x16xf32> to vector<4x16xf32>
    %690 = arith.truncf %689 : vector<4x16xf32> to vector<4x16xbf16>
    %c8_350 = arith.constant 8 : index
    %c0_351 = arith.constant 0 : index
    %c0_352 = arith.constant 0 : index
    %691 = vector.load %arg6[%c8_350, %c0_351, %c0_352] : memref<9x16x16xbf16, #tpu.memory_space<vmem>>, vector<1x16x16xbf16>
    %692 = vector.shape_cast %691 : vector<1x16x16xbf16> to vector<16x16xbf16>
    %cst_353 = arith.constant dense<0.000000e+00> : vector<4x16xf32>
    %693 = tpu.matmul %690, %692, %cst_353 {dimension_numbers = #tpu.dot_dimension_numbers<[1], [0], [0], [1], [0, 0, 1, 1], [], []>} : vector<4x16xbf16>, vector<16x16xbf16>, vector<4x16xf32> -> vector<4x16xf32>
    %694 = arith.addf %688, %693 : vector<4x16xf32>
    %695 = vector.broadcast %525 : vector<4x1xf32> to vector<4x16xf32>
    %696 = arith.addf %694, %695 : vector<4x16xf32>
    %697 = arith.addf %530, %696 : vector<4x16xf32>
    %cst_354 = arith.constant 0.707106769 : f32
    %698 = vector.broadcast %cst_354 : f32 to vector<4x16xf32>
    %699 = arith.mulf %697, %698 : vector<4x16xf32>
    %700 = arith.addf %699, %329 : vector<4x16xf32>
    %c0_355 = arith.constant 0 : index
    %c0_356 = arith.constant 0 : index
    %701 = vector.load %arg22[%c0_355, %c0_356] : memref<76x4xbf16, #tpu.memory_space<vmem>>, vector<76x4xbf16>
    %c0_357 = arith.constant 0 : index
    %c0_358 = arith.constant 0 : index
    %702 = vector.load %arg28[%c0_357, %c0_358] : memref<24x1xf32, #tpu.memory_space<vmem>>, vector<24x1xf32>
    %703 = vector.extract_strided_slice %701 {offsets = [0, 0], sizes = [36, 4], strides = [1, 1]} : vector<76x4xbf16> to vector<36x4xbf16>
    %704 = vector.extract_strided_slice %701 {offsets = [36, 0], sizes = [36, 4], strides = [1, 1]} : vector<76x4xbf16> to vector<36x4xbf16>
    %705 = vector.extract_strided_slice %701 {offsets = [72, 0], sizes = [4, 4], strides = [1, 1]} : vector<76x4xbf16> to vector<4x4xbf16>
    %706 = vector.extract_strided_slice %702 {offsets = [0, 0], sizes = [4, 1], strides = [1, 1]} : vector<24x1xf32> to vector<4x1xf32>
    %707 = vector.extract_strided_slice %702 {offsets = [4, 0], sizes = [4, 1], strides = [1, 1]} : vector<24x1xf32> to vector<4x1xf32>
    %708 = vector.extract_strided_slice %702 {offsets = [8, 0], sizes = [4, 1], strides = [1, 1]} : vector<24x1xf32> to vector<4x1xf32>
    %709 = vector.extract_strided_slice %702 {offsets = [12, 0], sizes = [4, 1], strides = [1, 1]} : vector<24x1xf32> to vector<4x1xf32>
    %710 = vector.extract_strided_slice %702 {offsets = [16, 0], sizes = [4, 1], strides = [1, 1]} : vector<24x1xf32> to vector<4x1xf32>
    %711 = vector.extract_strided_slice %702 {offsets = [20, 0], sizes = [4, 1], strides = [1, 1]} : vector<24x1xf32> to vector<4x1xf32>
    %712 = arith.truncf %700 : vector<4x16xf32> to vector<4x16xbf16>
    %cst_359 = arith.constant dense<0.000000e+00> : vector<4x16xf32>
    %713 = tpu.matmul %705, %712, %cst_359 {dimension_numbers = #tpu.dot_dimension_numbers<[1], [0], [0], [1], [0, 0, 1, 1], [], []>} : vector<4x4xbf16>, vector<4x16xbf16>, vector<4x16xf32> -> vector<4x16xf32>
    %714 = arith.truncf %713 : vector<4x16xf32> to vector<4x16xbf16>
    %c0_360 = arith.constant 0 : index
    %c0_361 = arith.constant 0 : index
    %715 = vector.load %arg14[%c0_360, %c0_361] : memref<16x64xbf16, #tpu.memory_space<vmem>>, vector<16x64xbf16>
    %cst_362 = arith.constant dense<0.000000e+00> : vector<4x64xf32>
    %716 = tpu.matmul %714, %715, %cst_362 {dimension_numbers = #tpu.dot_dimension_numbers<[1], [0], [0], [1], [0, 0, 1, 1], [], []>} : vector<4x16xbf16>, vector<16x64xbf16>, vector<4x64xf32> -> vector<4x64xf32>
    %cst_363 = arith.constant dense<0.000000e+00> : vector<4xf32>
    %717 = vector.multi_reduction <add>, %700, %cst_363 [1] : vector<4x16xf32> to vector<4xf32>
    %718 = vector.shape_cast %717 : vector<4xf32> to vector<4x1xf32>
    %cst_364 = arith.constant 1.600000e+01 : f32
    %719 = vector.broadcast %cst_364 : f32 to vector<4x1xf32>
    %720 = arith.divf %718, %719 : vector<4x1xf32>
    %721 = vector.broadcast %720 : vector<4x1xf32> to vector<4x16xf32>
    %722 = arith.subf %700, %721 : vector<4x16xf32>
    %723 = arith.mulf %722, %722 : vector<4x16xf32>
    %cst_365 = arith.constant dense<0.000000e+00> : vector<4xf32>
    %724 = vector.multi_reduction <add>, %723, %cst_365 [1] : vector<4x16xf32> to vector<4xf32>
    %725 = vector.shape_cast %724 : vector<4xf32> to vector<4x1xf32>
    %cst_366 = arith.constant 0.0666666701 : f32
    %726 = vector.broadcast %cst_366 : f32 to vector<4x1xf32>
    %727 = arith.mulf %725, %726 : vector<4x1xf32>
    %728 = math.sqrt %727 : vector<4x1xf32>
    %cst_367 = arith.constant 9.99999974E-6 : f32
    %729 = vector.broadcast %cst_367 : f32 to vector<4x1xf32>
    %730 = arith.addf %728, %729 : vector<4x1xf32>
    %731 = arith.divf %706, %730 : vector<4x1xf32>
    %732 = vector.broadcast %731 : vector<4x1xf32> to vector<4x16xf32>
    %733 = arith.mulf %722, %732 : vector<4x16xf32>
    %734 = vector.broadcast %707 : vector<4x1xf32> to vector<4x16xf32>
    %735 = arith.addf %733, %734 : vector<4x16xf32>
    %cst_368 = arith.constant 0.000000e+00 : f32
    %736 = vector.broadcast %cst_368 : f32 to vector<4x16xf32>
    %737 = arith.cmpf ogt, %735, %736 : vector<4x16xf32>
    %cst_369 = arith.constant 2.000000e-01 : f32
    %738 = vector.broadcast %cst_369 : f32 to vector<4x16xf32>
    %739 = arith.mulf %738, %735 : vector<4x16xf32>
    %740 = arith.select %737, %735, %739 : vector<4x16xi1>, vector<4x16xf32>
    %741 = arith.truncf %740 : vector<4x16xf32> to vector<4x16xbf16>
    %cst_370 = arith.constant dense<0.000000e+00> : vector<36x16xf32>
    %742 = tpu.matmul %703, %741, %cst_370 {dimension_numbers = #tpu.dot_dimension_numbers<[1], [0], [0], [1], [0, 0, 1, 1], [], []>} : vector<36x4xbf16>, vector<4x16xbf16>, vector<36x16xf32> -> vector<36x16xf32>
    %cst_371 = arith.constant 0.000000e+00 : f32
    %743 = vector.broadcast %cst_371 : f32 to vector<4x64xf32>
    %744 = vector.extract_strided_slice %742 {offsets = [0, 0], sizes = [4, 16], strides = [1, 1]} : vector<36x16xf32> to vector<4x16xf32>
    %745 = arith.truncf %744 : vector<4x16xf32> to vector<4x16xbf16>
    %c0_372 = arith.constant 0 : index
    %c0_373 = arith.constant 0 : index
    %c0_374 = arith.constant 0 : index
    %746 = vector.load %arg13[%c0_372, %c0_373, %c0_374] : memref<9x16x64xbf16, #tpu.memory_space<vmem>>, vector<1x16x64xbf16>
    %747 = vector.shape_cast %746 : vector<1x16x64xbf16> to vector<16x64xbf16>
    %cst_375 = arith.constant dense<0.000000e+00> : vector<4x64xf32>
    %748 = tpu.matmul %745, %747, %cst_375 {dimension_numbers = #tpu.dot_dimension_numbers<[1], [0], [0], [1], [0, 0, 1, 1], [], []>} : vector<4x16xbf16>, vector<16x64xbf16>, vector<4x64xf32> -> vector<4x64xf32>
    %749 = arith.addf %743, %748 : vector<4x64xf32>
    %750 = vector.extract_strided_slice %742 {offsets = [4, 0], sizes = [4, 16], strides = [1, 1]} : vector<36x16xf32> to vector<4x16xf32>
    %751 = arith.truncf %750 : vector<4x16xf32> to vector<4x16xbf16>
    %c1_376 = arith.constant 1 : index
    %c0_377 = arith.constant 0 : index
    %c0_378 = arith.constant 0 : index
    %752 = vector.load %arg13[%c1_376, %c0_377, %c0_378] : memref<9x16x64xbf16, #tpu.memory_space<vmem>>, vector<1x16x64xbf16>
    %753 = vector.shape_cast %752 : vector<1x16x64xbf16> to vector<16x64xbf16>
    %cst_379 = arith.constant dense<0.000000e+00> : vector<4x64xf32>
    %754 = tpu.matmul %751, %753, %cst_379 {dimension_numbers = #tpu.dot_dimension_numbers<[1], [0], [0], [1], [0, 0, 1, 1], [], []>} : vector<4x16xbf16>, vector<16x64xbf16>, vector<4x64xf32> -> vector<4x64xf32>
    %755 = arith.addf %749, %754 : vector<4x64xf32>
    %756 = vector.extract_strided_slice %742 {offsets = [8, 0], sizes = [4, 16], strides = [1, 1]} : vector<36x16xf32> to vector<4x16xf32>
    %757 = arith.truncf %756 : vector<4x16xf32> to vector<4x16xbf16>
    %c2_380 = arith.constant 2 : index
    %c0_381 = arith.constant 0 : index
    %c0_382 = arith.constant 0 : index
    %758 = vector.load %arg13[%c2_380, %c0_381, %c0_382] : memref<9x16x64xbf16, #tpu.memory_space<vmem>>, vector<1x16x64xbf16>
    %759 = vector.shape_cast %758 : vector<1x16x64xbf16> to vector<16x64xbf16>
    %cst_383 = arith.constant dense<0.000000e+00> : vector<4x64xf32>
    %760 = tpu.matmul %757, %759, %cst_383 {dimension_numbers = #tpu.dot_dimension_numbers<[1], [0], [0], [1], [0, 0, 1, 1], [], []>} : vector<4x16xbf16>, vector<16x64xbf16>, vector<4x64xf32> -> vector<4x64xf32>
    %761 = arith.addf %755, %760 : vector<4x64xf32>
    %762 = vector.extract_strided_slice %742 {offsets = [12, 0], sizes = [4, 16], strides = [1, 1]} : vector<36x16xf32> to vector<4x16xf32>
    %763 = arith.truncf %762 : vector<4x16xf32> to vector<4x16xbf16>
    %c3_384 = arith.constant 3 : index
    %c0_385 = arith.constant 0 : index
    %c0_386 = arith.constant 0 : index
    %764 = vector.load %arg13[%c3_384, %c0_385, %c0_386] : memref<9x16x64xbf16, #tpu.memory_space<vmem>>, vector<1x16x64xbf16>
    %765 = vector.shape_cast %764 : vector<1x16x64xbf16> to vector<16x64xbf16>
    %cst_387 = arith.constant dense<0.000000e+00> : vector<4x64xf32>
    %766 = tpu.matmul %763, %765, %cst_387 {dimension_numbers = #tpu.dot_dimension_numbers<[1], [0], [0], [1], [0, 0, 1, 1], [], []>} : vector<4x16xbf16>, vector<16x64xbf16>, vector<4x64xf32> -> vector<4x64xf32>
    %767 = arith.addf %761, %766 : vector<4x64xf32>
    %768 = vector.extract_strided_slice %742 {offsets = [16, 0], sizes = [4, 16], strides = [1, 1]} : vector<36x16xf32> to vector<4x16xf32>
    %769 = arith.truncf %768 : vector<4x16xf32> to vector<4x16xbf16>
    %c4_388 = arith.constant 4 : index
    %c0_389 = arith.constant 0 : index
    %c0_390 = arith.constant 0 : index
    %770 = vector.load %arg13[%c4_388, %c0_389, %c0_390] : memref<9x16x64xbf16, #tpu.memory_space<vmem>>, vector<1x16x64xbf16>
    %771 = vector.shape_cast %770 : vector<1x16x64xbf16> to vector<16x64xbf16>
    %cst_391 = arith.constant dense<0.000000e+00> : vector<4x64xf32>
    %772 = tpu.matmul %769, %771, %cst_391 {dimension_numbers = #tpu.dot_dimension_numbers<[1], [0], [0], [1], [0, 0, 1, 1], [], []>} : vector<4x16xbf16>, vector<16x64xbf16>, vector<4x64xf32> -> vector<4x64xf32>
    %773 = arith.addf %767, %772 : vector<4x64xf32>
    %774 = vector.extract_strided_slice %742 {offsets = [20, 0], sizes = [4, 16], strides = [1, 1]} : vector<36x16xf32> to vector<4x16xf32>
    %775 = arith.truncf %774 : vector<4x16xf32> to vector<4x16xbf16>
    %c5_392 = arith.constant 5 : index
    %c0_393 = arith.constant 0 : index
    %c0_394 = arith.constant 0 : index
    %776 = vector.load %arg13[%c5_392, %c0_393, %c0_394] : memref<9x16x64xbf16, #tpu.memory_space<vmem>>, vector<1x16x64xbf16>
    %777 = vector.shape_cast %776 : vector<1x16x64xbf16> to vector<16x64xbf16>
    %cst_395 = arith.constant dense<0.000000e+00> : vector<4x64xf32>
    %778 = tpu.matmul %775, %777, %cst_395 {dimension_numbers = #tpu.dot_dimension_numbers<[1], [0], [0], [1], [0, 0, 1, 1], [], []>} : vector<4x16xbf16>, vector<16x64xbf16>, vector<4x64xf32> -> vector<4x64xf32>
    %779 = arith.addf %773, %778 : vector<4x64xf32>
    %780 = vector.extract_strided_slice %742 {offsets = [24, 0], sizes = [4, 16], strides = [1, 1]} : vector<36x16xf32> to vector<4x16xf32>
    %781 = arith.truncf %780 : vector<4x16xf32> to vector<4x16xbf16>
    %c6_396 = arith.constant 6 : index
    %c0_397 = arith.constant 0 : index
    %c0_398 = arith.constant 0 : index
    %782 = vector.load %arg13[%c6_396, %c0_397, %c0_398] : memref<9x16x64xbf16, #tpu.memory_space<vmem>>, vector<1x16x64xbf16>
    %783 = vector.shape_cast %782 : vector<1x16x64xbf16> to vector<16x64xbf16>
    %cst_399 = arith.constant dense<0.000000e+00> : vector<4x64xf32>
    %784 = tpu.matmul %781, %783, %cst_399 {dimension_numbers = #tpu.dot_dimension_numbers<[1], [0], [0], [1], [0, 0, 1, 1], [], []>} : vector<4x16xbf16>, vector<16x64xbf16>, vector<4x64xf32> -> vector<4x64xf32>
    %785 = arith.addf %779, %784 : vector<4x64xf32>
    %786 = vector.extract_strided_slice %742 {offsets = [28, 0], sizes = [4, 16], strides = [1, 1]} : vector<36x16xf32> to vector<4x16xf32>
    %787 = arith.truncf %786 : vector<4x16xf32> to vector<4x16xbf16>
    %c7_400 = arith.constant 7 : index
    %c0_401 = arith.constant 0 : index
    %c0_402 = arith.constant 0 : index
    %788 = vector.load %arg13[%c7_400, %c0_401, %c0_402] : memref<9x16x64xbf16, #tpu.memory_space<vmem>>, vector<1x16x64xbf16>
    %789 = vector.shape_cast %788 : vector<1x16x64xbf16> to vector<16x64xbf16>
    %cst_403 = arith.constant dense<0.000000e+00> : vector<4x64xf32>
    %790 = tpu.matmul %787, %789, %cst_403 {dimension_numbers = #tpu.dot_dimension_numbers<[1], [0], [0], [1], [0, 0, 1, 1], [], []>} : vector<4x16xbf16>, vector<16x64xbf16>, vector<4x64xf32> -> vector<4x64xf32>
    %791 = arith.addf %785, %790 : vector<4x64xf32>
    %792 = vector.extract_strided_slice %742 {offsets = [32, 0], sizes = [4, 16], strides = [1, 1]} : vector<36x16xf32> to vector<4x16xf32>
    %793 = arith.truncf %792 : vector<4x16xf32> to vector<4x16xbf16>
    %c8_404 = arith.constant 8 : index
    %c0_405 = arith.constant 0 : index
    %c0_406 = arith.constant 0 : index
    %794 = vector.load %arg13[%c8_404, %c0_405, %c0_406] : memref<9x16x64xbf16, #tpu.memory_space<vmem>>, vector<1x16x64xbf16>
    %795 = vector.shape_cast %794 : vector<1x16x64xbf16> to vector<16x64xbf16>
    %cst_407 = arith.constant dense<0.000000e+00> : vector<4x64xf32>
    %796 = tpu.matmul %793, %795, %cst_407 {dimension_numbers = #tpu.dot_dimension_numbers<[1], [0], [0], [1], [0, 0, 1, 1], [], []>} : vector<4x16xbf16>, vector<16x64xbf16>, vector<4x64xf32> -> vector<4x64xf32>
    %797 = arith.addf %791, %796 : vector<4x64xf32>
    %798 = vector.broadcast %708 : vector<4x1xf32> to vector<4x64xf32>
    %799 = arith.addf %797, %798 : vector<4x64xf32>
    %cst_408 = arith.constant dense<0.000000e+00> : vector<4xf32>
    %800 = vector.multi_reduction <add>, %799, %cst_408 [1] : vector<4x64xf32> to vector<4xf32>
    %801 = vector.shape_cast %800 : vector<4xf32> to vector<4x1xf32>
    %cst_409 = arith.constant 6.400000e+01 : f32
    %802 = vector.broadcast %cst_409 : f32 to vector<4x1xf32>
    %803 = arith.divf %801, %802 : vector<4x1xf32>
    %804 = vector.broadcast %803 : vector<4x1xf32> to vector<4x64xf32>
    %805 = arith.subf %799, %804 : vector<4x64xf32>
    %806 = arith.mulf %805, %805 : vector<4x64xf32>
    %cst_410 = arith.constant dense<0.000000e+00> : vector<4xf32>
    %807 = vector.multi_reduction <add>, %806, %cst_410 [1] : vector<4x64xf32> to vector<4xf32>
    %808 = vector.shape_cast %807 : vector<4xf32> to vector<4x1xf32>
    %cst_411 = arith.constant 0.0158730168 : f32
    %809 = vector.broadcast %cst_411 : f32 to vector<4x1xf32>
    %810 = arith.mulf %808, %809 : vector<4x1xf32>
    %811 = math.sqrt %810 : vector<4x1xf32>
    %cst_412 = arith.constant 9.99999974E-6 : f32
    %812 = vector.broadcast %cst_412 : f32 to vector<4x1xf32>
    %813 = arith.addf %811, %812 : vector<4x1xf32>
    %814 = arith.divf %709, %813 : vector<4x1xf32>
    %815 = vector.broadcast %814 : vector<4x1xf32> to vector<4x64xf32>
    %816 = arith.mulf %805, %815 : vector<4x64xf32>
    %817 = vector.broadcast %710 : vector<4x1xf32> to vector<4x64xf32>
    %818 = arith.addf %816, %817 : vector<4x64xf32>
    %cst_413 = arith.constant 0.000000e+00 : f32
    %819 = vector.broadcast %cst_413 : f32 to vector<4x64xf32>
    %820 = arith.cmpf ogt, %818, %819 : vector<4x64xf32>
    %cst_414 = arith.constant 2.000000e-01 : f32
    %821 = vector.broadcast %cst_414 : f32 to vector<4x64xf32>
    %822 = arith.mulf %821, %818 : vector<4x64xf32>
    %823 = arith.select %820, %818, %822 : vector<4x64xi1>, vector<4x64xf32>
    %824 = arith.truncf %823 : vector<4x64xf32> to vector<4x64xbf16>
    %cst_415 = arith.constant dense<0.000000e+00> : vector<36x64xf32>
    %825 = tpu.matmul %704, %824, %cst_415 {dimension_numbers = #tpu.dot_dimension_numbers<[1], [0], [0], [1], [0, 0, 1, 1], [], []>} : vector<36x4xbf16>, vector<4x64xbf16>, vector<36x64xf32> -> vector<36x64xf32>
    %cst_416 = arith.constant 0.000000e+00 : f32
    %826 = vector.broadcast %cst_416 : f32 to vector<4x64xf32>
    %827 = vector.extract_strided_slice %825 {offsets = [0, 0], sizes = [4, 64], strides = [1, 1]} : vector<36x64xf32> to vector<4x64xf32>
    %828 = arith.truncf %827 : vector<4x64xf32> to vector<4x64xbf16>
    %c0_417 = arith.constant 0 : index
    %c0_418 = arith.constant 0 : index
    %c0_419 = arith.constant 0 : index
    %829 = vector.load %arg3[%c0_417, %c0_418, %c0_419] : memref<9x64x64xbf16, #tpu.memory_space<vmem>>, vector<1x64x64xbf16>
    %830 = vector.shape_cast %829 : vector<1x64x64xbf16> to vector<64x64xbf16>
    %cst_420 = arith.constant dense<0.000000e+00> : vector<4x64xf32>
    %831 = tpu.matmul %828, %830, %cst_420 {dimension_numbers = #tpu.dot_dimension_numbers<[1], [0], [0], [1], [0, 0, 1, 1], [], []>} : vector<4x64xbf16>, vector<64x64xbf16>, vector<4x64xf32> -> vector<4x64xf32>
    %832 = arith.addf %826, %831 : vector<4x64xf32>
    %833 = vector.extract_strided_slice %825 {offsets = [4, 0], sizes = [4, 64], strides = [1, 1]} : vector<36x64xf32> to vector<4x64xf32>
    %834 = arith.truncf %833 : vector<4x64xf32> to vector<4x64xbf16>
    %c1_421 = arith.constant 1 : index
    %c0_422 = arith.constant 0 : index
    %c0_423 = arith.constant 0 : index
    %835 = vector.load %arg3[%c1_421, %c0_422, %c0_423] : memref<9x64x64xbf16, #tpu.memory_space<vmem>>, vector<1x64x64xbf16>
    %836 = vector.shape_cast %835 : vector<1x64x64xbf16> to vector<64x64xbf16>
    %cst_424 = arith.constant dense<0.000000e+00> : vector<4x64xf32>
    %837 = tpu.matmul %834, %836, %cst_424 {dimension_numbers = #tpu.dot_dimension_numbers<[1], [0], [0], [1], [0, 0, 1, 1], [], []>} : vector<4x64xbf16>, vector<64x64xbf16>, vector<4x64xf32> -> vector<4x64xf32>
    %838 = arith.addf %832, %837 : vector<4x64xf32>
    %839 = vector.extract_strided_slice %825 {offsets = [8, 0], sizes = [4, 64], strides = [1, 1]} : vector<36x64xf32> to vector<4x64xf32>
    %840 = arith.truncf %839 : vector<4x64xf32> to vector<4x64xbf16>
    %c2_425 = arith.constant 2 : index
    %c0_426 = arith.constant 0 : index
    %c0_427 = arith.constant 0 : index
    %841 = vector.load %arg3[%c2_425, %c0_426, %c0_427] : memref<9x64x64xbf16, #tpu.memory_space<vmem>>, vector<1x64x64xbf16>
    %842 = vector.shape_cast %841 : vector<1x64x64xbf16> to vector<64x64xbf16>
    %cst_428 = arith.constant dense<0.000000e+00> : vector<4x64xf32>
    %843 = tpu.matmul %840, %842, %cst_428 {dimension_numbers = #tpu.dot_dimension_numbers<[1], [0], [0], [1], [0, 0, 1, 1], [], []>} : vector<4x64xbf16>, vector<64x64xbf16>, vector<4x64xf32> -> vector<4x64xf32>
    %844 = arith.addf %838, %843 : vector<4x64xf32>
    %845 = vector.extract_strided_slice %825 {offsets = [12, 0], sizes = [4, 64], strides = [1, 1]} : vector<36x64xf32> to vector<4x64xf32>
    %846 = arith.truncf %845 : vector<4x64xf32> to vector<4x64xbf16>
    %c3_429 = arith.constant 3 : index
    %c0_430 = arith.constant 0 : index
    %c0_431 = arith.constant 0 : index
    %847 = vector.load %arg3[%c3_429, %c0_430, %c0_431] : memref<9x64x64xbf16, #tpu.memory_space<vmem>>, vector<1x64x64xbf16>
    %848 = vector.shape_cast %847 : vector<1x64x64xbf16> to vector<64x64xbf16>
    %cst_432 = arith.constant dense<0.000000e+00> : vector<4x64xf32>
    %849 = tpu.matmul %846, %848, %cst_432 {dimension_numbers = #tpu.dot_dimension_numbers<[1], [0], [0], [1], [0, 0, 1, 1], [], []>} : vector<4x64xbf16>, vector<64x64xbf16>, vector<4x64xf32> -> vector<4x64xf32>
    %850 = arith.addf %844, %849 : vector<4x64xf32>
    %851 = vector.extract_strided_slice %825 {offsets = [16, 0], sizes = [4, 64], strides = [1, 1]} : vector<36x64xf32> to vector<4x64xf32>
    %852 = arith.truncf %851 : vector<4x64xf32> to vector<4x64xbf16>
    %c4_433 = arith.constant 4 : index
    %c0_434 = arith.constant 0 : index
    %c0_435 = arith.constant 0 : index
    %853 = vector.load %arg3[%c4_433, %c0_434, %c0_435] : memref<9x64x64xbf16, #tpu.memory_space<vmem>>, vector<1x64x64xbf16>
    %854 = vector.shape_cast %853 : vector<1x64x64xbf16> to vector<64x64xbf16>
    %cst_436 = arith.constant dense<0.000000e+00> : vector<4x64xf32>
    %855 = tpu.matmul %852, %854, %cst_436 {dimension_numbers = #tpu.dot_dimension_numbers<[1], [0], [0], [1], [0, 0, 1, 1], [], []>} : vector<4x64xbf16>, vector<64x64xbf16>, vector<4x64xf32> -> vector<4x64xf32>
    %856 = arith.addf %850, %855 : vector<4x64xf32>
    %857 = vector.extract_strided_slice %825 {offsets = [20, 0], sizes = [4, 64], strides = [1, 1]} : vector<36x64xf32> to vector<4x64xf32>
    %858 = arith.truncf %857 : vector<4x64xf32> to vector<4x64xbf16>
    %c5_437 = arith.constant 5 : index
    %c0_438 = arith.constant 0 : index
    %c0_439 = arith.constant 0 : index
    %859 = vector.load %arg3[%c5_437, %c0_438, %c0_439] : memref<9x64x64xbf16, #tpu.memory_space<vmem>>, vector<1x64x64xbf16>
    %860 = vector.shape_cast %859 : vector<1x64x64xbf16> to vector<64x64xbf16>
    %cst_440 = arith.constant dense<0.000000e+00> : vector<4x64xf32>
    %861 = tpu.matmul %858, %860, %cst_440 {dimension_numbers = #tpu.dot_dimension_numbers<[1], [0], [0], [1], [0, 0, 1, 1], [], []>} : vector<4x64xbf16>, vector<64x64xbf16>, vector<4x64xf32> -> vector<4x64xf32>
    %862 = arith.addf %856, %861 : vector<4x64xf32>
    %863 = vector.extract_strided_slice %825 {offsets = [24, 0], sizes = [4, 64], strides = [1, 1]} : vector<36x64xf32> to vector<4x64xf32>
    %864 = arith.truncf %863 : vector<4x64xf32> to vector<4x64xbf16>
    %c6_441 = arith.constant 6 : index
    %c0_442 = arith.constant 0 : index
    %c0_443 = arith.constant 0 : index
    %865 = vector.load %arg3[%c6_441, %c0_442, %c0_443] : memref<9x64x64xbf16, #tpu.memory_space<vmem>>, vector<1x64x64xbf16>
    %866 = vector.shape_cast %865 : vector<1x64x64xbf16> to vector<64x64xbf16>
    %cst_444 = arith.constant dense<0.000000e+00> : vector<4x64xf32>
    %867 = tpu.matmul %864, %866, %cst_444 {dimension_numbers = #tpu.dot_dimension_numbers<[1], [0], [0], [1], [0, 0, 1, 1], [], []>} : vector<4x64xbf16>, vector<64x64xbf16>, vector<4x64xf32> -> vector<4x64xf32>
    %868 = arith.addf %862, %867 : vector<4x64xf32>
    %869 = vector.extract_strided_slice %825 {offsets = [28, 0], sizes = [4, 64], strides = [1, 1]} : vector<36x64xf32> to vector<4x64xf32>
    %870 = arith.truncf %869 : vector<4x64xf32> to vector<4x64xbf16>
    %c7_445 = arith.constant 7 : index
    %c0_446 = arith.constant 0 : index
    %c0_447 = arith.constant 0 : index
    %871 = vector.load %arg3[%c7_445, %c0_446, %c0_447] : memref<9x64x64xbf16, #tpu.memory_space<vmem>>, vector<1x64x64xbf16>
    %872 = vector.shape_cast %871 : vector<1x64x64xbf16> to vector<64x64xbf16>
    %cst_448 = arith.constant dense<0.000000e+00> : vector<4x64xf32>
    %873 = tpu.matmul %870, %872, %cst_448 {dimension_numbers = #tpu.dot_dimension_numbers<[1], [0], [0], [1], [0, 0, 1, 1], [], []>} : vector<4x64xbf16>, vector<64x64xbf16>, vector<4x64xf32> -> vector<4x64xf32>
    %874 = arith.addf %868, %873 : vector<4x64xf32>
    %875 = vector.extract_strided_slice %825 {offsets = [32, 0], sizes = [4, 64], strides = [1, 1]} : vector<36x64xf32> to vector<4x64xf32>
    %876 = arith.truncf %875 : vector<4x64xf32> to vector<4x64xbf16>
    %c8_449 = arith.constant 8 : index
    %c0_450 = arith.constant 0 : index
    %c0_451 = arith.constant 0 : index
    %877 = vector.load %arg3[%c8_449, %c0_450, %c0_451] : memref<9x64x64xbf16, #tpu.memory_space<vmem>>, vector<1x64x64xbf16>
    %878 = vector.shape_cast %877 : vector<1x64x64xbf16> to vector<64x64xbf16>
    %cst_452 = arith.constant dense<0.000000e+00> : vector<4x64xf32>
    %879 = tpu.matmul %876, %878, %cst_452 {dimension_numbers = #tpu.dot_dimension_numbers<[1], [0], [0], [1], [0, 0, 1, 1], [], []>} : vector<4x64xbf16>, vector<64x64xbf16>, vector<4x64xf32> -> vector<4x64xf32>
    %880 = arith.addf %874, %879 : vector<4x64xf32>
    %881 = vector.broadcast %711 : vector<4x1xf32> to vector<4x64xf32>
    %882 = arith.addf %880, %881 : vector<4x64xf32>
    %883 = arith.addf %716, %882 : vector<4x64xf32>
    %cst_453 = arith.constant 0.707106769 : f32
    %884 = vector.broadcast %cst_453 : f32 to vector<4x64xf32>
    %885 = arith.mulf %883, %884 : vector<4x64xf32>
    %886 = arith.addf %885, %144 : vector<4x64xf32>
    %c0_454 = arith.constant 0 : index
    %c0_455 = arith.constant 0 : index
    %887 = vector.load %arg23[%c0_454, %c0_455] : memref<76x4xbf16, #tpu.memory_space<vmem>>, vector<76x4xbf16>
    %c0_456 = arith.constant 0 : index
    %c0_457 = arith.constant 0 : index
    %888 = vector.load %arg29[%c0_456, %c0_457] : memref<24x1xf32, #tpu.memory_space<vmem>>, vector<24x1xf32>
    %889 = vector.extract_strided_slice %887 {offsets = [0, 0], sizes = [36, 4], strides = [1, 1]} : vector<76x4xbf16> to vector<36x4xbf16>
    %890 = vector.extract_strided_slice %887 {offsets = [36, 0], sizes = [36, 4], strides = [1, 1]} : vector<76x4xbf16> to vector<36x4xbf16>
    %891 = vector.extract_strided_slice %887 {offsets = [72, 0], sizes = [4, 4], strides = [1, 1]} : vector<76x4xbf16> to vector<4x4xbf16>
    %892 = vector.extract_strided_slice %888 {offsets = [0, 0], sizes = [4, 1], strides = [1, 1]} : vector<24x1xf32> to vector<4x1xf32>
    %893 = vector.extract_strided_slice %888 {offsets = [4, 0], sizes = [4, 1], strides = [1, 1]} : vector<24x1xf32> to vector<4x1xf32>
    %894 = vector.extract_strided_slice %888 {offsets = [8, 0], sizes = [4, 1], strides = [1, 1]} : vector<24x1xf32> to vector<4x1xf32>
    %895 = vector.extract_strided_slice %888 {offsets = [12, 0], sizes = [4, 1], strides = [1, 1]} : vector<24x1xf32> to vector<4x1xf32>
    %896 = vector.extract_strided_slice %888 {offsets = [16, 0], sizes = [4, 1], strides = [1, 1]} : vector<24x1xf32> to vector<4x1xf32>
    %897 = vector.extract_strided_slice %888 {offsets = [20, 0], sizes = [4, 1], strides = [1, 1]} : vector<24x1xf32> to vector<4x1xf32>
    %898 = arith.truncf %886 : vector<4x64xf32> to vector<4x64xbf16>
    %cst_458 = arith.constant dense<0.000000e+00> : vector<4x64xf32>
    %899 = tpu.matmul %891, %898, %cst_458 {dimension_numbers = #tpu.dot_dimension_numbers<[1], [0], [0], [1], [0, 0, 1, 1], [], []>} : vector<4x4xbf16>, vector<4x64xbf16>, vector<4x64xf32> -> vector<4x64xf32>
    %900 = arith.truncf %899 : vector<4x64xf32> to vector<4x64xbf16>
    %c0_459 = arith.constant 0 : index
    %c0_460 = arith.constant 0 : index
    %901 = vector.load %arg17[%c0_459, %c0_460] : memref<64x256xbf16, #tpu.memory_space<vmem>>, vector<64x256xbf16>
    %cst_461 = arith.constant dense<0.000000e+00> : vector<4x256xf32>
    %902 = tpu.matmul %900, %901, %cst_461 {dimension_numbers = #tpu.dot_dimension_numbers<[1], [0], [0], [1], [0, 0, 1, 1], [], []>} : vector<4x64xbf16>, vector<64x256xbf16>, vector<4x256xf32> -> vector<4x256xf32>
    %cst_462 = arith.constant dense<0.000000e+00> : vector<4xf32>
    %903 = vector.multi_reduction <add>, %886, %cst_462 [1] : vector<4x64xf32> to vector<4xf32>
    %904 = vector.shape_cast %903 : vector<4xf32> to vector<4x1xf32>
    %cst_463 = arith.constant 6.400000e+01 : f32
    %905 = vector.broadcast %cst_463 : f32 to vector<4x1xf32>
    %906 = arith.divf %904, %905 : vector<4x1xf32>
    %907 = vector.broadcast %906 : vector<4x1xf32> to vector<4x64xf32>
    %908 = arith.subf %886, %907 : vector<4x64xf32>
    %909 = arith.mulf %908, %908 : vector<4x64xf32>
    %cst_464 = arith.constant dense<0.000000e+00> : vector<4xf32>
    %910 = vector.multi_reduction <add>, %909, %cst_464 [1] : vector<4x64xf32> to vector<4xf32>
    %911 = vector.shape_cast %910 : vector<4xf32> to vector<4x1xf32>
    %cst_465 = arith.constant 0.0158730168 : f32
    %912 = vector.broadcast %cst_465 : f32 to vector<4x1xf32>
    %913 = arith.mulf %911, %912 : vector<4x1xf32>
    %914 = math.sqrt %913 : vector<4x1xf32>
    %cst_466 = arith.constant 9.99999974E-6 : f32
    %915 = vector.broadcast %cst_466 : f32 to vector<4x1xf32>
    %916 = arith.addf %914, %915 : vector<4x1xf32>
    %917 = arith.divf %892, %916 : vector<4x1xf32>
    %918 = vector.broadcast %917 : vector<4x1xf32> to vector<4x64xf32>
    %919 = arith.mulf %908, %918 : vector<4x64xf32>
    %920 = vector.broadcast %893 : vector<4x1xf32> to vector<4x64xf32>
    %921 = arith.addf %919, %920 : vector<4x64xf32>
    %cst_467 = arith.constant 0.000000e+00 : f32
    %922 = vector.broadcast %cst_467 : f32 to vector<4x64xf32>
    %923 = arith.cmpf ogt, %921, %922 : vector<4x64xf32>
    %cst_468 = arith.constant 2.000000e-01 : f32
    %924 = vector.broadcast %cst_468 : f32 to vector<4x64xf32>
    %925 = arith.mulf %924, %921 : vector<4x64xf32>
    %926 = arith.select %923, %921, %925 : vector<4x64xi1>, vector<4x64xf32>
    %927 = arith.truncf %926 : vector<4x64xf32> to vector<4x64xbf16>
    %cst_469 = arith.constant dense<0.000000e+00> : vector<36x64xf32>
    %928 = tpu.matmul %889, %927, %cst_469 {dimension_numbers = #tpu.dot_dimension_numbers<[1], [0], [0], [1], [0, 0, 1, 1], [], []>} : vector<36x4xbf16>, vector<4x64xbf16>, vector<36x64xf32> -> vector<36x64xf32>
    %cst_470 = arith.constant 0.000000e+00 : f32
    %929 = vector.broadcast %cst_470 : f32 to vector<4x256xf32>
    %930 = vector.extract_strided_slice %928 {offsets = [0, 0], sizes = [4, 64], strides = [1, 1]} : vector<36x64xf32> to vector<4x64xf32>
    %931 = arith.truncf %930 : vector<4x64xf32> to vector<4x64xbf16>
    %c0_471 = arith.constant 0 : index
    %c0_472 = arith.constant 0 : index
    %c0_473 = arith.constant 0 : index
    %932 = vector.load %arg15[%c0_471, %c0_472, %c0_473] : memref<9x64x256xbf16, #tpu.memory_space<vmem>>, vector<1x64x256xbf16>
    %933 = vector.shape_cast %932 : vector<1x64x256xbf16> to vector<64x256xbf16>
    %cst_474 = arith.constant dense<0.000000e+00> : vector<4x256xf32>
    %934 = tpu.matmul %931, %933, %cst_474 {dimension_numbers = #tpu.dot_dimension_numbers<[1], [0], [0], [1], [0, 0, 1, 1], [], []>} : vector<4x64xbf16>, vector<64x256xbf16>, vector<4x256xf32> -> vector<4x256xf32>
    %935 = arith.addf %929, %934 : vector<4x256xf32>
    %936 = vector.extract_strided_slice %928 {offsets = [4, 0], sizes = [4, 64], strides = [1, 1]} : vector<36x64xf32> to vector<4x64xf32>
    %937 = arith.truncf %936 : vector<4x64xf32> to vector<4x64xbf16>
    %c1_475 = arith.constant 1 : index
    %c0_476 = arith.constant 0 : index
    %c0_477 = arith.constant 0 : index
    %938 = vector.load %arg15[%c1_475, %c0_476, %c0_477] : memref<9x64x256xbf16, #tpu.memory_space<vmem>>, vector<1x64x256xbf16>
    %939 = vector.shape_cast %938 : vector<1x64x256xbf16> to vector<64x256xbf16>
    %cst_478 = arith.constant dense<0.000000e+00> : vector<4x256xf32>
    %940 = tpu.matmul %937, %939, %cst_478 {dimension_numbers = #tpu.dot_dimension_numbers<[1], [0], [0], [1], [0, 0, 1, 1], [], []>} : vector<4x64xbf16>, vector<64x256xbf16>, vector<4x256xf32> -> vector<4x256xf32>
    %941 = arith.addf %935, %940 : vector<4x256xf32>
    %942 = vector.extract_strided_slice %928 {offsets = [8, 0], sizes = [4, 64], strides = [1, 1]} : vector<36x64xf32> to vector<4x64xf32>
    %943 = arith.truncf %942 : vector<4x64xf32> to vector<4x64xbf16>
    %c2_479 = arith.constant 2 : index
    %c0_480 = arith.constant 0 : index
    %c0_481 = arith.constant 0 : index
    %944 = vector.load %arg15[%c2_479, %c0_480, %c0_481] : memref<9x64x256xbf16, #tpu.memory_space<vmem>>, vector<1x64x256xbf16>
    %945 = vector.shape_cast %944 : vector<1x64x256xbf16> to vector<64x256xbf16>
    %cst_482 = arith.constant dense<0.000000e+00> : vector<4x256xf32>
    %946 = tpu.matmul %943, %945, %cst_482 {dimension_numbers = #tpu.dot_dimension_numbers<[1], [0], [0], [1], [0, 0, 1, 1], [], []>} : vector<4x64xbf16>, vector<64x256xbf16>, vector<4x256xf32> -> vector<4x256xf32>
    %947 = arith.addf %941, %946 : vector<4x256xf32>
    %948 = vector.extract_strided_slice %928 {offsets = [12, 0], sizes = [4, 64], strides = [1, 1]} : vector<36x64xf32> to vector<4x64xf32>
    %949 = arith.truncf %948 : vector<4x64xf32> to vector<4x64xbf16>
    %c3_483 = arith.constant 3 : index
    %c0_484 = arith.constant 0 : index
    %c0_485 = arith.constant 0 : index
    %950 = vector.load %arg15[%c3_483, %c0_484, %c0_485] : memref<9x64x256xbf16, #tpu.memory_space<vmem>>, vector<1x64x256xbf16>
    %951 = vector.shape_cast %950 : vector<1x64x256xbf16> to vector<64x256xbf16>
    %cst_486 = arith.constant dense<0.000000e+00> : vector<4x256xf32>
    %952 = tpu.matmul %949, %951, %cst_486 {dimension_numbers = #tpu.dot_dimension_numbers<[1], [0], [0], [1], [0, 0, 1, 1], [], []>} : vector<4x64xbf16>, vector<64x256xbf16>, vector<4x256xf32> -> vector<4x256xf32>
    %953 = arith.addf %947, %952 : vector<4x256xf32>
    %954 = vector.extract_strided_slice %928 {offsets = [16, 0], sizes = [4, 64], strides = [1, 1]} : vector<36x64xf32> to vector<4x64xf32>
    %955 = arith.truncf %954 : vector<4x64xf32> to vector<4x64xbf16>
    %c4_487 = arith.constant 4 : index
    %c0_488 = arith.constant 0 : index
    %c0_489 = arith.constant 0 : index
    %956 = vector.load %arg15[%c4_487, %c0_488, %c0_489] : memref<9x64x256xbf16, #tpu.memory_space<vmem>>, vector<1x64x256xbf16>
    %957 = vector.shape_cast %956 : vector<1x64x256xbf16> to vector<64x256xbf16>
    %cst_490 = arith.constant dense<0.000000e+00> : vector<4x256xf32>
    %958 = tpu.matmul %955, %957, %cst_490 {dimension_numbers = #tpu.dot_dimension_numbers<[1], [0], [0], [1], [0, 0, 1, 1], [], []>} : vector<4x64xbf16>, vector<64x256xbf16>, vector<4x256xf32> -> vector<4x256xf32>
    %959 = arith.addf %953, %958 : vector<4x256xf32>
    %960 = vector.extract_strided_slice %928 {offsets = [20, 0], sizes = [4, 64], strides = [1, 1]} : vector<36x64xf32> to vector<4x64xf32>
    %961 = arith.truncf %960 : vector<4x64xf32> to vector<4x64xbf16>
    %c5_491 = arith.constant 5 : index
    %c0_492 = arith.constant 0 : index
    %c0_493 = arith.constant 0 : index
    %962 = vector.load %arg15[%c5_491, %c0_492, %c0_493] : memref<9x64x256xbf16, #tpu.memory_space<vmem>>, vector<1x64x256xbf16>
    %963 = vector.shape_cast %962 : vector<1x64x256xbf16> to vector<64x256xbf16>
    %cst_494 = arith.constant dense<0.000000e+00> : vector<4x256xf32>
    %964 = tpu.matmul %961, %963, %cst_494 {dimension_numbers = #tpu.dot_dimension_numbers<[1], [0], [0], [1], [0, 0, 1, 1], [], []>} : vector<4x64xbf16>, vector<64x256xbf16>, vector<4x256xf32> -> vector<4x256xf32>
    %965 = arith.addf %959, %964 : vector<4x256xf32>
    %966 = vector.extract_strided_slice %928 {offsets = [24, 0], sizes = [4, 64], strides = [1, 1]} : vector<36x64xf32> to vector<4x64xf32>
    %967 = arith.truncf %966 : vector<4x64xf32> to vector<4x64xbf16>
    %c6_495 = arith.constant 6 : index
    %c0_496 = arith.constant 0 : index
    %c0_497 = arith.constant 0 : index
    %968 = vector.load %arg15[%c6_495, %c0_496, %c0_497] : memref<9x64x256xbf16, #tpu.memory_space<vmem>>, vector<1x64x256xbf16>
    %969 = vector.shape_cast %968 : vector<1x64x256xbf16> to vector<64x256xbf16>
    %cst_498 = arith.constant dense<0.000000e+00> : vector<4x256xf32>
    %970 = tpu.matmul %967, %969, %cst_498 {dimension_numbers = #tpu.dot_dimension_numbers<[1], [0], [0], [1], [0, 0, 1, 1], [], []>} : vector<4x64xbf16>, vector<64x256xbf16>, vector<4x256xf32> -> vector<4x256xf32>
    %971 = arith.addf %965, %970 : vector<4x256xf32>
    %972 = vector.extract_strided_slice %928 {offsets = [28, 0], sizes = [4, 64], strides = [1, 1]} : vector<36x64xf32> to vector<4x64xf32>
    %973 = arith.truncf %972 : vector<4x64xf32> to vector<4x64xbf16>
    %c7_499 = arith.constant 7 : index
    %c0_500 = arith.constant 0 : index
    %c0_501 = arith.constant 0 : index
    %974 = vector.load %arg15[%c7_499, %c0_500, %c0_501] : memref<9x64x256xbf16, #tpu.memory_space<vmem>>, vector<1x64x256xbf16>
    %975 = vector.shape_cast %974 : vector<1x64x256xbf16> to vector<64x256xbf16>
    %cst_502 = arith.constant dense<0.000000e+00> : vector<4x256xf32>
    %976 = tpu.matmul %973, %975, %cst_502 {dimension_numbers = #tpu.dot_dimension_numbers<[1], [0], [0], [1], [0, 0, 1, 1], [], []>} : vector<4x64xbf16>, vector<64x256xbf16>, vector<4x256xf32> -> vector<4x256xf32>
    %977 = arith.addf %971, %976 : vector<4x256xf32>
    %978 = vector.extract_strided_slice %928 {offsets = [32, 0], sizes = [4, 64], strides = [1, 1]} : vector<36x64xf32> to vector<4x64xf32>
    %979 = arith.truncf %978 : vector<4x64xf32> to vector<4x64xbf16>
    %c8_503 = arith.constant 8 : index
    %c0_504 = arith.constant 0 : index
    %c0_505 = arith.constant 0 : index
    %980 = vector.load %arg15[%c8_503, %c0_504, %c0_505] : memref<9x64x256xbf16, #tpu.memory_space<vmem>>, vector<1x64x256xbf16>
    %981 = vector.shape_cast %980 : vector<1x64x256xbf16> to vector<64x256xbf16>
    %cst_506 = arith.constant dense<0.000000e+00> : vector<4x256xf32>
    %982 = tpu.matmul %979, %981, %cst_506 {dimension_numbers = #tpu.dot_dimension_numbers<[1], [0], [0], [1], [0, 0, 1, 1], [], []>} : vector<4x64xbf16>, vector<64x256xbf16>, vector<4x256xf32> -> vector<4x256xf32>
    %983 = arith.addf %977, %982 : vector<4x256xf32>
    %984 = vector.broadcast %894 : vector<4x1xf32> to vector<4x256xf32>
    %985 = arith.addf %983, %984 : vector<4x256xf32>
    %cst_507 = arith.constant dense<0.000000e+00> : vector<4xf32>
    %986 = vector.multi_reduction <add>, %985, %cst_507 [1] : vector<4x256xf32> to vector<4xf32>
    %987 = vector.shape_cast %986 : vector<4xf32> to vector<4x1xf32>
    %cst_508 = arith.constant 2.560000e+02 : f32
    %988 = vector.broadcast %cst_508 : f32 to vector<4x1xf32>
    %989 = arith.divf %987, %988 : vector<4x1xf32>
    %990 = vector.broadcast %989 : vector<4x1xf32> to vector<4x256xf32>
    %991 = arith.subf %985, %990 : vector<4x256xf32>
    %992 = arith.mulf %991, %991 : vector<4x256xf32>
    %cst_509 = arith.constant dense<0.000000e+00> : vector<4xf32>
    %993 = vector.multi_reduction <add>, %992, %cst_509 [1] : vector<4x256xf32> to vector<4xf32>
    %994 = vector.shape_cast %993 : vector<4xf32> to vector<4x1xf32>
    %cst_510 = arith.constant 0.00392156886 : f32
    %995 = vector.broadcast %cst_510 : f32 to vector<4x1xf32>
    %996 = arith.mulf %994, %995 : vector<4x1xf32>
    %997 = math.sqrt %996 : vector<4x1xf32>
    %cst_511 = arith.constant 9.99999974E-6 : f32
    %998 = vector.broadcast %cst_511 : f32 to vector<4x1xf32>
    %999 = arith.addf %997, %998 : vector<4x1xf32>
    %1000 = arith.divf %895, %999 : vector<4x1xf32>
    %1001 = vector.broadcast %1000 : vector<4x1xf32> to vector<4x256xf32>
    %1002 = arith.mulf %991, %1001 : vector<4x256xf32>
    %1003 = vector.broadcast %896 : vector<4x1xf32> to vector<4x256xf32>
    %1004 = arith.addf %1002, %1003 : vector<4x256xf32>
    %cst_512 = arith.constant 0.000000e+00 : f32
    %1005 = vector.broadcast %cst_512 : f32 to vector<4x256xf32>
    %1006 = arith.cmpf ogt, %1004, %1005 : vector<4x256xf32>
    %cst_513 = arith.constant 2.000000e-01 : f32
    %1007 = vector.broadcast %cst_513 : f32 to vector<4x256xf32>
    %1008 = arith.mulf %1007, %1004 : vector<4x256xf32>
    %1009 = arith.select %1006, %1004, %1008 : vector<4x256xi1>, vector<4x256xf32>
    %1010 = arith.truncf %1009 : vector<4x256xf32> to vector<4x256xbf16>
    %cst_514 = arith.constant dense<0.000000e+00> : vector<36x256xf32>
    %1011 = tpu.matmul %890, %1010, %cst_514 {dimension_numbers = #tpu.dot_dimension_numbers<[1], [0], [0], [1], [0, 0, 1, 1], [], []>} : vector<36x4xbf16>, vector<4x256xbf16>, vector<36x256xf32> -> vector<36x256xf32>
    %1012 = vector.extract_strided_slice %1011 {offsets = [0, 0], sizes = [4, 256], strides = [1, 1]} : vector<36x256xf32> to vector<4x256xf32>
    %1013 = vector.extract_strided_slice %1011 {offsets = [4, 0], sizes = [4, 256], strides = [1, 1]} : vector<36x256xf32> to vector<4x256xf32>
    %1014 = vector.extract_strided_slice %1011 {offsets = [8, 0], sizes = [4, 256], strides = [1, 1]} : vector<36x256xf32> to vector<4x256xf32>
    %1015 = vector.extract_strided_slice %1011 {offsets = [12, 0], sizes = [4, 256], strides = [1, 1]} : vector<36x256xf32> to vector<4x256xf32>
    %1016 = vector.extract_strided_slice %1011 {offsets = [16, 0], sizes = [4, 256], strides = [1, 1]} : vector<36x256xf32> to vector<4x256xf32>
    %1017 = vector.extract_strided_slice %1011 {offsets = [20, 0], sizes = [4, 256], strides = [1, 1]} : vector<36x256xf32> to vector<4x256xf32>
    %1018 = vector.extract_strided_slice %1011 {offsets = [24, 0], sizes = [4, 256], strides = [1, 1]} : vector<36x256xf32> to vector<4x256xf32>
    %1019 = vector.extract_strided_slice %1011 {offsets = [28, 0], sizes = [4, 256], strides = [1, 1]} : vector<36x256xf32> to vector<4x256xf32>
    %1020 = vector.extract_strided_slice %1011 {offsets = [32, 0], sizes = [4, 256], strides = [1, 1]} : vector<36x256xf32> to vector<4x256xf32>
    %1021 = tpu.concatenate %1012, %1013, %1014, %1015, %1016, %1017, %1018, %1019, %1020 in 1 : vector<4x256xf32>, vector<4x256xf32>, vector<4x256xf32>, vector<4x256xf32>, vector<4x256xf32>, vector<4x256xf32>, vector<4x256xf32>, vector<4x256xf32>, vector<4x256xf32> -> vector<4x2304xf32>
    %1022 = arith.truncf %1021 : vector<4x2304xf32> to vector<4x2304xbf16>
    %c0_515 = arith.constant 0 : index
    %c0_516 = arith.constant 0 : index
    %1023 = vector.load %arg16[%c0_515, %c0_516] : memref<2304x256xbf16, #tpu.memory_space<vmem>>, vector<2304x256xbf16>
    %cst_517 = arith.constant dense<0.000000e+00> : vector<4x256xf32>
    %1024 = tpu.matmul %1022, %1023, %cst_517 {dimension_numbers = #tpu.dot_dimension_numbers<[1], [0], [0], [1], [0, 0, 1, 1], [], []>} : vector<4x2304xbf16>, vector<2304x256xbf16>, vector<4x256xf32> -> vector<4x256xf32>
    %1025 = vector.broadcast %897 : vector<4x1xf32> to vector<4x256xf32>
    %1026 = arith.addf %1024, %1025 : vector<4x256xf32>
    %1027 = arith.addf %902, %1026 : vector<4x256xf32>
    %cst_518 = arith.constant 0.707106769 : f32
    %1028 = vector.broadcast %cst_518 : f32 to vector<4x256xf32>
    %1029 = arith.mulf %1027, %1028 : vector<4x256xf32>
    %1030 = arith.negf %1029 : vector<4x256xf32>
    %1031 = math.exp %1030 : vector<4x256xf32>
    %cst_519 = arith.constant 1.000000e+00 : f32
    %1032 = vector.broadcast %cst_519 : f32 to vector<4x256xf32>
    %1033 = arith.addf %1032, %1031 : vector<4x256xf32>
    %1034 = arith.divf %1032, %1033 : vector<4x256xf32>
    %c0_520 = arith.constant 0 : index
    %c0_521 = arith.constant 0 : index
    %c0_522 = arith.constant 0 : index
    %1035 = vector.load %arg30[%c0_520, %c0_521, %c0_522] : memref<1x4x256xf32, #tpu.memory_space<vmem>>, vector<1x4x256xf32>
    %1036 = vector.shape_cast %1035 : vector<1x4x256xf32> to vector<4x256xf32>
    %1037 = vector.shape_cast %1034 : vector<4x256xf32> to vector<1x4x256xf32>
    tpu.vector_store %arg30[%c0_520, %c0_521, %c0_522], %1037 {strides = array<i32>} : memref<1x4x256xf32, #tpu.memory_space<vmem>>, vector<1x4x256xf32>,
    return
  }
  func.func @transform_0(%arg0: i32) -> (i32, i32, i32) {
    %c0_i32 = arith.constant 0 : i32
    %c0_i32_0 = arith.constant 0 : i32
    %c0_i32_1 = arith.constant 0 : i32
    return %arg0, %c0_i32, %c0_i32_0 : i32, i32, i32
  }
  func.func @transform_1(%arg0: i32) -> (i32, i32) {
    %c0_i32 = arith.constant 0 : i32
    %c0_i32_0 = arith.constant 0 : i32
    %c0_i32_1 = arith.constant 0 : i32
    return %c0_i32, %c0_i32_0 : i32, i32
  }
  func.func @transform_2(%arg0: i32) -> (i32, i32, i32) {
    %c0_i32 = arith.constant 0 : i32
    %c0_i32_0 = arith.constant 0 : i32
    %c0_i32_1 = arith.constant 0 : i32
    %c0_i32_2 = arith.constant 0 : i32
    return %c0_i32, %c0_i32_0, %c0_i32_1 : i32, i32, i32
  }
  func.func @transform_3(%arg0: i32) -> (i32, i32) {
    %c0_i32 = arith.constant 0 : i32
    %c0_i32_0 = arith.constant 0 : i32
    %c0_i32_1 = arith.constant 0 : i32
    return %c0_i32, %c0_i32_0 : i32, i32
  }
  func.func @transform_4(%arg0: i32) -> (i32, i32, i32) {
    %c0_i32 = arith.constant 0 : i32
    %c0_i32_0 = arith.constant 0 : i32
    %c0_i32_1 = arith.constant 0 : i32
    %c0_i32_2 = arith.constant 0 : i32
    return %c0_i32, %c0_i32_0, %c0_i32_1 : i32, i32, i32
  }
  func.func @transform_5(%arg0: i32) -> (i32, i32, i32) {
    %c0_i32 = arith.constant 0 : i32
    %c0_i32_0 = arith.constant 0 : i32
    %c0_i32_1 = arith.constant 0 : i32
    %c0_i32_2 = arith.constant 0 : i32
    return %c0_i32, %c0_i32_0, %c0_i32_1 : i32, i32, i32
  }
  func.func @transform_6(%arg0: i32) -> (i32, i32) {
    %c0_i32 = arith.constant 0 : i32
    %c0_i32_0 = arith.constant 0 : i32
    %c0_i32_1 = arith.constant 0 : i32
    return %c0_i32, %c0_i32_0 : i32, i32
  }
  func.func @transform_7(%arg0: i32) -> (i32, i32, i32) {
    %c0_i32 = arith.constant 0 : i32
    %c0_i32_0 = arith.constant 0 : i32
    %c0_i32_1 = arith.constant 0 : i32
    %c0_i32_2 = arith.constant 0 : i32
    return %c0_i32, %c0_i32_0, %c0_i32_1 : i32, i32, i32
  }
  func.func @transform_8(%arg0: i32) -> (i32, i32, i32) {
    %c0_i32 = arith.constant 0 : i32
    %c0_i32_0 = arith.constant 0 : i32
    %c0_i32_1 = arith.constant 0 : i32
    %c0_i32_2 = arith.constant 0 : i32
    return %c0_i32, %c0_i32_0, %c0_i32_1 : i32, i32, i32
  }
  func.func @transform_9(%arg0: i32) -> (i32, i32) {
    %c0_i32 = arith.constant 0 : i32
    %c0_i32_0 = arith.constant 0 : i32
    %c0_i32_1 = arith.constant 0 : i32
    return %c0_i32, %c0_i32_0 : i32, i32
  }
  func.func @transform_10(%arg0: i32) -> (i32, i32, i32) {
    %c0_i32 = arith.constant 0 : i32
    %c0_i32_0 = arith.constant 0 : i32
    %c0_i32_1 = arith.constant 0 : i32
    %c0_i32_2 = arith.constant 0 : i32
    return %c0_i32, %c0_i32_0, %c0_i32_1 : i32, i32, i32
  }
  func.func @transform_11(%arg0: i32) -> (i32, i32) {
    %c0_i32 = arith.constant 0 : i32
    %c0_i32_0 = arith.constant 0 : i32
    %c0_i32_1 = arith.constant 0 : i32
    return %c0_i32, %c0_i32_0 : i32, i32
  }
  func.func @transform_12(%arg0: i32) -> (i32, i32, i32) {
    %c0_i32 = arith.constant 0 : i32
    %c0_i32_0 = arith.constant 0 : i32
    %c0_i32_1 = arith.constant 0 : i32
    %c0_i32_2 = arith.constant 0 : i32
    return %c0_i32, %c0_i32_0, %c0_i32_1 : i32, i32, i32
  }
  func.func @transform_13(%arg0: i32) -> (i32, i32) {
    %c0_i32 = arith.constant 0 : i32
    %c0_i32_0 = arith.constant 0 : i32
    %c0_i32_1 = arith.constant 0 : i32
    return %c0_i32, %c0_i32_0 : i32, i32
  }
  func.func @transform_14(%arg0: i32) -> (i32, i32, i32) {
    %c0_i32 = arith.constant 0 : i32
    %c0_i32_0 = arith.constant 0 : i32
    %c0_i32_1 = arith.constant 0 : i32
    %c0_i32_2 = arith.constant 0 : i32
    return %c0_i32, %c0_i32_0, %c0_i32_1 : i32, i32, i32
  }
  func.func @transform_15(%arg0: i32) -> (i32, i32) {
    %c0_i32 = arith.constant 0 : i32
    %c0_i32_0 = arith.constant 0 : i32
    %c0_i32_1 = arith.constant 0 : i32
    return %c0_i32, %c0_i32_0 : i32, i32
  }
  func.func @transform_16(%arg0: i32) -> (i32, i32) {
    %c0_i32 = arith.constant 0 : i32
    %c0_i32_0 = arith.constant 0 : i32
    %c0_i32_1 = arith.constant 0 : i32
    return %c0_i32, %c0_i32_0 : i32, i32
  }
  func.func @transform_17(%arg0: i32) -> (i32, i32) {
    %c0_i32 = arith.constant 0 : i32
    %c0_i32_0 = arith.constant 0 : i32
    %c0_i32_1 = arith.constant 0 : i32
    return %c0_i32, %c0_i32_0 : i32, i32
  }
  func.func @transform_18(%arg0: i32) -> (i32, i32) {
    %c0_i32 = arith.constant 0 : i32
    %c0_i32_0 = arith.constant 0 : i32
    %c0_i32_1 = arith.constant 0 : i32
    return %c0_i32, %c0_i32_0 : i32, i32
  }
  func.func @transform_19(%arg0: i32) -> (i32, i32) {
    %c0_i32 = arith.constant 0 : i32
    %c0_i32_0 = arith.constant 0 : i32
    %c0_i32_1 = arith.constant 0 : i32
    return %c0_i32, %c0_i32_0 : i32, i32
  }
  func.func @transform_20(%arg0: i32) -> (i32, i32) {
    %c0_i32 = arith.constant 0 : i32
    %c0_i32_0 = arith.constant 0 : i32
    %c0_i32_1 = arith.constant 0 : i32
    return %c0_i32, %c0_i32_0 : i32, i32
  }
  func.func @transform_21(%arg0: i32) -> (i32, i32) {
    %c0_i32 = arith.constant 0 : i32
    %c0_i32_0 = arith.constant 0 : i32
    %c0_i32_1 = arith.constant 0 : i32
    return %c0_i32, %c0_i32_0 : i32, i32
  }
  func.func @transform_22(%arg0: i32) -> (i32, i32) {
    %c0_i32 = arith.constant 0 : i32
    %c0_i32_0 = arith.constant 0 : i32
    %c0_i32_1 = arith.constant 0 : i32
    return %c0_i32, %c0_i32_0 : i32, i32
  }
  func.func @transform_23(%arg0: i32) -> (i32, i32) {
    %c0_i32 = arith.constant 0 : i32
    %c0_i32_0 = arith.constant 0 : i32
    %c0_i32_1 = arith.constant 0 : i32
    return %c0_i32, %c0_i32_0 : i32, i32
  }
  func.func @transform_24(%arg0: i32) -> (i32, i32) {
    %c0_i32 = arith.constant 0 : i32
    %c0_i32_0 = arith.constant 0 : i32
    %c0_i32_1 = arith.constant 0 : i32
    return %c0_i32, %c0_i32_0 : i32, i32
  }
  func.func @transform_25(%arg0: i32) -> (i32, i32) {
    %c0_i32 = arith.constant 0 : i32
    %c0_i32_0 = arith.constant 0 : i32
    %c0_i32_1 = arith.constant 0 : i32
    return %c0_i32, %c0_i32_0 : i32, i32
  }
  func.func @transform_26(%arg0: i32) -> (i32, i32) {
    %c0_i32 = arith.constant 0 : i32
    %c0_i32_0 = arith.constant 0 : i32
    %c0_i32_1 = arith.constant 0 : i32
    return %c0_i32, %c0_i32_0 : i32, i32
  }
  func.func @transform_27(%arg0: i32) -> (i32, i32) {
    %c0_i32 = arith.constant 0 : i32
    %c0_i32_0 = arith.constant 0 : i32
    %c0_i32_1 = arith.constant 0 : i32
    return %c0_i32, %c0_i32_0 : i32, i32
  }
  func.func @transform_28(%arg0: i32) -> (i32, i32) {
    %c0_i32 = arith.constant 0 : i32
    %c0_i32_0 = arith.constant 0 : i32
    %c0_i32_1 = arith.constant 0 : i32
    return %c0_i32, %c0_i32_0 : i32, i32
  }
  func.func @transform_29(%arg0: i32) -> (i32, i32, i32) {
    %c0_i32 = arith.constant 0 : i32
    %c0_i32_0 = arith.constant 0 : i32
    %c0_i32_1 = arith.constant 0 : i32
    return %arg0, %c0_i32, %c0_i32_0 : i32, i32, i32
  }
}

</mosaic_0001>

<bundles_post_ra>
// kernel: forward.1
= control target key start
LH: loop header
LB: loop body
LE: loop exit
PB: predicated region body
PF: predicated region fallthrough
CT: control target
= control target key end

     0   :  { %s13993_s6 = smov 1   ;;  %s13994_s10 = smov 2   ;;  %s15937_s0 = inlined_call_operand.smem [shape: u32[30], index: -1, kind: input, shape index: {}] }
   0x1   :  { %s14043_s5 = sld [smem:[%s15937_s0]]   ;;  %s13995_s14 = smov 3  }
   0x2   :  { %s14048_s9 = sld [smem:[%s15937_s0 + %s13993_s6]]   ;;  %s13996_s18 = smov 4  }
   0x3   :  { %s14053_s13 = sld [smem:[%s15937_s0 + %s13994_s10]]   ;;  %s13997_s22 = smov 5  }
   0x4   :  { %s14058_s17 = sld [smem:[%s15937_s0 + %s13995_s14]]   ;;  %s13998_s26 = smov 6  }
   0x5   :  { %s14063_s21 = sld [smem:[%s15937_s0 + %s13996_s18]]   ;;  %s13999_s30 = smov 7  }
   0x6   :  { %s14068_s25 = sld [smem:[%s15937_s0 + %s13997_s22]]   ;;  %s14000_s4 = smov 8  }
   0x7   :  { %s14073_s29 = sld [smem:[%s15937_s0 + %s13998_s26]]   ;;  %s14001_s10 = smov 9  }
   0x8   :  { %s14078_s3 = sld [smem:[%s15937_s0 + %s13999_s30]]   ;;  %s14002_s15 = smov 10  }
   0x9   :  { %s14083_s8 = sld [smem:[%s15937_s0 + %s14000_s4]]   ;;  %s14003_s20 = smov 11  }
   0xa   :  { %s14088_s14 = sld [smem:[%s15937_s0 + %s14001_s10]]   ;;  %s14004_s26 = smov 12  }
   0xb   :  { %s14093_s19 = sld [smem:[%s15937_s0 + %s14002_s15]]   ;;  %s14005_s1 = smov 13  }
   0xc   :  { %15951 = sst [smem:[#allocation12_spill]] %s14068_s25  ;;  %s14006_s7 = smov 14  }
   0xd   :  { %s14098_s24 = sld [smem:[%s15937_s0 + %s14003_s20]]   ;;  %s14007_s15 = smov 15  }
   0xe   :  { %15952 = sst [smem:[#allocation13_spill]] %s14078_s3  ;;  %s14008_s22 = smov 16  }
   0xf   :  { %15953 = sst [smem:[#allocation14_spill]] %s14083_s8  ;;  %s14009_s28 = smov 17  }
  0x10   :  { %15954 = sst [smem:[#allocation15_spill]] %s14088_s14 }
  0x11   :  { %15955 = sst [smem:[#allocation16_spill]] %s14093_s19 }
  0x12   :  { %s14103_s30 = sld [smem:[%s15937_s0 + %s14004_s26]]  }
  0x13   :  { %15956 = sst [smem:[#allocation17_spill]] %s14098_s24 }
  0x14   :  { %s14108_s6 = sld [smem:[%s15937_s0 + %s14005_s1]]  }
  0x15   :  { %s14113_s12 = sld [smem:[%s15937_s0 + %s14006_s7]]   ;;  %s14010_s7 = smov 18  }
  0x16   :  { %s14118_s20 = sld [smem:[%s15937_s0 + %s14007_s15]]   ;;  %s14011_s15 = smov 19  }
  0x17   :  { %s14123_s27 = sld [smem:[%s15937_s0 + %s14008_s22]]   ;;  %s14012_s22 = smov 20  }
  0x18   :  { %15957 = sst [smem:[#allocation18_spill]] %s14103_s30 }
  0x19   :  { %s14128_s4 = sld [smem:[%s15937_s0 + %s14009_s28]]   ;;  %s14013_s28 = smov 21  }
  0x1a   :  { %s14143_s24 = sld [smem:[%s15937_s0 + %s14012_s22]]   ;;  %s14016_s22 = smov 24  }
  0x1b   :  { %15958 = sst [smem:[#allocation19_spill]] %s14113_s12 }
  0x1c   :  { %15959 = sst [smem:[#allocation20_spill]] %s14118_s20 }
  0x1d   :  { %s14133_s12 = sld [smem:[%s15937_s0 + %s14010_s7]]   ;;  %s14014_s7 = smov 22  }
  0x1e   :  { %s14138_s20 = sld [smem:[%s15937_s0 + %s14011_s15]]   ;;  %s14015_s15 = smov 23  }
  0x1f   :  { %s14148_s19 = sld [smem:[%s15937_s0 + %s14013_s28]]   ;;  %s14017_s28 = smov 25  }
  0x20   :  { %15961 = sst [smem:[#allocation22_spill]] %s14143_s24 }
  0x21   :  { %s14153_s8 = sld [smem:[%s15937_s0 + %s14014_s7]]   ;;  %s14018_s7 = smov 26  }
  0x22   :  { %s14158_s14 = sld [smem:[%s15937_s0 + %s14015_s15]]   ;;  %s14019_s15 = smov 27  }
  0x23   :  { %s14163_s24 = sld [smem:[%s15937_s0 + %s14016_s22]]   ;;  %s14020_s22 = smov 28  }
  0x24   :  { %15960 = sst [smem:[#allocation21_spill]] %s14138_s20 }
  0x25   :  { %15962 = sst [smem:[#allocation23_spill]] %s14148_s19 }
  0x26   :  { %s14168_s19 = sld [smem:[%s15937_s0 + %s14017_s28]]   ;;  %s14021_s28 = smov 29  }
  0x27   :  { %15963 = sst [smem:[#allocation24_spill]] %s14153_s8 }
  0x28   :  { %s14173_s8 = sld [smem:[%s15937_s0 + %s14018_s7]]  }
  0x29   :  { %s14178_s3 = sld [smem:[%s15937_s0 + %s14019_s15]]  }
  0x2a   :  { %s14183_s20 = sld [smem:[%s15937_s0 + %s14020_s22]]  }
  0x2c   :  { %15964 = sst [smem:[#allocation25_spill]] %s14168_s19 }
  0x2d   :  { %s14188_s19 = sld [smem:[%s15937_s0 + %s14021_s28]]  }
  0x2e   :  { %64 = vsyncpa [#allocation3], 0 }
  0x2f   :  { %65 = vsyncpa [#allocation5], 0 }
  0x30   :  { %66 = vsyncpa [#allocation8], 0  ;;  %s14190_s7 = smov 0  }
  0x31 LB: > { %s15965_s30 = sld [smem:[#allocation18_spill]]  ;;  %s14196_s10 = sadd.s32 4294967295, %s13991_s7   ;;  %s13991_s7 = sphi %s14190_s7, %s72_s7  }
  0x32   : > { %s15966_s25 = sld [smem:[#allocation12_spill]]  ;;  %p9962_p0 = scmp.ge.s32.totalorder %s13991_s7, 1 }
  0x33   : > { %p717_p1 = scmp.lt.s32.totalorder %s13991_s7, 3  ;;  %p13689_p2 = scmp.eq.s32.totalorder %s14196_s10, 0 }
  0x34   : > { %s14022_s16 = smov [#allocation4]   ;;  %s14023_s23 = smov [#allocation2]  }
  0x35   : > { %p14202_p3 = pnand %p9962_p0, %p717_p1  ;;  %s774_s18 = sshll.u32 %s14022_s16, 4  ;;  %s775_s18 = int_to_ptr.vmem [resolvable:$true] %s774_s18 }
  0x36   : > { %s14219_s26 = sshll.u32 %s14023_s23, 4 }
  0x37   : > { %s772_s0 = sshll.u32 %s15965_s30, 4  ;;  %p13676_p4 = pneg %p14202_p3  ;;  %s14206_s0 = int_to_ptr.hbm [resolvable:$true] %s772_s0 }
  0x38   : > { %s740_s15 = sshll.u32 %s15966_s25, 4  ;;  %15969 = sst [smem:[#allocation26_spill]] %s14219_s26  ;;  %s14211_s15 = int_to_ptr.hbm [resolvable:$true] %s740_s15 }
  0x39   : > { %p14215_p5 = pnand %p13689_p2, %p13676_p4  ;;  %s13853_s1 = sshra.s32 %s14206_s0, 4  ;;  %s13854_s1 = int_to_ptr.hbm [resolvable:$true] %s13853_s1 }
  0x3a   : > { %s13855_s2 = scalar_lea.hbm %s13854_s1, 72  ;;  %s13860_s16 = scalar_lea.hbm %s15965_s30, 72 }
  0x3b   : > { %p13856_p6 = scmp.ne.s32.totalorder %s13854_s1, %s13855_s2  ;;  %p13857_p7 = pneg %p14215_p5 }
  0x3c   : > { %p13861_p10 = scmp.lt.s32.totalorder %s13854_s1, %s15965_s30  ;;  %p13862_p11 = scmp.lt.s32.totalorder %s13860_s16, %s13855_s2 }
  0x3d   : > { %p13858_p8 = pnand %p13857_p7, %p13856_p6 }
  0x3e   : > { %p13863_p12 = por %p13862_p11, %p13861_p10 }
  0x3f   : > { %p13859_p9 = pneg %p13858_p8 }
  0x41   : > { %p13864_p13 = pnand %p13863_p12, %p13859_p9 }
  0x43   : > { %13867 = shalt.err (!%p13864_p13)
}
  0x44   : > { %s14024_s23 = smov 64   ;;  %s14025_s28 = smov 4  }
  0x45   : > { %13682 = dma.hbm_to_vmem [thread:$0]  (!%p14215_p5), %s14206_s0, 1152, %s775_s18, [#allocation5], %s14024_s23, %s14024_s23, %s14025_s28  }
  0x46   : > { %s13883_s26 = sshra.s32 %s14211_s15, 4  ;;  %s13890_s2 = scalar_lea.hbm %s15966_s25, 72  ;;  %s13884_s26 = int_to_ptr.hbm [resolvable:$true] %s13883_s26 }
  0x47   : > { %s13885_s1 = scalar_lea.hbm %s13884_s26, 72  ;;  %p13891_p6 = scmp.lt.s32.totalorder %s13884_s26, %s15966_s25 }
  0x48   : > { %p13886_p0 = scmp.ne.s32.totalorder %s13884_s26, %s13885_s1  ;;  %p13892_p8 = scmp.lt.s32.totalorder %s13890_s2, %s13885_s1 }
  0x4a   : > { %p13888_p1 = pnand %p13886_p0, %p13857_p7  ;;  %p13893_p9 = por %p13892_p8, %p13891_p6 }
  0x4c   : > { %p13889_p4 = pneg %p13888_p1 }
  0x4e   : > { %p13894_p10 = pnand %p13893_p9, %p13889_p4 }
  0x50   : > { %13897 = shalt.err (!%p13894_p10)
}
  0x51   : > { %s15970_s0 = sld [smem:[#allocation26_spill]]  ;;  %s15972_s16 = sshll.u32 %s14108_s6, 4  ;;  %s787_s16 = int_to_ptr.hbm [resolvable:$true] %s15972_s16 }
  0x52   : > { %s14026_s26 = smov [#allocation6]   ;;  %s806_s2 = sshll.u32 %s14123_s27, 4  ;;  %s14254_s2 = int_to_ptr.hbm [resolvable:$true] %s806_s2 }
  0x53   : > { %s788_s1 = sshll.u32 %s14026_s26, 4  ;;  %s13913_s25 = sshra.s32 %s787_s16, 4  ;;  %s789_s1 = int_to_ptr.vmem [resolvable:$true] %s788_s1  ;;  %s13914_s25 = int_to_ptr.hbm [resolvable:$true] %s13913_s25 }
  0x54   : > { %s13915_s30 = scalar_lea.hbm %s13914_s25, 8  ;;  %p13921_p0 = scmp.lt.s32.totalorder %s13914_s25, %s14108_s6 }
  0x55   : > { %p13916_p11 = scmp.ne.s32.totalorder %s13914_s25, %s13915_s30 }
  0x57   : > { %s15971_s18 = int_to_ptr.vmem [resolvable:$true] %s15970_s0  ;;  %p13918_p12 = pnand %p13916_p11, %p13857_p7 }
  0x58   : > { %13679 = dma.hbm_to_vmem [thread:$0]  (!%p14215_p5), %s14211_s15, 1152, %s15971_s18, [#allocation3], %s14024_s23, %s14024_s23, %s14025_s28  }
  0x59   : > { %p13919_p13 = pneg %p13918_p12  ;;  %s13920_s0 = scalar_lea.hbm %s14108_s6, 8 }
  0x5a   : > { %p13922_p1 = scmp.lt.s32.totalorder %s13920_s0, %s13915_s30 }
  0x5c   : > { %p13923_p4 = por %p13922_p1, %p13921_p0 }
  0x5e   : > { %p13924_p6 = pnand %p13923_p4, %p13919_p13 }
  0x60   : > { %13927 = shalt.err (!%p13924_p6)
}
  0x61   : > { %13685 = dma.hbm_to_vmem [thread:$0]  (!%p14215_p5), %s787_s16, 128, %s789_s1, [#allocation5], %s14024_s23, %s14024_s23, %s14025_s28  }
  0x62   : > { %s14027_s15 = smov [#allocation7]   ;;  %s13943_s26 = sshra.s32 %s14254_s2, 4  ;;  %s13944_s26 = int_to_ptr.hbm [resolvable:$true] %s13943_s26 }
  0x63   : > { %s808_s18 = sshll.u32 %s14027_s15, 4  ;;  %s13945_s25 = scalar_lea.hbm %s13944_s26, 64  ;;  %s809_s18 = int_to_ptr.vmem [resolvable:$true] %s808_s18 }
  0x64   : > { %p13946_p8 = scmp.ne.s32.totalorder %s13944_s26, %s13945_s25  ;;  %s13950_s30 = scalar_lea.hbm %s14123_s27, 64 }
  0x65   : > { %p13951_p11 = scmp.lt.s32.totalorder %s13944_s26, %s14123_s27  ;;  %p13952_p12 = scmp.lt.s32.totalorder %s13950_s30, %s13945_s25 }
  0x66   : > { %p13948_p9 = pnand %p13946_p8, %p13857_p7 }
  0x67   : > { %p13953_p13 = por %p13952_p12, %p13951_p11 }
  0x68   : > { %p13949_p10 = pneg %p13948_p9 }
  0x6a   : > { %p13954_p0 = pnand %p13953_p13, %p13949_p10 }
  0x6c   : > { %13957 = shalt.err (!%p13954_p0)
}
  0x6d   : > { %s14028_s0 = smov 128   ;;  %s14029_s28 = smov 8  }
  0x6e   : > { %13688 = dma.hbm_to_vmem [thread:$0]  (!%p14215_p5), %s14254_s2, 1024, %s809_s18, [#allocation8], %s14028_s0, %s14028_s0, %s14029_s28  }
  0x6f   : > { %868 = sbr.rel (%p14202_p3) target bundleno = 8962 (0x2302), region = 136 }
  0x74   : > { %13978 = dma.done.wait (%p13689_p2), [#allocation3], 1152  }
  0x75   : > { %13980 = vsyncadd (%p13689_p2), [#allocation3], 4294966144 }
  0x76   : > { %13982 = dma.done.wait (%p13689_p2), [#allocation5], 1280  }
  0x77   : > { %13984 = vsyncadd (%p13689_p2), [#allocation5], 4294966016 }
  0x78   : > { %13986 = dma.done.wait (%p13689_p2), [#allocation8], 1024  }
  0x79   : > { %13988 = vsyncadd (%p13689_p2), [#allocation8], 4294966272  ;;  %p960_p3 = scmp.lt.s32.totalorder %s14196_s10, 1  ;;  %v14030_v3 = vmov 256.0   ;;  %v14031_v17 = vmov 0   ;;  %v987_v38 = vld [vmem:[%s14158_s14] sm:$0xff] }
  0x7a   : > { %13750 = vrcp.f32 %v14030_v3  ;;  %13747 = vset.pattern.permute.xlu1 %v14031_v17  ;;  %13748 = vset.pattern.permute.xlu2 %v14031_v17  ;;  %v988_v43 = vld [vmem:[%s14158_s14 + $0x8] sm:$0xff]  ;;  %vm1003_vm9 = vcmask 1043456   ;;  %v12981_v58 = vld [vmem:[%s14128_s4] sm:$0xff]  ;;  %vm999_vm10 = vcmask 64512   ;;  %v13010_v62 = vld [vmem:[%s14048_s9 + $0x38] sm:$0xff]  ;;  %vm2658_vm11 = vcmask 523264  }
  0x7b   : > { %s15988_s10 = smov (!%p960_p3, %s14196_s10), 1  ;;  %13749 = vset.pattern.permute.xlu0 %v14031_v17  ;;  %v12982_v59 = vld [vmem:[%s14128_s4 + $0x8] sm:$0xff]  ;;  %v13018_v63 = vld [vmem:[%s14048_s9 + $0x78] sm:$0xff]  ;;  %v13049_v17 = vld [vmem:[%s14048_s9 + $0x170] sm:$0xff]  ;;  %s15973_s23 = sld [smem:[#allocation25_spill]] }
  0x7c   : > { %s12979_s11 = sshll.u32 %s15988_s10, 4  ;;  %s15974_s16 = sld [smem:[#allocation21_spill]] }
  0x7d   : > { %s964_s22 = scalar_lea.vmem %s14043_s5, %s12979_s11  ;;  %s15975_s1 = sld [smem:[#allocation13_spill]] }
  0x7e   : > { %v14295_v0 = vld [vmem:[%s964_s22] sm:$0xff]  ;;  %v14297_v1 = vld [vmem:[%s964_s22 + $0x8] sm:$0xff]  ;;  %s15976_s2 = sld [smem:[#allocation15_spill]]  ;;  %s12980_s22 = sshll.u32 %s15988_s10, 3 }
  0x7f   : > { %v1070_v2 = vadd.f32 %v14297_v1, %v14295_v0  ;;  %v993_v60 = vpack.c.bf16 %v14295_v0, %v14295_v0  ;;  %v994_v61 = vpack.c.bf16 %v14297_v1, %v14297_v1  ;;  %s15977_s15 = sld [smem:[#allocation14_spill]] }
  0x80   : > { %v13751_v4 = vpop.eup %13750  ;;  %s15978_s18 = sld [smem:[#allocation22_spill]] }
  0x81   : > { %1071 = vadd.xlane.f32.xlu0 %v1070_v2  ;;  %v1074_v5 = vmul.f32 256.0, %v13751_v4  ;;  %vm1078_vm0 = vweird.f32 %v13751_v4  ;;  %v1005_v2 = vsel %vm1003_vm9, %v993_v60, 0  ;;  %v1008_v3 = vsel %vm1003_vm9, %v994_v61, 0  ;;  %v13072_v60 = vld [vmem:[%s14048_s9 + $0x228] sm:$0xff]  ;;  %v13019_v61 = vld [vmem:[%s14048_s9 + $0x80] sm:$0xff]  ;;  %s15979_s26 = sld [smem:[#allocation16_spill]] }
  0x82   : > { %1017 = vmatpush.bf16.msra.mxu0 %v1005_v2  ;;  %1030 = vmatpush.bf16.msra.mxu1 %v1008_v3  ;;  %v13071_v2 = vld [vmem:[%s14048_s9 + $0x220] sm:$0xff]  ;;  %s15980_s25 = sld [smem:[#allocation17_spill]] }
  0x83   : > { %v1075_v6 = vsub.f32 1.0, %v1074_v5  ;;  %v13008_v5 = vld [vmem:[%s14048_s9 + $0x28] sm:$0xff]  ;;  %v13079_v3 = vld [vmem:[%s14048_s9 + $0x260] sm:$0xff]  ;;  %s15981_s30 = sld [smem:[#allocation23_spill]] }
  0x84   : > { %s15982_s0 = sld [smem:[#allocation24_spill]] }
  0x85   : > { %v1076_v7 = vmul.f32 %v13751_v4, %v1075_v6  ;;  %v13016_v6 = vld [vmem:[%s14048_s9 + $0x68] sm:$0xff]  ;;  %s15983_s28 = sld [smem:[#allocation19_spill]] }
  0x86   : > { %2424 = vmatpush.bf16.msrb.mxu0 %v13010_v62  ;;  %2437 = vmatpush.bf16.msrb.mxu1 %v13018_v63  ;;  %v13027_v62 = vld [vmem:[%s14048_s9 + $0xc0] sm:$0xff]  ;;  %v13080_v63 = vld [vmem:[%s14048_s9 + $0x268] sm:$0xff]  ;;  %s15984_s11 = sld [smem:[#allocation20_spill]] }
  0x87   : > { %v1077_v8 = vadd.f32 %v13751_v4, %v1076_v7  ;;  %v13042_v7 = vld [vmem:[%s14048_s9 + $0x138] sm:$0xff] }
  0x89   : > { %v14301_v9 = vsel %vm1078_vm0, %v13751_v4, %v1077_v8  ;;  %v13017_v4 = vld [vmem:[%s14048_s9 + $0x70] sm:$0xff] }
  0x8a   : > { %2438 = vmatpush.bf16.msrb.mxu1 %v13017_v4  ;;  %v986_v8 = vld [vmem:[%s14128_s4 + $0x34] sm:$0xf] }
  0x8b   : > { %v13069_v4 = vld [vmem:[%s14048_s9 + $0x210] sm:$0xff] }
  0x8e   : > { %2439 = vmatpush.bf16.msrb.mxu1 %v13016_v6  ;;  %v13068_v6 = vld [vmem:[%s14048_s9 + $0x208] sm:$0xff] }
  0xf4   : > { %v1072_v10 = vpop.xlane.xlu0 %1071 }
  0xf5   : > { %v1080_v11 = vmul.f32 %v14301_v9, %v1072_v10  ;;  %v996_v10 = vunpack.c.l.b16 %v986_v8  ;;  %v13067_v8 = vld [vmem:[%s14048_s9 + $0x200] sm:$0xff] }
  0xf7   : > { %v1081_v12 = vsub.f32 %v14295_v0, %v1080_v11  ;;  %v1082_v13 = vsub.f32 %v14297_v1, %v1080_v11  ;;  %v12983_v0 = vld [vmem:[%s14128_s4 + $0x10] sm:$0xff]  ;;  %v13050_v11 = vld [vmem:[%s14048_s9 + $0x178] sm:$0xff] }
  0xf8   : > { %v13009_v1 = vld [vmem:[%s14048_s9 + $0x30] sm:$0xff] }
  0xf9   : > { %v1083_v14 = vmul.f32 %v1081_v12, %v1081_v12  ;;  %v1084_v15 = vmul.f32 %v1082_v13, %v1082_v13  ;;  %2425 = vmatpush.bf16.msrb.mxu0 %v13009_v1  ;;  %v13078_v1 = vld [vmem:[%s14048_s9 + $0x258] sm:$0xff] }
  0xfb   : > { %v1085_v16 = vadd.f32 %v1084_v15, %v1083_v14  ;;  %v13015_v14 = vld [vmem:[%s14048_s9 + $0x60] sm:$0xff]  ;;  %v14337_v15 = vpack.c.b16 %v996_v10, %v996_v10 }
  0xfc   : > { %2440 = vmatpush.bf16.msrb.mxu1 %v13015_v14  ;;  %v13075_v10 = vld [vmem:[%s14048_s9 + $0x240] sm:$0xff]  ;;  %v13066_v14 = vld [vmem:[%s14048_s9 + $0x1f8] sm:$0xff] }
  0xfd   : > { %1086 = vadd.xlane.f32.xlu0 %v1085_v16  ;;  %2426 = vmatpush.bf16.msrb.mxu0 %v13008_v5  ;;  %v998_v16 = vrot.slane %v14337_v15, 2  ;;  %v13077_v5 = vld [vmem:[%s14048_s9 + $0x250] sm:$0xff] }
  0xff   : > { %9977 = vmatmul.msk.bf16.vlgmr.msra.gmra.mxu0 %vm999_vm10, %v998_v16  ;;  %9978 = vmatmul.msk.bf16.vlgmr.msra.gmra.mxu1 %vm999_vm10, %v998_v16 }
 0x170   : > { %v1087_v18 = vpop.xlane.xlu0 %1086 }
 0x171   : > { %v1088_v19 = vmul.f32 0.003921569, %v1087_v18  ;;  %v13040_v18 = vld [vmem:[%s14048_s9 + $0x128] sm:$0xff] }
 0x173   : > { %13752 = vrsqrt.f32 %v1088_v19  ;;  %vm1096_vm1 = vcmp.eq.f32.partialorder %v1088_v19, inf  ;;  %v1099_v27 = vand.u32 2147483648, %v1088_v19  ;;  %vm1098_vm2 = vcmp.eq.f32.partialorder %v1088_v19, 0.0 }
 0x179   : > { %v13753_v20 = vpop.eup %13752 }
 0x17a   : > { %v1090_v21 = vmul.f32 %v13753_v20, %v1088_v19 }
 0x17c   : > { %v1091_v22 = vmul.f32 %v13753_v20, %v1090_v21  ;;  %v12984_v21 = vld [vmem:[%s14128_s4 + $0x18] sm:$0xff] }
 0x17e   : > { %v1092_v23 = vmul.f32 0.5, %v1091_v22  ;;  %v13048_v22 = vld [vmem:[%s14048_s9 + $0x168] sm:$0xff] }
 0x180   : > { %v1093_v24 = vsub.f32 1.5, %v1092_v23  ;;  %v13039_v23 = vld [vmem:[%s14048_s9 + $0x120] sm:$0xff] }
 0x182   : > { %v1094_v25 = vmul.f32 %v13753_v20, %v1093_v24  ;;  %v13014_v20 = vld [vmem:[%s14048_s9 + $0x58] sm:$0xff]  ;;  %v13005_v24 = vld [vmem:[%s14048_s9 + $0x10] sm:$0xff] }
 0x183   : > { %2441 = vmatpush.bf16.msrb.mxu1 %v13014_v20  ;;  %v989_v20 = vld [vmem:[%s14158_s14 + $0x10] sm:$0xff] }
 0x184   : > { %v1095_v26 = vmul.f32 %v1094_v25, %v1088_v19  ;;  %v13013_v25 = vld [vmem:[%s14048_s9 + $0x50] sm:$0xff]  ;;  %1557 = vperm.xlu2 %13748, %v989_v20  }
 0x186   : > { %v1097_v28 = vsel %vm1096_vm1, %v1088_v19, %v1095_v26  ;;  %v13006_v19 = vld [vmem:[%s14048_s9 + $0x18] sm:$0xff]  ;;  %v13047_v26 = vld [vmem:[%s14048_s9 + $0x160] sm:$0xff] }
 0x187   : > { %v1100_v29 = vsel %vm1098_vm2, %v1099_v27, %v1097_v28  ;;  %v13038_v27 = vld [vmem:[%s14048_s9 + $0x118] sm:$0xff]  ;;  %2442 = vmatpush.bf16.msrb.mxu1 %v13013_v25  ;;  %v13004_v28 = vld [vmem:[%s14048_s9 + $0x8] sm:$0xff]  ;;  %v13055_v25 = vld [vmem:[%s14048_s9 + $0x1a0] sm:$0xff] }
 0x188   : > { %v1101_v30 = vadd.f32 1e-05, %v1100_v29  ;;  %v13012_v29 = vld [vmem:[%s14048_s9 + $0x48] sm:$0xff] }
 0x18a   : > { %13754 = vrcp.f32 %v1101_v30  ;;  %v1113_v34 = vand.u32 2147483648, %v1101_v30  ;;  %v1111_v36 = vand.u32 2147483647, %v1101_v30  ;;  %vm1107_vm4 = vweird.f32 %v1101_v30 }
 0x18b   : > { %2443 = vmatpush.bf16.msrb.mxu1 %v13012_v29  ;;  %v13054_v29 = vld [vmem:[%s14048_s9 + $0x198] sm:$0xff] }
 0x18c   : > { %v1114_v39 = vor.u32 1.1754944e-38, %v1113_v34  ;;  %vm1112_vm6 = vcmp.eq.f32.partialorder %v1111_v36, 8.507059e+37  ;;  %v13011_v34 = vld [vmem:[%s14048_s9 + $0x40] sm:$0xff]  ;;  %v13034_v36 = vld [vmem:[%s14048_s9 + $0xf8] sm:$0xff] }
 0x18f   : > { %2444 = vmatpush.bf16.msrb.mxu1 %v13011_v34  ;;  %v13062_v34 = vld [vmem:[%s14048_s9 + $0x1d8] sm:$0xff] }
 0x190   : > { %v13755_v31 = vpop.eup %13754 }
 0x191   : > { %v1103_v32 = vmul.f32 %v13755_v31, %v1101_v30  ;;  %vm1108_vm3 = vweird.f32 %v13755_v31  ;;  %v981_v30 = vld [vmem:[%s14128_s4 + $0x20] sm:$0xf] }
 0x192   : > { %vm1109_vm5 = vmor %vm1107_vm4, %vm1108_vm3  ;;  %vm3398_vm4 = vcmask 519168  }
 0x193   : > { %v1104_v33 = vsub.f32 1.0, %v1103_v32  ;;  %v13037_v32 = vld [vmem:[%s14048_s9 + $0x110] sm:$0xff]  ;;  %2463 = vmatpush.bf16.msra.mxu1 %v13034_v36  ;;  %v13114_v36 = vld [vmem:[%s14048_s9 + $0x378] sm:$0xff] }
 0x195   : > { %v1105_v35 = vmul.f32 %v13755_v31, %v1104_v33  ;;  %v13003_v33 = vld [vmem:[%s14048_s9] sm:$0xff] }
 0x197   : > { %v1106_v37 = vadd.f32 %v13755_v31, %v1105_v35  ;;  %v13026_v35 = vld [vmem:[%s14048_s9 + $0xb8] sm:$0xff] }
 0x199   : > { %v1110_v40 = vsel %vm1109_vm5, %v13755_v31, %v1106_v37  ;;  %v13046_v31 = vld [vmem:[%s14048_s9 + $0x158] sm:$0xff]  ;;  %v1156_v37 = vunpack.c.l.b16 %v981_v30  ;;  %vm3372_vm5 = vcmask 1041408  }
 0x19a   : > { %v1115_v41 = vsel %vm1112_vm6, %v1114_v39, %v1110_v40  ;;  %v13036_v39 = vld [vmem:[%s14048_s9 + $0x108] sm:$0xff]  ;;  %v13025_v40 = vld [vmem:[%s14048_s9 + $0xb0] sm:$0xff] }
 0x19b   : > { %v1116_v42 = vmul.f32 %v1115_v41, %v987_v38  ;;  %v13045_v38 = vld [vmem:[%s14048_s9 + $0x150] sm:$0xff] }
 0x19c   : > { %v13033_v41 = vld [vmem:[%s14048_s9 + $0xf0] sm:$0xff] }
 0x19d   : > { %1119 = vperm.xlu1 %13747, %v1116_v42   ;;  %v1161_v42 = vpack.c.b16 %v1156_v37, %v1156_v37  ;;  %2464 = vmatpush.bf16.msra.mxu1 %v13033_v41  ;;  %v13053_v37 = vld [vmem:[%s14048_s9 + $0x190] sm:$0xff] }
 0x1a5   : > { %1126 = vperm.xlu1 %13747, %v988_v43   ;;  %v13044_v43 = vld [vmem:[%s14048_s9 + $0x148] sm:$0xff] }
 0x20f   : > { %v1120_v44 = vpop.permute.xlu1 %1119 }
 0x210   : > { %v1122_v45 = vmul.f32 %v1120_v44, %v1081_v12  ;;  %v1123_v46 = vmul.f32 %v1120_v44, %v1082_v13  ;;  %v13041_v12 = vld [vmem:[%s14048_s9 + $0x130] sm:$0xff]  ;;  %v13007_v13 = vld [vmem:[%s14048_s9 + $0x20] sm:$0xff] }
 0x211   : > { %2427 = vmatpush.bf16.msrb.mxu0 %v13007_v13  ;;  %v13035_v44 = vld [vmem:[%s14048_s9 + $0x100] sm:$0xff]  ;;  %v13058_v13 = vld [vmem:[%s14048_s9 + $0x1b8] sm:$0xff] }
 0x215   : > { %2428 = vmatpush.bf16.msrb.mxu0 %v13006_v19  ;;  %v13065_v19 = vld [vmem:[%s14048_s9 + $0x1f0] sm:$0xff] }
 0x217   : > { %v1127_v47 = vpop.permute.xlu1 %1126 }
 0x218   : > { %v1129_v48 = vadd.f32 %v1127_v47, %v1122_v45  ;;  %v1130_v49 = vadd.f32 %v1127_v47, %v1123_v46  ;;  %v13074_v45 = vld [vmem:[%s14048_s9 + $0x238] sm:$0xff]  ;;  %v13024_v46 = vld [vmem:[%s14048_s9 + $0xa8] sm:$0xff] }
 0x219   : > { %2429 = vmatpush.bf16.msrb.mxu0 %v13005_v24  ;;  %v13032_v47 = vld [vmem:[%s14048_s9 + $0xe8] sm:$0xff] }
 0x21a   : > { %v1133_v50 = vmul.f32 0.2, %v1129_v48  ;;  %v1134_v51 = vmul.f32 0.2, %v1130_v49  ;;  %vm1131_vm7 = vcmp.gt.f32.partialorder %v1129_v48, 0.0  ;;  %vm1132_vm8 = vcmp.gt.f32.partialorder %v1130_v49, 0.0  ;;  %2465 = vmatpush.bf16.msra.mxu1 %v13032_v47 }
 0x21b   : > { %v13064_v24 = vld [vmem:[%s14048_s9 + $0x1e8] sm:$0xff]  ;;  %v13051_v47 = vld [vmem:[%s14048_s9 + $0x180] sm:$0xff] }
 0x21c   : > { %v1135_v52 = vsel %vm1131_vm7, %v1129_v48, %v1133_v50  ;;  %v1136_v53 = vsel %vm1132_vm8, %v1130_v49, %v1134_v51  ;;  %v13043_v48 = vld [vmem:[%s14048_s9 + $0x140] sm:$0xff]  ;;  %v13082_v49 = vld [vmem:[%s14048_s9 + $0x278] sm:$0xff]  ;;  %v13073_v50 = vld [vmem:[%s14048_s9 + $0x230] sm:$0xff] }
 0x21d   : > { %v1137_v54 = vpack.c.bf16 %v1135_v52, %v1135_v52  ;;  %v1138_v55 = vpack.c.bf16 %v1136_v53, %v1136_v53  ;;  %2430 = vmatpush.bf16.msrb.mxu0 %v13004_v28  ;;  %v13023_v51 = vld [vmem:[%s14048_s9 + $0xa0] sm:$0xff]  ;;  %v13081_v53 = vld [vmem:[%s14048_s9 + $0x270] sm:$0xff] }
 0x21e   : > { %v13031_v52 = vld [vmem:[%s14048_s9 + $0xe0] sm:$0xff] }
 0x21f   : > { %v1178_v56 = vsel %vm1003_vm9, %v1137_v54, 0  ;;  %v1181_v57 = vsel %vm1003_vm9, %v1138_v55, 0  ;;  %2466 = vmatpush.bf16.msra.mxu1 %v13031_v52  ;;  %v13022_v54 = vld [vmem:[%s14048_s9 + $0x98] sm:$0xff]  ;;  %v13111_v52 = vld [vmem:[%s14048_s9 + $0x360] sm:$0xff] }
 0x220   : > { %1190 = vmatpush.bf16.msra.mxu2 %v1178_v56  ;;  %1223 = vmatpush.bf16.msra.mxu3 %v1181_v57  ;;  %v13030_v55 = vld [vmem:[%s14048_s9 + $0xd8] sm:$0xff]  ;;  %v13021_v56 = vld [vmem:[%s14048_s9 + $0x90] sm:$0xff] }
 0x221   : > { %2431 = vmatpush.bf16.msrb.mxu0 %v13003_v33  ;;  %v13029_v57 = vld [vmem:[%s14048_s9 + $0xd0] sm:$0xff] }
 0x223   : > { %9995 = vmatmul.msk.bf16.vlgmr.msra.gmra.mxu2 %vm999_vm10, %v12981_v58  ;;  %10000 = vmatmul.msk.bf16.vlgmr.msra.gmra.mxu3 %vm999_vm10, %v12981_v58  ;;  %v13020_v58 = vld [vmem:[%s14048_s9 + $0x88] sm:$0xff] }
 0x224   : > { %2476 = vmatpush.bf16.msrb.mxu2 %v13042_v7  ;;  %2489 = vmatpush.bf16.msrb.mxu3 %v13050_v11  ;;  %v13076_v7 = vld [vmem:[%s14048_s9 + $0x248] sm:$0xff] }
 0x225   : > { %2450 = vmatpush.bf16.msra.mxu0 %v13026_v35  ;;  %2467 = vmatpush.bf16.msra.mxu1 %v13030_v55  ;;  %v13106_v35 = vld [vmem:[%s14048_s9 + $0x338] sm:$0xff] }
 0x228   : > { %2477 = vmatpush.bf16.msrb.mxu2 %v13041_v12  ;;  %2490 = vmatpush.bf16.msrb.mxu3 %v13049_v17 }
 0x229   : > { %2451 = vmatpush.bf16.msra.mxu0 %v13025_v40  ;;  %2468 = vmatpush.bf16.msra.mxu1 %v13029_v57  ;;  %v13113_v40 = vld [vmem:[%s14048_s9 + $0x370] sm:$0xff] }
 0x22c   : > { %2478 = vmatpush.bf16.msrb.mxu2 %v13040_v18  ;;  %2491 = vmatpush.bf16.msrb.mxu3 %v13048_v22  ;;  %v13057_v18 = vld [vmem:[%s14048_s9 + $0x1b0] sm:$0xff] }
 0x22d   : > { %2452 = vmatpush.bf16.msra.mxu0 %v13024_v46  ;;  %v13112_v46 = vld [vmem:[%s14048_s9 + $0x368] sm:$0xff] }
 0x230   : > { %2479 = vmatpush.bf16.msrb.mxu2 %v13039_v23  ;;  %2492 = vmatpush.bf16.msrb.mxu3 %v13047_v26  ;;  %v13056_v23 = vld [vmem:[%s14048_s9 + $0x1a8] sm:$0xff]  ;;  %v13063_v26 = vld [vmem:[%s14048_s9 + $0x1e0] sm:$0xff] }
 0x231   : > { %2453 = vmatpush.bf16.msra.mxu0 %v13023_v51  ;;  %v13103_v51 = vld [vmem:[%s14048_s9 + $0x320] sm:$0xff] }
 0x233   : > { %9996 = vmatmul.msk.bf16.gmra.mxu2 %vm999_vm10, %v12982_v59  ;;  %10001 = vmatmul.msk.bf16.gmra.mxu3 %vm999_vm10, %v12982_v59  ;;  %v13028_v59 = vld [vmem:[%s14048_s9 + $0xc8] sm:$0xff] }
 0x234   : > { %2480 = vmatpush.bf16.msrb.mxu2 %v13038_v27  ;;  %2493 = vmatpush.bf16.msrb.mxu3 %v13046_v31 }
 0x235   : > { %2454 = vmatpush.bf16.msra.mxu0 %v13022_v54  ;;  %2469 = vmatpush.bf16.msra.mxu1 %v13028_v59 }
 0x238   : > { %2481 = vmatpush.bf16.msrb.mxu2 %v13037_v32  ;;  %2494 = vmatpush.bf16.msrb.mxu3 %v13045_v38  ;;  %v13061_v38 = vld [vmem:[%s14048_s9 + $0x1d0] sm:$0xff] }
 0x239   : > { %2455 = vmatpush.bf16.msra.mxu0 %v13021_v56  ;;  %2470 = vmatpush.bf16.msra.mxu1 %v13027_v62  ;;  %v13110_v62 = vld [vmem:[%s14048_s9 + $0x358] sm:$0xff] }
 0x23c   : > { %2482 = vmatpush.bf16.msrb.mxu2 %v13036_v39  ;;  %2495 = vmatpush.bf16.msrb.mxu3 %v13044_v43  ;;  %v13105_v39 = vld [vmem:[%s14048_s9 + $0x330] sm:$0xff]  ;;  %v13052_v43 = vld [vmem:[%s14048_s9 + $0x188] sm:$0xff] }
 0x23d   : > { %2456 = vmatpush.bf16.msra.mxu0 %v13020_v58  ;;  %v13089_v58 = vld [vmem:[%s14048_s9 + $0x2b0] sm:$0xff] }
 0x240   : > { %2483 = vmatpush.bf16.msrb.mxu2 %v13035_v44  ;;  %2496 = vmatpush.bf16.msrb.mxu3 %v13043_v48  ;;  %v13060_v44 = vld [vmem:[%s14048_s9 + $0x1c8] sm:$0xff]  ;;  %v13059_v48 = vld [vmem:[%s14048_s9 + $0x1c0] sm:$0xff] }
 0x241   : > { %2457 = vmatpush.bf16.msra.mxu0 %v13019_v61  ;;  %v13102_v61 = vld [vmem:[%s14048_s9 + $0x318] sm:$0xff] }
 0x243   : > { %9997 = vmatmul.msk.bf16.gmra.mxu2 %vm999_vm10, %v12983_v0  ;;  %10002 = vmatmul.msk.bf16.gmra.mxu3 %vm999_vm10, %v12983_v0  ;;  %v13070_v0 = vld [vmem:[%s14048_s9 + $0x218] sm:$0xff] }
 0x244   : > { %2528 = vmatpush.bf16.msra.mxu2 %v13074_v45  ;;  %2541 = vmatpush.bf16.msra.mxu3 %v13082_v49  ;;  %v13104_v45 = vld [vmem:[%s14048_s9 + $0x328] sm:$0xff]  ;;  %v13090_v49 = vld [vmem:[%s14048_s9 + $0x2b8] sm:$0xff] }
 0x248   : > { %2529 = vmatpush.bf16.msra.mxu2 %v13073_v50  ;;  %2542 = vmatpush.bf16.msra.mxu3 %v13081_v53  ;;  %v13098_v50 = vld [vmem:[%s14048_s9 + $0x2f8] sm:$0xff] }
 0x24c   : > { %2530 = vmatpush.bf16.msra.mxu2 %v13072_v60  ;;  %2543 = vmatpush.bf16.msra.mxu3 %v13080_v63  ;;  %v13097_v60 = vld [vmem:[%s14048_s9 + $0x2f0] sm:$0xff]  ;;  %v13088_v63 = vld [vmem:[%s14048_s9 + $0x2a8] sm:$0xff] }
 0x250   : > { %2531 = vmatpush.bf16.msra.mxu2 %v13071_v2  ;;  %2544 = vmatpush.bf16.msra.mxu3 %v13079_v3  ;;  %v13096_v2 = vld [vmem:[%s14048_s9 + $0x2e8] sm:$0xff]  ;;  %v13101_v3 = vld [vmem:[%s14048_s9 + $0x310] sm:$0xff] }
 0x253   : > { %9998 = vmatmul.msk.bf16.gmra.mxu2 %vm999_vm10, %v12984_v21  ;;  %10003 = vmatmul.msk.bf16.gmra.mxu3 %vm999_vm10, %v12984_v21 }
 0x254   : > { %2532 = vmatpush.bf16.msra.mxu2 %v13070_v0  ;;  %2545 = vmatpush.bf16.msra.mxu3 %v13078_v1  ;;  %v13109_v0 = vld [vmem:[%s14048_s9 + $0x350] sm:$0xff] }
 0x258   : > { %2533 = vmatpush.bf16.msra.mxu2 %v13069_v4  ;;  %2546 = vmatpush.bf16.msra.mxu3 %v13077_v5  ;;  %v13087_v5 = vld [vmem:[%s14048_s9 + $0x2a0] sm:$0xff] }
 0x25c   : > { %2534 = vmatpush.bf16.msra.mxu2 %v13068_v6  ;;  %2547 = vmatpush.bf16.msra.mxu3 %v13076_v7  ;;  %v13095_v6 = vld [vmem:[%s14048_s9 + $0x2e0] sm:$0xff]  ;;  %v13100_v7 = vld [vmem:[%s14048_s9 + $0x308] sm:$0xff] }
 0x260   : > { %2535 = vmatpush.bf16.msra.mxu2 %v13067_v8  ;;  %2548 = vmatpush.bf16.msra.mxu3 %v13075_v10  ;;  %v13108_v8 = vld [vmem:[%s14048_s9 + $0x348] sm:$0xff]  ;;  %v13086_v10 = vld [vmem:[%s14048_s9 + $0x298] sm:$0xff] }
 0x263   : > { %9999 = vmatmul.msk.bf16.gmra.mxu2 %vm999_vm10, %v1161_v42  ;;  %10004 = vmatmul.msk.bf16.gmra.mxu3 %vm999_vm10, %v1161_v42 }
 0x2a6   : > { %v1192_v11 = vpop.f32.mrf.mxu2  ;;  %v1225_v12 = vpop.f32.mrf.mxu3 }
 0x2a7   : > { %v1249_v16 = vpack.c.bf16 %v1192_v11, %v1192_v11  ;;  %v1250_v17 = vpack.c.bf16 %v1225_v12, %v1225_v12  ;;  %v13094_v11 = vld [vmem:[%s14048_s9 + $0x2d8] sm:$0xff]  ;;  %v13099_v12 = vld [vmem:[%s14048_s9 + $0x300] sm:$0xff] }
 0x2a9   : > { %2432 = vmatmul.bf16.vlgmr.msrb.gmra.mxu0 %v1249_v16  ;;  %2445 = vmatmul.bf16.vlgmr.msrb.gmra.mxu1 %v1250_v17  ;;  %v13146_v16 = vld [vmem:[%s14048_s9 + $0x478] sm:$0xff] }
 0x2aa   : > { %2502 = vmatpush.bf16.msrb.mxu0 %v13058_v13  ;;  %2515 = vmatpush.bf16.msrb.mxu1 %v13066_v14  ;;  %v13138_v13 = vld [vmem:[%s14048_s9 + $0x438] sm:$0xff]  ;;  %v13107_v14 = vld [vmem:[%s14048_s9 + $0x340] sm:$0xff] }
 0x2ae   : > { %2503 = vmatpush.bf16.msrb.mxu0 %v13057_v18  ;;  %2516 = vmatpush.bf16.msrb.mxu1 %v13065_v19  ;;  %v1194_v21 = vpop.f32.mrf.mxu2  ;;  %v1227_v22 = vpop.f32.mrf.mxu3  ;;  %v13085_v19 = vld [vmem:[%s14048_s9 + $0x290] sm:$0xff] }
 0x2af   : > { %v1251_v30 = vpack.c.bf16 %v1194_v21, %v1194_v21  ;;  %v1252_v31 = vpack.c.bf16 %v1227_v22, %v1227_v22  ;;  %v13093_v21 = vld [vmem:[%s14048_s9 + $0x2d0] sm:$0xff] }
 0x2b2   : > { %2504 = vmatpush.bf16.msrb.mxu0 %v13056_v23  ;;  %2517 = vmatpush.bf16.msrb.mxu1 %v13064_v24  ;;  %v13137_v23 = vld [vmem:[%s14048_s9 + $0x430] sm:$0xff] }
 0x2b3   : > { %v13145_v24 = vld [vmem:[%s14048_s9 + $0x470] sm:$0xff] }
 0x2b6   : > { %2505 = vmatpush.bf16.msrb.mxu0 %v13055_v25  ;;  %2518 = vmatpush.bf16.msrb.mxu1 %v13063_v26  ;;  %v1197_v27 = vpop.f32.mrf.mxu2  ;;  %v1230_v28 = vpop.f32.mrf.mxu3  ;;  %v13084_v25 = vld [vmem:[%s14048_s9 + $0x288] sm:$0xff] }
 0x2b7   : > { %v1253_v32 = vpack.c.bf16 %v1197_v27, %v1197_v27  ;;  %v1254_v33 = vpack.c.bf16 %v1230_v28, %v1230_v28  ;;  %v13092_v26 = vld [vmem:[%s14048_s9 + $0x2c8] sm:$0xff] }
 0x2b8   : > { %v13136_v27 = vld [vmem:[%s14048_s9 + $0x428] sm:$0xff] }
 0x2b9   : > { %2458 = vmatmul.bf16.vlgmr.msra.gmra.mxu0 %v1251_v30  ;;  %2471 = vmatmul.bf16.vlgmr.msra.gmra.mxu1 %v1252_v31  ;;  %v13144_v28 = vld [vmem:[%s14048_s9 + $0x468] sm:$0xff]  ;;  %v13083_v31 = vld [vmem:[%s14048_s9 + $0x280] sm:$0xff] }
 0x2ba   : > { %2484 = vmatmul.bf16.vlgmr.msrb.gmra.mxu2 %v1253_v32  ;;  %2506 = vmatpush.bf16.msrb.mxu0 %v13054_v29  ;;  %v13091_v32 = vld [vmem:[%s14048_s9 + $0x2c0] sm:$0xff] }
 0x2bb   : > { %2519 = vmatpush.bf16.msrb.mxu1 %v13062_v34  ;;  %2497 = vmatmul.bf16.vlgmr.msrb.gmra.mxu3 %v1254_v33  ;;  %v13122_v33 = vld [vmem:[%s14048_s9 + $0x3b8] sm:$0xff] }
 0x2bc   : > { %2580 = vmatpush.bf16.msrb.mxu2 %v13106_v35  ;;  %2593 = vmatpush.bf16.msrb.mxu3 %v13114_v36  ;;  %v13130_v34 = vld [vmem:[%s14048_s9 + $0x3f8] sm:$0xff]  ;;  %v13135_v35 = vld [vmem:[%s14048_s9 + $0x420] sm:$0xff]  ;;  %v14467_v36 = vpop.f32.mrf.mxu0 }
 0x2be   : > { %2507 = vmatpush.bf16.msrb.mxu0 %v13053_v37  ;;  %v1199_v41 = vpop.f32.mrf.mxu2  ;;  %v1232_v42 = vpop.f32.mrf.mxu3  ;;  %v13143_v37 = vld [vmem:[%s14048_s9 + $0x460] sm:$0xff] }
 0x2bf   : > { %2520 = vmatpush.bf16.msrb.mxu1 %v13061_v38  ;;  %v1255_v55 = vpack.c.bf16 %v1199_v41, %v1199_v41  ;;  %v1256_v59 = vpack.c.bf16 %v1232_v42, %v1232_v42  ;;  %v13129_v42 = vld [vmem:[%s14048_s9 + $0x3f0] sm:$0xff] }
 0x2c0   : > { %2581 = vmatpush.bf16.msrb.mxu2 %v13105_v39  ;;  %2594 = vmatpush.bf16.msrb.mxu3 %v13113_v40  ;;  %v13121_v39 = vld [vmem:[%s14048_s9 + $0x3b0] sm:$0xff]  ;;  %v14473_v40 = vpop.f32.mrf.mxu1 }
 0x2c2   : > { %2508 = vmatpush.bf16.msrb.mxu0 %v13052_v43  ;;  %v13134_v43 = vld [vmem:[%s14048_s9 + $0x418] sm:$0xff] }
 0x2c3   : > { %2521 = vmatpush.bf16.msrb.mxu1 %v13060_v44  ;;  %v13142_v44 = vld [vmem:[%s14048_s9 + $0x458] sm:$0xff] }
 0x2c4   : > { %2582 = vmatpush.bf16.msrb.mxu2 %v13104_v45  ;;  %2595 = vmatpush.bf16.msrb.mxu3 %v13112_v46 }
 0x2c6   : > { %2509 = vmatpush.bf16.msrb.mxu0 %v13051_v47  ;;  %v1202_v53 = vpop.f32.mrf.mxu2  ;;  %v1235_v54 = vpop.f32.mrf.mxu3  ;;  %v13120_v47 = vld [vmem:[%s14048_s9 + $0x3a8] sm:$0xff] }
 0x2c7   : > { %2522 = vmatpush.bf16.msrb.mxu1 %v13059_v48  ;;  %v1257_v56 = vpack.c.bf16 %v1202_v53, %v1202_v53  ;;  %v1258_v57 = vpack.c.bf16 %v1235_v54, %v1235_v54  ;;  %v13128_v48 = vld [vmem:[%s14048_s9 + $0x3e8] sm:$0xff]  ;;  %v13127_v54 = vld [vmem:[%s14048_s9 + $0x3e0] sm:$0xff] }
 0x2c8   : > { %2583 = vmatpush.bf16.msrb.mxu2 %v13103_v51  ;;  %2596 = vmatpush.bf16.msrb.mxu3 %v13111_v52  ;;  %v13141_v51 = vld [vmem:[%s14048_s9 + $0x450] sm:$0xff]  ;;  %v13119_v52 = vld [vmem:[%s14048_s9 + $0x3a0] sm:$0xff]  ;;  %v1034_v53 = vpop.f32.mrf.mxu1 }
 0x2c9   : > { %2510 = vmatmul.bf16.vlgmr.msrb.gmra.mxu0 %v1255_v55  ;;  %v13132_v55 = vld [vmem:[%s14048_s9 + $0x408] sm:$0xff] }
 0x2ca   : > { %2554 = vmatpush.bf16.msra.mxu0 %v13090_v49  ;;  %2523 = vmatmul.bf16.vlgmr.msrb.gmra.mxu1 %v1256_v59  ;;  %v13133_v49 = vld [vmem:[%s14048_s9 + $0x410] sm:$0xff]  ;;  %v13118_v59 = vld [vmem:[%s14048_s9 + $0x398] sm:$0xff] }
 0x2cb   : > { %2567 = vmatpush.bf16.msra.mxu1 %v13098_v50  ;;  %2536 = vmatmul.bf16.vlgmr.msra.gmra.mxu2 %v1257_v56  ;;  %v1021_v50 = vpop.f32.mrf.mxu0  ;;  %v13140_v56 = vld [vmem:[%s14048_s9 + $0x448] sm:$0xff] }
 0x2cc   : > { %2549 = vmatmul.bf16.vlgmr.msra.gmra.mxu3 %v1258_v57  ;;  %2584 = vmatpush.bf16.msrb.mxu2 %v13102_v61  ;;  %v13131_v61 = vld [vmem:[%s14048_s9 + $0x400] sm:$0xff] }
 0x2cd   : > { %2597 = vmatpush.bf16.msrb.mxu3 %v13110_v62  ;;  %v13139_v62 = vld [vmem:[%s14048_s9 + $0x440] sm:$0xff] }
 0x2ce   : > { %2555 = vmatpush.bf16.msra.mxu0 %v13089_v58  ;;  %v14436_v1 = vpop.f32.mrf.mxu2  ;;  %v14438_v4 = vpop.f32.mrf.mxu3 }
 0x2cf   : > { %2568 = vmatpush.bf16.msra.mxu1 %v13097_v60  ;;  %v1259_v38 = vpack.c.bf16 %v14436_v1, %v14436_v1  ;;  %v1260_v41 = vpack.c.bf16 %v14438_v4, %v14438_v4  ;;  %v13126_v60 = vld [vmem:[%s14048_s9 + $0x3d8] sm:$0xff]  ;;  %v13116_v1 = vld [vmem:[%s14048_s9 + $0x388] sm:$0xff] }
 0x2d0   : > { %2585 = vmatpush.bf16.msrb.mxu2 %v13101_v3  ;;  %v13124_v4 = vld [vmem:[%s14048_s9 + $0x3c8] sm:$0xff] }
 0x2d1   : > { %2598 = vmatpush.bf16.msrb.mxu3 %v13109_v0  ;;  %v13125_v0 = vld [vmem:[%s14048_s9 + $0x3d0] sm:$0xff] }
 0x2d2   : > { %2556 = vmatpush.bf16.msra.mxu0 %v13088_v63 }
 0x2d3   : > { %2569 = vmatpush.bf16.msra.mxu1 %v13096_v2  ;;  %v13117_v2 = vld [vmem:[%s14048_s9 + $0x390] sm:$0xff] }
 0x2d4   : > { %2586 = vmatpush.bf16.msrb.mxu2 %v13100_v7 }
 0x2d5   : > { %2599 = vmatpush.bf16.msrb.mxu3 %v13108_v8 }
 0x2d6   : > { %2557 = vmatpush.bf16.msra.mxu0 %v13087_v5  ;;  %v1207_v17 = vpop.f32.mrf.mxu2  ;;  %v1240_v18 = vpop.f32.mrf.mxu3  ;;  %v13115_v5 = vld [vmem:[%s14048_s9 + $0x380] sm:$0xff] }
 0x2d7   : > { %2570 = vmatpush.bf16.msra.mxu1 %v13095_v6  ;;  %v1261_v20 = vpack.c.bf16 %v1207_v17, %v1207_v17  ;;  %v1262_v22 = vpack.c.bf16 %v1240_v18, %v1240_v18  ;;  %v13123_v6 = vld [vmem:[%s14048_s9 + $0x3c0] sm:$0xff] }
 0x2d8   : > { %2587 = vmatpush.bf16.msrb.mxu2 %v13099_v12 }
 0x2d9   : > { %2600 = vmatpush.bf16.msrb.mxu3 %v13107_v14 }
 0x2da   : > { %2558 = vmatpush.bf16.msra.mxu0 %v13086_v10 }
 0x2db   : > { %2571 = vmatpush.bf16.msra.mxu1 %v13094_v11  ;;  %2588 = vmatmul.bf16.vlgmr.msrb.gmra.mxu2 %v1261_v20 }
 0x2dc   : > { %2632 = vmatpush.bf16.msra.mxu2 %v13138_v13  ;;  %2601 = vmatmul.bf16.vlgmr.msrb.gmra.mxu3 %v1262_v22 }
 0x2dd   : > { %2645 = vmatpush.bf16.msra.mxu3 %v13146_v16 }
 0x2de   : > { %2559 = vmatpush.bf16.msra.mxu0 %v13085_v19  ;;  %v14458_v29 = vpop.f32.mrf.mxu2  ;;  %v14460_v30 = vpop.f32.mrf.mxu3 }
 0x2df   : > { %2572 = vmatpush.bf16.msra.mxu1 %v13093_v21  ;;  %v1263_v7 = vpack.c.bf16 %v14458_v29, %v14458_v29  ;;  %v1264_v8 = vpack.c.bf16 %v14460_v30, %v14460_v30  ;;  %v1558_v29 = vpop.permute.xlu2 %1557 }
 0x2e0   : > { %2633 = vmatpush.bf16.msra.mxu2 %v13137_v23 }
 0x2e1   : > { %2646 = vmatpush.bf16.msra.mxu3 %v13145_v24 }
 0x2e2   : > { %2560 = vmatpush.bf16.msra.mxu0 %v13084_v25 }
 0x2e3   : > { %2573 = vmatpush.bf16.msra.mxu1 %v13092_v26 }
 0x2e4   : > { %2634 = vmatpush.bf16.msra.mxu2 %v13136_v27 }
 0x2e5   : > { %2647 = vmatpush.bf16.msra.mxu3 %v13144_v28 }
 0x2e6   : > { %2561 = vmatpush.bf16.msra.mxu0 %v13083_v31  ;;  %v1212_v45 = vpop.f32.mrf.mxu2  ;;  %v1245_v46 = vpop.f32.mrf.mxu3 }
 0x2e7   : > { %2574 = vmatpush.bf16.msra.mxu1 %v13091_v32  ;;  %v1265_v63 = vpack.c.bf16 %v1212_v45, %v1212_v45  ;;  %v1266_v3 = vpack.c.bf16 %v1245_v46, %v1245_v46 }
 0x2e8   : > { %2635 = vmatpush.bf16.msra.mxu2 %v13135_v35 }
 0x2e9   : > { %2562 = vmatmul.bf16.vlgmr.msra.gmra.mxu0 %v1259_v38  ;;  %2648 = vmatpush.bf16.msra.mxu3 %v13143_v37 }
 0x2ea   : > { %2606 = vmatpush.bf16.msrb.mxu0 %v13122_v33  ;;  %2575 = vmatmul.bf16.vlgmr.msra.gmra.mxu1 %v1260_v41 }
 0x2eb   : > { %2619 = vmatpush.bf16.msrb.mxu1 %v13130_v34 }
 0x2ec   : > { %2636 = vmatpush.bf16.msra.mxu2 %v13134_v43 }
 0x2ed   : > { %2649 = vmatpush.bf16.msra.mxu3 %v13142_v44 }
 0x2ee   : > { %2607 = vmatpush.bf16.msrb.mxu0 %v13121_v39  ;;  %v1214_v57 = vpop.f32.mrf.mxu2  ;;  %v1247_v58 = vpop.f32.mrf.mxu3 }
 0x2ef   : > { %2620 = vmatpush.bf16.msrb.mxu1 %v13129_v42 }
 0x2f0   : > { %2637 = vmatpush.bf16.msra.mxu2 %v13133_v49 }
 0x2f1   : > { %2650 = vmatpush.bf16.msra.mxu3 %v13141_v51 }
 0x2f2   : > { %2608 = vmatpush.bf16.msrb.mxu0 %v13120_v47 }
 0x2f3   : > { %2621 = vmatpush.bf16.msrb.mxu1 %v13128_v48 }
 0x2f4   : > { %2638 = vmatpush.bf16.msra.mxu2 %v13132_v55 }
 0x2f5   : > { %2651 = vmatpush.bf16.msra.mxu3 %v13140_v56 }
 0x2f6   : > { %2609 = vmatpush.bf16.msrb.mxu0 %v13119_v52 }
 0x2f7   : > { %2622 = vmatpush.bf16.msrb.mxu1 %v13127_v54 }
 0x2f8   : > { %2639 = vmatpush.bf16.msra.mxu2 %v13131_v61 }
 0x2f9   : > { %2652 = vmatpush.bf16.msra.mxu3 %v13139_v62 }
 0x2fa   : > { %2610 = vmatpush.bf16.msrb.mxu0 %v13118_v59 }
 0x2fb   : > { %2623 = vmatpush.bf16.msrb.mxu1 %v13126_v60  ;;  %2640 = vmatmul.bf16.vlgmr.msra.gmra.mxu2 %v1265_v63 }
 0x2fc   : > { %2653 = vmatmul.bf16.vlgmr.msra.gmra.mxu3 %v1266_v3 }
 0x2fe   : > { %2611 = vmatpush.bf16.msrb.mxu0 %v13117_v2 }
 0x2ff   : > { %2624 = vmatpush.bf16.msrb.mxu1 %v13125_v0 }
 0x302   : > { %2612 = vmatpush.bf16.msrb.mxu0 %v13116_v1 }
 0x303   : > { %2625 = vmatpush.bf16.msrb.mxu1 %v13124_v4 }
 0x306   : > { %2613 = vmatpush.bf16.msrb.mxu0 %v13115_v5  ;;  %v14032_v5 = vmov 64.0  }
 0x307   : > { %2626 = vmatpush.bf16.msrb.mxu1 %v13123_v6  ;;  %13756 = vrcp.f32 %v14032_v5  ;;  %v13170_v5 = vld [vmem:[%s14053_s13 + $0xb8] sm:$0xff] }
 0x309   : > { %2614 = vmatmul.bf16.vlgmr.msrb.gmra.mxu0 %v1263_v7 }
 0x30a   : > { %2627 = vmatmul.bf16.vlgmr.msrb.gmra.mxu1 %v1264_v8 }
 0x30d   : > { %v13757_v6 = vpop.eup %13756 }
 0x30e   : > { %v2663_v7 = vmul.f32 64.0, %v13757_v6  ;;  %vm2667_vm12 = vweird.f32 %v13757_v6 }
 0x310   : > { %v2664_v8 = vsub.f32 1.0, %v2663_v7  ;;  %v13159_v7 = vld [vmem:[%s14053_s13 + $0x60] sm:$0xff] }
 0x326   : > { %v2433_v10 = vpop.f32.mrf.mxu0  ;;  %v2446_v11 = vpop.f32.mrf.mxu1 }
 0x327   : > { %v2434_v30 = vadd.f32 %v2433_v10, %v1558_v29  ;;  %v2665_v10 = vmul.f32 %v13757_v6, %v2664_v8  ;;  %v13174_v8 = vld [vmem:[%s14053_s13 + $0xd8] sm:$0xff] }
 0x329   : > { %v2447_v33 = vadd.f32 %v2446_v11, %v2434_v30  ;;  %v2666_v11 = vadd.f32 %v13757_v6, %v2665_v10  ;;  %v13151_v10 = vld [vmem:[%s14053_s13 + $0x20] sm:$0xff] }
 0x32e   : > { %v2435_v12 = vpop.f32.mrf.mxu0  ;;  %v2448_v13 = vpop.f32.mrf.mxu1 }
 0x32f   : > { %v14503_v12 = vsel %vm2667_vm12, %v13757_v6, %v2666_v11  ;;  %v12986_v6 = vld [vmem:[%s14128_s4 + $0x2c] sm:$0xff] }
 0x330   : > { %v13169_v11 = vld [vmem:[%s14053_s13 + $0xb0] sm:$0xff] }
 0x336   : > { %v2459_v14 = vpop.f32.mrf.mxu0  ;;  %v2472_v16 = vpop.f32.mrf.mxu1 }
 0x337   : > { %v2460_v34 = vadd.f32 %v2459_v14, %v2447_v33 }
 0x339   : > { %v2473_v37 = vadd.f32 %v2472_v16, %v2460_v34 }
 0x33d   : > { %v2485_v17 = vpop.f32.mrf.mxu2 }
 0x33e   : > { %v2461_v18 = vpop.f32.mrf.mxu0  ;;  %v2474_v19 = vpop.f32.mrf.mxu1  ;;  %v2486_v39 = vadd.f32 %v2485_v17, %v2473_v37 }
 0x33f   : > { %v2498_v20 = vpop.f32.mrf.mxu3  ;;  %v991_v19 = vld [vmem:[%s14158_s14 + $0x20] sm:$0xff] }
 0x340   : > { %v2499_v43 = vadd.f32 %v2498_v20, %v2486_v39  ;;  %v14509_v20 = vld [vmem:[%s14163_s24] sm:$0xff] }
 0x345   : > { %v2487_v21 = vpop.f32.mrf.mxu2 }
 0x346   : > { %v2511_v22 = vpop.f32.mrf.mxu0 }
 0x347   : > { %v2500_v23 = vpop.f32.mrf.mxu3  ;;  %v2524_v24 = vpop.f32.mrf.mxu1  ;;  %v2512_v45 = vadd.f32 %v2511_v22, %v2499_v43 }
 0x349   : > { %v2525_v47 = vadd.f32 %v2524_v24, %v2512_v45 }
 0x34e   : > { %v2537_v25 = vpop.f32.mrf.mxu2  ;;  %v2513_v26 = vpop.f32.mrf.mxu0 }
 0x34f   : > { %v2526_v27 = vpop.f32.mrf.mxu1  ;;  %v2550_v28 = vpop.f32.mrf.mxu3  ;;  %v2538_v50 = vadd.f32 %v2537_v25, %v2525_v47  ;;  %v14513_v26 = vld [vmem:[%s14163_s24 + $0x8] sm:$0xff] }
 0x351   : > { %v2551_v51 = vadd.f32 %v2550_v28, %v2538_v50 }
 0x356   : > { %v2539_v31 = vpop.f32.mrf.mxu2 }
 0x357   : > { %v2552_v32 = vpop.f32.mrf.mxu3 }
 0x35e   : > { %v2589_v35 = vpop.f32.mrf.mxu2 }
 0x35f   : > { %v2602_v38 = vpop.f32.mrf.mxu3 }
 0x366   : > { %v2563_v41 = vpop.f32.mrf.mxu0  ;;  %v2591_v44 = vpop.f32.mrf.mxu2 }
 0x367   : > { %v2576_v42 = vpop.f32.mrf.mxu1  ;;  %v2604_v46 = vpop.f32.mrf.mxu3  ;;  %v2564_v52 = vadd.f32 %v2563_v41, %v2551_v51  ;;  %v990_v44 = vld [vmem:[%s14158_s14 + $0x18] sm:$0xff] }
 0x369   : > { %v2577_v53 = vadd.f32 %v2576_v42, %v2564_v52 }
 0x36b   : > { %v2590_v54 = vadd.f32 %v2589_v35, %v2577_v53 }
 0x36d   : > { %v2603_v57 = vadd.f32 %v2602_v38, %v2590_v54 }
 0x36e   : > { %v2565_v48 = vpop.f32.mrf.mxu0 }
 0x36f   : > { %v2578_v49 = vpop.f32.mrf.mxu1 }
 0x370   : > { %v992_v49 = vld [vmem:[%s14158_s14 + $0x28] sm:$0xf] }
 0x37e   : > { %v2641_v55 = vpop.f32.mrf.mxu2 }
 0x37f   : > { %v2654_v56 = vpop.f32.mrf.mxu3 }
 0x386   : > { %v2615_v58 = vpop.f32.mrf.mxu0  ;;  %v2643_v62 = vpop.f32.mrf.mxu2 }
 0x387   : > { %v2616_v59 = vadd.f32 %v2615_v58, %v2603_v57  ;;  %v2628_v60 = vpop.f32.mrf.mxu1  ;;  %v2656_v63 = vpop.f32.mrf.mxu3  ;;  %v12985_v58 = vld [vmem:[%s14128_s4 + $0x24] sm:$0xff]  ;;  %v13157_v62 = vld [vmem:[%s14053_s13 + $0x50] sm:$0xff] }
 0x388   : > { %v13161_v63 = vld [vmem:[%s14053_s13 + $0x70] sm:$0xff] }
 0x389   : > { %v2629_v61 = vadd.f32 %v2628_v60, %v2616_v59  ;;  %v13158_v59 = vld [vmem:[%s14053_s13 + $0x58] sm:$0xff] }
 0x38a   : > { %v13162_v60 = vld [vmem:[%s14053_s13 + $0x78] sm:$0xff]  ;;  %2906 = vmatpush.bf16.msrb.mxu2 %v13158_v59  ;;  %v12989_v59 = vld [vmem:[%s14058_s17 + $0x10] sm:$0xff] }
 0x38b   : > { %v2642_v2 = vadd.f32 %v2641_v55, %v2629_v61  ;;  %v13154_v61 = vld [vmem:[%s14053_s13 + $0x38] sm:$0xff]  ;;  %2958 = vmatpush.bf16.msrb.mxu3 %v13162_v60  ;;  %v12997_v60 = vld [vmem:[%s14058_s17 + $0x50] sm:$0xff] }
 0x38c   : > { %2816 = vmatpush.bf16.msra.mxu1 %v13154_v61  ;;  %v13179_v61 = vld [vmem:[%s14053_s13 + $0x100] sm:$0xff] }
 0x38d   : > { %v2655_v3 = vadd.f32 %v2654_v56, %v2642_v2  ;;  %v13153_v2 = vld [vmem:[%s14053_s13 + $0x30] sm:$0xff] }
 0x38e   : > { %v2617_v0 = vpop.f32.mrf.mxu0  ;;  %2907 = vmatpush.bf16.msrb.mxu2 %v13157_v62  ;;  %v12988_v62 = vld [vmem:[%s14058_s17 + $0x8] sm:$0xff] }
 0x38f   : > { %v2630_v1 = vpop.f32.mrf.mxu1  ;;  %v2659_v4 = vsel %vm2658_vm11, %v2655_v3, 0.0  ;;  %2959 = vmatpush.bf16.msrb.mxu3 %v13161_v63  ;;  %v13160_v0 = vld [vmem:[%s14053_s13 + $0x68] sm:$0xff] }
 0x390   : > { %2660 = vadd.xlane.f32.xlu2 %v2659_v4  ;;  %2817 = vmatpush.bf16.msra.mxu1 %v13153_v2  ;;  %v13152_v1 = vld [vmem:[%s14053_s13 + $0x28] sm:$0xff]  ;;  %v13155_v4 = vld [vmem:[%s14053_s13 + $0x40] sm:$0xff] }
 0x391   : > { %v12996_v2 = vld [vmem:[%s14058_s17 + $0x48] sm:$0xff] }
 0x393   : > { %2960 = vmatpush.bf16.msrb.mxu3 %v13160_v0  ;;  %v12995_v0 = vld [vmem:[%s14058_s17 + $0x40] sm:$0xff] }
 0x394   : > { %2818 = vmatpush.bf16.msra.mxu1 %v13152_v1 }
 0x397   : > { %2961 = vmatpush.bf16.msrb.mxu3 %v13159_v7 }
 0x398   : > { %2819 = vmatpush.bf16.msra.mxu1 %v13151_v10 }
 0x39b   : > { %3112 = vmatpush.bf16.msra.mxu3 %v13174_v8 }
 0x403   : > { %v2661_v13 = vpop.xlane.xlu2 %2660 }
 0x404   : > { %v2669_v14 = vmul.f32 %v14503_v12, %v2661_v13  ;;  %v13173_v13 = vld [vmem:[%s14053_s13 + $0xd0] sm:$0xff] }
 0x405   : > { %3113 = vmatpush.bf16.msra.mxu3 %v13173_v13 }
 0x406   : > { %v2670_v16 = vsub.f32 %v2655_v3, %v2669_v14  ;;  %v13156_v3 = vld [vmem:[%s14053_s13 + $0x48] sm:$0xff]  ;;  %v13150_v14 = vld [vmem:[%s14053_s13 + $0x18] sm:$0xff] }
 0x407   : > { %2908 = vmatpush.bf16.msrb.mxu2 %v13156_v3  ;;  %2856 = vmatpush.bf16.msrb.mxu1 %v13150_v14  ;;  %v12987_v3 = vld [vmem:[%s14058_s17] sm:$0xff] }
 0x408   : > { %v2671_v17 = vmul.f32 %v2670_v16, %v2670_v16 }
 0x40a   : > { %v2672_v18 = vsel %vm2658_vm11, %v2671_v17, 0.0  ;;  %v13149_v17 = vld [vmem:[%s14053_s13 + $0x10] sm:$0xff] }
 0x40b   : > { %2673 = vadd.xlane.f32.xlu0 %v2672_v18  ;;  %2909 = vmatpush.bf16.msrb.mxu2 %v13155_v4  ;;  %v13167_v18 = vld [vmem:[%s14053_s13 + $0xa0] sm:$0xff]  ;;  %v1036_v4 = vpack.c.bf16 %v14467_v36, %v14467_v36 }
 0x40c   : > { %2857 = vmatpush.bf16.msrb.mxu1 %v13149_v17 }
 0x40f   : > { %3061 = vmatpush.bf16.msra.mxu2 %v13170_v5  ;;  %v1037_v5 = vpack.c.bf16 %v14473_v40, %v14473_v40 }
 0x413   : > { %3062 = vmatpush.bf16.msra.mxu2 %v13169_v11 }
 0x41f   : > { %2712 = vperm.xlu0 %13749, %v991_v19   ;;  %v13171_v19 = vld [vmem:[%s14053_s13 + $0xc0] sm:$0xff] }
 0x427   : > { %3445 = vperm.xlu0 %13749, %v14509_v20  }
 0x42f   : > { %3964 = vperm.xlu0 %13749, %v14513_v26  }
 0x47e   : > { %v2674_v21 = vpop.xlane.xlu0 %2673 }
 0x47f   : > { %v2675_v22 = vmul.f32 0.015873017, %v2674_v21  ;;  %v13148_v21 = vld [vmem:[%s14053_s13 + $0x8] sm:$0xff] }
 0x480   : > { %2858 = vmatpush.bf16.msrb.mxu1 %v13148_v21 }
 0x481   : > { %13758 = vrsqrt.f32 %v2675_v22  ;;  %vm2683_vm13 = vcmp.eq.f32.partialorder %v2675_v22, inf  ;;  %v2686_v31 = vand.u32 2147483648, %v2675_v22  ;;  %vm2685_vm14 = vcmp.eq.f32.partialorder %v2675_v22, 0.0 }
 0x487   : > { %v13759_v23 = vpop.eup %13758 }
 0x488   : > { %v2677_v24 = vmul.f32 %v13759_v23, %v2675_v22 }
 0x48a   : > { %v2678_v25 = vmul.f32 %v13759_v23, %v2677_v24  ;;  %v13177_v24 = vld [vmem:[%s14053_s13 + $0xf0] sm:$0xff] }
 0x48c   : > { %v2679_v27 = vmul.f32 0.5, %v2678_v25  ;;  %v13176_v25 = vld [vmem:[%s14053_s13 + $0xe8] sm:$0xff] }
 0x48e   : > { %v2680_v28 = vsub.f32 1.5, %v2679_v27  ;;  %v13175_v27 = vld [vmem:[%s14053_s13 + $0xe0] sm:$0xff] }
 0x490   : > { %v2681_v29 = vmul.f32 %v13759_v23, %v2680_v28  ;;  %v13147_v23 = vld [vmem:[%s14053_s13] sm:$0xff] }
 0x491   : > { %v2713_v52 = vpop.permute.xlu0 %2712  ;;  %2859 = vmatpush.bf16.msrb.mxu1 %v13147_v23 }
 0x492   : > { %v2682_v30 = vmul.f32 %v2681_v29, %v2675_v22 }
 0x494   : > { %v2684_v32 = vsel %vm2683_vm13, %v2675_v22, %v2682_v30  ;;  %v13178_v22 = vld [vmem:[%s14053_s13 + $0xf8] sm:$0xff] }
 0x495   : > { %v2687_v33 = vsel %vm2685_vm14, %v2686_v31, %v2684_v32  ;;  %v13166_v30 = vld [vmem:[%s14053_s13 + $0x98] sm:$0xff]  ;;  %v13165_v32 = vld [vmem:[%s14053_s13 + $0x90] sm:$0xff] }
 0x496   : > { %v2688_v34 = vadd.f32 1e-05, %v2687_v33 }
 0x498   : > { %13760 = vrcp.f32 %v2688_v34  ;;  %v2700_v39 = vand.u32 2147483648, %v2688_v34  ;;  %v2698_v42 = vand.u32 2147483647, %v2688_v34  ;;  %vm2694_vm0 = vweird.f32 %v2688_v34 }
 0x49a   : > { %v2701_v45 = vor.u32 1.1754944e-38, %v2700_v39  ;;  %vm2699_vm2 = vcmp.eq.f32.partialorder %v2698_v42, 8.507059e+37  ;;  %v13001_v42 = vld [vmem:[%s14058_s17 + $0x70] sm:$0xff] }
 0x49e   : > { %v13761_v35 = vpop.eup %13760 }
 0x49f   : > { %v2690_v37 = vmul.f32 %v13761_v35, %v2688_v34  ;;  %vm2695_vm15 = vweird.f32 %v13761_v35  ;;  %v12994_v34 = vld [vmem:[%s14058_s17 + $0x38] sm:$0xff] }
 0x4a0   : > { %vm2696_vm1 = vmor %vm2694_vm0, %vm2695_vm15  ;;  %vm3368_vm15 = vcmask 31744   ;;  %vm3968_vm0 = vcmask 125952  }
 0x4a1   : > { %v2691_v38 = vsub.f32 1.0, %v2690_v37  ;;  %v13002_v37 = vld [vmem:[%s14058_s17 + $0x78] sm:$0xff] }
 0x4a3   : > { %v2692_v41 = vmul.f32 %v13761_v35, %v2691_v38  ;;  %v13164_v38 = vld [vmem:[%s14053_s13 + $0x88] sm:$0xff] }
 0x4a5   : > { %v2693_v43 = vadd.f32 %v13761_v35, %v2692_v41  ;;  %v12993_v41 = vld [vmem:[%s14058_s17 + $0x30] sm:$0xff] }
 0x4a7   : > { %v2697_v46 = vsel %vm2696_vm1, %v13761_v35, %v2693_v43  ;;  %v13163_v43 = vld [vmem:[%s14053_s13 + $0x80] sm:$0xff] }
 0x4a8   : > { %v2702_v47 = vsel %vm2699_vm2, %v2701_v45, %v2697_v46  ;;  %v12992_v45 = vld [vmem:[%s14058_s17 + $0x28] sm:$0xff] }
 0x4a9   : > { %v2703_v48 = vmul.f32 %v2702_v47, %v990_v44  ;;  %v13000_v46 = vld [vmem:[%s14058_s17 + $0x68] sm:$0xff]  ;;  %v13182_v47 = vld [vmem:[%s14053_s13 + $0x118] sm:$0xff] }
 0x4ab   : > { %2706 = vperm.xlu1 %13747, %v2703_v48  }
 0x4b3   : > { %3227 = vperm.xlu1 %13747, %v992_v49   ;;  %v12991_v49 = vld [vmem:[%s14058_s17 + $0x20] sm:$0xff] }
 0x51d   : > { %v2707_v50 = vpop.permute.xlu1 %2706 }
 0x51e   : > { %v2709_v51 = vmul.f32 %v2707_v50, %v2670_v16  ;;  %v13168_v16 = vld [vmem:[%s14053_s13 + $0xa8] sm:$0xff]  ;;  %v12999_v50 = vld [vmem:[%s14058_s17 + $0x60] sm:$0xff] }
 0x51f   : > { %3063 = vmatpush.bf16.msra.mxu2 %v13168_v16 }
 0x520   : > { %v2715_v53 = vadd.f32 %v2713_v52, %v2709_v51  ;;  %v13181_v51 = vld [vmem:[%s14053_s13 + $0x110] sm:$0xff] }
 0x522   : > { %vm2716_vm3 = vcmp.gt.f32.partialorder %v2715_v53, 0.0  ;;  %v2717_v54 = vmul.f32 0.2, %v2715_v53 }
 0x523   : > { %3064 = vmatpush.bf16.msra.mxu2 %v13167_v18 }
 0x524   : > { %v2718_v55 = vsel %vm2716_vm3, %v2715_v53, %v2717_v54  ;;  %v12990_v54 = vld [vmem:[%s14058_s17 + $0x18] sm:$0xff] }
 0x525   : > { %v2719_v56 = vpack.c.bf16 %v2718_v55, %v2718_v55 }
 0x527   : > { %v2740_v57 = vsel %vm1003_vm9, %v2719_v56, 0  ;;  %v12998_v56 = vld [vmem:[%s14058_s17 + $0x58] sm:$0xff] }
 0x528   : > { %2749 = vmatpush.bf16.msra.mxu0 %v2740_v57  ;;  %v13180_v57 = vld [vmem:[%s14053_s13 + $0x108] sm:$0xff] }
 0x52b   : > { %10589 = vmatmul.msk.bf16.vlgmr.msra.gmra.mxu0 %vm999_vm10, %v12985_v58 }
 0x52c   : > { %3164 = vmatpush.bf16.msrb.mxu0 %v13178_v22 }
 0x530   : > { %3165 = vmatpush.bf16.msrb.mxu0 %v13177_v24 }
 0x534   : > { %3166 = vmatpush.bf16.msrb.mxu0 %v13176_v25 }
 0x538   : > { %3167 = vmatpush.bf16.msrb.mxu0 %v13175_v27 }
 0x53b   : > { %10590 = vmatmul.msk.bf16.gmra.mxu0 %vm999_vm10, %v12986_v6 }
 0x54b   : > { %10591 = vmatmul.msk.bf16.gmra.mxu0 %vm999_vm10, %v14337_v15  ;;  %v13172_v15 = vld [vmem:[%s14053_s13 + $0xc8] sm:$0xff] }
 0x54c   : > { %3114 = vmatpush.bf16.msra.mxu3 %v13172_v15 }
 0x550   : > { %3115 = vmatpush.bf16.msra.mxu3 %v13171_v19 }
 0x5a8   : > { %v2751_v28 = vpop.f32.mrf.mxu0 }
 0x5a9   : > { %v2765_v29 = vpack.c.bf16 %v2751_v28, %v2751_v28 }
 0x5ab   : > { %v2784_v31 = vrot.slane %v2765_v29, 2 }
 0x5ad   : > { %10616 = vmatmul.msk.bf16.vlgmr.msra.gmra.mxu1 %vm2658_vm11, %v2784_v31 }
 0x5ae   : > { %3009 = vmatpush.bf16.msra.mxu1 %v13166_v30 }
 0x5b0   : > { %v2753_v33 = vpop.f32.mrf.mxu0 }
 0x5b1   : > { %v2865_v35 = vpack.c.bf16 %v2753_v33, %v2753_v33 }
 0x5b2   : > { %3010 = vmatpush.bf16.msra.mxu1 %v13165_v32 }
 0x5b3   : > { %v2926_v39 = vrot.slane %v2865_v35, 2  ;;  %10658 = vmatmul.msk.bf16.vlgmr.msrb.gmra.mxu2 %vm2658_vm11, %v2865_v35 }
 0x5b4   : > { %3327 = vmatpush.bf16.msrb.mxu2 %v12994_v34 }
 0x5b5   : > { %10683 = vmatmul.msk.bf16.vlgmr.msrb.gmra.mxu3 %vm2658_vm11, %v2926_v39 }
 0x5b6   : > { %3340 = vmatpush.bf16.msrb.mxu3 %v13002_v37  ;;  %3011 = vmatpush.bf16.msra.mxu1 %v13164_v38  ;;  %v3228_v37 = vpop.permute.xlu1 %3227 }
 0x5b8   : > { %v2756_v44 = vpop.f32.mrf.mxu0  ;;  %3328 = vmatpush.bf16.msrb.mxu2 %v12993_v41 }
 0x5b9   : > { %v2968_v48 = vpack.c.bf16 %v2756_v44, %v2756_v44 }
 0x5ba   : > { %3341 = vmatpush.bf16.msrb.mxu3 %v13001_v42  ;;  %3012 = vmatpush.bf16.msra.mxu1 %v13163_v43 }
 0x5bb   : > { %v3029_v52 = vrot.slane %v2968_v48, 2 }
 0x5bc   : > { %3329 = vmatpush.bf16.msrb.mxu2 %v12992_v45 }
 0x5bd   : > { %10633 = vmatmul.msk.bf16.vlgmr.msrb.gmra.mxu1 %vm2658_vm11, %v2765_v29 }
 0x5be   : > { %3342 = vmatpush.bf16.msrb.mxu3 %v13000_v46  ;;  %3215 = vmatpush.bf16.msrb.mxu1 %v13182_v47 }
 0x5c0   : > { %v2758_v53 = vpop.f32.mrf.mxu0  ;;  %3330 = vmatpush.bf16.msrb.mxu2 %v12991_v49 }
 0x5c1   : > { %v3071_v55 = vpack.c.bf16 %v2758_v53, %v2758_v53 }
 0x5c2   : > { %3343 = vmatpush.bf16.msrb.mxu3 %v12999_v50  ;;  %3216 = vmatpush.bf16.msrb.mxu1 %v13181_v51 }
 0x5c3   : > { %v3132_v58 = vrot.slane %v3071_v55, 2  ;;  %10733 = vmatmul.msk.bf16.vlgmr.msra.gmra.mxu2 %vm2658_vm11, %v3029_v52 }
 0x5c4   : > { %3331 = vmatpush.bf16.msrb.mxu2 %v12990_v54 }
 0x5c5   : > { %10758 = vmatmul.msk.bf16.vlgmr.msra.gmra.mxu3 %vm2658_vm11, %v3071_v55  ;;  %10783 = vmatmul.msk.bf16.vlgmr.msrb.gmra.mxu0 %vm2658_vm11, %v3132_v58 }
 0x5c6   : > { %3344 = vmatpush.bf16.msrb.mxu3 %v12998_v56  ;;  %3217 = vmatpush.bf16.msrb.mxu1 %v13180_v57 }
 0x5c8   : > { %3332 = vmatpush.bf16.msrb.mxu2 %v12989_v59  ;;  %v2761_v63 = vpop.f32.mrf.mxu0 }
 0x5c9   : > { %v3174_v6 = vpack.c.bf16 %v2761_v63, %v2761_v63 }
 0x5ca   : > { %3345 = vmatpush.bf16.msrb.mxu3 %v12997_v60  ;;  %3218 = vmatpush.bf16.msrb.mxu1 %v13179_v61 }
 0x5cc   : > { %3333 = vmatpush.bf16.msrb.mxu2 %v12988_v62 }
 0x5cd   : > { %10708 = vmatmul.msk.bf16.vlgmr.msra.gmra.mxu1 %vm2658_vm11, %v2968_v48 }
 0x5ce   : > { %3346 = vmatpush.bf16.msrb.mxu3 %v12996_v2 }
 0x5d0   : > { %3334 = vmatpush.bf16.msrb.mxu2 %v12987_v3  ;;  %v2763_v1 = vpop.f32.mrf.mxu0 }
 0x5d2   : > { %3347 = vmatpush.bf16.msrb.mxu3 %v12995_v0 }
 0x5d3   : > { %3335 = vmatmul.bf16.vlgmr.msrb.gmra.mxu2 %v1036_v4 }
 0x5d5   : > { %3348 = vmatmul.bf16.vlgmr.msrb.gmra.mxu3 %v1037_v5 }
 0x5dd   : > { %10808 = vmatmul.msk.bf16.vlgmr.msrb.gmra.mxu1 %vm2658_vm11, %v3174_v6 }
 0x62a   : > { %v2821_v7 = vpop.f32.mrf.mxu1 }
 0x632   : > { %v2823_v8 = vpop.f32.mrf.mxu1 }
 0x636   : > { %v2911_v10 = vpop.f32.mrf.mxu2 }
 0x638   : > { %v2963_v11 = vpop.f32.mrf.mxu3 }
 0x63a   : > { %v2861_v13 = vpop.f32.mrf.mxu1 }
 0x63b   : > { %v2862_v18 = vadd.f32 %v2861_v13, %v2821_v7 }
 0x63d   : > { %v2915_v19 = vadd.f32 %v2911_v10, %v2862_v18 }
 0x63e   : > { %v2913_v14 = vpop.f32.mrf.mxu2 }
 0x63f   : > { %v2967_v23 = vadd.f32 %v2963_v11, %v2915_v19 }
 0x640   : > { %v2965_v16 = vpop.f32.mrf.mxu3 }
 0x642   : > { %v2863_v15 = vpop.f32.mrf.mxu1  ;;  %v3169_v17 = vpop.f32.mrf.mxu0 }
 0x643   : > { %v3446_v15 = vpop.permute.xlu0 %3445 }
 0x644   : > { %v3447_v18 = vrot.slane %v3446_v15, 4 }
 0x646   : > { %v3066_v36 = vpop.f32.mrf.mxu2 }
 0x648   : > { %v3117_v21 = vpop.f32.mrf.mxu3 }
 0x64a   : > { %v3014_v22 = vpop.f32.mrf.mxu1  ;;  %v3171_v40 = vpop.f32.mrf.mxu0 }
 0x64b   : > { %v3018_v24 = vadd.f32 %v3014_v22, %v2967_v23 }
 0x64d   : > { %v3070_v28 = vadd.f32 %v3066_v36, %v3018_v24  ;;  %v13183_v24 = vld [vmem:[%s14133_s12] sm:$0xff] }
 0x64e   : > { %v3068_v25 = vpop.f32.mrf.mxu2 }
 0x64f   : > { %v3121_v30 = vadd.f32 %v3117_v21, %v3070_v28  ;;  %v13193_v25 = vld [vmem:[%s14063_s21 + $0x18] sm:$0xff]  ;;  %v13192_v28 = vld [vmem:[%s14063_s21 + $0x10] sm:$0xff] }
 0x650   : > { %v3119_v27 = vpop.f32.mrf.mxu3  ;;  %3593 = vmatpush.bf16.msra.mxu2 %v13193_v25 }
 0x651   : > { %v3173_v33 = vadd.f32 %v3169_v17, %v3121_v30  ;;  %v13197_v27 = vld [vmem:[%s14063_s21 + $0x38] sm:$0xff] }
 0x652   : > { %v3016_v29 = vpop.f32.mrf.mxu1  ;;  %v13201_v30 = vld [vmem:[%s14063_s21 + $0x58] sm:$0xff] }
 0x653   : > { %v13196_v29 = vld [vmem:[%s14063_s21 + $0x30] sm:$0xff]  ;;  %3643 = vmatpush.bf16.msra.mxu3 %v13201_v30 }
 0x654   : > { %3594 = vmatpush.bf16.msra.mxu2 %v13192_v28 }
 0x656   : > { %v3336_v31 = vpop.f32.mrf.mxu2 }
 0x658   : > { %v3349_v32 = vpop.f32.mrf.mxu3 }
 0x65a   : > { %v3220_v34 = vpop.f32.mrf.mxu1 }
 0x65b   : > { %v3224_v35 = vadd.f32 %v3220_v34, %v3173_v33  ;;  %v13184_v33 = vld [vmem:[%s14133_s12 + $0x8] sm:$0xff]  ;;  %v14616_v34 = vld [vmem:[%s14133_s12 + $0x10] sm:$0xff]  }
 0x65d   : > { %v3230_v38 = vadd.f32 %v3228_v37, %v3224_v35  ;;  %v13637_v35 = vunpack.c.l.b16 %v14616_v34 }
 0x65e   : > { %v3338_v39 = vpop.f32.mrf.mxu2 }
 0x65f   : > { %v3337_v41 = vadd.f32 %v3336_v31, %v3230_v38  ;;  %v13191_v31 = vld [vmem:[%s14063_s21 + $0x8] sm:$0xff]  ;;  %v3466_v37 = vpack.c.b16 %v13637_v35, %v13637_v35  ;;  %v13190_v38 = vld [vmem:[%s14063_s21] sm:$0xff]  ;;  %v13200_v39 = vld [vmem:[%s14063_s21 + $0x50] sm:$0xff] }
 0x660   : > { %v3351_v42 = vpop.f32.mrf.mxu3  ;;  %3595 = vmatpush.bf16.msra.mxu2 %v13191_v31  ;;  %3644 = vmatpush.bf16.msra.mxu3 %v13200_v39 }
 0x661   : > { %v3350_v43 = vadd.f32 %v3349_v32, %v3337_v41  ;;  %v13195_v32 = vld [vmem:[%s14063_s21 + $0x28] sm:$0xff]  ;;  %v13194_v41 = vld [vmem:[%s14063_s21 + $0x20] sm:$0xff] }
 0x662   : > { %v3222_v44 = vpop.f32.mrf.mxu1  ;;  %v13199_v42 = vld [vmem:[%s14063_s21 + $0x48] sm:$0xff] }
 0x663   : > { %v14590_v45 = vmul.f32 0.70710677, %v3350_v43  ;;  %v13209_v43 = vld [vmem:[%s14063_s21 + $0x98] sm:$0xff] }
 0x664   : > { %3596 = vmatpush.bf16.msra.mxu2 %v13190_v38  ;;  %3645 = vmatpush.bf16.msra.mxu3 %v13199_v42  ;;  %v13205_v44 = vld [vmem:[%s14063_s21 + $0x78] sm:$0xff] }
 0x665   : > { %v3399_v46 = vsel %vm3398_vm4, %v14590_v45, 0.0  ;;  %v3367_v47 = vpack.c.bf16 %v14590_v45, %v14590_v45 }
 0x666   : > { %3400 = vadd.xlane.f32.xlu1 %v3399_v46  ;;  %v13198_v46 = vld [vmem:[%s14063_s21 + $0x40] sm:$0xff] }
 0x667   : > { %v3374_v48 = vsel %vm3372_vm5, %v3367_v47, 0  ;;  %v13208_v47 = vld [vmem:[%s14063_s21 + $0x90] sm:$0xff] }
 0x668   : > { %3383 = vmatpush.bf16.msra.mxu0 %v3374_v48  ;;  %3746 = vmatpush.bf16.msrb.mxu2 %v13209_v43  ;;  %v13204_v48 = vld [vmem:[%s14063_s21 + $0x70] sm:$0xff] }
 0x669   : > { %3646 = vmatpush.bf16.msra.mxu3 %v13198_v46 }
 0x66c   : > { %3553 = vmatpush.bf16.msrb.mxu0 %v13197_v27  ;;  %3747 = vmatpush.bf16.msrb.mxu2 %v13208_v47 }
 0x670   : > { %3554 = vmatpush.bf16.msrb.mxu0 %v13196_v29 }
 0x674   : > { %3555 = vmatpush.bf16.msrb.mxu0 %v13195_v32 }
 0x678   : > { %3556 = vmatpush.bf16.msrb.mxu0 %v13194_v41 }
 0x6d9   : > { %v3401_v49 = vpop.xlane.xlu1 %3400 }
 0x6da   : > { %v3402_v50 = vmul.f32 %v3401_v49, %v14503_v12  ;;  %v13207_v49 = vld [vmem:[%s14063_s21 + $0x88] sm:$0xff] }
 0x6db   : > { %3748 = vmatpush.bf16.msrb.mxu2 %v13207_v49 }
 0x6dc   : > { %v3403_v51 = vsub.f32 %v14590_v45, %v3402_v50  ;;  %v13213_v50 = vld [vmem:[%s14063_s21 + $0xb8] sm:$0xff] }
 0x6dd   : > { %3798 = vmatpush.bf16.msrb.mxu3 %v13213_v50 }
 0x6de   : > { %v3404_v52 = vmul.f32 %v3403_v51, %v3403_v51 }
 0x6e0   : > { %v3405_v53 = vsel %vm3398_vm4, %v3404_v52, 0.0  ;;  %v13221_v52 = vld [vmem:[%s14063_s21 + $0xf8] sm:$0xff] }
 0x6e1   : > { %3406 = vadd.xlane.f32.xlu2 %v3405_v53  ;;  %v13206_v53 = vld [vmem:[%s14063_s21 + $0x80] sm:$0xff] }
 0x6e2   : > { %3749 = vmatpush.bf16.msrb.mxu2 %v13206_v53 }
 0x754   : > { %v3407_v54 = vpop.xlane.xlu2 %3406 }
 0x755   : > { %v3408_v55 = vmul.f32 0.015873017, %v3407_v54  ;;  %v13212_v54 = vld [vmem:[%s14063_s21 + $0xb0] sm:$0xff] }
 0x756   : > { %3799 = vmatpush.bf16.msrb.mxu3 %v13212_v54 }
 0x757   : > { %13762 = vrsqrt.f32 %v3408_v55  ;;  %vm3416_vm6 = vcmp.eq.f32.partialorder %v3408_v55, inf  ;;  %v3419_v63 = vand.u32 2147483648, %v3408_v55  ;;  %vm3418_vm7 = vcmp.eq.f32.partialorder %v3408_v55, 0.0 }
 0x75d   : > { %v13763_v56 = vpop.eup %13762 }
 0x75e   : > { %v3410_v57 = vmul.f32 %v13763_v56, %v3408_v55 }
 0x760   : > { %v3411_v58 = vmul.f32 %v13763_v56, %v3410_v57  ;;  %v13211_v57 = vld [vmem:[%s14063_s21 + $0xa8] sm:$0xff] }
 0x761   : > { %3800 = vmatpush.bf16.msrb.mxu3 %v13211_v57  ;;  %v14033_v57 = vmov 16.0  }
 0x762   : > { %v3412_v59 = vmul.f32 0.5, %v3411_v58  ;;  %v13219_v58 = vld [vmem:[%s14063_s21 + $0xe8] sm:$0xff] }
 0x764   : > { %v3413_v60 = vsub.f32 1.5, %v3412_v59  ;;  %v13210_v59 = vld [vmem:[%s14063_s21 + $0xa0] sm:$0xff] }
 0x765   : > { %3801 = vmatpush.bf16.msrb.mxu3 %v13210_v59 }
 0x766   : > { %v3414_v61 = vmul.f32 %v13763_v56, %v3413_v60  ;;  %v13220_v56 = vld [vmem:[%s14063_s21 + $0xf0] sm:$0xff]  ;;  %v13218_v60 = vld [vmem:[%s14063_s21 + $0xe0] sm:$0xff] }
 0x768   : > { %v3415_v62 = vmul.f32 %v3414_v61, %v3408_v55 }
 0x76a   : > { %v3417_v2 = vsel %vm3416_vm6, %v3408_v55, %v3415_v62  ;;  %v13202_v55 = vld [vmem:[%s14063_s21 + $0x60] sm:$0xff]  ;;  %v13225_v62 = vld [vmem:[%s14063_s21 + $0x118] sm:$0xff] }
 0x76b   : > { %v3420_v3 = vsel %vm3418_vm7, %v3419_v63, %v3417_v2  ;;  %v13217_v2 = vld [vmem:[%s14063_s21 + $0xd8] sm:$0xff] }
 0x76c   : > { %v3421_v0 = vadd.f32 1e-05, %v3420_v3 }
 0x76e   : > { %13764 = vrcp.f32 %v3421_v0  ;;  %v3433_v6 = vand.u32 2147483648, %v3421_v0  ;;  %v3431_v8 = vand.u32 2147483647, %v3421_v0  ;;  %vm3427_vm10 = vweird.f32 %v3421_v0 }
 0x76f   : > { %13766 = vrcp.f32 %v14033_v57  ;;  %v14686_v57 = vld [vmem:[#allocation2] sm:$0xff] }
 0x770   : > { %v3434_v11 = vor.u32 1.1754944e-38, %v3433_v6  ;;  %vm3432_vm13 = vcmp.eq.f32.partialorder %v3431_v8, 8.507059e+37  ;;  %v13215_v8 = vld [vmem:[%s14063_s21 + $0xc8] sm:$0xff] }
 0x774   : > { %v13765_v1 = vpop.eup %13764 }
 0x775   : > { %v3423_v4 = vmul.f32 %v13765_v1, %v3421_v0  ;;  %vm3428_vm8 = vweird.f32 %v13765_v1  ;;  %v13224_v0 = vld [vmem:[%s14063_s21 + $0x110] sm:$0xff] }
 0x776   : > { %vm3429_vm12 = vmor %vm3427_vm10, %vm3428_vm8 }
 0x777   : > { %v3424_v5 = vsub.f32 1.0, %v3423_v4 }
 0x779   : > { %v3425_v7 = vmul.f32 %v13765_v1, %v3424_v5  ;;  %v13223_v5 = vld [vmem:[%s14063_s21 + $0x108] sm:$0xff] }
 0x77b   : > { %v3426_v10 = vadd.f32 %v13765_v1, %v3425_v7 }
 0x77d   : > { %v3430_v13 = vsel %vm3429_vm12, %v13765_v1, %v3426_v10  ;;  %v13216_v1 = vld [vmem:[%s14063_s21 + $0xd0] sm:$0xff]  ;;  %v13222_v10 = vld [vmem:[%s14063_s21 + $0x100] sm:$0xff] }
 0x77e   : > { %v3435_v14 = vsel %vm3432_vm13, %v3434_v11, %v3430_v13  ;;  %v13214_v11 = vld [vmem:[%s14063_s21 + $0xc0] sm:$0xff]  ;;  %vm4045_vm13 = vcmask 1045504  }
 0x77f   : > { %v3436_v16 = vmul.f32 %v3435_v14, %v14509_v20  ;;  %v3363_v20 = vld [vmem:[%s14133_s12 + $0x24] sm:$0x3] }
 0x780   : > { %10873 = vmatmul.msk.bf16.vlgmr.msra.gmra.mxu0 %vm3368_vm15, %v3363_v20 }
 0x781   : > { %3439 = vperm.xlu2 %13748, %v3436_v16   ;;  %3695 = vmatpush.bf16.msra.mxu0 %v13205_v44 }
 0x785   : > { %3696 = vmatpush.bf16.msra.mxu0 %v13204_v48 }
 0x7db   : > { %v3440_v17 = vpop.permute.xlu2 %3439 }
 0x7dc   : > { %v3442_v36 = vmul.f32 %v3440_v17, %v3403_v51  ;;  %v13203_v51 = vld [vmem:[%s14063_s21 + $0x68] sm:$0xff] }
 0x7dd   : > { %3697 = vmatpush.bf16.msra.mxu0 %v13203_v51  ;;  %v3965_v51 = vpop.permute.xlu0 %3964 }
 0x7de   : > { %v3449_v19 = vadd.f32 %v3447_v18, %v3442_v36 }
 0x7e0   : > { %vm3450_vm14 = vcmp.gt.f32.partialorder %v3449_v19, 0.0  ;;  %v3451_v21 = vmul.f32 0.2, %v3449_v19 }
 0x7e1   : > { %3698 = vmatpush.bf16.msra.mxu0 %v13202_v55 }
 0x7e2   : > { %v3452_v22 = vsel %vm3450_vm14, %v3449_v19, %v3451_v21  ;;  %vm4100_vm14 = vcmask 130048  }
 0x7e3   : > { %v3453_v40 = vpack.c.bf16 %v3452_v22, %v3452_v22 }
 0x7e5   : > { %v3477_v23 = vsel %vm3372_vm5, %v3453_v40, 0 }
 0x7e6   : > { %3486 = vmatpush.bf16.msra.mxu1 %v3477_v23 }
 0x7e9   : > { %10882 = vmatmul.msk.bf16.vlgmr.msra.gmra.mxu1 %vm3368_vm15, %v13183_v24 }
 0x7ea   : > { %3901 = vmatpush.bf16.msrb.mxu1 %v13221_v52 }
 0x7ee   : > { %3902 = vmatpush.bf16.msrb.mxu1 %v13220_v56  ;;  %v3366_v56 = vld [vmem:[%s14163_s24 + $0x10] sm:$0xff] }
 0x7f2   : > { %3903 = vmatpush.bf16.msrb.mxu1 %v13219_v58  ;;  %v13767_v58 = vpop.eup %13766 }
 0x7f3   : > { %v3973_v59 = vmul.f32 16.0, %v13767_v58  ;;  %vm3977_vm1 = vweird.f32 %v13767_v58 }
 0x7f6   : > { %3904 = vmatpush.bf16.msrb.mxu1 %v13218_v60  ;;  %v3974_v60 = vsub.f32 1.0, %v3973_v59  ;;  %v14692_v59 = vld [vmem:[#allocation2 + $0x10] sm:$0xff] }
 0x7f9   : > { %10883 = vmatmul.msk.bf16.gmra.mxu1 %vm3368_vm15, %v13184_v33 }
 0x7fa   : > { %4133 = vmatpush.bf16.msra.mxu1 %v14686_v57 }
 0x7fd   : > { %v14648_v6 = vpop.f32.mrf.mxu0 }
 0x805   : > { %v3387_v14 = vpop.f32.mrf.mxu0 }
 0x809   : > { %10884 = vmatmul.msk.bf16.gmra.mxu1 %vm3368_vm15, %v3466_v37 }
 0x866   : > { %v3488_v61 = vpop.f32.mrf.mxu1 }
 0x867   : > { %v3502_v63 = vpack.c.bf16 %v3488_v61, %v3488_v61  ;;  %v3975_v61 = vmul.f32 %v13767_v58, %v3974_v60  ;;  %v14695_v60 = vld [vmem:[#allocation2 + $0x20] sm:$0xff] }
 0x869   : > { %v3521_v3 = vrot.slane %v3502_v63, 2  ;;  %10926 = vmatmul.msk.bf16.vlgmr.msra.gmra.mxu2 %vm2658_vm11, %v3502_v63 }
 0x86a   : > { %3952 = vmatpush.bf16.msra.mxu2 %v13225_v62  ;;  %v3976_v62 = vadd.f32 %v13767_v58, %v3975_v61  ;;  %v14698_v61 = vld [vmem:[#allocation2 + $0x18] sm:$0xff] }
 0x86b   : > { %10909 = vmatmul.msk.bf16.vlgmr.msrb.gmra.mxu0 %vm2658_vm11, %v3521_v3 }
 0x86c   : > { %3849 = vmatpush.bf16.msrb.mxu0 %v13217_v2  ;;  %v14662_v63 = vsel %vm3977_vm1, %v13767_v58, %v3976_v62  ;;  %v14689_v58 = vld [vmem:[#allocation2 + $0x8] sm:$0xff] }
 0x86e   : > { %v3490_v4 = vpop.f32.mrf.mxu1  ;;  %3953 = vmatpush.bf16.msra.mxu2 %v13224_v0 }
 0x86f   : > { %v3602_v7 = vpack.c.bf16 %v3490_v4, %v3490_v4 }
 0x870   : > { %3850 = vmatpush.bf16.msrb.mxu0 %v13216_v1 }
 0x871   : > { %10951 = vmatmul.msk.bf16.vlgmr.msra.gmra.mxu3 %vm2658_vm11, %v3602_v7  ;;  %v3663_v15 = vrot.slane %v3602_v7, 2 }
 0x872   : > { %3954 = vmatpush.bf16.msra.mxu2 %v13223_v5 }
 0x874   : > { %3851 = vmatpush.bf16.msrb.mxu0 %v13215_v8 }
 0x876   : > { %v3493_v13 = vpop.f32.mrf.mxu1  ;;  %3955 = vmatpush.bf16.msra.mxu2 %v13222_v10 }
 0x877   : > { %v3705_v16 = vpack.c.bf16 %v3493_v13, %v3493_v13 }
 0x878   : > { %3852 = vmatpush.bf16.msrb.mxu0 %v13214_v11 }
 0x879   : > { %11001 = vmatmul.msk.bf16.vlgmr.msrb.gmra.mxu2 %vm2658_vm11, %v3705_v16  ;;  %v3766_v18 = vrot.slane %v3705_v16, 2 }
 0x87a   : > { %4159 = vmatpush.bf16.msrb.mxu2 %v14692_v59 }
 0x87b   : > { %10976 = vmatmul.msk.bf16.vlgmr.msra.gmra.mxu0 %vm2658_vm11, %v3663_v15 }
 0x87c   : > { %4111 = vmatpush.bf16.msra.mxu0 %v14689_v58 }
 0x87e   : > { %v3495_v17 = vpop.f32.mrf.mxu1 }
 0x87f   : > { %v3808_v36 = vpack.c.bf16 %v3495_v17, %v3495_v17 }
 0x881   : > { %v3869_v19 = vrot.slane %v3808_v36, 2  ;;  %11026 = vmatmul.msk.bf16.vlgmr.msrb.gmra.mxu3 %vm2658_vm11, %v3766_v18 }
 0x883   : > { %11076 = vmatmul.msk.bf16.vlgmr.msrb.gmra.mxu1 %vm2658_vm11, %v3869_v19 }
 0x884   : > { %4214 = vmatpush.bf16.msrb.mxu1 %v14695_v60 }
 0x886   : > { %v3498_v21 = vpop.f32.mrf.mxu1 }
 0x887   : > { %v3911_v22 = vpack.c.bf16 %v3498_v21, %v3498_v21 }
 0x889   : > { %11101 = vmatmul.msk.bf16.vlgmr.msra.gmra.mxu2 %vm2658_vm11, %v3911_v22 }
 0x88b   : > { %11051 = vmatmul.msk.bf16.vlgmr.msrb.gmra.mxu0 %vm2658_vm11, %v3808_v36 }
 0x88c   : > { %4187 = vmatpush.bf16.msrb.mxu0 %v14698_v61 }
 0x88e   : > { %v3500_v40 = vpop.f32.mrf.mxu1 }
 0x8e8   : > { %v3558_v23 = vpop.f32.mrf.mxu0 }
 0x8ec   : > { %v3598_v24 = vpop.f32.mrf.mxu2 }
 0x8ed   : > { %v3599_v31 = vadd.f32 %v3598_v24, %v3558_v23 }
 0x8f0   : > { %v3560_v20 = vpop.f32.mrf.mxu0 }
 0x8f4   : > { %v3600_v25 = vpop.f32.mrf.mxu2  ;;  %v3648_v27 = vpop.f32.mrf.mxu3 }
 0x8f5   : > { %v3652_v35 = vadd.f32 %v3648_v27, %v3599_v31 }
 0x8f8   : > { %v3700_v28 = vpop.f32.mrf.mxu0 }
 0x8f9   : > { %v3704_v37 = vadd.f32 %v3700_v28, %v3652_v35 }
 0x8fc   : > { %v3650_v29 = vpop.f32.mrf.mxu3  ;;  %v3751_v30 = vpop.f32.mrf.mxu2 }
 0x8fd   : > { %v3755_v41 = vadd.f32 %v3751_v30, %v3704_v37 }
 0x900   : > { %v3702_v32 = vpop.f32.mrf.mxu0  ;;  %v3906_v33 = vpop.f32.mrf.mxu1 }
 0x904   : > { %v3753_v38 = vpop.f32.mrf.mxu2  ;;  %v3803_v39 = vpop.f32.mrf.mxu3 }
 0x905   : > { %v3807_v42 = vadd.f32 %v3803_v39, %v3755_v41  ;;  %v13185_v39 = vld [vmem:[%s14133_s12 + $0x18] sm:$0xff] }
 0x908   : > { %v3854_v43 = vpop.f32.mrf.mxu0  ;;  %v3908_v44 = vpop.f32.mrf.mxu1 }
 0x909   : > { %v3858_v46 = vadd.f32 %v3854_v43, %v3807_v42  ;;  %v4046_v42 = vrot.slane %v14616_v34, 2  ;;  %v4047_v44 = vrot.slane %v13185_v39, 2  ;;  %v13187_v34 = vld [vmem:[%s14073_s29 + $0x8] sm:$0xff] }
 0x90b   : > { %v3910_v47 = vadd.f32 %v3906_v33, %v3858_v46 }
 0x90c   : > { %v3805_v48 = vpop.f32.mrf.mxu3  ;;  %v3957_v49 = vpop.f32.mrf.mxu2 }
 0x90d   : > { %v3961_v50 = vadd.f32 %v3957_v49, %v3910_v47  ;;  %v4048_v47 = vsel %vm4045_vm13, %v4046_v42, %v4047_v44  ;;  %v3362_v48 = vld [vmem:[%s14133_s12 + $0x20] sm:$0xf]  ;;  %v13189_v49 = vld [vmem:[%s14073_s29 + $0x18] sm:$0xff] }
 0x90f   : > { %v3967_v52 = vadd.f32 %v3965_v51, %v3961_v50  ;;  %v4041_v50 = vunpack.c.l.b16 %v3362_v48  ;;  %v13188_v51 = vld [vmem:[%s14073_s29 + $0x10] sm:$0xff] }
 0x910   : > { %v3856_v53 = vpop.f32.mrf.mxu0 }
 0x911   : > { %v3969_v54 = vsel %vm3968_vm0, %v3967_v52, 0.0 }
 0x912   : > { %3970 = vadd.xlane.f32.xlu1 %v3969_v54  ;;  %v13186_v54 = vld [vmem:[%s14073_s29] sm:$0xff] }
 0x914   : > { %v3959_v55 = vpop.f32.mrf.mxu2 }
 0x92b   : > { %4026 = vperm.xlu1 %13747, %v3366_v56   ;;  %v3389_v56 = vpack.c.bf16 %v14648_v6, %v14648_v6  ;;  %v14701_v6 = vld [vmem:[#allocation2 + $0x28] sm:$0xff] }
 0x92c   : > { %4242 = vmatpush.bf16.msra.mxu2 %v14701_v6 }
 0x985   : > { %v3971_v2 = vpop.xlane.xlu1 %3970 }
 0x986   : > { %v3979_v3 = vmul.f32 %v14662_v63, %v3971_v2  ;;  %v13233_v2 = vld [vmem:[#allocation2 + $0x38] sm:$0xff] }
 0x988   : > { %v3980_v0 = vsub.f32 %v3967_v52, %v3979_v3  ;;  %v4044_v52 = vpack.c.b16 %v4041_v50, %v4041_v50 }
 0x98a   : > { %v3981_v1 = vmul.f32 %v3980_v0, %v3980_v0  ;;  %v4049_v53 = vrot.slane %v4044_v52, 2 }
 0x98c   : > { %v3982_v4 = vsel %vm3968_vm0, %v3981_v1, 0.0  ;;  %v4050_v55 = vsel %vm4045_vm13, %v4047_v44, %v4049_v53 }
 0x98d   : > { %3983 = vadd.xlane.f32.xlu0 %v3982_v4 }
 0x99d   : > { %v14667_v37 = vpop.permute.xlu1 %4026 }
 0xa00   : > { %v3984_v5 = vpop.xlane.xlu0 %3983 }
 0xa01   : > { %v3985_v7 = vmul.f32 0.06666667, %v3984_v5  ;;  %v13234_v5 = vld [vmem:[#allocation2 + $0x40] sm:$0xff] }
 0xa03   : > { %13768 = vrsqrt.f32 %v3985_v7  ;;  %vm3993_vm2 = vcmp.eq.f32.partialorder %v3985_v7, inf  ;;  %v3996_v17 = vand.u32 2147483648, %v3985_v7  ;;  %vm3995_vm3 = vcmp.eq.f32.partialorder %v3985_v7, 0.0 }
 0xa09   : > { %v13769_v8 = vpop.eup %13768 }
 0xa0a   : > { %v3987_v10 = vmul.f32 %v13769_v8, %v3985_v7 }
 0xa0c   : > { %v3988_v11 = vmul.f32 %v13769_v8, %v3987_v10 }
 0xa0e   : > { %v3989_v13 = vmul.f32 0.5, %v3988_v11 }
 0xa10   : > { %v3990_v14 = vsub.f32 1.5, %v3989_v13 }
 0xa12   : > { %v3991_v16 = vmul.f32 %v13769_v8, %v3990_v14 }
 0xa14   : > { %v3992_v15 = vmul.f32 %v3991_v16, %v3985_v7 }
 0xa16   : > { %v3994_v18 = vsel %vm3993_vm2, %v3985_v7, %v3992_v15 }
 0xa17   : > { %v3997_v36 = vsel %vm3995_vm3, %v3996_v17, %v3994_v18 }
 0xa18   : > { %v3998_v19 = vadd.f32 1e-05, %v3997_v36 }
 0xa1a   : > { %v4000_v21 = vrot.slane %v3998_v19, 4 }
 0xa1c   : > { %13770 = vrcp.f32 %v4000_v21  ;;  %v4013_v24 = vand.u32 2147483648, %v4000_v21  ;;  %v4011_v25 = vand.u32 2147483647, %v4000_v21  ;;  %vm4007_vm7 = vweird.f32 %v4000_v21 }
 0xa1e   : > { %v4014_v28 = vor.u32 1.1754944e-38, %v4013_v24  ;;  %vm4012_vm10 = vcmp.eq.f32.partialorder %v4011_v25, 8.507059e+37 }
 0xa22   : > { %v13771_v22 = vpop.eup %13770 }
 0xa23   : > { %v4003_v40 = vmul.f32 %v13771_v22, %v4000_v21  ;;  %vm4008_vm6 = vweird.f32 %v13771_v22 }
 0xa24   : > { %vm4009_vm8 = vmor %vm4007_vm7, %vm4008_vm6 }
 0xa25   : > { %v4004_v23 = vsub.f32 1.0, %v4003_v40 }
 0xa27   : > { %v4005_v20 = vmul.f32 %v13771_v22, %v4004_v23 }
 0xa29   : > { %v4006_v27 = vadd.f32 %v13771_v22, %v4005_v20 }
 0xa2b   : > { %v4010_v29 = vsel %vm4009_vm8, %v13771_v22, %v4006_v27 }
 0xa2c   : > { %v4015_v30 = vsel %vm4012_vm10, %v4014_v28, %v4010_v29 }
 0xa2d   : > { %v4016_v31 = vmul.f32 %v4015_v30, %v14513_v26 }
 0xa2f   : > { %4019 = vperm.xlu2 %13748, %v4016_v31  }
 0xa89   : > { %v4020_v32 = vpop.permute.xlu2 %4019 }
 0xa8a   : > { %v4021_v33 = vrot.slane %v4020_v32, 4 }
 0xa8c   : > { %v4023_v35 = vmul.f32 %v4021_v33, %v3980_v0  ;;  %v13232_v0 = vld [vmem:[#allocation2 + $0x30] sm:$0xff] }
 0xa8e   : > { %v4029_v38 = vadd.f32 %v14667_v37, %v4023_v35 }
 0xa90   : > { %v4031_v41 = vmul.f32 0.2, %v4029_v38  ;;  %vm4030_vm12 = vcmp.gt.f32.partialorder %v4029_v38, 0.0 }
 0xa92   : > { %v4032_v43 = vsel %vm4030_vm12, %v4029_v38, %v4031_v41  ;;  %vm4764_vm12 = vcmask 27648  }
 0xa93   : > { %v4033_v26 = vpack.c.bf16 %v4032_v43, %v4032_v43 }
 0xa95   : > { %v4061_v46 = vsel %vm3372_vm5, %v4033_v26, 0 }
 0xa96   : > { %4070 = vmatpush.bf16.msra.mxu3 %v4061_v46 }
 0xa99   : > { %11106 = vmatmul.msk.bf16.vlgmr.msra.gmra.mxu3 %vm3368_vm15, %v4048_v47 }
 0xa9a   : > { %4365 = vmatpush.bf16.msrb.mxu3 %v13189_v49  ;;  %v4331_v49 = vrot.slane %v14667_v37, 4 }
 0xa9e   : > { %4366 = vmatpush.bf16.msrb.mxu3 %v13188_v51 }
 0xaa2   : > { %4367 = vmatpush.bf16.msrb.mxu3 %v13187_v34 }
 0xaa6   : > { %4368 = vmatpush.bf16.msrb.mxu3 %v13186_v54 }
 0xaa9   : > { %11107 = vmatmul.msk.bf16.gmra.mxu3 %vm3368_vm15, %v4050_v55 }
 0xab9   : > { %11108 = vmatmul.msk.bf16.gmra.mxu3 %vm3368_vm15, %v4049_v53 }
 0xac9   : > { %11170 = vmatmul.msk.bf16.vlgmr.msrb.gmra.mxu3 %vm2658_vm11, %v3389_v56 }
 0xb1c   : > { %v4072_v62 = vpop.f32.mrf.mxu3 }
 0xb1d   : > { %v4086_v3 = vpack.c.bf16 %v4072_v62, %v4072_v62  ;;  %v4385_v62 = vld [vmem:[%s15973_s23] sm:$0xff] }
 0xb1f   : > { %v4093_v1 = vrot.slane %v4086_v3, 2  ;;  %11118 = vmatmul.msk.bf16.vlgmr.msra.gmra.mxu1 %vm4100_vm14, %v4086_v3 }
 0xb20   : > { %4297 = vmatpush.bf16.msra.mxu1 %v13233_v2 }
 0xb21   : > { %11113 = vmatmul.msk.bf16.vlgmr.msra.gmra.mxu0 %vm4100_vm14, %v4093_v1 }
 0xb22   : > { %4269 = vmatpush.bf16.msra.mxu0 %v13232_v0 }
 0xb24   : > { %v4074_v4 = vpop.f32.mrf.mxu3 }
 0xb25   : > { %v4139_v7 = vpack.c.bf16 %v4074_v4, %v4074_v4 }
 0xb27   : > { %11123 = vmatmul.msk.bf16.vlgmr.msrb.gmra.mxu2 %vm4100_vm14, %v4139_v7  ;;  %v4170_v11 = vrot.slane %v4139_v7, 2 }
 0xb28   : > { %4324 = vmatpush.bf16.msrb.mxu2 %v13234_v5 }
 0xb2c   : > { %v4077_v8 = vpop.f32.mrf.mxu3 }
 0xb2d   : > { %v4194_v10 = vpack.c.bf16 %v4077_v8, %v4077_v8 }
 0xb2f   : > { %11133 = vmatmul.msk.bf16.vlgmr.msrb.gmra.mxu1 %vm4100_vm14, %v4194_v10  ;;  %v4225_v13 = vrot.slane %v4194_v10, 2 }
 0xb31   : > { %11128 = vmatmul.msk.bf16.vlgmr.msrb.gmra.mxu0 %vm4100_vm14, %v4170_v11 }
 0xb34   : > { %v4079_v14 = vpop.f32.mrf.mxu3 }
 0xb35   : > { %v4249_v16 = vpack.c.bf16 %v4079_v14, %v4079_v14 }
 0xb37   : > { %11138 = vmatmul.msk.bf16.vlgmr.msra.gmra.mxu2 %vm4100_vm14, %v4225_v13  ;;  %v4280_v17 = vrot.slane %v4249_v16, 2 }
 0xb3c   : > { %v4082_v15 = vpop.f32.mrf.mxu3 }
 0xb3d   : > { %v4304_v18 = vpack.c.bf16 %v4082_v15, %v4082_v15 }
 0xb3f   : > { %11148 = vmatmul.msk.bf16.vlgmr.msra.gmra.mxu1 %vm4100_vm14, %v4280_v17 }
 0xb41   : > { %11143 = vmatmul.msk.bf16.vlgmr.msra.gmra.mxu0 %vm4100_vm14, %v4249_v16 }
 0xb44   : > { %v4084_v36 = vpop.f32.mrf.mxu3 }
 0xb47   : > { %11153 = vmatmul.msk.bf16.vlgmr.msrb.gmra.mxu2 %vm4100_vm14, %v4304_v18 }
 0xb4c   : > { %v4370_v19 = vpop.f32.mrf.mxu3 }
 0xb54   : > { %v4372_v21 = vpop.f32.mrf.mxu3 }
 0xb9c   : > { %v4135_v22 = vpop.f32.mrf.mxu1 }
 0xb9e   : > { %v4113_v40 = vpop.f32.mrf.mxu0 }
 0xb9f   : > { %v4136_v31 = vadd.f32 %v4135_v22, %v4113_v40 }
 0xba4   : > { %v4137_v23 = vpop.f32.mrf.mxu1 }
 0xba6   : > { %v4115_v24 = vpop.f32.mrf.mxu0 }
 0xbaa   : > { %v4161_v20 = vpop.f32.mrf.mxu2 }
 0xbab   : > { %v4165_v33 = vadd.f32 %v4161_v20, %v4136_v31 }
 0xbac   : > { %v4216_v25 = vpop.f32.mrf.mxu1 }
 0xbae   : > { %v4189_v27 = vpop.f32.mrf.mxu0 }
 0xbaf   : > { %v4193_v38 = vadd.f32 %v4189_v27, %v4165_v33 }
 0xbb1   : > { %v4220_v41 = vadd.f32 %v4216_v25, %v4193_v38 }
 0xbb2   : > { %v4163_v28 = vpop.f32.mrf.mxu2 }
 0xbb4   : > { %v4218_v29 = vpop.f32.mrf.mxu1 }
 0xbb6   : > { %v4191_v30 = vpop.f32.mrf.mxu0 }
 0xbb7   : > { %v14726_v30 = vld [vmem:[%s15973_s23 + $0x8] sm:$0xff] }
 0xbba   : > { %v4244_v32 = vpop.f32.mrf.mxu2 }
 0xbbb   : > { %v4248_v43 = vadd.f32 %v4244_v32, %v4220_v41 }
 0xbbc   : > { %v4299_v35 = vpop.f32.mrf.mxu1 }
 0xbbe   : > { %v4271_v39 = vpop.f32.mrf.mxu0 }
 0xbbf   : > { %v4275_v26 = vadd.f32 %v4271_v39, %v4248_v43 }
 0xbc1   : > { %v4303_v47 = vadd.f32 %v4299_v35, %v4275_v26  ;;  %v4384_v26 = vld [vmem:[%s15974_s16 + $0x24] sm:$0x3] }
 0xbc2   : > { %v4246_v42 = vpop.f32.mrf.mxu2 }
 0xbc4   : > { %v4301_v44 = vpop.f32.mrf.mxu1 }
 0xbc5   : > { %v13235_v44 = vld [vmem:[%s15974_s16] sm:$0xff] }
 0xbc6   : > { %v4273_v46 = vpop.f32.mrf.mxu0 }
 0xbc7   : > { %v13236_v46 = vld [vmem:[%s15974_s16 + $0x8] sm:$0xff] }
 0xbca   : > { %v4326_v48 = vpop.f32.mrf.mxu2 }
 0xbcb   : > { %v4330_v50 = vadd.f32 %v4326_v48, %v4303_v47  ;;  %v14737_v47 = vld [vmem:[%s15974_s16 + $0x10] sm:$0xff]  }
 0xbcc   : > { %v13641_v48 = vunpack.c.l.b16 %v14737_v47 }
 0xbcd   : > { %v4333_v51 = vadd.f32 %v4331_v49, %v4330_v50  ;;  %v13239_v50 = vld [vmem:[%s15975_s1] sm:$0xff] }
 0xbce   : > { %v4478_v49 = vpack.c.b16 %v13641_v48, %v13641_v48  ;;  %4560 = vmatpush.bf16.msra.mxu3 %v13239_v50 }
 0xbcf   : > { %v4371_v52 = vadd.f32 %v4370_v19, %v4333_v51  ;;  %v13240_v51 = vld [vmem:[%s15975_s1 + $0x8] sm:$0xff] }
 0xbd0   : > { %4538 = vmatpush.bf16.msra.mxu2 %v13240_v51 }
 0xbd1   : > { %v14714_v34 = vmul.f32 0.70710677, %v4371_v52  ;;  %v13241_v52 = vld [vmem:[%s15975_s1 + $0x10] sm:$0xff] }
 0xbd2   : > { %v4328_v53 = vpop.f32.mrf.mxu2 }
 0xbd3   : > { %v4411_v54 = vsel %vm3968_vm0, %v14714_v34, 0.0  ;;  %v4388_v55 = vpack.c.bf16 %v14714_v34, %v14714_v34  ;;  %v13243_v53 = vld [vmem:[%s15975_s1 + $0x20] sm:$0xff] }
 0xbd4   : > { %4412 = vadd.xlane.f32.xlu2 %v4411_v54  ;;  %4641 = vmatpush.bf16.msrb.mxu3 %v13243_v53  ;;  %v13242_v54 = vld [vmem:[%s15975_s1 + $0x18] sm:$0xff] }
 0xbd5   : > { %v4393_v56 = vsel %vm3372_vm5, %v4388_v55, 0  ;;  %4614 = vmatpush.bf16.msrb.mxu2 %v13242_v54  ;;  %v13244_v55 = vld [vmem:[%s15975_s1 + $0x28] sm:$0xff]  ;;  %v4387_v54 = vld [vmem:[%s15973_s23 + $0x10] sm:$0xff] }
 0xbd6   : > { %4402 = vmatpush.bf16.msrb.mxu0 %v4393_v56 }
 0xbd9   : > { %11171 = vmatmul.msk.bf16.vlgmr.msrb.gmra.mxu0 %vm3368_vm15, %v4384_v26 }
 0xbda   : > { %4586 = vmatpush.bf16.msra.mxu0 %v13241_v52 }
 0xbde   : > { %4669 = vmatpush.bf16.msrb.mxu0 %v13244_v55  ;;  %v14034_v55 = vmov 4.0  }
 0xbec   : > { %4457 = vperm.xlu2 %13748, %v4385_v62  }
 0xc47   : > { %v4413_v2 = vpop.xlane.xlu2 %4412 }
 0xc48   : > { %v4414_v37 = vmul.f32 %v4413_v2, %v14662_v63 }
 0xc4a   : > { %v4415_v3 = vsub.f32 %v14714_v34, %v4414_v37  ;;  %v13245_v37 = vld [vmem:[%s15975_s1 + $0x30] sm:$0xff] }
 0xc4c   : > { %v4416_v0 = vmul.f32 %v4415_v3, %v4415_v3 }
 0xc4e   : > { %v4417_v1 = vsel %vm3968_vm0, %v4416_v0, 0.0 }
 0xc4f   : > { %4418 = vadd.xlane.f32.xlu1 %v4417_v1  ;;  %v4458_v31 = vpop.permute.xlu2 %4457  ;;  %v13247_v1 = vld [vmem:[%s15975_s1 + $0x40] sm:$0xff] }
 0xc50   : > { %v4459_v33 = vrot.slane %v4458_v31, 4 }
 0xcc2   : > { %v4419_v4 = vpop.xlane.xlu1 %4418 }
 0xcc3   : > { %v4420_v5 = vmul.f32 0.06666667, %v4419_v4 }
 0xcc5   : > { %13772 = vrsqrt.f32 %v4420_v5  ;;  %vm4428_vm1 = vcmp.eq.f32.partialorder %v4420_v5, inf  ;;  %v4431_v15 = vand.u32 2147483648, %v4420_v5  ;;  %vm4430_vm2 = vcmp.eq.f32.partialorder %v4420_v5, 0.0 }
 0xccb   : > { %v13773_v7 = vpop.eup %13772 }
 0xccc   : > { %v4422_v8 = vmul.f32 %v13773_v7, %v4420_v5 }
 0xcce   : > { %v4423_v10 = vmul.f32 %v13773_v7, %v4422_v8 }
 0xcd0   : > { %v4424_v11 = vmul.f32 0.5, %v4423_v10 }
 0xcd2   : > { %v4425_v13 = vsub.f32 1.5, %v4424_v11 }
 0xcd4   : > { %v4426_v14 = vmul.f32 %v13773_v7, %v4425_v13 }
 0xcd6   : > { %v4427_v16 = vmul.f32 %v4426_v14, %v4420_v5 }
 0xcd8   : > { %v4429_v17 = vsel %vm4428_vm1, %v4420_v5, %v4427_v16  ;;  %v14753_v5 = vpop.f32.mrf.mxu0 }
 0xcd9   : > { %v4432_v18 = vsel %vm4430_vm2, %v4431_v15, %v4429_v17 }
 0xcda   : > { %v4433_v36 = vadd.f32 1e-05, %v4432_v18 }
 0xcdc   : > { %13774 = vrcp.f32 %v4433_v36  ;;  %v4445_v40 = vand.u32 2147483648, %v4433_v36  ;;  %v4443_v24 = vand.u32 2147483647, %v4433_v36  ;;  %vm4439_vm6 = vweird.f32 %v4433_v36 }
 0xcdd   : > { %13776 = vrcp.f32 %v14034_v55  ;;  %v13238_v55 = vld [vmem:[%s15976_s2] sm:$0xff]  ;;  %s969_s2 = scalar_lea.vmem %s14188_s19, %s12980_s22 }
 0xcde   : > { %v4446_v25 = vor.u32 1.1754944e-38, %v4445_v40  ;;  %vm4444_vm8 = vcmp.eq.f32.partialorder %v4443_v24, 8.507059e+37 }
 0xce0   : > { %v4406_v11 = vpop.f32.mrf.mxu0 }
 0xce2   : > { %v13775_v19 = vpop.eup %13774 }
 0xce3   : > { %v4435_v21 = vmul.f32 %v13775_v19, %v4433_v36  ;;  %vm4440_vm3 = vweird.f32 %v13775_v19 }
 0xce4   : > { %vm4441_vm7 = vmor %vm4439_vm6, %vm4440_vm3 }
 0xce5   : > { %v4436_v22 = vsub.f32 1.0, %v4435_v21 }
 0xce7   : > { %v4437_v23 = vmul.f32 %v13775_v19, %v4436_v22 }
 0xce9   : > { %v4438_v20 = vadd.f32 %v13775_v19, %v4437_v23 }
 0xceb   : > { %v4442_v27 = vsel %vm4441_vm7, %v13775_v19, %v4438_v20 }
 0xcec   : > { %v4447_v28 = vsel %vm4444_vm8, %v4446_v25, %v4442_v27 }
 0xced   : > { %v4448_v29 = vmul.f32 %v4447_v28, %v4385_v62  ;;  %v13246_v62 = vld [vmem:[%s15975_s1 + $0x38] sm:$0xff] }
 0xcef   : > { %4451 = vperm.xlu0 %13749, %v4448_v29  }
 0xcf7   : > { %4760 = vperm.xlu0 %13749, %v14726_v30  }
 0xd61   : > { %v4452_v32 = vpop.permute.xlu0 %4451 }
 0xd62   : > { %v4454_v35 = vmul.f32 %v4452_v32, %v4415_v3 }
 0xd64   : > { %v4461_v38 = vadd.f32 %v4459_v33, %v4454_v35 }
 0xd66   : > { %vm4462_vm10 = vcmp.gt.f32.partialorder %v4461_v38, 0.0  ;;  %v4463_v39 = vmul.f32 0.2, %v4461_v38 }
 0xd68   : > { %v4464_v41 = vsel %vm4462_vm10, %v4461_v38, %v4463_v39 }
 0xd69   : > { %v4465_v42 = vpack.c.bf16 %v4464_v41, %v4464_v41  ;;  %v4761_v48 = vpop.permute.xlu0 %4760 }
 0xd6b   : > { %v4489_v43 = vsel %vm3372_vm5, %v4465_v42, 0 }
 0xd6c   : > { %4498 = vmatpush.bf16.msrb.mxu1 %v4489_v43 }
 0xd6f   : > { %11180 = vmatmul.msk.bf16.vlgmr.msrb.gmra.mxu1 %vm3368_vm15, %v13235_v44 }
 0xd7f   : > { %11181 = vmatmul.msk.bf16.gmra.mxu1 %vm3368_vm15, %v13236_v46 }
 0xd8f   : > { %11182 = vmatmul.msk.bf16.gmra.mxu1 %vm3368_vm15, %v4478_v49 }
 0xdec   : > { %v4500_v56 = vpop.f32.mrf.mxu1 }
 0xded   : > { %v4514_v2 = vpack.c.bf16 %v4500_v56, %v4500_v56  ;;  %v13777_v56 = vpop.eup %13776 }
 0xdee   : > { %vm4773_vm1 = vweird.f32 %v13777_v56 }
 0xdef   : > { %v4521_v3 = vrot.slane %v4514_v2, 2  ;;  %11194 = vmatmul.msk.bf16.vlgmr.msra.gmra.mxu3 %vm4100_vm14, %v4514_v2 }
 0xdf0   : > { %4724 = vmatpush.bf16.msra.mxu3 %v13246_v62  ;;  %v4769_v62 = vmul.f32 4.0, %v13777_v56 }
 0xdf1   : > { %11189 = vmatmul.msk.bf16.vlgmr.msra.gmra.mxu2 %vm4100_vm14, %v4521_v3 }
 0xdf2   : > { %4696 = vmatpush.bf16.msra.mxu2 %v13245_v37  ;;  %v4770_v2 = vsub.f32 1.0, %v4769_v62 }
 0xdf4   : > { %v4502_v0 = vpop.f32.mrf.mxu1  ;;  %v4771_v37 = vmul.f32 %v13777_v56, %v4770_v2 }
 0xdf5   : > { %v4566_v4 = vpack.c.bf16 %v4502_v0, %v4502_v0 }
 0xdf6   : > { %v4772_v3 = vadd.f32 %v13777_v56, %v4771_v37  ;;  %v4408_v37 = vpack.c.bf16 %v14753_v5, %v14753_v5 }
 0xdf7   : > { %11201 = vmatmul.msk.bf16.vlgmr.msra.gmra.mxu0 %vm4100_vm14, %v4566_v4  ;;  %v4597_v10 = vrot.slane %v4566_v4, 2 }
 0xdf8   : > { %4751 = vmatpush.bf16.msra.mxu0 %v13247_v1  ;;  %v14763_v0 = vsel %vm4773_vm1, %v13777_v56, %v4772_v3  ;;  %v4882_v3 = vld [vmem:[%s15977_s15] sm:$0x3] }
 0xdfc   : > { %v4505_v7 = vpop.f32.mrf.mxu1 }
 0xdfd   : > { %v4621_v8 = vpack.c.bf16 %v4505_v7, %v4505_v7 }
 0xdff   : > { %11215 = vmatmul.msk.bf16.vlgmr.msrb.gmra.mxu3 %vm4100_vm14, %v4621_v8  ;;  %v4652_v14 = vrot.slane %v4621_v8, 2 }
 0xe01   : > { %11208 = vmatmul.msk.bf16.vlgmr.msrb.gmra.mxu2 %vm4100_vm14, %v4597_v10 }
 0xe04   : > { %v4507_v13 = vpop.f32.mrf.mxu1 }
 0xe05   : > { %v4676_v16 = vpack.c.bf16 %v4507_v13, %v4507_v13 }
 0xe07   : > { %11222 = vmatmul.msk.bf16.vlgmr.msrb.gmra.mxu0 %vm4100_vm14, %v4652_v14  ;;  %v4707_v17 = vrot.slane %v4676_v16, 2 }
 0xe0c   : > { %v4510_v15 = vpop.f32.mrf.mxu1 }
 0xe0d   : > { %v4731_v18 = vpack.c.bf16 %v4510_v15, %v4510_v15 }
 0xe0f   : > { %11236 = vmatmul.msk.bf16.vlgmr.msra.gmra.mxu3 %vm4100_vm14, %v4707_v17 }
 0xe11   : > { %11229 = vmatmul.msk.bf16.vlgmr.msra.gmra.mxu2 %vm4100_vm14, %v4676_v16 }
 0xe14   : > { %v4512_v36 = vpop.f32.mrf.mxu1 }
 0xe17   : > { %11243 = vmatmul.msk.bf16.vlgmr.msra.gmra.mxu0 %vm4100_vm14, %v4731_v18 }
 0xe72   : > { %v4562_v19 = vpop.f32.mrf.mxu3 }
 0xe74   : > { %v4540_v21 = vpop.f32.mrf.mxu2  ;;  %v4588_v22 = vpop.f32.mrf.mxu0 }
 0xe75   : > { %v4563_v28 = vadd.f32 %v4562_v19, %v4540_v21 }
 0xe77   : > { %v4592_v29 = vadd.f32 %v4588_v22, %v4563_v28 }
 0xe7a   : > { %v4564_v40 = vpop.f32.mrf.mxu3 }
 0xe7c   : > { %v4542_v23 = vpop.f32.mrf.mxu2  ;;  %v4590_v24 = vpop.f32.mrf.mxu0 }
 0xe82   : > { %v4643_v20 = vpop.f32.mrf.mxu3 }
 0xe84   : > { %v4616_v25 = vpop.f32.mrf.mxu2  ;;  %v4671_v27 = vpop.f32.mrf.mxu0 }
 0xe85   : > { %v4620_v32 = vadd.f32 %v4616_v25, %v4592_v29 }
 0xe87   : > { %v4647_v38 = vadd.f32 %v4643_v20, %v4620_v32 }
 0xe89   : > { %v4675_v41 = vadd.f32 %v4671_v27, %v4647_v38 }
 0xe8a   : > { %v4645_v31 = vpop.f32.mrf.mxu3 }
 0xe8c   : > { %v4618_v33 = vpop.f32.mrf.mxu2  ;;  %v4673_v35 = vpop.f32.mrf.mxu0 }
 0xe92   : > { %v4726_v39 = vpop.f32.mrf.mxu3 }
 0xe94   : > { %v4698_v42 = vpop.f32.mrf.mxu2  ;;  %v4753_v43 = vpop.f32.mrf.mxu0 }
 0xe95   : > { %v4702_v44 = vadd.f32 %v4698_v42, %v4675_v41 }
 0xe97   : > { %v4730_v26 = vadd.f32 %v4726_v39, %v4702_v44 }
 0xe99   : > { %v4757_v46 = vadd.f32 %v4753_v43, %v4730_v26 }
 0xe9a   : > { %v4728_v49 = vpop.f32.mrf.mxu3 }
 0xe9b   : > { %v4763_v50 = vadd.f32 %v4761_v48, %v4757_v46  ;;  %v13237_v46 = vld [vmem:[%s15974_s16 + $0x18] sm:$0xff]  ;;  %v4841_v49 = vrot.slane %v14737_v47, 2 }
 0xe9c   : > { %v4700_v51 = vpop.f32.mrf.mxu2  ;;  %v4755_v52 = vpop.f32.mrf.mxu0 }
 0xe9d   : > { %v4765_v53 = vsel %vm4764_vm12, %v4763_v50, 0.0  ;;  %v4842_v51 = vrot.slane %v13237_v46, 2 }
 0xe9e   : > { %4766 = vadd.xlane.f32.xlu1 %v4765_v53 }
 0xe9f   : > { %v4843_v53 = vsel %vm4045_vm13, %v4841_v49, %v4842_v51 }
 0xeb7   : > { %4822 = vperm.xlu1 %13747, %v4387_v54   ;;  %v4383_v54 = vld [vmem:[%s15974_s16 + $0x20] sm:$0xf] }
 0xeb8   : > { %v4837_v56 = vunpack.c.l.b16 %v4383_v54 }
 0xeba   : > { %v4840_v62 = vpack.c.b16 %v4837_v56, %v4837_v56 }
 0xebc   : > { %v4844_v47 = vrot.slane %v4840_v62, 2 }
 0xebe   : > { %v4845_v2 = vsel %vm4045_vm13, %v4842_v51, %v4844_v47 }
 0xf11   : > { %v4767_v1 = vpop.xlane.xlu1 %4766 }
 0xf12   : > { %v4775_v4 = vmul.f32 %v14763_v0, %v4767_v1  ;;  %v4910_v1 = vsel %vm3372_vm5, %v4882_v3, 0 }
 0xf13   : > { %4919 = vmatpush.bf16.msrb.mxu3 %v4910_v1 }
 0xf14   : > { %v4776_v7 = vsub.f32 %v4763_v50, %v4775_v4  ;;  %v11251_v4 = vld [vmem:[%s15977_s15 + $0x2] sm:$0x3] }
 0xf16   : > { %v4777_v8 = vmul.f32 %v4776_v7, %v4776_v7 }
 0xf18   : > { %v4778_v10 = vsel %vm4764_vm12, %v4777_v8, 0.0  ;;  %v11254_v8 = vld [vmem:[%s15977_s15 + $0x4] sm:$0x3] }
 0xf19   : > { %4779 = vadd.xlane.f32.xlu0 %v4778_v10  ;;  %v4932_v10 = vsel %vm3372_vm5, %v11254_v8, 0 }
 0xf1a   : > { %4941 = vmatpush.bf16.msrb.mxu0 %v4932_v10 }
 0xf29   : > { %v14768_v44 = vpop.permute.xlu1 %4822 }
 0xf8c   : > { %v4780_v11 = vpop.xlane.xlu0 %4779 }
 0xf8d   : > { %v4781_v13 = vmul.f32 0.33333334, %v4780_v11  ;;  %v11258_v11 = vld [vmem:[%s15977_s15 + $0x8] sm:$0x3] }
 0xf8e   : > { %v4979_v5 = vsel %vm3372_vm5, %v11258_v11, 0  ;;  %v5089_v11 = vrot.slane %v14768_v44, 4 }
 0xf8f   : > { %13778 = vrsqrt.f32 %v4781_v13  ;;  %vm4789_vm2 = vcmp.eq.f32.partialorder %v4781_v13, inf  ;;  %v4792_v21 = vand.u32 2147483648, %v4781_v13  ;;  %vm4791_vm3 = vcmp.eq.f32.partialorder %v4781_v13, 0.0  ;;  %4988 = vmatpush.bf16.msra.mxu3 %v4979_v5 }
 0xf95   : > { %v13779_v14 = vpop.eup %13778 }
 0xf96   : > { %v4783_v16 = vmul.f32 %v13779_v14, %v4781_v13 }
 0xf98   : > { %v4784_v15 = vmul.f32 %v13779_v14, %v4783_v16  ;;  %v11260_v16 = vld [vmem:[%s15977_s15 + $0xa] sm:$0x3] }
 0xf9a   : > { %v4785_v17 = vmul.f32 0.5, %v4784_v15  ;;  %v5003_v15 = vsel %vm3372_vm5, %v11260_v16, 0 }
 0xf9b   : > { %5012 = vmatpush.bf16.msra.mxu0 %v5003_v15 }
 0xf9c   : > { %v4786_v18 = vsub.f32 1.5, %v4785_v17  ;;  %v11264_v17 = vld [vmem:[%s15977_s15 + $0xe] sm:$0x3] }
 0xf9e   : > { %v4787_v36 = vmul.f32 %v13779_v14, %v4786_v18 }
 0xfa0   : > { %v4788_v19 = vmul.f32 %v4787_v36, %v4781_v13 }
 0xfa2   : > { %v4790_v22 = vsel %vm4789_vm2, %v4781_v13, %v4788_v19  ;;  %v11256_v13 = vld [vmem:[%s15977_s15 + $0x6] sm:$0x3]  ;;  %v5050_v19 = vsel %vm3372_vm5, %v11264_v17, 0 }
 0xfa3   : > { %v4793_v40 = vsel %vm4791_vm3, %v4792_v21, %v4790_v22  ;;  %v4956_v14 = vsel %vm3372_vm5, %v11256_v13, 0  ;;  %v11262_v21 = vld [vmem:[%s15977_s15 + $0xc] sm:$0x3] }
 0xfa4   : > { %v4794_v23 = vadd.f32 1e-05, %v4793_v40  ;;  %v5026_v40 = vsel %vm3372_vm5, %v11262_v21, 0 }
 0xfa6   : > { %v4796_v24 = vrot.slane %v4794_v23, 4  ;;  %v11266_v23 = vld [vmem:[%s15977_s15 + $0x10] sm:$0x3] }
 0xfa8   : > { %13780 = vrcp.f32 %v4796_v24  ;;  %v4809_v28 = vand.u32 2147483648, %v4796_v24  ;;  %v4807_v31 = vand.u32 2147483647, %v4796_v24  ;;  %vm4803_vm7 = vweird.f32 %v4796_v24 }
 0xfaa   : > { %v4810_v33 = vor.u32 1.1754944e-38, %v4809_v28  ;;  %vm4808_vm10 = vcmp.eq.f32.partialorder %v4807_v31, 8.507059e+37 }
 0xfae   : > { %v13781_v20 = vpop.eup %13780 }
 0xfaf   : > { %v4799_v25 = vmul.f32 %v13781_v20, %v4796_v24  ;;  %vm4804_vm6 = vweird.f32 %v13781_v20 }
 0xfb0   : > { %vm4805_vm8 = vmor %vm4803_vm7, %vm4804_vm6 }
 0xfb1   : > { %v4800_v27 = vsub.f32 1.0, %v4799_v25  ;;  %v5073_v25 = vsel %vm3372_vm5, %v11266_v23, 0 }
 0xfb3   : > { %v4801_v29 = vmul.f32 %v13781_v20, %v4800_v27 }
 0xfb5   : > { %v4802_v32 = vadd.f32 %v13781_v20, %v4801_v29 }
 0xfb7   : > { %v4806_v35 = vsel %vm4805_vm8, %v13781_v20, %v4802_v32 }
 0xfb8   : > { %v4811_v38 = vsel %vm4808_vm10, %v4810_v33, %v4806_v35 }
 0xfb9   : > { %v4812_v39 = vmul.f32 %v4811_v38, %v14726_v30 }
 0xfbb   : > { %4815 = vperm.xlu2 %13748, %v4812_v39  }
0x1015   : > { %v4816_v41 = vpop.permute.xlu2 %4815 }
0x1016   : > { %v4817_v42 = vrot.slane %v4816_v41, 4 }
0x1018   : > { %v4819_v43 = vmul.f32 %v4817_v42, %v4776_v7  ;;  %v4891_v7 = vsel %vm3372_vm5, %v11251_v4, 0 }
0x1019   : > { %4900 = vmatpush.bf16.msrb.mxu2 %v4891_v7 }
0x101a   : > { %v4825_v26 = vadd.f32 %v14768_v44, %v4819_v43 }
0x101c   : > { %v4827_v48 = vmul.f32 0.2, %v4825_v26  ;;  %vm4826_vm1 = vcmp.gt.f32.partialorder %v4825_v26, 0.0 }
0x101d   : > { %4965 = vmatpush.bf16.msra.mxu2 %v4956_v14 }
0x101e   : > { %v4828_v50 = vsel %vm4826_vm1, %v4825_v26, %v4827_v48 }
0x101f   : > { %v4829_v52 = vpack.c.bf16 %v4828_v50, %v4828_v50 }
0x1021   : > { %v4856_v30 = vsel %vm3372_vm5, %v4829_v52, 0 }
0x1022   : > { %4865 = vmatpush.bf16.msra.mxu1 %v4856_v30 }
0x1025   : > { %11248 = vmatmul.msk.bf16.vlgmr.msra.gmra.mxu1 %vm3368_vm15, %v4843_v53 }
0x1026   : > { %5108 = vmatpush.bf16.msrb.mxu1 %v13238_v55 }
0x1035   : > { %11249 = vmatmul.msk.bf16.gmra.mxu1 %vm3368_vm15, %v4845_v2 }
0x1045   : > { %11250 = vmatmul.msk.bf16.gmra.mxu1 %vm3368_vm15, %v4844_v47 }
0x1055   : > { %11272 = vmatmul.msk.bf16.vlgmr.msrb.gmra.mxu1 %vm4100_vm14, %v4408_v37 }
0x10a2   : > { %v4867_v18 = vpop.f32.mrf.mxu1 }
0x10a3   : > { %v4881_v36 = vpack.c.bf16 %v4867_v18, %v4867_v18 }
0x10a5   : > { %v4886_v22 = vrot.slane %v4881_v36, 2  ;;  %11253 = vmatmul.msk.bf16.vlgmr.msrb.gmra.mxu3 %vm3368_vm15, %v4881_v36 }
0x10a6   : > { %5059 = vmatpush.bf16.msrb.mxu3 %v5050_v19 }
0x10a7   : > { %11252 = vmatmul.msk.bf16.vlgmr.msrb.gmra.mxu2 %vm3368_vm15, %v4886_v22  ;;  %v5125_v22 = vld [vmem:[%s14173_s8] sm:$0xff] }
0x10a8   : > { %5035 = vmatpush.bf16.msrb.mxu2 %v5026_v40 }
0x10aa   : > { %v4869_v24 = vpop.f32.mrf.mxu1 }
0x10ab   : > { %v4925_v20 = vpack.c.bf16 %v4869_v24, %v4869_v24 }
0x10ad   : > { %11255 = vmatmul.msk.bf16.vlgmr.msrb.gmra.mxu0 %vm3368_vm15, %v4925_v20  ;;  %v4951_v29 = vrot.slane %v4925_v20, 2 }
0x10ae   : > { %5082 = vmatpush.bf16.msrb.mxu0 %v5073_v25 }
0x10b2   : > { %v4872_v27 = vpop.f32.mrf.mxu1 }
0x10b3   : > { %v4972_v28 = vpack.c.bf16 %v4872_v27, %v4872_v27 }
0x10b5   : > { %11259 = vmatmul.msk.bf16.vlgmr.msra.gmra.mxu3 %vm3368_vm15, %v4972_v28  ;;  %v4998_v32 = vrot.slane %v4972_v28, 2 }
0x10b7   : > { %11257 = vmatmul.msk.bf16.vlgmr.msra.gmra.mxu2 %vm3368_vm15, %v4951_v29 }
0x10ba   : > { %v4874_v31 = vpop.f32.mrf.mxu1 }
0x10bb   : > { %v5019_v33 = vpack.c.bf16 %v4874_v31, %v4874_v31 }
0x10bd   : > { %11261 = vmatmul.msk.bf16.vlgmr.msra.gmra.mxu0 %vm3368_vm15, %v4998_v32  ;;  %v5045_v38 = vrot.slane %v5019_v33, 2 }
0x10c2   : > { %v4877_v35 = vpop.f32.mrf.mxu1 }
0x10c3   : > { %v5066_v39 = vpack.c.bf16 %v4877_v35, %v4877_v35 }
0x10c5   : > { %11265 = vmatmul.msk.bf16.vlgmr.msrb.gmra.mxu3 %vm3368_vm15, %v5045_v38 }
0x10c7   : > { %11263 = vmatmul.msk.bf16.vlgmr.msrb.gmra.mxu2 %vm3368_vm15, %v5019_v33 }
0x10ca   : > { %v4879_v41 = vpop.f32.mrf.mxu1 }
0x10cd   : > { %11267 = vmatmul.msk.bf16.vlgmr.msrb.gmra.mxu0 %vm3368_vm15, %v5066_v39 }
0x10d2   : > { %v5110_v42 = vpop.f32.mrf.mxu1 }
0x10da   : > { %v5112_v43 = vpop.f32.mrf.mxu1 }
0x1128   : > { %v4921_v26 = vpop.f32.mrf.mxu3 }
0x112a   : > { %v4902_v46 = vpop.f32.mrf.mxu2  ;;  %v4943_v48 = vpop.f32.mrf.mxu0 }
0x112b   : > { %v4922_v54 = vadd.f32 %v4921_v26, %v4902_v46 }
0x112d   : > { %v4947_v55 = vadd.f32 %v4943_v48, %v4922_v54 }
0x1130   : > { %v4923_v49 = vpop.f32.mrf.mxu3 }
0x1132   : > { %v4904_v50 = vpop.f32.mrf.mxu2  ;;  %v4945_v51 = vpop.f32.mrf.mxu0 }
0x1138   : > { %v4990_v52 = vpop.f32.mrf.mxu3 }
0x113a   : > { %v4967_v30 = vpop.f32.mrf.mxu2  ;;  %v5014_v53 = vpop.f32.mrf.mxu0 }
0x113b   : > { %v4971_v62 = vadd.f32 %v4967_v30, %v4947_v55  ;;  %v14818_v55 = vld [vmem:[%s14173_s8 + $0x8] sm:$0xff] }
0x113d   : > { %v4994_v37 = vadd.f32 %v4990_v52, %v4971_v62 }
0x113f   : > { %v5018_v1 = vadd.f32 %v5014_v53, %v4994_v37 }
0x1140   : > { %v4992_v56 = vpop.f32.mrf.mxu3 }
0x1142   : > { %v4969_v47 = vpop.f32.mrf.mxu2  ;;  %v5016_v2 = vpop.f32.mrf.mxu0 }
0x1148   : > { %v5061_v3 = vpop.f32.mrf.mxu3 }
0x114a   : > { %v5037_v4 = vpop.f32.mrf.mxu2  ;;  %v5084_v7 = vpop.f32.mrf.mxu0 }
0x114b   : > { %v5041_v8 = vadd.f32 %v5037_v4, %v5018_v1 }
0x114d   : > { %v5065_v10 = vadd.f32 %v5061_v3, %v5041_v8  ;;  %v13248_v8 = vld [vmem:[%s15978_s18] sm:$0xff] }
0x114f   : > { %v5088_v5 = vadd.f32 %v5084_v7, %v5065_v10  ;;  %v5124_v10 = vld [vmem:[%s15978_s18 + $0x24] sm:$0x3] }
0x1150   : > { %v5063_v13 = vpop.f32.mrf.mxu3 }
0x1151   : > { %v5091_v14 = vadd.f32 %v5089_v11, %v5088_v5  ;;  %v13249_v11 = vld [vmem:[%s15978_s18 + $0x8] sm:$0xff]  ;;  %v14829_v5 = vld [vmem:[%s15978_s18 + $0x10] sm:$0xff]  }
0x1152   : > { %v5039_v16 = vpop.f32.mrf.mxu2  ;;  %v5086_v15 = vpop.f32.mrf.mxu0  ;;  %v13645_v13 = vunpack.c.l.b16 %v14829_v5 }
0x1153   : > { %v5111_v17 = vadd.f32 %v5110_v42, %v5091_v14  ;;  %v5254_v16 = vld [vmem:[%s15979_s26] sm:$0x3] }
0x1154   : > { %v5217_v14 = vpack.c.b16 %v13645_v13, %v13645_v13  ;;  %v5282_v15 = vsel %vm3372_vm5, %v5254_v16, 0 }
0x1155   : > { %v5114_v18 = vmul.f32 0.70710677, %v5111_v17  ;;  %5291 = vmatpush.bf16.msra.mxu1 %v5282_v15  ;;  %v11285_v17 = vld [vmem:[%s15979_s26 + $0x2] sm:$0x3] }
0x1157   : > { %v5150_v36 = vsel %vm4764_vm12, %v5114_v18, 0.0  ;;  %v5128_v19 = vpack.c.bf16 %v5114_v18, %v5114_v18 }
0x1158   : > { %5151 = vadd.xlane.f32.xlu2 %v5150_v36  ;;  %v11288_v36 = vld [vmem:[%s15979_s26 + $0x4] sm:$0x3] }
0x1159   : > { %v5133_v21 = vsel %vm3372_vm5, %v5128_v19, 0  ;;  %v5304_v19 = vsel %vm3372_vm5, %v11288_v36, 0 }
0x115a   : > { %5142 = vmatpush.bf16.msra.mxu2 %v5133_v21  ;;  %v11292_v21 = vld [vmem:[%s15979_s26 + $0x8] sm:$0x3] }
0x115d   : > { %11273 = vmatmul.msk.bf16.vlgmr.msra.gmra.mxu2 %vm3368_vm15, %v5124_v10 }
0x115e   : > { %5313 = vmatpush.bf16.msrb.mxu2 %v5304_v19 }
0x1170   : > { %5196 = vperm.xlu2 %13748, %v5125_v22  }
0x11cb   : > { %v5152_v40 = vpop.xlane.xlu2 %5151 }
0x11cc   : > { %v5153_v23 = vmul.f32 %v5152_v40, %v14763_v0  ;;  %v11290_v40 = vld [vmem:[%s15979_s26 + $0x6] sm:$0x3] }
0x11ce   : > { %v5154_v44 = vsub.f32 %v5114_v18, %v5153_v23  ;;  %v5263_v18 = vsel %vm3372_vm5, %v11285_v17, 0  ;;  %v5328_v23 = vsel %vm3372_vm5, %v11290_v40, 0 }
0x11cf   : > { %5272 = vmatpush.bf16.msra.mxu0 %v5263_v18 }
0x11d0   : > { %v5155_v24 = vmul.f32 %v5154_v44, %v5154_v44 }
0x11d2   : > { %v5156_v20 = vsel %vm4764_vm12, %v5155_v24, 0.0 }
0x11d3   : > { %5157 = vadd.xlane.f32.xlu1 %v5156_v20  ;;  %v5197_v56 = vpop.permute.xlu2 %5196  ;;  %5337 = vmatpush.bf16.msrb.mxu0 %v5328_v23  ;;  %v11298_v20 = vld [vmem:[%s15979_s26 + $0xe] sm:$0x3] }
0x11d4   : > { %v5198_v47 = vrot.slane %v5197_v56, 4 }
0x1246   : > { %v5158_v25 = vpop.xlane.xlu1 %5157 }
0x1247   : > { %v5159_v27 = vmul.f32 0.33333334, %v5158_v25 }
0x1249   : > { %13782 = vrsqrt.f32 %v5159_v27  ;;  %vm5167_vm2 = vcmp.eq.f32.partialorder %v5159_v27, inf  ;;  %v5170_v39 = vand.u32 2147483648, %v5159_v27  ;;  %vm5169_vm3 = vcmp.eq.f32.partialorder %v5159_v27, 0.0 }
0x124f   : > { %v13783_v28 = vpop.eup %13782 }
0x1250   : > { %v5161_v29 = vmul.f32 %v13783_v28, %v5159_v27 }
0x1252   : > { %v5162_v31 = vmul.f32 %v13783_v28, %v5161_v29  ;;  %v11296_v29 = vld [vmem:[%s15979_s26 + $0xc] sm:$0x3] }
0x1254   : > { %v5163_v32 = vmul.f32 0.5, %v5162_v31 }
0x1256   : > { %v5164_v33 = vsub.f32 1.5, %v5163_v32  ;;  %v5398_v32 = vsel %vm3372_vm5, %v11296_v29, 0 }
0x1258   : > { %v5165_v35 = vmul.f32 %v13783_v28, %v5164_v33  ;;  %v5422_v28 = vsel %vm3372_vm5, %v11298_v20, 0  ;;  %v11300_v33 = vld [vmem:[%s15979_s26 + $0x10] sm:$0x3] }
0x1259   : > { %v5127_v20 = vld [vmem:[%s14173_s8 + $0x10] sm:$0xff] }
0x125a   : > { %v5166_v38 = vmul.f32 %v5165_v35, %v5159_v27 }
0x125c   : > { %v5168_v41 = vsel %vm5167_vm2, %v5159_v27, %v5166_v38 }
0x125d   : > { %v5171_v0 = vsel %vm5169_vm3, %v5170_v39, %v5168_v41  ;;  %v5445_v39 = vsel %vm3372_vm5, %v11300_v33, 0  ;;  %v14854_v41 = vpop.f32.mrf.mxu2 }
0x125e   : > { %v5172_v42 = vadd.f32 1e-05, %v5171_v0 }
0x1260   : > { %13784 = vrcp.f32 %v5172_v42  ;;  %v5184_v48 = vand.u32 2147483648, %v5172_v42  ;;  %v5182_v50 = vand.u32 2147483647, %v5172_v42  ;;  %vm5178_vm6 = vweird.f32 %v5172_v42 }
0x1262   : > { %v5185_v52 = vor.u32 1.1754944e-38, %v5184_v48  ;;  %vm5183_vm8 = vcmp.eq.f32.partialorder %v5182_v50, 8.507059e+37 }
0x1266   : > { %v13785_v43 = vpop.eup %13784 }
0x1267   : > { %v5174_v26 = vmul.f32 %v13785_v43, %v5172_v42  ;;  %vm5179_vm12 = vweird.f32 %v13785_v43 }
0x1268   : > { %vm5180_vm7 = vmor %vm5178_vm6, %vm5179_vm12 }
0x1269   : > { %v5175_v46 = vsub.f32 1.0, %v5174_v26  ;;  %v5146_v26 = vpop.f32.mrf.mxu2 }
0x126b   : > { %v5176_v49 = vmul.f32 %v13785_v43, %v5175_v46 }
0x126d   : > { %v5177_v51 = vadd.f32 %v13785_v43, %v5176_v49 }
0x126f   : > { %v5181_v30 = vsel %vm5180_vm7, %v13785_v43, %v5177_v51 }
0x1270   : > { %v5186_v53 = vsel %vm5183_vm8, %v5185_v52, %v5181_v30 }
0x1271   : > { %v5187_v54 = vmul.f32 %v5186_v53, %v5125_v22  ;;  %v5351_v22 = vsel %vm3372_vm5, %v11292_v21, 0 }
0x1272   : > { %5360 = vmatpush.bf16.msrb.mxu1 %v5351_v22 }
0x1273   : > { %5190 = vperm.xlu0 %13749, %v5187_v54  }
0x127b   : > { %5463 = vperm.xlu0 %13749, %v14818_v55  }
0x12e5   : > { %v5191_v62 = vpop.permute.xlu0 %5190 }
0x12e6   : > { %v5193_v2 = vmul.f32 %v5191_v62, %v5154_v44  ;;  %v11294_v44 = vld [vmem:[%s15979_s26 + $0xa] sm:$0x3] }
0x12e7   : > { %v5375_v24 = vsel %vm3372_vm5, %v11294_v44, 0 }
0x12e8   : > { %v5200_v37 = vadd.f32 %v5198_v47, %v5193_v2  ;;  %5384 = vmatpush.bf16.msra.mxu2 %v5375_v24 }
0x12ea   : > { %vm5201_vm10 = vcmp.gt.f32.partialorder %v5200_v37, 0.0  ;;  %v5202_v3 = vmul.f32 0.2, %v5200_v37 }
0x12ec   : > { %v5203_v1 = vsel %vm5201_vm10, %v5200_v37, %v5202_v3 }
0x12ed   : > { %v5204_v4 = vpack.c.bf16 %v5203_v1, %v5203_v1  ;;  %v5464_v18 = vpop.permute.xlu0 %5463 }
0x12ef   : > { %v5228_v7 = vsel %vm3372_vm5, %v5204_v4, 0 }
0x12f0   : > { %5237 = vmatpush.bf16.msra.mxu3 %v5228_v7 }
0x12f3   : > { %11282 = vmatmul.msk.bf16.vlgmr.msra.gmra.mxu3 %vm3368_vm15, %v13248_v8 }
0x1303   : > { %11283 = vmatmul.msk.bf16.gmra.mxu3 %vm3368_vm15, %v13249_v11 }
0x1313   : > { %11284 = vmatmul.msk.bf16.gmra.mxu3 %vm3368_vm15, %v5217_v14 }
0x1376   : > { %v5239_v25 = vpop.f32.mrf.mxu3 }
0x1377   : > { %v5253_v27 = vpack.c.bf16 %v5239_v25, %v5239_v25 }
0x1379   : > { %v5258_v31 = vrot.slane %v5253_v27, 2  ;;  %11287 = vmatmul.msk.bf16.vlgmr.msra.gmra.mxu1 %vm3368_vm15, %v5253_v27 }
0x137a   : > { %5431 = vmatpush.bf16.msra.mxu1 %v5422_v28 }
0x137b   : > { %11286 = vmatmul.msk.bf16.vlgmr.msra.gmra.mxu0 %vm3368_vm15, %v5258_v31 }
0x137c   : > { %5407 = vmatpush.bf16.msra.mxu0 %v5398_v32 }
0x137e   : > { %v5241_v35 = vpop.f32.mrf.mxu3 }
0x137f   : > { %v5297_v38 = vpack.c.bf16 %v5241_v35, %v5241_v35 }
0x1381   : > { %11289 = vmatmul.msk.bf16.vlgmr.msrb.gmra.mxu2 %vm3368_vm15, %v5297_v38  ;;  %v5323_v43 = vrot.slane %v5297_v38, 2 }
0x1382   : > { %5454 = vmatpush.bf16.msrb.mxu2 %v5445_v39 }
0x1386   : > { %v5244_v0 = vpop.f32.mrf.mxu3 }
0x1387   : > { %v5344_v42 = vpack.c.bf16 %v5244_v0, %v5244_v0 }
0x1389   : > { %11293 = vmatmul.msk.bf16.vlgmr.msrb.gmra.mxu1 %vm3368_vm15, %v5344_v42  ;;  %v5370_v46 = vrot.slane %v5344_v42, 2 }
0x138a   : > { %5605 = vmatpush.bf16.msrb.mxu1 %v14686_v57 }
0x138b   : > { %11291 = vmatmul.msk.bf16.vlgmr.msrb.gmra.mxu0 %vm3368_vm15, %v5323_v43 }
0x138c   : > { %5589 = vmatpush.bf16.msrb.mxu0 %v14689_v58 }
0x138e   : > { %v5246_v48 = vpop.f32.mrf.mxu3 }
0x138f   : > { %v5391_v49 = vpack.c.bf16 %v5246_v48, %v5246_v48 }
0x1391   : > { %11295 = vmatmul.msk.bf16.vlgmr.msra.gmra.mxu2 %vm3368_vm15, %v5370_v46  ;;  %v5417_v51 = vrot.slane %v5391_v49, 2 }
0x1392   : > { %5622 = vmatpush.bf16.msra.mxu2 %v14692_v59 }
0x1396   : > { %v5249_v50 = vpop.f32.mrf.mxu3 }
0x1397   : > { %v5438_v57 = vpack.c.bf16 %v5249_v50, %v5249_v50 }
0x1399   : > { %11299 = vmatmul.msk.bf16.vlgmr.msra.gmra.mxu1 %vm3368_vm15, %v5417_v51 }
0x139a   : > { %5659 = vmatpush.bf16.msra.mxu1 %v14695_v60 }
0x139b   : > { %11297 = vmatmul.msk.bf16.vlgmr.msra.gmra.mxu0 %vm3368_vm15, %v5391_v49 }
0x139c   : > { %5641 = vmatpush.bf16.msra.mxu0 %v14698_v61 }
0x139e   : > { %v5251_v52 = vpop.f32.mrf.mxu3 }
0x13a1   : > { %11301 = vmatmul.msk.bf16.vlgmr.msrb.gmra.mxu2 %vm3368_vm15, %v5438_v57 }
0x13a2   : > { %5678 = vmatpush.bf16.msrb.mxu2 %v14701_v6 }
0x13f6   : > { %v5293_v58 = vpop.f32.mrf.mxu1 }
0x13f8   : > { %v5274_v30 = vpop.f32.mrf.mxu0 }
0x13f9   : > { %v5294_v37 = vadd.f32 %v5293_v58, %v5274_v30 }
0x13fe   : > { %v5295_v59 = vpop.f32.mrf.mxu1 }
0x1400   : > { %v5276_v53 = vpop.f32.mrf.mxu0 }
0x1404   : > { %v5315_v54 = vpop.f32.mrf.mxu2 }
0x1405   : > { %v5319_v1 = vadd.f32 %v5315_v54, %v5294_v37 }
0x1406   : > { %v5362_v56 = vpop.f32.mrf.mxu1 }
0x1408   : > { %v5339_v62 = vpop.f32.mrf.mxu0 }
0x1409   : > { %v5343_v4 = vadd.f32 %v5339_v62, %v5319_v1 }
0x140b   : > { %v5366_v8 = vadd.f32 %v5362_v56, %v5343_v4 }
0x140c   : > { %v5317_v47 = vpop.f32.mrf.mxu2 }
0x140e   : > { %v5364_v2 = vpop.f32.mrf.mxu1 }
0x1410   : > { %v5341_v60 = vpop.f32.mrf.mxu0 }
0x1411   : > { %v13250_v60 = vld [vmem:[%s15978_s18 + $0x18] sm:$0xff] }
0x1414   : > { %v5386_v3 = vpop.f32.mrf.mxu2 }
0x1415   : > { %v5390_v11 = vadd.f32 %v5386_v3, %v5366_v8  ;;  %v5536_v3 = vrot.slane %v14829_v5, 2  ;;  %v5123_v8 = vld [vmem:[%s15978_s18 + $0x20] sm:$0xf] }
0x1416   : > { %v5433_v61 = vpop.f32.mrf.mxu1 }
0x1418   : > { %v5409_v7 = vpop.f32.mrf.mxu0 }
0x1419   : > { %v5413_v13 = vadd.f32 %v5409_v7, %v5390_v11  ;;  %v5532_v11 = vunpack.c.l.b16 %v5123_v8 }
0x141b   : > { %v5437_v16 = vadd.f32 %v5433_v61, %v5413_v13  ;;  %v5537_v61 = vrot.slane %v13250_v60, 2  ;;  %v5535_v13 = vpack.c.b16 %v5532_v11, %v5532_v11 }
0x141c   : > { %v5388_v10 = vpop.f32.mrf.mxu2 }
0x141d   : > { %v5538_v7 = vsel %vm4045_vm13, %v5536_v3, %v5537_v61  ;;  %v5149_v10 = vld [vmem:[%s15980_s25] sm:$0x3] }
0x141e   : > { %v5435_v6 = vpop.f32.mrf.mxu1 }
0x141f   : > { %v5747_v6 = vsel %vm3372_vm5, %v5149_v10, 0 }
0x1420   : > { %v5411_v14 = vpop.f32.mrf.mxu0 }
0x1421   : > { %v5539_v14 = vrot.slane %v5535_v13, 2  ;;  %v5774_v13 = vld [vmem:[%s14178_s3] sm:$0xff] }
0x1423   : > { %v5540_v5 = vsel %vm4045_vm13, %v5537_v61, %v5539_v14 }
0x1424   : > { %v5456_v15 = vpop.f32.mrf.mxu2 }
0x1425   : > { %v5460_v17 = vadd.f32 %v5456_v15, %v5437_v16  ;;  %v5148_v16 = vpack.c.bf16 %v14854_v41, %v14854_v41 }
0x1427   : > { %v5466_v36 = vadd.f32 %v5464_v18, %v5460_v17 }
0x1429   : > { %v5467_v19 = vsel %vm3968_vm0, %v5466_v36, 0.0 }
0x142a   : > { %5468 = vadd.xlane.f32.xlu0 %v5467_v19  ;;  %v13815_v19 = vld [vmem:[#allocation2 + $0x30] sm:$0xff] }
0x142c   : > { %v5458_v21 = vpop.f32.mrf.mxu2 }
0x149d   : > { %v5469_v22 = vpop.xlane.xlu0 %5468 }
0x149e   : > { %v5470_v40 = vmul.f32 %v5469_v22, %v14662_v63 }
0x14a0   : > { %v5471_v23 = vsub.f32 %v5466_v36, %v5470_v40  ;;  %v13814_v36 = vld [vmem:[#allocation2 + $0x38] sm:$0xff]  ;;  %v13816_v40 = vld [vmem:[#allocation2 + $0x40] sm:$0xff] }
0x14a2   : > { %v5472_v44 = vmul.f32 %v5471_v23, %v5471_v23 }
0x14a4   : > { %v5473_v24 = vsel %vm3968_vm0, %v5472_v44, 0.0 }
0x14a5   : > { %5474 = vadd.xlane.f32.xlu1 %v5473_v24 }
0x14be   : > { %5517 = vperm.xlu1 %13747, %v5127_v20  }
0x1518   : > { %v5475_v25 = vpop.xlane.xlu1 %5474 }
0x1519   : > { %v5476_v27 = vmul.f32 0.06666667, %v5475_v25 }
0x151b   : > { %13786 = vrsqrt.f32 %v5476_v27  ;;  %vm5484_vm1 = vcmp.eq.f32.partialorder %v5476_v27, inf  ;;  %v5487_v39 = vand.u32 2147483648, %v5476_v27  ;;  %vm5486_vm2 = vcmp.eq.f32.partialorder %v5476_v27, 0.0 }
0x1521   : > { %v13787_v28 = vpop.eup %13786 }
0x1522   : > { %v5478_v29 = vmul.f32 %v13787_v28, %v5476_v27 }
0x1524   : > { %v5479_v31 = vmul.f32 %v13787_v28, %v5478_v29 }
0x1526   : > { %v5480_v32 = vmul.f32 0.5, %v5479_v31 }
0x1528   : > { %v5481_v33 = vsub.f32 1.5, %v5480_v32 }
0x152a   : > { %v5482_v35 = vmul.f32 %v13787_v28, %v5481_v33 }
0x152c   : > { %v5483_v38 = vmul.f32 %v5482_v35, %v5476_v27 }
0x152e   : > { %v5485_v0 = vsel %vm5484_vm1, %v5476_v27, %v5483_v38 }
0x152f   : > { %v5488_v42 = vsel %vm5486_vm2, %v5487_v39, %v5485_v0 }
0x1530   : > { %v5489_v43 = vadd.f32 1e-05, %v5488_v42  ;;  %v14873_v47 = vpop.permute.xlu1 %5517 }
0x1531   : > { %v5740_v3 = vrot.slane %v14873_v47, 4 }
0x1532   : > { %v5491_v26 = vrot.slane %v5489_v43, 4 }
0x1534   : > { %13788 = vrcp.f32 %v5491_v26  ;;  %v5504_v50 = vand.u32 2147483648, %v5491_v26  ;;  %v5502_v57 = vand.u32 2147483647, %v5491_v26  ;;  %vm5498_vm12 = vweird.f32 %v5491_v26 }
0x1536   : > { %v5505_v58 = vor.u32 1.1754944e-38, %v5504_v50  ;;  %vm5503_vm7 = vcmp.eq.f32.partialorder %v5502_v57, 8.507059e+37 }
0x153a   : > { %v13789_v46 = vpop.eup %13788 }
0x153b   : > { %v5494_v48 = vmul.f32 %v13789_v46, %v5491_v26  ;;  %vm5499_vm3 = vweird.f32 %v13789_v46 }
0x153c   : > { %vm5500_vm6 = vmor %vm5498_vm12, %vm5499_vm3 }
0x153d   : > { %v5495_v49 = vsub.f32 1.0, %v5494_v48 }
0x153f   : > { %v5496_v51 = vmul.f32 %v13789_v46, %v5495_v49 }
0x1541   : > { %v5497_v52 = vadd.f32 %v13789_v46, %v5496_v51 }
0x1543   : > { %v5501_v30 = vsel %vm5500_vm6, %v13789_v46, %v5497_v52 }
0x1544   : > { %v5506_v59 = vsel %vm5503_vm7, %v5505_v58, %v5501_v30 }
0x1545   : > { %v5507_v53 = vmul.f32 %v5506_v59, %v14818_v55 }
0x1547   : > { %5510 = vperm.xlu2 %13748, %v5507_v53  }
0x15a1   : > { %v5511_v54 = vpop.permute.xlu2 %5510 }
0x15a2   : > { %v5512_v56 = vrot.slane %v5511_v54, 4 }
0x15a4   : > { %v5514_v62 = vmul.f32 %v5512_v56, %v5471_v23 }
0x15a6   : > { %v5520_v2 = vadd.f32 %v14873_v47, %v5514_v62 }
0x15a8   : > { %v5522_v37 = vmul.f32 0.2, %v5520_v2  ;;  %vm5521_vm8 = vcmp.gt.f32.partialorder %v5520_v2, 0.0 }
0x15aa   : > { %v5523_v1 = vsel %vm5521_vm8, %v5520_v2, %v5522_v37 }
0x15ab   : > { %v5524_v4 = vpack.c.bf16 %v5523_v1, %v5523_v1 }
0x15ad   : > { %v5551_v55 = vsel %vm3372_vm5, %v5524_v4, 0 }
0x15ae   : > { %5560 = vmatpush.bf16.msrb.mxu3 %v5551_v55 }
0x15b1   : > { %11306 = vmatmul.msk.bf16.vlgmr.msrb.gmra.mxu3 %vm3368_vm15, %v5538_v7 }
0x15b2   : > { %5756 = vmatpush.bf16.msra.mxu3 %v5747_v6 }
0x15c1   : > { %11307 = vmatmul.msk.bf16.gmra.mxu3 %vm3368_vm15, %v5540_v5 }
0x15d1   : > { %11308 = vmatmul.msk.bf16.gmra.mxu3 %vm3368_vm15, %v5539_v14 }
0x15e1   : > { %11318 = vmatmul.msk.bf16.vlgmr.msra.gmra.mxu3 %vm3368_vm15, %v5148_v16 }
0x1634   : > { %v5562_v15 = vpop.f32.mrf.mxu3 }
0x1635   : > { %v5576_v17 = vpack.c.bf16 %v5562_v15, %v5562_v15 }
0x1637   : > { %v5578_v18 = vrot.slane %v5576_v17, 2  ;;  %11310 = vmatmul.msk.bf16.vlgmr.msrb.gmra.mxu1 %vm4100_vm14, %v5576_v17 }
0x1638   : > { %5715 = vmatpush.bf16.msrb.mxu1 %v13814_v36 }
0x1639   : > { %11309 = vmatmul.msk.bf16.vlgmr.msrb.gmra.mxu0 %vm4100_vm14, %v5578_v18 }
0x163a   : > { %5696 = vmatpush.bf16.msrb.mxu0 %v13815_v19 }
0x163c   : > { %v5564_v21 = vpop.f32.mrf.mxu3 }
0x163d   : > { %v5611_v22 = vpack.c.bf16 %v5564_v21, %v5564_v21 }
0x163f   : > { %11311 = vmatmul.msk.bf16.vlgmr.msra.gmra.mxu2 %vm4100_vm14, %v5611_v22  ;;  %v5630_v44 = vrot.slane %v5611_v22, 2 }
0x1640   : > { %5733 = vmatpush.bf16.msra.mxu2 %v13816_v40 }
0x1644   : > { %v5567_v41 = vpop.f32.mrf.mxu3 }
0x1645   : > { %v5648_v23 = vpack.c.bf16 %v5567_v41, %v5567_v41 }
0x1647   : > { %11313 = vmatmul.msk.bf16.vlgmr.msra.gmra.mxu1 %vm4100_vm14, %v5648_v23  ;;  %v5667_v24 = vrot.slane %v5648_v23, 2 }
0x1649   : > { %11312 = vmatmul.msk.bf16.vlgmr.msra.gmra.mxu0 %vm4100_vm14, %v5630_v44 }
0x164c   : > { %v5569_v20 = vpop.f32.mrf.mxu3 }
0x164d   : > { %v5685_v25 = vpack.c.bf16 %v5569_v20, %v5569_v20 }
0x164f   : > { %11314 = vmatmul.msk.bf16.vlgmr.msrb.gmra.mxu2 %vm4100_vm14, %v5667_v24  ;;  %v5704_v28 = vrot.slane %v5685_v25, 2 }
0x1654   : > { %v5572_v27 = vpop.f32.mrf.mxu3 }
0x1655   : > { %v5722_v29 = vpack.c.bf16 %v5572_v27, %v5572_v27 }
0x1657   : > { %11316 = vmatmul.msk.bf16.vlgmr.msrb.gmra.mxu1 %vm4100_vm14, %v5704_v28 }
0x1659   : > { %11315 = vmatmul.msk.bf16.vlgmr.msrb.gmra.mxu0 %vm4100_vm14, %v5685_v25 }
0x165c   : > { %v5574_v31 = vpop.f32.mrf.mxu3 }
0x165f   : > { %11317 = vmatmul.msk.bf16.vlgmr.msra.gmra.mxu2 %vm4100_vm14, %v5722_v29 }
0x1664   : > { %v5758_v32 = vpop.f32.mrf.mxu3 }
0x166c   : > { %v5760_v33 = vpop.f32.mrf.mxu3 }
0x16b4   : > { %v5607_v35 = vpop.f32.mrf.mxu1 }
0x16b6   : > { %v5591_v38 = vpop.f32.mrf.mxu0 }
0x16b7   : > { %v5608_v50 = vadd.f32 %v5607_v35, %v5591_v38 }
0x16bc   : > { %v5609_v39 = vpop.f32.mrf.mxu1 }
0x16be   : > { %v5593_v0 = vpop.f32.mrf.mxu0 }
0x16bf   : > { %v14907_v0 = vld [vmem:[%s14178_s3 + $0x8] sm:$0xff] }
0x16c2   : > { %v5624_v42 = vpop.f32.mrf.mxu2 }
0x16c3   : > { %v5628_v57 = vadd.f32 %v5624_v42, %v5608_v50 }
0x16c4   : > { %v5661_v43 = vpop.f32.mrf.mxu1 }
0x16c6   : > { %v5643_v26 = vpop.f32.mrf.mxu0 }
0x16c7   : > { %v5647_v58 = vadd.f32 %v5643_v26, %v5628_v57 }
0x16c9   : > { %v5665_v59 = vadd.f32 %v5661_v43, %v5647_v58  ;;  %v5773_v58 = vld [vmem:[%s15981_s30 + $0x24] sm:$0x3] }
0x16ca   : > { %v5626_v46 = vpop.f32.mrf.mxu2 }
0x16cc   : > { %v5663_v48 = vpop.f32.mrf.mxu1 }
0x16ce   : > { %v5645_v49 = vpop.f32.mrf.mxu0 }
0x16d2   : > { %v5680_v51 = vpop.f32.mrf.mxu2 }
0x16d3   : > { %v5684_v54 = vadd.f32 %v5680_v51, %v5665_v59  ;;  %v14918_v59 = vld [vmem:[%s15981_s30 + $0x10] sm:$0xff]  }
0x16d4   : > { %v5717_v52 = vpop.f32.mrf.mxu1 }
0x16d6   : > { %v5698_v30 = vpop.f32.mrf.mxu0 }
0x16d7   : > { %v5702_v62 = vadd.f32 %v5698_v30, %v5684_v54  ;;  %v13252_v30 = vld [vmem:[%s15981_s30 + $0x8] sm:$0xff] }
0x16d9   : > { %v5721_v60 = vadd.f32 %v5717_v52, %v5702_v62  ;;  %v13251_v52 = vld [vmem:[%s15981_s30] sm:$0xff]  ;;  %v13256_v62 = vld [vmem:[#allocation4 + $0x8] sm:$0xff] }
0x16da   : > { %v5682_v53 = vpop.f32.mrf.mxu2  ;;  %5927 = vmatpush.bf16.msrb.mxu2 %v13256_v62 }
0x16db   : > { %v13649_v53 = vunpack.c.l.b16 %v14918_v59 }
0x16dc   : > { %v5719_v56 = vpop.f32.mrf.mxu1 }
0x16dd   : > { %v5867_v54 = vpack.c.b16 %v13649_v53, %v13649_v53  ;;  %v13255_v56 = vld [vmem:[#allocation4] sm:$0xff] }
0x16de   : > { %v5700_v2 = vpop.f32.mrf.mxu0  ;;  %5949 = vmatpush.bf16.msrb.mxu3 %v13255_v56 }
0x16df   : > { %v13257_v2 = vld [vmem:[#allocation4 + $0x10] sm:$0xff] }
0x16e2   : > { %v5735_v37 = vpop.f32.mrf.mxu2 }
0x16e3   : > { %v5739_v1 = vadd.f32 %v5735_v37, %v5721_v60  ;;  %v13259_v60 = vld [vmem:[#allocation4 + $0x20] sm:$0xff]  ;;  %v13258_v37 = vld [vmem:[#allocation4 + $0x18] sm:$0xff] }
0x16e4   : > { %6030 = vmatpush.bf16.msra.mxu3 %v13259_v60  ;;  %6003 = vmatpush.bf16.msra.mxu2 %v13258_v37 }
0x16e5   : > { %v5742_v61 = vadd.f32 %v5740_v3, %v5739_v1  ;;  %v13260_v3 = vld [vmem:[#allocation4 + $0x28] sm:$0xff] }
0x16e7   : > { %v5759_v4 = vadd.f32 %v5758_v32, %v5742_v61  ;;  %v13262_v61 = vld [vmem:[#allocation4 + $0x38] sm:$0xff] }
0x16e9   : > { %v5762_v55 = vmul.f32 0.70710677, %v5759_v4 }
0x16ea   : > { %v5737_v7 = vpop.f32.mrf.mxu2 }
0x16eb   : > { %v5763_v8 = vadd.f32 %v5762_v55, %v14714_v34  ;;  %v13261_v55 = vld [vmem:[#allocation4 + $0x30] sm:$0xff] }
0x16ed   : > { %v5800_v10 = vsel %vm3968_vm0, %v5763_v8, 0.0  ;;  %v5777_v11 = vpack.c.bf16 %v5763_v8, %v5763_v8 }
0x16ee   : > { %5801 = vadd.xlane.f32.xlu2 %v5800_v10  ;;  %v13263_v10 = vld [vmem:[#allocation4 + $0x40] sm:$0xff] }
0x16ef   : > { %v5782_v6 = vsel %vm3372_vm5, %v5777_v11, 0 }
0x16f0   : > { %5791 = vmatpush.bf16.msra.mxu0 %v5782_v6 }
0x16f3   : > { %11319 = vmatmul.msk.bf16.vlgmr.msra.gmra.mxu0 %vm3368_vm15, %v5773_v58 }
0x16f4   : > { %5975 = vmatpush.bf16.msrb.mxu0 %v13257_v2 }
0x16f8   : > { %6058 = vmatpush.bf16.msra.mxu0 %v13260_v3 }
0x1706   : > { %5846 = vperm.xlu2 %13748, %v5774_v13  }
0x1761   : > { %v5802_v14 = vpop.xlane.xlu2 %5801 }
0x1762   : > { %v5803_v5 = vmul.f32 %v5802_v14, %v14662_v63 }
0x1764   : > { %v5804_v47 = vsub.f32 %v5763_v8, %v5803_v5 }
0x1766   : > { %v5805_v16 = vmul.f32 %v5804_v47, %v5804_v47 }
0x1768   : > { %v5806_v15 = vsel %vm3968_vm0, %v5805_v16, 0.0  ;;  %v13817_v16 = vld [vmem:[%s14053_s13 + $0x18] sm:$0xff] }
0x1769   : > { %5807 = vadd.xlane.f32.xlu1 %v5806_v15  ;;  %v5847_v42 = vpop.permute.xlu2 %5846  ;;  %v13818_v15 = vld [vmem:[%s14053_s13 + $0x38] sm:$0xff] }
0x176a   : > { %v5848_v26 = vrot.slane %v5847_v42, 4  ;;  %v13836_v42 = vld [vmem:[%s14053_s13 + $0x80] sm:$0xff] }
0x1770   : > { %v14925_v6 = vpop.f32.mrf.mxu0 }
0x17dc   : > { %v5808_v17 = vpop.xlane.xlu1 %5807 }
0x17dd   : > { %v5809_v18 = vmul.f32 0.06666667, %v5808_v17 }
0x17df   : > { %13790 = vrsqrt.f32 %v5809_v18  ;;  %vm5817_vm10 = vcmp.eq.f32.partialorder %v5809_v18, inf  ;;  %v5820_v23 = vand.u32 2147483648, %v5809_v18  ;;  %vm5819_vm1 = vcmp.eq.f32.partialorder %v5809_v18, 0.0 }
0x17e5   : > { %v13791_v34 = vpop.eup %13790 }
0x17e6   : > { %v5811_v36 = vmul.f32 %v13791_v34, %v5809_v18 }
0x17e8   : > { %v5812_v19 = vmul.f32 %v13791_v34, %v5811_v36  ;;  %v13820_v36 = vld [vmem:[%s14053_s13 + $0x30] sm:$0xff] }
0x17ea   : > { %v5813_v21 = vmul.f32 0.5, %v5812_v19  ;;  %v13821_v19 = vld [vmem:[%s14053_s13 + $0x8] sm:$0xff] }
0x17ec   : > { %v5814_v22 = vsub.f32 1.5, %v5813_v21  ;;  %v13822_v21 = vld [vmem:[%s14053_s13 + $0x58] sm:$0xff] }
0x17ee   : > { %v5815_v40 = vmul.f32 %v13791_v34, %v5814_v22 }
0x17f0   : > { %v5816_v41 = vmul.f32 %v5815_v40, %v5809_v18  ;;  %v13823_v40 = vld [vmem:[%s14053_s13 + $0x28] sm:$0xff] }
0x17f2   : > { %v5818_v44 = vsel %vm5817_vm10, %v5809_v18, %v5816_v41  ;;  %v13819_v18 = vld [vmem:[%s14053_s13 + $0x10] sm:$0xff] }
0x17f3   : > { %v5821_v63 = vsel %vm5819_vm1, %v5820_v23, %v5818_v44  ;;  %v13824_v23 = vld [vmem:[%s14053_s13] sm:$0xff]  ;;  %v13825_v44 = vld [vmem:[%s14053_s13 + $0x50] sm:$0xff] }
0x17f4   : > { %v5822_v24 = vadd.f32 1e-05, %v5821_v63 }
0x17f6   : > { %13792 = vrcp.f32 %v5822_v24  ;;  %v5834_v28 = vand.u32 2147483648, %v5822_v24  ;;  %v5832_v31 = vand.u32 2147483647, %v5822_v24  ;;  %vm5828_vm2 = vweird.f32 %v5822_v24 }
0x17f8   : > { %v5835_v33 = vor.u32 1.1754944e-38, %v5834_v28  ;;  %vm5833_vm12 = vcmp.eq.f32.partialorder %v5832_v31, 8.507059e+37  ;;  %v13830_v31 = vld [vmem:[%s14053_s13 + $0x40] sm:$0xff] }
0x17fc   : > { %v13793_v20 = vpop.eup %13792 }
0x17fd   : > { %v5824_v25 = vmul.f32 %v13793_v20, %v5822_v24  ;;  %vm5829_vm0 = vweird.f32 %v13793_v20  ;;  %v13826_v24 = vld [vmem:[%s14053_s13 + $0x20] sm:$0xff] }
0x17fe   : > { %vm5830_vm3 = vmor %vm5828_vm2, %vm5829_vm0 }
0x17ff   : > { %v5825_v27 = vsub.f32 1.0, %v5824_v25  ;;  %v13828_v25 = vld [vmem:[%s14053_s13 + $0x98] sm:$0xff] }
0x1801   : > { %v5826_v29 = vmul.f32 %v13793_v20, %v5825_v27  ;;  %v13829_v27 = vld [vmem:[%s14053_s13 + $0x78] sm:$0xff] }
0x1803   : > { %v5827_v32 = vadd.f32 %v13793_v20, %v5826_v29 }
0x1805   : > { %v5831_v35 = vsel %vm5830_vm3, %v13793_v20, %v5827_v32  ;;  %v13827_v20 = vld [vmem:[%s14053_s13 + $0x48] sm:$0xff]  ;;  %v13831_v32 = vld [vmem:[%s14053_s13 + $0x90] sm:$0xff] }
0x1806   : > { %v5836_v38 = vsel %vm5833_vm12, %v5835_v33, %v5831_v35  ;;  %v13832_v33 = vld [vmem:[%s14053_s13 + $0x70] sm:$0xff]  ;;  %v13833_v35 = vld [vmem:[%s14053_s13 + $0x88] sm:$0xff] }
0x1807   : > { %v5837_v39 = vmul.f32 %v5836_v38, %v5774_v13  ;;  %v13834_v38 = vld [vmem:[%s14053_s13 + $0xb8] sm:$0xff] }
0x1809   : > { %5840 = vperm.xlu0 %13749, %v5837_v39   ;;  %v13835_v39 = vld [vmem:[%s14053_s13 + $0x68] sm:$0xff] }
0x1811   : > { %6149 = vperm.xlu0 %13749, %v14907_v0  }
0x187b   : > { %v5841_v43 = vpop.permute.xlu0 %5840 }
0x187c   : > { %v5843_v46 = vmul.f32 %v5841_v43, %v5804_v47  ;;  %v5795_v47 = vpop.f32.mrf.mxu0  ;;  %v13837_v43 = vld [vmem:[%s14053_s13 + $0xb0] sm:$0xff] }
0x187e   : > { %v5850_v48 = vadd.f32 %v5848_v26, %v5843_v46  ;;  %v13838_v26 = vld [vmem:[%s14053_s13 + $0x60] sm:$0xff]  ;;  %v13839_v46 = vld [vmem:[%s14053_s13 + $0xa8] sm:$0xff] }
0x1880   : > { %vm5851_vm6 = vcmp.gt.f32.partialorder %v5850_v48, 0.0  ;;  %v5852_v49 = vmul.f32 0.2, %v5850_v48 }
0x1882   : > { %v5853_v50 = vsel %vm5851_vm6, %v5850_v48, %v5852_v49  ;;  %v13840_v48 = vld [vmem:[%s14053_s13 + $0xa0] sm:$0xff] }
0x1883   : > { %v5854_v51 = vpack.c.bf16 %v5853_v50, %v5853_v50 }
0x1885   : > { %v5878_v57 = vsel %vm3372_vm5, %v5854_v51, 0 }
0x1886   : > { %5887 = vmatpush.bf16.msra.mxu1 %v5878_v57 }
0x1889   : > { %11328 = vmatmul.msk.bf16.vlgmr.msra.gmra.mxu1 %vm3368_vm15, %v13251_v52 }
0x1899   : > { %11329 = vmatmul.msk.bf16.gmra.mxu1 %vm3368_vm15, %v13252_v30 }
0x18a9   : > { %11330 = vmatmul.msk.bf16.gmra.mxu1 %vm3368_vm15, %v5867_v54 }
0x1906   : > { %v5889_v1 = vpop.f32.mrf.mxu1 }
0x1907   : > { %v5903_v4 = vpack.c.bf16 %v5889_v1, %v5889_v1 }
0x1909   : > { %v5910_v7 = vrot.slane %v5903_v4, 2  ;;  %11340 = vmatmul.msk.bf16.vlgmr.msrb.gmra.mxu3 %vm4100_vm14, %v5903_v4 }
0x190a   : > { %6113 = vmatpush.bf16.msrb.mxu3 %v13262_v61 }
0x190b   : > { %11335 = vmatmul.msk.bf16.vlgmr.msrb.gmra.mxu2 %vm4100_vm14, %v5910_v7 }
0x190c   : > { %6085 = vmatpush.bf16.msrb.mxu2 %v13261_v55 }
0x190e   : > { %v5891_v8 = vpop.f32.mrf.mxu1 }
0x190f   : > { %v5955_v11 = vpack.c.bf16 %v5891_v8, %v5891_v8 }
0x1911   : > { %11345 = vmatmul.msk.bf16.vlgmr.msrb.gmra.mxu0 %vm4100_vm14, %v5955_v11  ;;  %v5986_v5 = vrot.slane %v5955_v11, 2 }
0x1912   : > { %6140 = vmatpush.bf16.msrb.mxu0 %v13263_v10 }
0x1916   : > { %v5894_v13 = vpop.f32.mrf.mxu1 }
0x1917   : > { %v6010_v14 = vpack.c.bf16 %v5894_v13, %v5894_v13  ;;  %v6150_v13 = vpop.permute.xlu0 %6149 }
0x1919   : > { %11355 = vmatmul.msk.bf16.vlgmr.msra.gmra.mxu3 %vm4100_vm14, %v6010_v14  ;;  %v6041_v34 = vrot.slane %v6010_v14, 2 }
0x191a   : > { %6288 = vmatpush.bf16.msra.mxu3 %v13817_v16 }
0x191b   : > { %11350 = vmatmul.msk.bf16.vlgmr.msra.gmra.mxu2 %vm4100_vm14, %v5986_v5 }
0x191c   : > { %6272 = vmatpush.bf16.msra.mxu2 %v13818_v15 }
0x191e   : > { %v5896_v17 = vpop.f32.mrf.mxu1  ;;  %6289 = vmatpush.bf16.msra.mxu3 %v13819_v18 }
0x191f   : > { %v6065_v22 = vpack.c.bf16 %v5896_v17, %v5896_v17 }
0x1920   : > { %6273 = vmatpush.bf16.msra.mxu2 %v13820_v36 }
0x1921   : > { %11360 = vmatmul.msk.bf16.vlgmr.msra.gmra.mxu0 %vm4100_vm14, %v6041_v34  ;;  %v6096_v63 = vrot.slane %v6065_v22, 2 }
0x1922   : > { %6290 = vmatpush.bf16.msra.mxu3 %v13821_v19  ;;  %6305 = vmatpush.bf16.msra.mxu0 %v13822_v21  ;;  %v5776_v21 = vld [vmem:[%s14178_s3 + $0x10] sm:$0xff] }
0x1924   : > { %6274 = vmatpush.bf16.msra.mxu2 %v13823_v40 }
0x1926   : > { %v5899_v41 = vpop.f32.mrf.mxu1  ;;  %6291 = vmatpush.bf16.msra.mxu3 %v13824_v23  ;;  %6306 = vmatpush.bf16.msra.mxu0 %v13825_v44 }
0x1927   : > { %v6120_v28 = vpack.c.bf16 %v5899_v41, %v5899_v41 }
0x1928   : > { %6275 = vmatpush.bf16.msra.mxu2 %v13826_v24 }
0x1929   : > { %11370 = vmatmul.msk.bf16.vlgmr.msrb.gmra.mxu3 %vm4100_vm14, %v6096_v63 }
0x192a   : > { %6307 = vmatpush.bf16.msra.mxu0 %v13827_v20  ;;  %6342 = vmatpush.bf16.msrb.mxu3 %v13828_v25 }
0x192b   : > { %11365 = vmatmul.msk.bf16.vlgmr.msrb.gmra.mxu2 %vm4100_vm14, %v6065_v22 }
0x192c   : > { %6324 = vmatpush.bf16.msrb.mxu2 %v13829_v27 }
0x192e   : > { %v5901_v29 = vpop.f32.mrf.mxu1  ;;  %6308 = vmatpush.bf16.msra.mxu0 %v13830_v31  ;;  %6343 = vmatpush.bf16.msrb.mxu3 %v13831_v32 }
0x1930   : > { %6325 = vmatpush.bf16.msrb.mxu2 %v13832_v33 }
0x1931   : > { %11375 = vmatmul.msk.bf16.vlgmr.msrb.gmra.mxu0 %vm4100_vm14, %v6120_v28 }
0x1932   : > { %6344 = vmatpush.bf16.msrb.mxu3 %v13833_v35  ;;  %6361 = vmatpush.bf16.msrb.mxu0 %v13834_v38 }
0x1934   : > { %6326 = vmatpush.bf16.msrb.mxu2 %v13835_v39 }
0x1936   : > { %6345 = vmatpush.bf16.msrb.mxu3 %v13836_v42  ;;  %6362 = vmatpush.bf16.msrb.mxu0 %v13837_v43 }
0x1938   : > { %6327 = vmatpush.bf16.msrb.mxu2 %v13838_v26 }
0x193a   : > { %6363 = vmatpush.bf16.msrb.mxu0 %v13839_v46 }
0x193e   : > { %6364 = vmatpush.bf16.msrb.mxu0 %v13840_v48 }
0x198c   : > { %v5951_v49 = vpop.f32.mrf.mxu3 }
0x198e   : > { %v5929_v50 = vpop.f32.mrf.mxu2  ;;  %v5977_v51 = vpop.f32.mrf.mxu0 }
0x198f   : > { %v5952_v56 = vadd.f32 %v5951_v49, %v5929_v50 }
0x1991   : > { %v5981_v62 = vadd.f32 %v5977_v51, %v5952_v56  ;;  %v6222_v56 = vrot.slane %v14918_v59, 2 }
0x1994   : > { %v5953_v57 = vpop.f32.mrf.mxu3 }
0x1996   : > { %v5931_v52 = vpop.f32.mrf.mxu2  ;;  %v5979_v58 = vpop.f32.mrf.mxu0 }
0x199c   : > { %v6032_v30 = vpop.f32.mrf.mxu3 }
0x199e   : > { %v6005_v53 = vpop.f32.mrf.mxu2  ;;  %v6060_v54 = vpop.f32.mrf.mxu0 }
0x199f   : > { %v6009_v60 = vadd.f32 %v6005_v53, %v5981_v62  ;;  %v13253_v53 = vld [vmem:[%s15981_s30 + $0x18] sm:$0xff] }
0x19a1   : > { %v6036_v1 = vadd.f32 %v6032_v30, %v6009_v60 }
0x19a3   : > { %v6064_v4 = vadd.f32 %v6060_v54, %v6036_v1  ;;  %v13254_v1 = vld [vmem:[#allocation6] sm:$0xff] }
0x19a4   : > { %v6034_v2 = vpop.f32.mrf.mxu3 }
0x19a5   : > { %v6223_v2 = vrot.slane %v13253_v53, 2 }
0x19a6   : > { %v6007_v37 = vpop.f32.mrf.mxu2  ;;  %v6062_v3 = vpop.f32.mrf.mxu0 }
0x19a7   : > { %v5772_v3 = vld [vmem:[%s15981_s30 + $0x20] sm:$0xf] }
0x19ac   : > { %v6115_v61 = vpop.f32.mrf.mxu3 }
0x19ae   : > { %v6087_v55 = vpop.f32.mrf.mxu2  ;;  %v6142_v7 = vpop.f32.mrf.mxu0 }
0x19af   : > { %v6091_v8 = vadd.f32 %v6087_v55, %v6064_v4 }
0x19b1   : > { %v6119_v10 = vadd.f32 %v6115_v61, %v6091_v8  ;;  %v6218_v61 = vunpack.c.l.b16 %v5772_v3 }
0x19b3   : > { %v6146_v11 = vadd.f32 %v6142_v7, %v6119_v10  ;;  %v6221_v4 = vpack.c.b16 %v6218_v61, %v6218_v61  ;;  %v5797_v7 = vpack.c.bf16 %v14925_v6, %v14925_v6  ;;  %v13843_v6 = vld [vmem:[%s14053_s13 + $0xf0] sm:$0xff] }
0x19b4   : > { %v6117_v14 = vpop.f32.mrf.mxu3 }
0x19b5   : > { %v6152_v5 = vadd.f32 %v6150_v13, %v6146_v11  ;;  %v6225_v55 = vrot.slane %v6221_v4, 2  ;;  %v13841_v13 = vld [vmem:[%s14053_s13 + $0xf8] sm:$0xff] }
0x19b6   : > { %v6089_v47 = vpop.f32.mrf.mxu2  ;;  %v6144_v16 = vpop.f32.mrf.mxu0  ;;  %v13842_v14 = vld [vmem:[%s14053_s13 + $0xd8] sm:$0xff] }
0x19b7   : > { %v6153_v15 = vsel %vm3398_vm4, %v6152_v5, 0.0  ;;  %v6226_v59 = vsel %vm4045_vm13, %v6223_v2, %v6225_v55  ;;  %v13844_v16 = vld [vmem:[%s14053_s13 + $0xd0] sm:$0xff] }
0x19b8   : > { %6154 = vadd.xlane.f32.xlu0 %v6153_v15  ;;  %v13845_v15 = vld [vmem:[%s14053_s13 + $0xe8] sm:$0xff] }
0x1a2b   : > { %v6155_v17 = vpop.xlane.xlu0 %6154 }
0x1a2c   : > { %v6156_v18 = vmul.f32 %v6155_v17, %v14503_v12  ;;  %v13846_v17 = vld [vmem:[%s14053_s13 + $0x118] sm:$0xff] }
0x1a2e   : > { %v6157_v34 = vsub.f32 %v6152_v5, %v6156_v18  ;;  %v13847_v18 = vld [vmem:[%s14053_s13 + $0xc8] sm:$0xff] }
0x1a30   : > { %v6158_v36 = vmul.f32 %v6157_v34, %v6157_v34 }
0x1a32   : > { %v6159_v19 = vsel %vm3398_vm4, %v6158_v36, 0.0  ;;  %v13848_v36 = vld [vmem:[%s14053_s13 + $0xe0] sm:$0xff] }
0x1a33   : > { %6160 = vadd.xlane.f32.xlu1 %v6159_v19  ;;  %v13849_v19 = vld [vmem:[%s14053_s13 + $0x110] sm:$0xff] }
0x1a4c   : > { %6203 = vperm.xlu1 %13747, %v5776_v21  }
0x1aa6   : > { %v6161_v22 = vpop.xlane.xlu1 %6160 }
0x1aa7   : > { %v6162_v40 = vmul.f32 0.015873017, %v6161_v22  ;;  %v13850_v22 = vld [vmem:[%s14053_s13 + $0xc0] sm:$0xff] }
0x1aa9   : > { %13794 = vrsqrt.f32 %v6162_v40  ;;  %vm6170_vm7 = vcmp.eq.f32.partialorder %v6162_v40, inf  ;;  %v6173_v27 = vand.u32 2147483648, %v6162_v40  ;;  %vm6172_vm8 = vcmp.eq.f32.partialorder %v6162_v40, 0.0 }
0x1aaf   : > { %v13795_v41 = vpop.eup %13794 }
0x1ab0   : > { %v6164_v23 = vmul.f32 %v13795_v41, %v6162_v40 }
0x1ab2   : > { %v6165_v44 = vmul.f32 %v13795_v41, %v6164_v23 }
0x1ab4   : > { %v6166_v63 = vmul.f32 0.5, %v6165_v44  ;;  %v13852_v44 = vld [vmem:[%s14053_s13 + $0x100] sm:$0xff] }
0x1ab6   : > { %v6167_v24 = vsub.f32 1.5, %v6166_v63 }
0x1ab8   : > { %v6168_v20 = vmul.f32 %v13795_v41, %v6167_v24  ;;  %v13851_v41 = vld [vmem:[%s14053_s13 + $0x108] sm:$0xff] }
0x1aba   : > { %v6169_v25 = vmul.f32 %v6168_v20, %v6162_v40 }
0x1abc   : > { %v6171_v28 = vsel %vm6170_vm7, %v6162_v40, %v6169_v25 }
0x1abd   : > { %v6174_v29 = vsel %vm6172_vm8, %v6173_v27, %v6171_v28 }
0x1abe   : > { %v6175_v31 = vadd.f32 1e-05, %v6174_v29  ;;  %v14962_v58 = vpop.permute.xlu1 %6203 }
0x1ac0   : > { %v6177_v32 = vrot.slane %v6175_v31, 4 }
0x1ac2   : > { %13796 = vrcp.f32 %v6177_v32  ;;  %v6190_v39 = vand.u32 2147483648, %v6177_v32  ;;  %v6188_v43 = vand.u32 2147483647, %v6177_v32  ;;  %vm6184_vm1 = vweird.f32 %v6177_v32 }
0x1ac4   : > { %v6191_v46 = vor.u32 1.1754944e-38, %v6190_v39  ;;  %vm6189_vm2 = vcmp.eq.f32.partialorder %v6188_v43, 8.507059e+37 }
0x1ac8   : > { %v13797_v33 = vpop.eup %13796 }
0x1ac9   : > { %v6180_v35 = vmul.f32 %v13797_v33, %v6177_v32  ;;  %vm6185_vm10 = vweird.f32 %v13797_v33 }
0x1aca   : > { %vm6186_vm0 = vmor %vm6184_vm1, %vm6185_vm10 }
0x1acb   : > { %v6181_v38 = vsub.f32 1.0, %v6180_v35 }
0x1acd   : > { %v6182_v42 = vmul.f32 %v13797_v33, %v6181_v38 }
0x1acf   : > { %v6183_v26 = vadd.f32 %v13797_v33, %v6182_v42 }
0x1ad1   : > { %v6187_v48 = vsel %vm6186_vm0, %v13797_v33, %v6183_v26 }
0x1ad2   : > { %v6192_v49 = vsel %vm6189_vm2, %v6191_v46, %v6187_v48 }
0x1ad3   : > { %v6193_v50 = vmul.f32 %v6192_v49, %v14907_v0  ;;  %v6224_v0 = vsel %vm4045_vm13, %v6222_v56, %v6223_v2 }
0x1ad5   : > { %6196 = vperm.xlu2 %13748, %v6193_v50  }
0x1b2f   : > { %v6197_v51 = vpop.permute.xlu2 %6196 }
0x1b30   : > { %v6198_v57 = vrot.slane %v6197_v51, 4 }
0x1b32   : > { %v6200_v52 = vmul.f32 %v6198_v57, %v6157_v34 }
0x1b34   : > { %v6206_v30 = vadd.f32 %v14962_v58, %v6200_v52 }
0x1b36   : > { %v6208_v54 = vmul.f32 0.2, %v6206_v30  ;;  %vm6207_vm3 = vcmp.gt.f32.partialorder %v6206_v30, 0.0 }
0x1b38   : > { %v6209_v62 = vsel %vm6207_vm3, %v6206_v30, %v6208_v54 }
0x1b39   : > { %v6210_v60 = vpack.c.bf16 %v6209_v62, %v6209_v62 }
0x1b3b   : > { %v6237_v37 = vsel %vm3372_vm5, %v6210_v60, 0 }
0x1b3c   : > { %6246 = vmatpush.bf16.msrb.mxu1 %v6237_v37  ;;  %v6426_v37 = vrot.slane %v14962_v58, 4 }
0x1b3f   : > { %11380 = vmatmul.msk.bf16.vlgmr.msrb.gmra.mxu1 %vm3368_vm15, %v6224_v0 }
0x1b40   : > { %6445 = vmatpush.bf16.msra.mxu1 %v13254_v1 }
0x1b4f   : > { %11381 = vmatmul.msk.bf16.gmra.mxu1 %vm3368_vm15, %v6226_v59 }
0x1b5f   : > { %11382 = vmatmul.msk.bf16.gmra.mxu1 %vm3368_vm15, %v6225_v55 }
0x1b6f   : > { %11396 = vmatmul.msk.bf16.vlgmr.msra.gmra.mxu1 %vm4100_vm14, %v5797_v7 }
0x1bbc   : > { %v6248_v8 = vpop.f32.mrf.mxu1 }
0x1bbd   : > { %v6262_v10 = vpack.c.bf16 %v6248_v8, %v6248_v8 }
0x1bbf   : > { %v6264_v11 = vrot.slane %v6262_v10, 2  ;;  %11384 = vmatmul.msk.bf16.vlgmr.msra.gmra.mxu3 %vm2658_vm11, %v6262_v10 }
0x1bc0   : > { %6398 = vmatpush.bf16.msra.mxu3 %v13841_v13 }
0x1bc1   : > { %11383 = vmatmul.msk.bf16.vlgmr.msra.gmra.mxu2 %vm2658_vm11, %v6264_v11 }
0x1bc2   : > { %6379 = vmatpush.bf16.msra.mxu2 %v13842_v14 }
0x1bc4   : > { %v6250_v5 = vpop.f32.mrf.mxu1  ;;  %6399 = vmatpush.bf16.msra.mxu3 %v13843_v6 }
0x1bc5   : > { %v6297_v47 = vpack.c.bf16 %v6250_v5, %v6250_v5 }
0x1bc6   : > { %6380 = vmatpush.bf16.msra.mxu2 %v13844_v16  ;;  %v6465_v16 = vld [vmem:[%s14183_s20 + $0x10] sm:$0xff] }
0x1bc7   : > { %11385 = vmatmul.msk.bf16.vlgmr.msra.gmra.mxu0 %vm2658_vm11, %v6297_v47  ;;  %v6316_v40 = vrot.slane %v6297_v47, 2  ;;  %v6463_v47 = vld [vmem:[%s14183_s20] sm:$0xff] }
0x1bc8   : > { %6400 = vmatpush.bf16.msra.mxu3 %v13845_v15  ;;  %6416 = vmatpush.bf16.msra.mxu0 %v13846_v17 }
0x1bca   : > { %6381 = vmatpush.bf16.msra.mxu2 %v13847_v18 }
0x1bcc   : > { %v6253_v34 = vpop.f32.mrf.mxu1  ;;  %6401 = vmatpush.bf16.msra.mxu3 %v13848_v36  ;;  %6417 = vmatpush.bf16.msra.mxu0 %v13849_v19 }
0x1bcd   : > { %v6334_v21 = vpack.c.bf16 %v6253_v34, %v6253_v34 }
0x1bce   : > { %6382 = vmatpush.bf16.msra.mxu2 %v13850_v22 }
0x1bcf   : > { %11387 = vmatmul.msk.bf16.vlgmr.msrb.gmra.mxu3 %vm2658_vm11, %v6334_v21  ;;  %v6353_v63 = vrot.slane %v6334_v21, 2 }
0x1bd0   : > { %6418 = vmatpush.bf16.msra.mxu0 %v13851_v41 }
0x1bd1   : > { %11386 = vmatmul.msk.bf16.vlgmr.msrb.gmra.mxu2 %vm2658_vm11, %v6316_v40 }
0x1bd4   : > { %v6255_v23 = vpop.f32.mrf.mxu1  ;;  %6419 = vmatpush.bf16.msra.mxu0 %v13852_v44 }
0x1bd5   : > { %v6371_v24 = vpack.c.bf16 %v6255_v23, %v6255_v23 }
0x1bd7   : > { %11388 = vmatmul.msk.bf16.vlgmr.msrb.gmra.mxu0 %vm2658_vm11, %v6353_v63  ;;  %v6390_v25 = vrot.slane %v6371_v24, 2 }
0x1bdc   : > { %v6258_v20 = vpop.f32.mrf.mxu1 }
0x1bdd   : > { %v6408_v27 = vpack.c.bf16 %v6258_v20, %v6258_v20 }
0x1bdf   : > { %11390 = vmatmul.msk.bf16.vlgmr.msra.gmra.mxu3 %vm2658_vm11, %v6390_v25 }
0x1be1   : > { %11389 = vmatmul.msk.bf16.vlgmr.msra.gmra.mxu2 %vm2658_vm11, %v6371_v24 }
0x1be4   : > { %v6260_v28 = vpop.f32.mrf.mxu1 }
0x1be7   : > { %11391 = vmatmul.msk.bf16.vlgmr.msra.gmra.mxu0 %vm2658_vm11, %v6408_v27 }
0x1bec   : > { %v6447_v29 = vpop.f32.mrf.mxu1 }
0x1bf4   : > { %v6449_v31 = vpop.f32.mrf.mxu1 }
0x1c42   : > { %v6293_v32 = vpop.f32.mrf.mxu3 }
0x1c44   : > { %v6277_v33 = vpop.f32.mrf.mxu2  ;;  %v6310_v35 = vpop.f32.mrf.mxu0 }
0x1c45   : > { %v6294_v48 = vadd.f32 %v6293_v32, %v6277_v33 }
0x1c47   : > { %v6314_v49 = vadd.f32 %v6310_v35, %v6294_v48  ;;  %v15007_v35 = vld [vmem:[%s14183_s20 + $0x8] sm:$0xff] }
0x1c4a   : > { %v6295_v38 = vpop.f32.mrf.mxu3 }
0x1c4c   : > { %v6279_v39 = vpop.f32.mrf.mxu2  ;;  %v6312_v42 = vpop.f32.mrf.mxu0 }
0x1c52   : > { %v6347_v43 = vpop.f32.mrf.mxu3 }
0x1c54   : > { %v6329_v26 = vpop.f32.mrf.mxu2  ;;  %v6366_v46 = vpop.f32.mrf.mxu0 }
0x1c55   : > { %v6333_v51 = vadd.f32 %v6329_v26, %v6314_v49 }
0x1c57   : > { %v6351_v30 = vadd.f32 %v6347_v43, %v6333_v51  ;;  %v13264_v51 = vld [vmem:[%s15982_s0] sm:$0xff] }
0x1c59   : > { %v6370_v54 = vadd.f32 %v6366_v46, %v6351_v30  ;;  %v13282_v30 = vld [vmem:[%s15983_s28 + $0x34] sm:$0xf0] }
0x1c5a   : > { %v6349_v50 = vpop.f32.mrf.mxu3 }
0x1c5c   : > { %v6331_v57 = vpop.f32.mrf.mxu2  ;;  %v6368_v52 = vpop.f32.mrf.mxu0 }
0x1c5d   : > { %v6462_v57 = vld [vmem:[%s15982_s0 + $0x24] sm:$0x3]  ;;  %v11477_v52 = vld [vmem:[%s15983_s28 + $0x30] sm:$0xf] }
0x1c62   : > { %v6403_v53 = vpop.f32.mrf.mxu3 }
0x1c64   : > { %v6384_v56 = vpop.f32.mrf.mxu2  ;;  %v6421_v62 = vpop.f32.mrf.mxu0 }
0x1c65   : > { %v6388_v2 = vadd.f32 %v6384_v56, %v6370_v54  ;;  %v13290_v54 = vld [vmem:[%s15983_s28 + $0x74] sm:$0xf0]  ;;  %v11478_v56 = vor.u32 %v13282_v30, %v11477_v52  ;;  %v13296_v52 = vld [vmem:[%s15983_s28 + $0xa4] sm:$0xf0] }
0x1c67   : > { %v6407_v60 = vadd.f32 %v6403_v53, %v6388_v2  ;;  %v11443_v53 = vld [vmem:[%s15983_s28 + $0x70] sm:$0xf]  ;;  %v13289_v2 = vld [vmem:[%s15983_s28 + $0x74] sm:$0xf] }
0x1c69   : > { %v6425_v0 = vadd.f32 %v6421_v62, %v6407_v60  ;;  %v11444_v62 = vor.u32 %v13290_v54, %v11443_v53  ;;  %v11445_v60 = vld [vmem:[%s15983_s28 + $0x78] sm:$0xf0]  ;;  %v13293_v53 = vld [vmem:[%s15983_s28 + $0x94] sm:$0xf] }
0x1c6a   : > { %v6405_v3 = vpop.f32.mrf.mxu3  ;;  %v11505_v54 = vld [vmem:[%s15983_s28 + $0x98] sm:$0xf0] }
0x1c6b   : > { %v6428_v1 = vadd.f32 %v6426_v37, %v6425_v0  ;;  %v11469_v37 = vld [vmem:[%s15983_s28 + $0x20] sm:$0xf]  ;;  %v11448_v0 = vor.u32 %v13289_v2, %v11445_v60  ;;  %v13280_v3 = vld [vmem:[%s15983_s28 + $0x24] sm:$0xf0]  ;;  %6665 = vmatpush.bf16.msrb.mxu0 %v11444_v62  ;;  %v11508_v62 = vor.u32 %v13293_v53, %v11505_v54  ;;  %v11589_v2 = vld [vmem:[%s15983_s28 + $0x118] sm:$0xf0] }
0x1c6c   : > { %v6386_v61 = vpop.f32.mrf.mxu2  ;;  %v6423_v4 = vpop.f32.mrf.mxu0  ;;  %v13277_v60 = vld [vmem:[%s15983_s28 + $0x14] sm:$0xf]  ;;  %v11547_v54 = vld [vmem:[%s15983_s28 + $0xd8] sm:$0xf0] }
0x1c6d   : > { %v6448_v55 = vadd.f32 %v6447_v29, %v6428_v1  ;;  %v11435_v1 = vld [vmem:[%s15983_s28 + $0x60] sm:$0xf]  ;;  %v13288_v61 = vld [vmem:[%s15983_s28 + $0x64] sm:$0xf0]  ;;  %v11470_v4 = vor.u32 %v13280_v3, %v11469_v37  ;;  %6678 = vmatpush.bf16.msrb.mxu1 %v11448_v0  ;;  %v11463_v37 = vld [vmem:[%s15983_s28 + $0x18] sm:$0xf0] }
0x1c6e   : > { %v11466_v3 = vor.u32 %v13277_v60, %v11463_v37  ;;  %v13301_v53 = vld [vmem:[%s15983_s28 + $0xd4] sm:$0xf]  ;;  %v13308_v60 = vld [vmem:[%s15983_s28 + $0x104] sm:$0xf0] }
0x1c6f   : > { %v6451_v59 = vmul.f32 0.70710677, %v6448_v55  ;;  %v11436_v55 = vor.u32 %v13288_v61, %v11435_v1  ;;  %v11503_v1 = vld [vmem:[%s15983_s28 + $0x90] sm:$0xf]  ;;  %v13294_v61 = vld [vmem:[%s15983_s28 + $0x94] sm:$0xf0] }
0x1c71   : > { %v6452_v7 = vadd.f32 %v6451_v59, %v14590_v45  ;;  %v13287_v59 = vld [vmem:[%s15983_s28 + $0x64] sm:$0xf]  ;;  %6666 = vmatpush.bf16.msrb.mxu0 %v11436_v55 }
0x1c72   : > { %v13291_v55 = vld [vmem:[%s15983_s28 + $0x84] sm:$0xf] }
0x1c73   : > { %v6495_v8 = vsel %vm3398_vm4, %v6452_v7, 0.0  ;;  %v6466_v10 = vpack.c.bf16 %v6452_v7, %v6452_v7 }
0x1c74   : > { %6496 = vadd.xlane.f32.xlu2 %v6495_v8  ;;  %v11461_v8 = vld [vmem:[%s15983_s28 + $0x10] sm:$0xf] }
0x1c75   : > { %v6471_v11 = vsel %vm3372_vm5, %v6466_v10, 0 }
0x1c76   : > { %6480 = vmatpush.bf16.msrb.mxu2 %v6471_v11  ;;  %v13278_v11 = vld [vmem:[%s15983_s28 + $0x14] sm:$0xf0] }
0x1c79   : > { %11397 = vmatmul.msk.bf16.vlgmr.msrb.gmra.mxu2 %vm3368_vm15, %v6462_v57 }
0x1c7a   : > { %6734 = vmatpush.bf16.msra.mxu2 %v11478_v56  ;;  %v13309_v56 = vld [vmem:[%s15983_s28 + $0x114] sm:$0xf] }
0x1c7b   : > { %v11592_v0 = vor.u32 %v13309_v56, %v11589_v2  ;;  %v11579_v2 = vld [vmem:[%s15983_s28 + $0x100] sm:$0xf] }
0x1c7e   : > { %6735 = vmatpush.bf16.msra.mxu2 %v11470_v4  ;;  %v11504_v4 = vor.u32 %v13294_v61, %v11503_v1  ;;  %v13300_v1 = vld [vmem:[%s15983_s28 + $0xc4] sm:$0xf0]  ;;  %v13299_v61 = vld [vmem:[%s15983_s28 + $0xc4] sm:$0xf] }
0x1ce7   : > { %v6497_v13 = vpop.xlane.xlu2 %6496 }
0x1ce8   : > { %v6498_v58 = vmul.f32 %v6497_v13, %v14503_v12  ;;  %v11427_v13 = vld [vmem:[%s15983_s28 + $0x50] sm:$0xf] }
0x1cea   : > { %v6499_v14 = vsub.f32 %v6452_v7, %v6498_v58  ;;  %v11437_v7 = vld [vmem:[%s15983_s28 + $0x68] sm:$0xf0]  ;;  %v13286_v58 = vld [vmem:[%s15983_s28 + $0x54] sm:$0xf0] }
0x1ceb   : > { %v11440_v10 = vor.u32 %v13287_v59, %v11437_v7  ;;  %v11497_v59 = vld [vmem:[%s15983_s28 + $0x88] sm:$0xf0]  ;;  %v13307_v7 = vld [vmem:[%s15983_s28 + $0x104] sm:$0xf] }
0x1cec   : > { %v6500_v5 = vmul.f32 %v6499_v14, %v6499_v14 }
0x1ced   : > { %6679 = vmatpush.bf16.msrb.mxu1 %v11440_v10  ;;  %v11581_v10 = vld [vmem:[%s15983_s28 + $0x108] sm:$0xf0] }
0x1cee   : > { %v6501_v6 = vsel %vm3398_vm4, %v6500_v5, 0.0  ;;  %v11429_v5 = vld [vmem:[%s15983_s28 + $0x58] sm:$0xf0] }
0x1cef   : > { %6502 = vadd.xlane.f32.xlu0 %v6501_v6  ;;  %v11462_v6 = vor.u32 %v13278_v11, %v11461_v8  ;;  %v11500_v8 = vor.u32 %v13291_v55, %v11497_v59  ;;  %v11584_v11 = vor.u32 %v13307_v7, %v11581_v10  ;;  %v11580_v55 = vor.u32 %v13308_v60, %v11579_v2  ;;  %v11687_v59 = vld [vmem:[%s15983_s28 + $0x1b0] sm:$0xf]  ;;  %v13330_v7 = vld [vmem:[%s15983_s28 + $0x1b4] sm:$0xf0]  ;;  %v11773_v10 = vld [vmem:[%s15983_s28 + $0x238] sm:$0xf0] }
0x1cf0   : > { %v11771_v2 = vld [vmem:[%s15983_s28 + $0x230] sm:$0xf]  ;;  %v13346_v60 = vld [vmem:[%s15983_s28 + $0x234] sm:$0xf0] }
0x1cf1   : > { %6736 = vmatpush.bf16.msra.mxu2 %v11462_v6  ;;  %v13292_v6 = vld [vmem:[%s15983_s28 + $0x84] sm:$0xf0] }
0x1d03   : > { %6541 = vperm.xlu0 %13749, %v6463_v47  }
0x1d0b   : > { %7390 = vperm.xlu0 %13749, %v6465_v16  }
0x1d62   : > { %v6503_v45 = vpop.xlane.xlu0 %6502 }
0x1d63   : > { %v6504_v15 = vmul.f32 0.015873017, %v6503_v45  ;;  %v13265_v45 = vld [vmem:[%s15982_s0 + $0x8] sm:$0xff] }
0x1d65   : > { %13798 = vrsqrt.f32 %v6504_v15  ;;  %vm6512_vm14 = vcmp.eq.f32.partialorder %v6504_v15, inf  ;;  %v6515_v12 = vand.u32 2147483648, %v6504_v15  ;;  %vm6514_vm12 = vcmp.eq.f32.partialorder %v6504_v15, 0.0 }
0x1d6b   : > { %v13799_v17 = vpop.eup %13798 }
0x1d6c   : > { %v6506_v18 = vmul.f32 %v13799_v17, %v6504_v15 }
0x1d6e   : > { %v6507_v34 = vmul.f32 %v13799_v17, %v6506_v18 }
0x1d70   : > { %v6508_v36 = vmul.f32 0.5, %v6507_v34  ;;  %v11453_v34 = vld [vmem:[%s15983_s28] sm:$0xf] }
0x1d72   : > { %v6509_v19 = vsub.f32 1.5, %v6508_v36  ;;  %v13276_v36 = vld [vmem:[%s15983_s28 + $0x4] sm:$0xf0] }
0x1d74   : > { %v6510_v21 = vmul.f32 %v13799_v17, %v6509_v19  ;;  %v11454_v19 = vor.u32 %v13276_v36, %v11453_v34  ;;  %v11681_v34 = vld [vmem:[%s15983_s28 + $0x1a8] sm:$0xf0] }
0x1d75   : > { %v6542_v38 = vpop.permute.xlu0 %6541 }
0x1d76   : > { %v6511_v22 = vmul.f32 %v6510_v21, %v6504_v15  ;;  %v6543_v42 = vrot.slane %v6542_v38, 4  ;;  %v11419_v21 = vld [vmem:[%s15983_s28 + $0x40] sm:$0xf]  ;;  %6737 = vmatpush.bf16.msra.mxu2 %v11454_v19  ;;  %v13325_v19 = vld [vmem:[%s15983_s28 + $0x194] sm:$0xf] }
0x1d78   : > { %v6513_v40 = vsel %vm6512_vm14, %v6504_v15, %v6511_v22  ;;  %v15036_v15 = vld [vmem:[%s15982_s0 + $0x10] sm:$0xff]   ;;  %v13284_v22 = vld [vmem:[%s15983_s28 + $0x44] sm:$0xf0] }
0x1d79   : > { %v6516_v41 = vsel %vm6514_vm12, %v6515_v12, %v6513_v40  ;;  %v13653_v17 = vunpack.c.l.b16 %v15036_v15  ;;  %v13283_v12 = vld [vmem:[%s15983_s28 + $0x44] sm:$0xf]  ;;  %v11420_v40 = vor.u32 %v13284_v22, %v11419_v21  ;;  %v11673_v21 = vld [vmem:[%s15983_s28 + $0x198] sm:$0xf0] }
0x1d7a   : > { %v6517_v23 = vadd.f32 1e-05, %v6516_v41  ;;  %v11421_v41 = vld [vmem:[%s15983_s28 + $0x48] sm:$0xf0]  ;;  %v11676_v22 = vor.u32 %v13325_v19, %v11673_v21  ;;  %v13343_v19 = vld [vmem:[%s15983_s28 + $0x224] sm:$0xf] }
0x1d7b   : > { %v6562_v18 = vpack.c.b16 %v13653_v17, %v13653_v17  ;;  %v11765_v21 = vld [vmem:[%s15983_s28 + $0x228] sm:$0xf0] }
0x1d7c   : > { %13800 = vrcp.f32 %v6517_v23  ;;  %v6529_v20 = vand.u32 2147483648, %v6517_v23  ;;  %v6527_v27 = vand.u32 2147483647, %v6517_v23  ;;  %vm6523_vm6 = vweird.f32 %v6517_v23 }
0x1d7e   : > { %v6530_v29 = vor.u32 1.1754944e-38, %v6529_v20  ;;  %vm6528_vm8 = vcmp.eq.f32.partialorder %v6527_v27, 8.507059e+37 }
0x1d82   : > { %v13801_v44 = vpop.eup %13800 }
0x1d83   : > { %v6519_v63 = vmul.f32 %v13801_v44, %v6517_v23  ;;  %vm6524_vm4 = vweird.f32 %v13801_v44  ;;  %v11424_v23 = vor.u32 %v13283_v12, %v11421_v41  ;;  %v13323_v12 = vld [vmem:[%s15983_s28 + $0x184] sm:$0xf]  ;;  %v11603_v41 = vld [vmem:[%s15983_s28 + $0x130] sm:$0xf] }
0x1d84   : > { %vm6525_vm7 = vmor %vm6523_vm6, %vm6524_vm4 }
0x1d85   : > { %v6520_v24 = vsub.f32 1.0, %v6519_v63  ;;  %v11521_v63 = vld [vmem:[%s15983_s28 + $0xb8] sm:$0xf0] }
0x1d87   : > { %v6521_v25 = vmul.f32 %v13801_v44, %v6520_v24  ;;  %v13313_v24 = vld [vmem:[%s15983_s28 + $0x134] sm:$0xf] }
0x1d89   : > { %v6522_v28 = vadd.f32 %v13801_v44, %v6521_v25  ;;  %v11605_v25 = vld [vmem:[%s15983_s28 + $0x138] sm:$0xf0] }
0x1d8a   : > { %v11608_v27 = vor.u32 %v13313_v24, %v11605_v25  ;;  %v13306_v24 = vld [vmem:[%s15983_s28 + $0xf4] sm:$0xf0]  ;;  %v11563_v25 = vld [vmem:[%s15983_s28 + $0xf8] sm:$0xf0] }
0x1d8b   : > { %v6526_v31 = vsel %vm6525_vm7, %v13801_v44, %v6522_v28  ;;  %v13297_v44 = vld [vmem:[%s15983_s28 + $0xb4] sm:$0xf] }
0x1d8c   : > { %v6531_v32 = vsel %vm6528_vm8, %v6530_v29, %v6526_v31  ;;  %v11524_v20 = vor.u32 %v13297_v44, %v11521_v63  ;;  %v13281_v28 = vld [vmem:[%s15983_s28 + $0x34] sm:$0xf]  ;;  %v11479_v29 = vld [vmem:[%s15983_s28 + $0x38] sm:$0xf0]  ;;  %v11519_v31 = vld [vmem:[%s15983_s28 + $0xb0] sm:$0xf] }
0x1d8d   : > { %v6532_v33 = vmul.f32 %v6531_v32, %v6463_v47  ;;  %v11428_v47 = vor.u32 %v13286_v58, %v11427_v13  ;;  %v11482_v32 = vor.u32 %v13281_v28, %v11479_v29  ;;  %v13275_v13 = vld [vmem:[%s15983_s28 + $0x4] sm:$0xf]  ;;  %v11455_v58 = vld [vmem:[%s15983_s28 + $0x8] sm:$0xf0]  ;;  %v11561_v44 = vld [vmem:[%s15983_s28 + $0xf0] sm:$0xf] }
0x1d8e   : > { %6826 = vmatpush.bf16.msrb.mxu2 %v11524_v20  ;;  %v13305_v20 = vld [vmem:[%s15983_s28 + $0xf4] sm:$0xf] }
0x1d8f   : > { %6535 = vperm.xlu1 %13747, %v6532_v33   ;;  %6667 = vmatpush.bf16.msrb.mxu0 %v11428_v47  ;;  %v13298_v33 = vld [vmem:[%s15983_s28 + $0xb4] sm:$0xf0] }
0x1d90   : > { %v11520_v38 = vor.u32 %v13298_v33, %v11519_v31  ;;  %v11595_v31 = vld [vmem:[%s15983_s28 + $0x120] sm:$0xf]  ;;  %v11562_v33 = vor.u32 %v13306_v24, %v11561_v44  ;;  %v11639_v44 = vld [vmem:[%s15983_s28 + $0x168] sm:$0xf0]  ;;  %v11671_v24 = vld [vmem:[%s15983_s28 + $0x190] sm:$0xf] }
0x1d93   : > { %6668 = vmatpush.bf16.msrb.mxu0 %v11420_v40  ;;  %v11665_v40 = vld [vmem:[%s15983_s28 + $0x188] sm:$0xf0] }
0x1d94   : > { %v11668_v63 = vor.u32 %v13323_v12, %v11665_v40  ;;  %v11637_v40 = vld [vmem:[%s15983_s28 + $0x160] sm:$0xf] }
0x1d97   : > { %7328 = vperm.xlu1 %13747, %v15007_v35   ;;  %6747 = vmatpush.bf16.msra.mxu0 %v11482_v32  ;;  %v13312_v32 = vld [vmem:[%s15983_s28 + $0x124] sm:$0xf0] }
0x1e01   : > { %v6536_v39 = vpop.permute.xlu1 %6535 }
0x1e02   : > { %v6538_v43 = vmul.f32 %v6536_v39, %v6499_v14  ;;  %v13285_v14 = vld [vmem:[%s15983_s28 + $0x54] sm:$0xf]  ;;  %v13295_v39 = vld [vmem:[%s15983_s28 + $0xa4] sm:$0xf] }
0x1e03   : > { %v11432_v16 = vor.u32 %v13285_v14, %v11429_v5  ;;  %v11495_v14 = vld [vmem:[%s15983_s28 + $0x80] sm:$0xf]  ;;  %v11458_v5 = vor.u32 %v13275_v13, %v11455_v58  ;;  %v11645_v58 = vld [vmem:[%s15983_s28 + $0x170] sm:$0xf] }
0x1e04   : > { %v6545_v26 = vadd.f32 %v6543_v42, %v6538_v43  ;;  %v11513_v42 = vld [vmem:[%s15983_s28 + $0xa8] sm:$0xf0]  ;;  %v13311_v43 = vld [vmem:[%s15983_s28 + $0x124] sm:$0xf]  ;;  %v11496_v47 = vor.u32 %v13292_v6, %v11495_v14  ;;  %v13322_v14 = vld [vmem:[%s15983_s28 + $0x174] sm:$0xf0] }
0x1e05   : > { %6680 = vmatpush.bf16.msrb.mxu1 %v11432_v16  ;;  %v13329_v16 = vld [vmem:[%s15983_s28 + $0x1b4] sm:$0xf]  ;;  %v11647_v6 = vld [vmem:[%s15983_s28 + $0x178] sm:$0xf0] }
0x1e06   : > { %vm6546_vm10 = vcmp.gt.f32.partialorder %v6545_v26, 0.0  ;;  %v6547_v46 = vmul.f32 0.2, %v6545_v26 }
0x1e08   : > { %v6548_v48 = vsel %vm6546_vm10, %v6545_v26, %v6547_v46  ;;  %v11516_v26 = vor.u32 %v13295_v39, %v11513_v42  ;;  %v11597_v46 = vld [vmem:[%s15983_s28 + $0x128] sm:$0xf0]  ;;  %v11553_v39 = vld [vmem:[%s15983_s28 + $0xe0] sm:$0xf]  ;;  %v13304_v42 = vld [vmem:[%s15983_s28 + $0xe4] sm:$0xf0] }
0x1e09   : > { %v6549_v49 = vpack.c.bf16 %v6548_v48, %v6548_v48  ;;  %6681 = vmatpush.bf16.msrb.mxu1 %v11424_v23  ;;  %v11600_v48 = vor.u32 %v13311_v43, %v11597_v46  ;;  %v13314_v23 = vld [vmem:[%s15983_s28 + $0x134] sm:$0xf0]  ;;  %v11555_v46 = vld [vmem:[%s15983_s28 + $0xe8] sm:$0xf0] }
0x1e0a   : > { %6827 = vmatpush.bf16.msrb.mxu2 %v11516_v26  ;;  %v11604_v28 = vor.u32 %v13314_v23, %v11603_v41  ;;  %v13303_v26 = vld [vmem:[%s15983_s28 + $0xe4] sm:$0xf]  ;;  %v13320_v41 = vld [vmem:[%s15983_s28 + $0x164] sm:$0xf0] }
0x1e0b   : > { %v6573_v50 = vsel %vm3372_vm5, %v6549_v49, 0  ;;  %v13279_v49 = vld [vmem:[%s15983_s28 + $0x24] sm:$0xf] }
0x1e0c   : > { %6582 = vmatpush.bf16.msrb.mxu3 %v6573_v50  ;;  %v11471_v50 = vld [vmem:[%s15983_s28 + $0x28] sm:$0xf0]  ;;  %v13319_v23 = vld [vmem:[%s15983_s28 + $0x164] sm:$0xf] }
0x1e0d   : > { %6813 = vmatpush.bf16.msra.mxu1 %v11520_v38  ;;  %v11474_v57 = vor.u32 %v13279_v49, %v11471_v50  ;;  %v11566_v38 = vor.u32 %v13305_v20, %v11563_v25  ;;  %v11587_v49 = vld [vmem:[%s15983_s28 + $0x110] sm:$0xf]  ;;  %v13310_v50 = vld [vmem:[%s15983_s28 + $0x114] sm:$0xf0]  ;;  %v11768_v20 = vor.u32 %v13343_v19, %v11765_v21 }
0x1e0e   : > { %6828 = vmatpush.bf16.msrb.mxu2 %v11508_v62  ;;  %v11588_v62 = vor.u32 %v13310_v50, %v11587_v49  ;;  %v13326_v25 = vld [vmem:[%s15983_s28 + $0x194] sm:$0xf0]  ;;  %v13339_v49 = vld [vmem:[%s15983_s28 + $0x204] sm:$0xf]  ;;  %v11749_v50 = vld [vmem:[%s15983_s28 + $0x208] sm:$0xf0] }
0x1e0f   : > { %11406 = vmatmul.msk.bf16.vlgmr.msrb.gmra.mxu3 %vm3368_vm15, %v13264_v51  ;;  %v11511_v51 = vld [vmem:[%s15983_s28 + $0xa0] sm:$0xf]  ;;  %6748 = vmatpush.bf16.msra.mxu0 %v11474_v57  ;;  %v11558_v57 = vor.u32 %v13303_v26, %v11555_v46  ;;  %v11713_v21 = vld [vmem:[%s15983_s28 + $0x1d0] sm:$0xf] }
0x1e10   : > { %6989 = vmatpush.bf16.msra.mxu3 %v11608_v27  ;;  %v11512_v30 = vor.u32 %v13296_v52, %v11511_v51  ;;  %v11554_v51 = vor.u32 %v13304_v42, %v11553_v39  ;;  %v11545_v52 = vld [vmem:[%s15983_s28 + $0xd0] sm:$0xf]  ;;  %v13317_v39 = vld [vmem:[%s15983_s28 + $0x154] sm:$0xf]  ;;  %v11663_v26 = vld [vmem:[%s15983_s28 + $0x180] sm:$0xf] }
0x1e12   : > { %6814 = vmatpush.bf16.msra.mxu1 %v11512_v30  ;;  %6829 = vmatpush.bf16.msrb.mxu2 %v11500_v8  ;;  %v13302_v30 = vld [vmem:[%s15983_s28 + $0xd4] sm:$0xf0]  ;;  %v13345_v8 = vld [vmem:[%s15983_s28 + $0x234] sm:$0xf] }
0x1e13   : > { %6749 = vmatpush.bf16.msra.mxu0 %v11466_v3  ;;  %v11546_v37 = vor.u32 %v13302_v30, %v11545_v52  ;;  %v11537_v3 = vld [vmem:[%s15983_s28 + $0xc0] sm:$0xf]  ;;  %v13316_v30 = vld [vmem:[%s15983_s28 + $0x144] sm:$0xf0] }
0x1e14   : > { %6990 = vmatpush.bf16.msra.mxu3 %v11600_v48  ;;  %v11596_v48 = vor.u32 %v13312_v32, %v11595_v31  ;;  %v11638_v31 = vor.u32 %v13320_v41, %v11637_v40  ;;  %v11642_v32 = vor.u32 %v13319_v23, %v11639_v44  ;;  %v11621_v52 = vld [vmem:[%s15983_s28 + $0x140] sm:$0xf]  ;;  %v11715_v40 = vld [vmem:[%s15983_s28 + $0x1d8] sm:$0xf0] }
0x1e15   : > { %v11747_v44 = vld [vmem:[%s15983_s28 + $0x200] sm:$0xf] }
0x1e16   : > { %6815 = vmatpush.bf16.msra.mxu1 %v11504_v4  ;;  %v11539_v4 = vld [vmem:[%s15983_s28 + $0xc8] sm:$0xf0] }
0x1e17   : > { %6750 = vmatpush.bf16.msra.mxu0 %v11458_v5  ;;  %v11542_v13 = vor.u32 %v13299_v61, %v11539_v4  ;;  %v13321_v5 = vld [vmem:[%s15983_s28 + $0x174] sm:$0xf]  ;;  %v13338_v61 = vld [vmem:[%s15983_s28 + $0x1f4] sm:$0xf0] }
0x1e18   : > { %6991 = vmatpush.bf16.msra.mxu3 %v11592_v0  ;;  %v11550_v0 = vor.u32 %v13301_v53, %v11547_v54  ;;  %v11650_v12 = vor.u32 %v13321_v5, %v11647_v6  ;;  %v13315_v53 = vld [vmem:[%s15983_s28 + $0x144] sm:$0xf]  ;;  %v11623_v54 = vld [vmem:[%s15983_s28 + $0x148] sm:$0xf0]  ;;  %v13337_v4 = vld [vmem:[%s15983_s28 + $0x1f4] sm:$0xf] }
0x1e19   : > { %v13336_v5 = vld [vmem:[%s15983_s28 + $0x1e4] sm:$0xf0]  ;;  %v13335_v6 = vld [vmem:[%s15983_s28 + $0x1e4] sm:$0xf] }
0x1e1a   : > { %6816 = vmatpush.bf16.msra.mxu1 %v11496_v47 }
0x1e1c   : > { %6992 = vmatpush.bf16.msra.mxu3 %v11584_v11  ;;  %v11538_v11 = vor.u32 %v13300_v1, %v11537_v3  ;;  %v11729_v3 = vld [vmem:[%s15983_s28 + $0x1f0] sm:$0xf] }
0x1e1f   : > { %11407 = vmatmul.msk.bf16.gmra.mxu3 %vm3368_vm15, %v13265_v45  ;;  %v11689_v45 = vld [vmem:[%s15983_s28 + $0x1b8] sm:$0xf0] }
0x1e20   : > { %v11692_v17 = vor.u32 %v13329_v16, %v11689_v45  ;;  %v11688_v16 = vor.u32 %v13330_v7, %v11687_v59  ;;  %v11679_v45 = vld [vmem:[%s15983_s28 + $0x1a0] sm:$0xf]  ;;  %v11772_v59 = vor.u32 %v13346_v60, %v11771_v2 }
0x1e22   : > { %7152 = vmatpush.bf16.msrb.mxu3 %v11692_v17  ;;  %v11776_v17 = vor.u32 %v13345_v8, %v11773_v10  ;;  %v11763_v8 = vld [vmem:[%s15983_s28 + $0x220] sm:$0xf]  ;;  %v13344_v10 = vld [vmem:[%s15983_s28 + $0x224] sm:$0xf0] }
0x1e2f   : > { %11408 = vmatmul.msk.bf16.gmra.mxu3 %vm3368_vm15, %v6562_v18  ;;  %v13327_v18 = vld [vmem:[%s15983_s28 + $0x1a4] sm:$0xf] }
0x1e30   : > { %v11684_v36 = vor.u32 %v13327_v18, %v11681_v34 }
0x1e32   : > { %7153 = vmatpush.bf16.msrb.mxu3 %v11684_v36  ;;  %v13328_v36 = vld [vmem:[%s15983_s28 + $0x1a4] sm:$0xf0] }
0x1e36   : > { %7154 = vmatpush.bf16.msrb.mxu3 %v11676_v22  ;;  %v11646_v22 = vor.u32 %v13322_v14, %v11645_v58  ;;  %v11721_v14 = vld [vmem:[%s15983_s28 + $0x1e0] sm:$0xf] }
0x1e3a   : > { %7155 = vmatpush.bf16.msrb.mxu3 %v11668_v63  ;;  %v11680_v63 = vor.u32 %v13328_v36, %v11679_v45  ;;  %v11755_v45 = vld [vmem:[%s15983_s28 + $0x210] sm:$0xf]  ;;  %v11722_v36 = vor.u32 %v13336_v5, %v11721_v14 }
0x1e92   : > { %v6584_v27 = vpop.f32.mrf.mxu3 }
0x1e93   : > { %v15092_v29 = vpack.c.bf16 %v6584_v27, %v6584_v27  ;;  %v13341_v27 = vld [vmem:[%s15983_s28 + $0x214] sm:$0xf] }
0x1e95   : > { %v6617_v43 = vrot.slane %v15092_v29, 2  ;;  %11483 = vmatmul.msk.bf16.vlgmr.msra.gmra.mxu2 %vm2658_vm11, %v15092_v29 }
0x1e96   : > { %6976 = vmatpush.bf16.msra.mxu2 %v11604_v28  ;;  %v11757_v28 = vld [vmem:[%s15983_s28 + $0x218] sm:$0xf0] }
0x1e97   : > { %11449 = vmatmul.msk.bf16.vlgmr.msrb.gmra.mxu0 %vm2658_vm11, %v6617_v43  ;;  %11450 = vmatmul.msk.bf16.vlgmr.msrb.gmra.mxu1 %vm2658_vm11, %v6617_v43  ;;  %v11672_v43 = vor.u32 %v13326_v25, %v11671_v24  ;;  %v11760_v46 = vor.u32 %v13341_v27, %v11757_v28  ;;  %v11705_v25 = vld [vmem:[%s15983_s28 + $0x1c0] sm:$0xf]  ;;  %v13332_v27 = vld [vmem:[%s15983_s28 + $0x1c4] sm:$0xf0]  ;;  %v13331_v28 = vld [vmem:[%s15983_s28 + $0x1c4] sm:$0xf] }
0x1e98   : > { %6895 = vmatpush.bf16.msrb.mxu0 %v11562_v33  ;;  %6908 = vmatpush.bf16.msrb.mxu1 %v11566_v38  ;;  %v11629_v33 = vld [vmem:[%s15983_s28 + $0x150] sm:$0xf]  ;;  %v13318_v38 = vld [vmem:[%s15983_s28 + $0x154] sm:$0xf0] }
0x1e9a   : > { %v6586_v56 = vpop.f32.mrf.mxu3  ;;  %6977 = vmatpush.bf16.msra.mxu2 %v11596_v48  ;;  %v13324_v48 = vld [vmem:[%s15983_s28 + $0x184] sm:$0xf0] }
0x1e9b   : > { %v15126_v18 = vpack.c.bf16 %v6586_v56, %v6586_v56  ;;  %v11664_v56 = vor.u32 %v13324_v48, %v11663_v26 }
0x1e9c   : > { %6896 = vmatpush.bf16.msrb.mxu0 %v11554_v51  ;;  %6909 = vmatpush.bf16.msrb.mxu1 %v11558_v57  ;;  %v11630_v51 = vor.u32 %v13318_v38, %v11629_v33  ;;  %v11706_v38 = vor.u32 %v13332_v27, %v11705_v25 }
0x1e9e   : > { %6978 = vmatpush.bf16.msra.mxu2 %v11588_v62  ;;  %v11752_v62 = vor.u32 %v13339_v49, %v11749_v50 }
0x1ea0   : > { %6897 = vmatpush.bf16.msrb.mxu0 %v11546_v37  ;;  %6910 = vmatpush.bf16.msrb.mxu1 %v11550_v0  ;;  %v11622_v37 = vor.u32 %v13316_v30, %v11621_v52  ;;  %v11626_v0 = vor.u32 %v13315_v53, %v11623_v54 }
0x1ea2   : > { %v6589_v47 = vpop.f32.mrf.mxu3  ;;  %6979 = vmatpush.bf16.msra.mxu2 %v11580_v55  ;;  %v11731_v55 = vld [vmem:[%s15983_s28 + $0x1f8] sm:$0xf0] }
0x1ea3   : > { %v15128_v34 = vpack.c.bf16 %v6589_v47, %v6589_v47  ;;  %v11734_v58 = vor.u32 %v13337_v4, %v11731_v55  ;;  %v11723_v47 = vld [vmem:[%s15983_s28 + $0x1e8] sm:$0xf0] }
0x1ea4   : > { %6898 = vmatpush.bf16.msrb.mxu0 %v11538_v11  ;;  %6911 = vmatpush.bf16.msrb.mxu1 %v11542_v13  ;;  %v6847_v11 = vrot.slane %v15126_v18, 2  ;;  %v11730_v13 = vor.u32 %v13338_v61, %v11729_v3  ;;  %v11726_v19 = vor.u32 %v13335_v6, %v11723_v47 }
0x1ea5   : > { %11526 = vmatmul.msk.bf16.vlgmr.msrb.gmra.mxu2 %vm2658_vm11, %v15126_v18  ;;  %11610 = vmatmul.msk.bf16.vlgmr.msra.gmra.mxu3 %vm2658_vm11, %v15128_v34 }
0x1ea6   : > { %7139 = vmatpush.bf16.msrb.mxu2 %v11688_v16  ;;  %7315 = vmatpush.bf16.msra.mxu3 %v11776_v17  ;;  %v11764_v16 = vor.u32 %v13344_v10, %v11763_v8  ;;  %v13342_v17 = vld [vmem:[%s15983_s28 + $0x214] sm:$0xf0] }
0x1ea7   : > { %11484 = vmatmul.msk.bf16.vlgmr.msra.gmra.mxu0 %vm2658_vm11, %v15092_v29  ;;  %11525 = vmatmul.msk.bf16.vlgmr.msra.gmra.mxu1 %vm2658_vm11, %v15126_v18  ;;  %v11631_v29 = vld [vmem:[%s15983_s28 + $0x158] sm:$0xf0]  ;;  %v15184_v18 = vpop.f32.mrf.mxu2  ;;  %v11756_v41 = vor.u32 %v13342_v17, %v11755_v45 }
0x1ea8   : > { %7058 = vmatpush.bf16.msra.mxu0 %v11646_v22  ;;  %7071 = vmatpush.bf16.msra.mxu1 %v11650_v12  ;;  %v11634_v57 = vor.u32 %v13317_v39, %v11631_v29  ;;  %v13334_v22 = vld [vmem:[%s15983_s28 + $0x1d4] sm:$0xf0]  ;;  %v13333_v12 = vld [vmem:[%s15983_s28 + $0x1d4] sm:$0xf] }
0x1ea9   : > { %v11714_v24 = vor.u32 %v13334_v22, %v11713_v21 }
0x1eaa   : > { %v6591_v42 = vpop.f32.mrf.mxu3  ;;  %7140 = vmatpush.bf16.msrb.mxu2 %v11680_v63  ;;  %7316 = vmatpush.bf16.msra.mxu3 %v11768_v20  ;;  %v13340_v63 = vld [vmem:[%s15983_s28 + $0x204] sm:$0xf0]  ;;  %v11718_v20 = vor.u32 %v13333_v12, %v11715_v40 }
0x1eab   : > { %v15164_v1 = vpack.c.bf16 %v6591_v42, %v6591_v42  ;;  %v7010_v42 = vrot.slane %v15128_v34, 2 }
0x1eac   : > { %7059 = vmatpush.bf16.msra.mxu0 %v11638_v31  ;;  %7072 = vmatpush.bf16.msra.mxu1 %v11642_v32  ;;  %v11707_v31 = vld [vmem:[%s15983_s28 + $0x1c8] sm:$0xf0]  ;;  %v11748_v32 = vor.u32 %v13340_v63, %v11747_v44 }
0x1ead   : > { %v11710_v39 = vor.u32 %v13331_v28, %v11707_v31 }
0x1eae   : > { %7141 = vmatpush.bf16.msrb.mxu2 %v11672_v43  ;;  %7317 = vmatpush.bf16.msra.mxu3 %v11760_v46  ;;  %v7173_v43 = vrot.slane %v15164_v1, 2 }
0x1eaf   : > { %v6484_v33 = vpop.f32.mrf.mxu2 }
0x1eb0   : > { %7060 = vmatpush.bf16.msra.mxu0 %v11630_v51  ;;  %7073 = vmatpush.bf16.msra.mxu1 %v11634_v57 }
0x1eb2   : > { %7142 = vmatpush.bf16.msrb.mxu2 %v11664_v56  ;;  %v6594_v7 = vpop.f32.mrf.mxu3  ;;  %7318 = vmatpush.bf16.msra.mxu3 %v11752_v62 }
0x1eb3   : > { %v7245_v29 = vpack.c.bf16 %v6594_v7, %v6594_v7 }
0x1eb4   : > { %7061 = vmatpush.bf16.msra.mxu0 %v11622_v37  ;;  %7074 = vmatpush.bf16.msra.mxu1 %v11626_v0 }
0x1eb5   : > { %11609 = vmatmul.msk.bf16.vlgmr.msra.gmra.mxu2 %vm2658_vm11, %v15128_v34  ;;  %11694 = vmatmul.msk.bf16.vlgmr.msrb.gmra.mxu3 %vm2658_vm11, %v15164_v1 }
0x1eb6   : > { %7302 = vmatpush.bf16.msra.mxu2 %v11772_v59 }
0x1eb7   : > { %11567 = vmatmul.msk.bf16.vlgmr.msrb.gmra.mxu0 %vm2658_vm11, %v6847_v11  ;;  %11568 = vmatmul.msk.bf16.vlgmr.msrb.gmra.mxu1 %vm2658_vm11, %v6847_v11 }
0x1eb8   : > { %7221 = vmatpush.bf16.msrb.mxu0 %v11730_v13  ;;  %7234 = vmatpush.bf16.msrb.mxu1 %v11734_v58 }
0x1eba   : > { %7303 = vmatpush.bf16.msra.mxu2 %v11764_v16  ;;  %v6596_v23 = vpop.f32.mrf.mxu3 }
0x1ebc   : > { %7222 = vmatpush.bf16.msrb.mxu0 %v11722_v36  ;;  %7235 = vmatpush.bf16.msrb.mxu1 %v11726_v19 }
0x1ebe   : > { %7304 = vmatpush.bf16.msra.mxu2 %v11756_v41 }
0x1ec0   : > { %7223 = vmatpush.bf16.msrb.mxu0 %v11714_v24  ;;  %7236 = vmatpush.bf16.msrb.mxu1 %v11718_v20  ;;  %v7329_v24 = vpop.permute.xlu1 %7328 }
0x1ec2   : > { %7305 = vmatpush.bf16.msra.mxu2 %v11748_v32 }
0x1ec4   : > { %7224 = vmatpush.bf16.msrb.mxu0 %v11706_v38  ;;  %7237 = vmatpush.bf16.msrb.mxu1 %v11710_v39 }
0x1ec5   : > { %11693 = vmatmul.msk.bf16.vlgmr.msrb.gmra.mxu2 %vm2658_vm11, %v15164_v1  ;;  %11778 = vmatmul.msk.bf16.vlgmr.msra.gmra.mxu3 %vm2658_vm11, %v7245_v29 }
0x1ec7   : > { %11651 = vmatmul.msk.bf16.vlgmr.msra.gmra.mxu0 %vm2658_vm11, %v7010_v42  ;;  %11652 = vmatmul.msk.bf16.vlgmr.msra.gmra.mxu1 %vm2658_vm11, %v7010_v42 }
0x1ed5   : > { %11777 = vmatmul.msk.bf16.vlgmr.msra.gmra.mxu2 %vm2658_vm11, %v7245_v29 }
0x1ed7   : > { %11735 = vmatmul.msk.bf16.vlgmr.msrb.gmra.mxu0 %vm2658_vm11, %v7173_v43  ;;  %11736 = vmatmul.msk.bf16.vlgmr.msrb.gmra.mxu1 %vm2658_vm11, %v7173_v43 }
0x1f14   : > { %v6670_v26 = vpop.f32.mrf.mxu0  ;;  %v6683_v46 = vpop.f32.mrf.mxu1 }
0x1f18   : > { %v6739_v34 = vpop.f32.mrf.mxu2 }
0x1f19   : > { %v6740_v58 = vadd.f32 %v6739_v34, %v6670_v26 }
0x1f1c   : > { %v6672_v48 = vpop.f32.mrf.mxu0  ;;  %v6685_v49 = vpop.f32.mrf.mxu1 }
0x1f20   : > { %v6741_v50 = vpop.f32.mrf.mxu2 }
0x1f24   : > { %v6752_v51 = vpop.f32.mrf.mxu0  ;;  %v6818_v57 = vpop.f32.mrf.mxu1 }
0x1f25   : > { %v6753_v7 = vadd.f32 %v6752_v51, %v6683_v46  ;;  %v6835_v6 = vadd.f32 %v6818_v57, %v6740_v58 }
0x1f28   : > { %v6831_v52 = vpop.f32.mrf.mxu2  ;;  %v6994_v30 = vpop.f32.mrf.mxu3 }
0x1f29   : > { %v6836_v8 = vadd.f32 %v6831_v52, %v6753_v7 }
0x1f2c   : > { %v6754_v53 = vpop.f32.mrf.mxu0  ;;  %v6820_v54 = vpop.f32.mrf.mxu1 }
0x1f30   : > { %v6833_v56 = vpop.f32.mrf.mxu2  ;;  %v6996_v62 = vpop.f32.mrf.mxu3 }
0x1f34   : > { %v6900_v2 = vpop.f32.mrf.mxu0  ;;  %v6913_v60 = vpop.f32.mrf.mxu1 }
0x1f35   : > { %v6918_v13 = vadd.f32 %v6913_v60, %v6836_v8  ;;  %v6917_v16 = vadd.f32 %v6900_v2, %v6835_v6  ;;  %v11847_v6 = vld [vmem:[%s15984_s11 + $0x70] sm:$0xf] }
0x1f37   : > { %v6999_v47 = vadd.f32 %v6994_v30, %v6918_v13 }
0x1f38   : > { %v6981_v37 = vpop.f32.mrf.mxu2  ;;  %v7157_v0 = vpop.f32.mrf.mxu3 }
0x1f39   : > { %v6998_v19 = vadd.f32 %v6981_v37, %v6917_v16  ;;  %v11911_v16 = vld [vmem:[%s15984_s11 + $0xf0] sm:$0xf] }
0x1f3c   : > { %v6902_v3 = vpop.f32.mrf.mxu0  ;;  %v6915_v1 = vpop.f32.mrf.mxu1 }
0x1f40   : > { %v6983_v61 = vpop.f32.mrf.mxu2  ;;  %v7159_v4 = vpop.f32.mrf.mxu3 }
0x1f44   : > { %v7063_v55 = vpop.f32.mrf.mxu0  ;;  %v7076_v59 = vpop.f32.mrf.mxu1 }
0x1f45   : > { %v7081_v45 = vadd.f32 %v7076_v59, %v6999_v47  ;;  %v7080_v21 = vadd.f32 %v7063_v55, %v6998_v19  ;;  %v13362_v47 = vld [vmem:[%s15984_s11 + $0x74] sm:$0xf0] }
0x1f47   : > { %v7162_v22 = vadd.f32 %v7157_v0, %v7081_v45 }
0x1f48   : > { %v7144_v10 = vpop.f32.mrf.mxu2  ;;  %v7320_v11 = vpop.f32.mrf.mxu3 }
0x1f49   : > { %v7161_v41 = vadd.f32 %v7144_v10, %v7080_v21 }
0x1f4c   : > { %v7065_v14 = vpop.f32.mrf.mxu0  ;;  %v7078_v5 = vpop.f32.mrf.mxu1 }
0x1f50   : > { %v7146_v17 = vpop.f32.mrf.mxu2  ;;  %v7322_v36 = vpop.f32.mrf.mxu3 }
0x1f51   : > { %v11848_v17 = vor.u32 %v13362_v47, %v11847_v6  ;;  %v13378_v36 = vld [vmem:[%s15984_s11 + $0xf4] sm:$0xf0]  ;;  %v11807_v47 = vld [vmem:[%s15984_s11 + $0x20] sm:$0xf] }
0x1f52   : > { %v11912_v19 = vor.u32 %v13378_v36, %v11911_v16  ;;  %v13352_v16 = vld [vmem:[%s15984_s11 + $0x24] sm:$0xf0] }
0x1f53   : > { %9252 = vmatpush.bf16.msrb.mxu2 %v11848_v17 }
0x1f54   : > { %v7226_v12 = vpop.f32.mrf.mxu0  ;;  %v7239_v40 = vpop.f32.mrf.mxu1  ;;  %9265 = vmatpush.bf16.msrb.mxu3 %v11912_v19 }
0x1f55   : > { %v7244_v23 = vadd.f32 %v7239_v40, %v7162_v22  ;;  %v7243_v44 = vadd.f32 %v7226_v12, %v7161_v41  ;;  %v13360_v12 = vld [vmem:[%s15984_s11 + $0x64] sm:$0xf0]  ;;  %v11903_v40 = vld [vmem:[%s15984_s11 + $0xe0] sm:$0xf]  ;;  %v15219_v41 = vpop.permute.xlu0 %7390 }
0x1f57   : > { %v7325_v63 = vadd.f32 %v7320_v11, %v7244_v23  ;;  %v15222_v23 = vld [vmem:[%s15982_s0 + $0x18] sm:$0xff] }
0x1f58   : > { %v7307_v20 = vpop.f32.mrf.mxu2 }
0x1f59   : > { %v7324_v25 = vadd.f32 %v7307_v20, %v7243_v44  ;;  %v7332_v27 = vadd.f32 %v7329_v24, %v7325_v63  ;;  %v13376_v63 = vld [vmem:[%s15984_s11 + $0xe4] sm:$0xf0] }
0x1f5b   : > { %v7331_v28 = vadd.f32 %v7329_v24, %v7324_v25  ;;  %v7334_v38 = vsel %vm1003_vm9, %v7332_v27, 0.0  ;;  %v11975_v25 = vld [vmem:[%s15984_s11 + $0x170] sm:$0xf] }
0x1f5c   : > { %v7228_v31 = vpop.f32.mrf.mxu0  ;;  %v7241_v32 = vpop.f32.mrf.mxu1 }
0x1f5d   : > { %v7333_v33 = vsel %vm1003_vm9, %v7331_v28, 0.0  ;;  %v13410_v31 = vld [vmem:[%s15984_s11 + $0x1f4] sm:$0xf0]  ;;  %v11904_v32 = vor.u32 %v13376_v63, %v11903_v40  ;;  %v12015_v40 = vld [vmem:[%s15984_s11 + $0x1c0] sm:$0xf]  ;;  %v11808_v63 = vor.u32 %v13352_v16, %v11807_v47 }
0x1f5e   : > { %v7335_v39 = vadd.f32 %v7334_v38, %v7333_v33  ;;  %v11831_v33 = vld [vmem:[%s15984_s11 + $0x50] sm:$0xf]  ;;  %v13358_v38 = vld [vmem:[%s15984_s11 + $0x54] sm:$0xf0] }
0x1f5f   : > { %9266 = vmatpush.bf16.msrb.mxu3 %v11904_v32  ;;  %v11943_v32 = vld [vmem:[%s15984_s11 + $0x130] sm:$0xf]  ;;  %v13422_v16 = vld [vmem:[%s15984_s11 + $0x254] sm:$0xf0] }
0x1f60   : > { %v7309_v29 = vpop.f32.mrf.mxu2  ;;  %7336 = vadd.xlane.f32.xlu1 %v7335_v39  ;;  %v11895_v39 = vld [vmem:[%s15984_s11 + $0xd0] sm:$0xf] }
0x1f61   : > { %v13374_v29 = vld [vmem:[%s15984_s11 + $0xd4] sm:$0xf0]  ;;  %v12087_v47 = vld [vmem:[%s15984_s11 + $0x250] sm:$0xf] }
0x1fd3   : > { %v7337_v42 = vpop.xlane.xlu1 %7336 }
0x1fd4   : > { %v7338_v43 = vmul.f32 %v7337_v42, %v14301_v9 }
0x1fd6   : > { %v7339_v26 = vsub.f32 %v7331_v28, %v7338_v43  ;;  %v7340_v46 = vsub.f32 %v7332_v27, %v7338_v43  ;;  %v13394_v27 = vld [vmem:[%s15984_s11 + $0x174] sm:$0xf0]  ;;  %v12039_v28 = vld [vmem:[%s15984_s11 + $0x1f0] sm:$0xf] }
0x1fd8   : > { %v7341_v34 = vmul.f32 %v7339_v26, %v7339_v26  ;;  %v7342_v48 = vmul.f32 %v7340_v46, %v7340_v46 }
0x1fda   : > { %v7343_v49 = vsel %vm1003_vm9, %v7341_v34, 0.0  ;;  %v7344_v50 = vsel %vm1003_vm9, %v7342_v48, 0.0  ;;  %v7414_v34 = vrot.slane %v15036_v15, 2 }
0x1fdb   : > { %v7345_v51 = vadd.f32 %v7344_v50, %v7343_v49  ;;  %v7415_v50 = vrot.slane %v15222_v23, 2 }
0x1fdd   : > { %7346 = vadd.xlane.f32.xlu2 %v7345_v51  ;;  %v11823_v51 = vld [vmem:[%s15984_s11 + $0x40] sm:$0xf] }
0x2050   : > { %v7347_v57 = vpop.xlane.xlu2 %7346 }
0x2051   : > { %v7348_v52 = vmul.f32 0.003921569, %v7347_v57  ;;  %v13356_v57 = vld [vmem:[%s15984_s11 + $0x44] sm:$0xf0] }
0x2052   : > { %v11824_v15 = vor.u32 %v13356_v57, %v11823_v51  ;;  %v11855_v51 = vld [vmem:[%s15984_s11 + $0x80] sm:$0xf] }
0x2053   : > { %13802 = vrsqrt.f32 %v7348_v52  ;;  %vm7356_vm1 = vcmp.eq.f32.partialorder %v7348_v52, inf  ;;  %v7359_v60 = vand.u32 2147483648, %v7348_v52  ;;  %vm7358_vm0 = vcmp.eq.f32.partialorder %v7348_v52, 0.0 }
0x2059   : > { %v13803_v30 = vpop.eup %13802 }
0x205a   : > { %v7350_v53 = vmul.f32 %v13803_v30, %v7348_v52 }
0x205c   : > { %v7351_v54 = vmul.f32 %v13803_v30, %v7350_v53  ;;  %v11976_v53 = vor.u32 %v13394_v27, %v11975_v25 }
0x205e   : > { %v7352_v56 = vmul.f32 0.5, %v7351_v54  ;;  %v12040_v54 = vor.u32 %v13410_v31, %v12039_v28 }
0x2060   : > { %v7353_v62 = vsub.f32 1.5, %v7352_v56  ;;  %v11967_v56 = vld [vmem:[%s15984_s11 + $0x160] sm:$0xf] }
0x2062   : > { %v7354_v2 = vmul.f32 %v13803_v30, %v7353_v62  ;;  %v11887_v62 = vld [vmem:[%s15984_s11 + $0xc0] sm:$0xf] }
0x2064   : > { %v7355_v9 = vmul.f32 %v7354_v2, %v7348_v52  ;;  %v13372_v2 = vld [vmem:[%s15984_s11 + $0xc4] sm:$0xf0] }
0x2066   : > { %v7357_v37 = vsel %vm7356_vm1, %v7348_v52, %v7355_v9  ;;  %v13392_v9 = vld [vmem:[%s15984_s11 + $0x164] sm:$0xf0] }
0x2067   : > { %v7360_v0 = vsel %vm7358_vm0, %v7359_v60, %v7357_v37  ;;  %v12031_v60 = vld [vmem:[%s15984_s11 + $0x1e0] sm:$0xf]  ;;  %v13408_v37 = vld [vmem:[%s15984_s11 + $0x1e4] sm:$0xf0] }
0x2068   : > { %v7361_v3 = vadd.f32 1e-05, %v7360_v0 }
0x206a   : > { %v7363_v1 = vrot.slane %v7361_v3, 4 }
0x206c   : > { %13804 = vrcp.f32 %v7363_v1  ;;  %v7376_v59 = vand.u32 2147483648, %v7363_v1  ;;  %v7374_v8 = vand.u32 2147483647, %v7363_v1  ;;  %vm7370_vm3 = vweird.f32 %v7363_v1 }
0x206e   : > { %v7377_v11 = vor.u32 1.1754944e-38, %v7376_v59  ;;  %vm7375_vm12 = vcmp.eq.f32.partialorder %v7374_v8, 8.507059e+37  ;;  %v11888_v59 = vor.u32 %v13372_v2, %v11887_v62  ;;  %v12032_v8 = vor.u32 %v13408_v37, %v12031_v60  ;;  %v11999_v62 = vld [vmem:[%s15984_s11 + $0x1a0] sm:$0xf]  ;;  %v13400_v2 = vld [vmem:[%s15984_s11 + $0x1a4] sm:$0xf0] }
0x206f   : > { %v12167_v60 = vld [vmem:[%s15984_s11 + $0x2f0] sm:$0xf]  ;;  %v13442_v37 = vld [vmem:[%s15984_s11 + $0x2f4] sm:$0xf0] }
0x2070   : > { %v12168_v23 = vor.u32 %v13442_v37, %v12167_v60 }
0x2072   : > { %v13805_v61 = vpop.eup %13804 }
0x2073   : > { %v7366_v4 = vmul.f32 %v13805_v61, %v7363_v1  ;;  %vm7371_vm2 = vweird.f32 %v13805_v61  ;;  %v11815_v1 = vld [vmem:[%s15984_s11 + $0x30] sm:$0xf] }
0x2074   : > { %vm7372_vm14 = vmor %vm7370_vm3, %vm7371_vm2 }
0x2075   : > { %v7367_v55 = vsub.f32 1.0, %v7366_v4  ;;  %v7416_v4 = vsel %vm4045_vm13, %v7414_v34, %v7415_v50 }
0x2077   : > { %v7368_v7 = vmul.f32 %v13805_v61, %v7367_v55  ;;  %v6461_v55 = vld [vmem:[%s15982_s0 + $0x20] sm:$0xf] }
0x2079   : > { %v7369_v10 = vadd.f32 %v13805_v61, %v7368_v7  ;;  %v11968_v7 = vor.u32 %v13392_v9, %v11967_v56  ;;  %v13384_v56 = vld [vmem:[%s15984_s11 + $0x124] sm:$0xf0] }
0x207b   : > { %v7373_v13 = vsel %vm7372_vm14, %v13805_v61, %v7369_v10  ;;  %v13354_v61 = vld [vmem:[%s15984_s11 + $0x34] sm:$0xf0]  ;;  %v11959_v10 = vld [vmem:[%s15984_s11 + $0x150] sm:$0xf] }
0x207c   : > { %v7378_v58 = vsel %vm7375_vm12, %v7377_v11, %v7373_v13  ;;  %v11879_v11 = vld [vmem:[%s15984_s11 + $0xb0] sm:$0xf]  ;;  %v13370_v13 = vld [vmem:[%s15984_s11 + $0xb4] sm:$0xf0]  ;;  %v11816_v6 = vor.u32 %v13354_v61, %v11815_v1  ;;  %v12000_v61 = vor.u32 %v13400_v2, %v11999_v62  ;;  %v12063_v2 = vld [vmem:[%s15984_s11 + $0x220] sm:$0xf] }
0x207d   : > { %v7379_v14 = vmul.f32 %v7378_v58, %v15007_v35  ;;  %v11839_v35 = vld [vmem:[%s15984_s11 + $0x60] sm:$0xf]  ;;  %v13390_v58 = vld [vmem:[%s15984_s11 + $0x154] sm:$0xf0]  ;;  %v11880_v17 = vor.u32 %v13370_v13, %v11879_v11  ;;  %v13440_v11 = vld [vmem:[%s15984_s11 + $0x2e4] sm:$0xf0] }
0x207e   : > { %v11840_v44 = vor.u32 %v13360_v12, %v11839_v35  ;;  %v11960_v36 = vor.u32 %v13390_v58, %v11959_v10  ;;  %v13368_v35 = vld [vmem:[%s15984_s11 + $0xa4] sm:$0xf0]  ;;  %v13398_v10 = vld [vmem:[%s15984_s11 + $0x194] sm:$0xf0]  ;;  %v11919_v13 = vld [vmem:[%s15984_s11 + $0x100] sm:$0xf] }
0x207f   : > { %7382 = vperm.xlu2 %13748, %v7379_v14   ;;  %v12023_v14 = vld [vmem:[%s15984_s11 + $0x1d0] sm:$0xf]  ;;  %v13388_v12 = vld [vmem:[%s15984_s11 + $0x144] sm:$0xf0]  ;;  %v13434_v62 = vld [vmem:[%s15984_s11 + $0x2b4] sm:$0xf0] }
0x2080   : > { %9253 = vmatpush.bf16.msrb.mxu2 %v11840_v44  ;;  %v13404_v44 = vld [vmem:[%s15984_s11 + $0x1c4] sm:$0xf0] }
0x2081   : > { %v12016_v31 = vor.u32 %v13404_v44, %v12015_v40  ;;  %v12151_v40 = vld [vmem:[%s15984_s11 + $0x2d0] sm:$0xf]  ;;  %v13438_v44 = vld [vmem:[%s15984_s11 + $0x2d4] sm:$0xf0] }
0x20d9   : > { %v7383_v5 = vpop.permute.xlu2 %7382 }
0x20da   : > { %v7384_v45 = vrot.slane %v7383_v5, 4  ;;  %v13406_v5 = vld [vmem:[%s15984_s11 + $0x1d4] sm:$0xf0] }
0x20db   : > { %v12024_v19 = vor.u32 %v13406_v5, %v12023_v14 }
0x20dc   : > { %v7386_v21 = vmul.f32 %v7384_v45, %v7339_v26  ;;  %v7387_v22 = vmul.f32 %v7384_v45, %v7340_v46  ;;  %v11832_v26 = vor.u32 %v13358_v38, %v11831_v33  ;;  %v11896_v46 = vor.u32 %v13374_v29, %v11895_v39  ;;  %v11863_v33 = vld [vmem:[%s15984_s11 + $0x90] sm:$0xf]  ;;  %v13366_v38 = vld [vmem:[%s15984_s11 + $0x94] sm:$0xf0] }
0x20dd   : > { %v7410_v45 = vunpack.c.l.b16 %v6461_v55  ;;  %v13386_v39 = vld [vmem:[%s15984_s11 + $0x134] sm:$0xf0]  ;;  %v12007_v29 = vld [vmem:[%s15984_s11 + $0x1b0] sm:$0xf]  ;;  %v12095_v55 = vld [vmem:[%s15984_s11 + $0x260] sm:$0xf] }
0x20de   : > { %v7393_v24 = vadd.f32 %v15219_v41, %v7386_v21  ;;  %v7394_v20 = vadd.f32 %v15219_v41, %v7387_v22  ;;  %9254 = vmatpush.bf16.msrb.mxu2 %v11832_v26  ;;  %9267 = vmatpush.bf16.msrb.mxu3 %v11896_v46  ;;  %v11951_v21 = vld [vmem:[%s15984_s11 + $0x140] sm:$0xf]  ;;  %v13348_v46 = vld [vmem:[%s15984_s11 + $0x4] sm:$0xf0]  ;;  %v11944_v57 = vor.u32 %v13386_v39, %v11943_v32 }
0x20df   : > { %v11871_v22 = vld [vmem:[%s15984_s11 + $0xa0] sm:$0xf]  ;;  %v7413_v25 = vpack.c.b16 %v7410_v45, %v7410_v45  ;;  %v11952_v28 = vor.u32 %v13388_v12, %v11951_v21  ;;  %v13458_v21 = vld [vmem:[%s15984_s11 + $0x374] sm:$0xf0]  ;;  %v12088_v12 = vor.u32 %v13422_v16, %v12087_v47  ;;  %v13456_v32 = vld [vmem:[%s15984_s11 + $0x364] sm:$0xf0]  ;;  %v12152_v39 = vor.u32 %v13438_v44, %v12151_v40 }
0x20e0   : > { %v7397_v42 = vmul.f32 0.2, %v7393_v24  ;;  %v7398_v43 = vmul.f32 0.2, %v7394_v20  ;;  %vm7395_vm4 = vcmp.gt.f32.partialorder %v7393_v24, 0.0  ;;  %vm7396_vm6 = vcmp.gt.f32.partialorder %v7394_v20, 0.0 }
0x20e1   : > { %v11872_v27 = vor.u32 %v13368_v35, %v11871_v22  ;;  %v11791_v26 = vld [vmem:[%s15984_s11] sm:$0xf]  ;;  %v15279_v34 = vrot.slane %v7413_v25, 2  ;;  %v12295_v22 = vld [vmem:[%s15984_s11 + $0x3f0] sm:$0xf] }
0x20e2   : > { %v7399_v48 = vsel %vm7395_vm4, %v7393_v24, %v7397_v42  ;;  %v7400_v49 = vsel %vm7396_vm6, %v7394_v20, %v7398_v43  ;;  %9255 = vmatpush.bf16.msrb.mxu2 %v11824_v15  ;;  %9268 = vmatpush.bf16.msrb.mxu3 %v11888_v59  ;;  %v11799_v24 = vld [vmem:[%s15984_s11 + $0x10] sm:$0xf]  ;;  %v13350_v20 = vld [vmem:[%s15984_s11 + $0x14] sm:$0xf0]  ;;  %v11792_v9 = vor.u32 %v13348_v46, %v11791_v26  ;;  %v13424_v59 = vld [vmem:[%s15984_s11 + $0x264] sm:$0xf0] }
0x20e3   : > { %v7401_v52 = vpack.c.bf16 %v7399_v48, %v7399_v48  ;;  %v7402_v30 = vpack.c.bf16 %v7400_v49, %v7400_v49  ;;  %v13402_v42 = vld [vmem:[%s15984_s11 + $0x1b4] sm:$0xf0]  ;;  %v11800_v43 = vor.u32 %v13350_v20, %v11799_v24  ;;  %v11935_v48 = vld [vmem:[%s15984_s11 + $0x120] sm:$0xf]  ;;  %v11864_v49 = vor.u32 %v13366_v38, %v11863_v33  ;;  %v13420_v25 = vld [vmem:[%s15984_s11 + $0x244] sm:$0xf0] }
0x20e4   : > { %v7418_v15 = vsel %vm4045_vm13, %v7415_v50, %v15279_v34  ;;  %v11936_v1 = vor.u32 %v13384_v56, %v11935_v48  ;;  %v12159_v50 = vld [vmem:[%s15984_s11 + $0x2e0] sm:$0xf]  ;;  %v12096_v58 = vor.u32 %v13424_v59, %v12095_v55  ;;  %v13474_v35 = vld [vmem:[%s15984_s11 + $0x3f4] sm:$0xf0]  ;;  %v13472_v38 = vld [vmem:[%s15984_s11 + $0x3e4] sm:$0xf0] }
0x20e5   : > { %v7429_v0 = vsel %vm3372_vm5, %v7401_v52, 0  ;;  %v7432_v3 = vsel %vm3372_vm5, %v7402_v30, 0  ;;  %v12008_v52 = vor.u32 %v13402_v42, %v12007_v29  ;;  %v13364_v30 = vld [vmem:[%s15984_s11 + $0x84] sm:$0xf0]  ;;  %v11983_v45 = vld [vmem:[%s15984_s11 + $0x180] sm:$0xf] }
0x20e6   : > { %7441 = vmatpush.bf16.msra.mxu0 %v7429_v0  ;;  %7464 = vmatpush.bf16.msra.mxu1 %v7432_v3  ;;  %v11856_v0 = vor.u32 %v13364_v30, %v11855_v51  ;;  %v12079_v20 = vld [vmem:[%s15984_s11 + $0x240] sm:$0xf]  ;;  %v12071_v26 = vld [vmem:[%s15984_s11 + $0x230] sm:$0xf]  ;;  %v13418_v46 = vld [vmem:[%s15984_s11 + $0x234] sm:$0xf0] }
0x20e7   : > { %9256 = vmatpush.bf16.msrb.mxu2 %v11816_v6  ;;  %9269 = vmatpush.bf16.msrb.mxu3 %v11880_v17  ;;  %v13380_v6 = vld [vmem:[%s15984_s11 + $0x104] sm:$0xf0]  ;;  %v12287_v33 = vld [vmem:[%s15984_s11 + $0x3e0] sm:$0xf]  ;;  %v12080_v29 = vor.u32 %v13420_v25, %v12079_v20  ;;  %v12215_v51 = vld [vmem:[%s15984_s11 + $0x350] sm:$0xf] }
0x20e8   : > { %v13396_v17 = vld [vmem:[%s15984_s11 + $0x184] sm:$0xf0]  ;;  %v12143_v42 = vld [vmem:[%s15984_s11 + $0x2c0] sm:$0xf]  ;;  %v13470_v30 = vld [vmem:[%s15984_s11 + $0x3d4] sm:$0xf0] }
0x20e9   : > { %11783 = vmatmul.msk.bf16.vlgmr.msra.gmra.mxu0 %vm3368_vm15, %v7416_v4  ;;  %11786 = vmatmul.msk.bf16.vlgmr.msra.gmra.mxu1 %vm3368_vm15, %v7416_v4  ;;  %v11927_v4 = vld [vmem:[%s15984_s11 + $0x110] sm:$0xf]  ;;  %v11984_v24 = vor.u32 %v13396_v17, %v11983_v45  ;;  %v12127_v55 = vld [vmem:[%s15984_s11 + $0x2a0] sm:$0xf]  ;;  %v13432_v59 = vld [vmem:[%s15984_s11 + $0x2a4] sm:$0xf0] }
0x20ea   : > { %9278 = vmatpush.bf16.msrb.mxu0 %v11976_v53  ;;  %9291 = vmatpush.bf16.msrb.mxu1 %v12040_v54  ;;  %v12103_v53 = vld [vmem:[%s15984_s11 + $0x270] sm:$0xf]  ;;  %v13426_v54 = vld [vmem:[%s15984_s11 + $0x274] sm:$0xf0]  ;;  %v12191_v45 = vld [vmem:[%s15984_s11 + $0x320] sm:$0xf] }
0x20eb   : > { %9257 = vmatpush.bf16.msrb.mxu2 %v11808_v63  ;;  %9270 = vmatpush.bf16.msrb.mxu3 %v11872_v27  ;;  %v12104_v3 = vor.u32 %v13426_v54, %v12103_v53  ;;  %v11920_v63 = vor.u32 %v13380_v6, %v11919_v13  ;;  %v12072_v54 = vor.u32 %v13418_v46, %v12071_v26  ;;  %v12135_v56 = vld [vmem:[%s15984_s11 + $0x2b0] sm:$0xf]  ;;  %v13466_v13 = vld [vmem:[%s15984_s11 + $0x3b4] sm:$0xf0]  ;;  %v13448_v17 = vld [vmem:[%s15984_s11 + $0x324] sm:$0xf0] }
0x20ec   : > { %v13430_v6 = vld [vmem:[%s15984_s11 + $0x294] sm:$0xf0]  ;;  %v12247_v44 = vld [vmem:[%s15984_s11 + $0x390] sm:$0xf]  ;;  %v12047_v25 = vld [vmem:[%s15984_s11 + $0x200] sm:$0xf] }
0x20ed   : > { %v13446_v40 = vld [vmem:[%s15984_s11 + $0x314] sm:$0xf0]  ;;  %v12359_v46 = vld [vmem:[%s15984_s11 + $0x470] sm:$0xf] }
0x20ee   : > { %9279 = vmatpush.bf16.msrb.mxu0 %v11968_v7  ;;  %9292 = vmatpush.bf16.msrb.mxu1 %v12032_v8  ;;  %v13382_v7 = vld [vmem:[%s15984_s11 + $0x114] sm:$0xf0]  ;;  %v11991_v8 = vld [vmem:[%s15984_s11 + $0x190] sm:$0xf] }
0x20ef   : > { %9258 = vmatpush.bf16.msrb.mxu2 %v11800_v43  ;;  %9271 = vmatpush.bf16.msrb.mxu3 %v11864_v49  ;;  %v11928_v14 = vor.u32 %v13382_v7, %v11927_v4  ;;  %v11992_v5 = vor.u32 %v13398_v10, %v11991_v8  ;;  %v13436_v43 = vld [vmem:[%s15984_s11 + $0x2c4] sm:$0xf0]  ;;  %v12288_v49 = vor.u32 %v13472_v38, %v12287_v33  ;;  %v12055_v7 = vld [vmem:[%s15984_s11 + $0x210] sm:$0xf]  ;;  %v13414_v8 = vld [vmem:[%s15984_s11 + $0x214] sm:$0xf0] }
0x20f0   : > { %v12144_v53 = vor.u32 %v13436_v43, %v12143_v42  ;;  %v12175_v38 = vld [vmem:[%s15984_s11 + $0x300] sm:$0xf]  ;;  %v13460_v42 = vld [vmem:[%s15984_s11 + $0x384] sm:$0xf0] }
0x20f2   : > { %9280 = vmatpush.bf16.msrb.mxu0 %v11960_v36  ;;  %9293 = vmatpush.bf16.msrb.mxu1 %v12024_v19  ;;  %v12231_v36 = vld [vmem:[%s15984_s11 + $0x370] sm:$0xf]  ;;  %v12160_v19 = vor.u32 %v13440_v11, %v12159_v50  ;;  %v13450_v50 = vld [vmem:[%s15984_s11 + $0x334] sm:$0xf0] }
0x20f3   : > { %9259 = vmatpush.bf16.msrb.mxu2 %v11792_v9  ;;  %9272 = vmatpush.bf16.msrb.mxu3 %v11856_v0  ;;  %v12232_v27 = vor.u32 %v13458_v21, %v12231_v36  ;;  %v13416_v9 = vld [vmem:[%s15984_s11 + $0x224] sm:$0xf0]  ;;  %v12263_v11 = vld [vmem:[%s15984_s11 + $0x3b0] sm:$0xf]  ;;  %v12255_v36 = vld [vmem:[%s15984_s11 + $0x3a0] sm:$0xf] }
0x20f4   : > { %v13452_v0 = vld [vmem:[%s15984_s11 + $0x344] sm:$0xf0]  ;;  %v12064_v4 = vor.u32 %v13416_v9, %v12063_v2  ;;  %v12264_v16 = vor.u32 %v13466_v13, %v12263_v11  ;;  %v12351_v9 = vld [vmem:[%s15984_s11 + $0x460] sm:$0xf]  ;;  %v12343_v13 = vld [vmem:[%s15984_s11 + $0x450] sm:$0xf] }
0x20f6   : > { %9281 = vmatpush.bf16.msrb.mxu0 %v11952_v28  ;;  %9294 = vmatpush.bf16.msrb.mxu1 %v12016_v31  ;;  %v12296_v28 = vor.u32 %v13474_v35, %v12295_v22  ;;  %v12223_v31 = vld [vmem:[%s15984_s11 + $0x360] sm:$0xf]  ;;  %v12192_v22 = vor.u32 %v13448_v17, %v12191_v45  ;;  %v13518_v45 = vld [vmem:[%s15984_s11 + $0x554] sm:$0xf0]  ;;  %v12535_v17 = vld [vmem:[%s15984_s11 + $0x5d0] sm:$0xf] }
0x20f7   : > { %9304 = vmatpush.bf16.msra.mxu2 %v12104_v3  ;;  %9317 = vmatpush.bf16.msra.mxu3 %v12168_v23  ;;  %v12224_v48 = vor.u32 %v13456_v32, %v12223_v31  ;;  %v12271_v3 = vld [vmem:[%s15984_s11 + $0x3c0] sm:$0xf]  ;;  %v12199_v23 = vld [vmem:[%s15984_s11 + $0x330] sm:$0xf]  ;;  %v13428_v32 = vld [vmem:[%s15984_s11 + $0x284] sm:$0xf0] }
0x20f8   : > { %v12200_v47 = vor.u32 %v13450_v50, %v12199_v23  ;;  %v13536_v23 = vld [vmem:[%s15984_s11 + $0x5e4] sm:$0xf0] }
0x20f9   : > { %11784 = vmatmul.msk.bf16.gmra.mxu0 %vm3368_vm15, %v7418_v15  ;;  %11787 = vmatmul.msk.bf16.gmra.mxu1 %vm3368_vm15, %v7418_v15  ;;  %v12207_v15 = vld [vmem:[%s15984_s11 + $0x340] sm:$0xf] }
0x20fa   : > { %9282 = vmatpush.bf16.msrb.mxu0 %v11944_v57  ;;  %9295 = vmatpush.bf16.msrb.mxu1 %v12008_v52  ;;  %v13454_v57 = vld [vmem:[%s15984_s11 + $0x354] sm:$0xf0]  ;;  %v12279_v52 = vld [vmem:[%s15984_s11 + $0x3d0] sm:$0xf] }
0x20fb   : > { %9305 = vmatpush.bf16.msra.mxu2 %v12096_v58  ;;  %9318 = vmatpush.bf16.msra.mxu3 %v12160_v19  ;;  %v12216_v60 = vor.u32 %v13454_v57, %v12215_v51  ;;  %v12280_v37 = vor.u32 %v13470_v30, %v12279_v52  ;;  %v12128_v58 = vor.u32 %v13432_v59, %v12127_v55  ;;  %v13464_v19 = vld [vmem:[%s15984_s11 + $0x3a4] sm:$0xf0]  ;;  %v13506_v51 = vld [vmem:[%s15984_s11 + $0x4f4] sm:$0xf0]  ;;  %v12487_v57 = vld [vmem:[%s15984_s11 + $0x570] sm:$0xf] }
0x20fc   : > { %v12256_v35 = vor.u32 %v13464_v19, %v12255_v36  ;;  %v13522_v52 = vld [vmem:[%s15984_s11 + $0x574] sm:$0xf0]  ;;  %v12551_v30 = vld [vmem:[%s15984_s11 + $0x5f0] sm:$0xf]  ;;  %v12479_v59 = vld [vmem:[%s15984_s11 + $0x560] sm:$0xf] }
0x20fd   : > { %v13534_v36 = vld [vmem:[%s15984_s11 + $0x5d4] sm:$0xf0] }
0x20fe   : > { %9283 = vmatpush.bf16.msrb.mxu0 %v11936_v1  ;;  %9296 = vmatpush.bf16.msrb.mxu1 %v12000_v61  ;;  %v13468_v1 = vld [vmem:[%s15984_s11 + $0x3c4] sm:$0xf0]  ;;  %v12136_v61 = vor.u32 %v13434_v62, %v12135_v56 }
0x20ff   : > { %9306 = vmatpush.bf16.msra.mxu2 %v12088_v12  ;;  %9319 = vmatpush.bf16.msra.mxu3 %v12152_v39  ;;  %v12272_v10 = vor.u32 %v13468_v1, %v12271_v3  ;;  %v12183_v12 = vld [vmem:[%s15984_s11 + $0x310] sm:$0xf]  ;;  %v13444_v39 = vld [vmem:[%s15984_s11 + $0x304] sm:$0xf0]  ;;  %v12415_v1 = vld [vmem:[%s15984_s11 + $0x4e0] sm:$0xf] }
0x2100   : > { %v12176_v43 = vor.u32 %v13444_v39, %v12175_v38  ;;  %v12327_v38 = vld [vmem:[%s15984_s11 + $0x430] sm:$0xf]  ;;  %v13482_v39 = vld [vmem:[%s15984_s11 + $0x434] sm:$0xf0] }
0x2102   : > { %9284 = vmatpush.bf16.msrb.mxu0 %v11928_v14  ;;  %9297 = vmatpush.bf16.msrb.mxu1 %v11992_v5  ;;  %v12056_v14 = vor.u32 %v13414_v8, %v12055_v7  ;;  %v12119_v5 = vld [vmem:[%s15984_s11 + $0x290] sm:$0xf] }
0x2103   : > { %9307 = vmatpush.bf16.msra.mxu2 %v12080_v29  ;;  %9320 = vmatpush.bf16.msra.mxu3 %v12144_v53  ;;  %v12120_v21 = vor.u32 %v13430_v6, %v12119_v5  ;;  %v12239_v29 = vld [vmem:[%s15984_s11 + $0x380] sm:$0xf]  ;;  %v13538_v53 = vld [vmem:[%s15984_s11 + $0x5f4] sm:$0xf0] }
0x2104   : > { %v12240_v26 = vor.u32 %v13460_v42, %v12239_v29  ;;  %v12552_v55 = vor.u32 %v13538_v53, %v12551_v30  ;;  %v13502_v5 = vld [vmem:[%s15984_s11 + $0x4d4] sm:$0xf0]  ;;  %v12391_v29 = vld [vmem:[%s15984_s11 + $0x4b0] sm:$0xf]  ;;  %v12328_v30 = vor.u32 %v13482_v39, %v12327_v38 }
0x2105   : > { %v13498_v42 = vld [vmem:[%s15984_s11 + $0x4b4] sm:$0xf0] }
0x2106   : > { %9285 = vmatpush.bf16.msrb.mxu0 %v11920_v63  ;;  %9298 = vmatpush.bf16.msrb.mxu1 %v11984_v24  ;;  %v12184_v63 = vor.u32 %v13446_v40, %v12183_v12  ;;  %v13462_v24 = vld [vmem:[%s15984_s11 + $0x394] sm:$0xf0]  ;;  %v12399_v12 = vld [vmem:[%s15984_s11 + $0x4c0] sm:$0xf]  ;;  %v13500_v40 = vld [vmem:[%s15984_s11 + $0x4c4] sm:$0xf0]  ;;  %v12392_v53 = vor.u32 %v13498_v42, %v12391_v29 }
0x2107   : > { %9308 = vmatpush.bf16.msra.mxu2 %v12072_v54  ;;  %9321 = vmatpush.bf16.msra.mxu3 %v12136_v61  ;;  %v12248_v20 = vor.u32 %v13462_v24, %v12247_v44  ;;  %v13504_v61 = vld [vmem:[%s15984_s11 + $0x4e4] sm:$0xf0]  ;;  %v12463_v24 = vld [vmem:[%s15984_s11 + $0x540] sm:$0xf]  ;;  %v13586_v39 = vld [vmem:[%s15984_s11 + $0x774] sm:$0xf0] }
0x2108   : > { %v12416_v11 = vor.u32 %v13504_v61, %v12415_v1  ;;  %v12447_v1 = vld [vmem:[%s15984_s11 + $0x520] sm:$0xf]  ;;  %v12807_v29 = vld [vmem:[%s15984_s11 + $0x7f0] sm:$0xf]  ;;  %v13602_v42 = vld [vmem:[%s15984_s11 + $0x7f4] sm:$0xf0] }
0x2109   : > { %11785 = vmatmul.msk.bf16.gmra.mxu0 %vm3368_vm15, %v15279_v34  ;;  %11788 = vmatmul.msk.bf16.gmra.mxu1 %vm3368_vm15, %v15279_v34  ;;  %v12208_v34 = vor.u32 %v13452_v0, %v12207_v15 }
0x210a   : > { %9330 = vmatpush.bf16.msra.mxu0 %v12232_v27  ;;  %9343 = vmatpush.bf16.msra.mxu1 %v12296_v28  ;;  %v13412_v27 = vld [vmem:[%s15984_s11 + $0x204] sm:$0xf0]  ;;  %v12111_v28 = vld [vmem:[%s15984_s11 + $0x280] sm:$0xf] }
0x210b   : > { %9309 = vmatpush.bf16.msra.mxu2 %v12064_v4  ;;  %9322 = vmatpush.bf16.msra.mxu3 %v12128_v58  ;;  %v12048_v31 = vor.u32 %v13412_v27, %v12047_v25  ;;  %v12112_v33 = vor.u32 %v13428_v32, %v12111_v28  ;;  %v12488_v4 = vor.u32 %v13522_v52, %v12487_v57  ;;  %v13486_v58 = vld [vmem:[%s15984_s11 + $0x454] sm:$0xf0]  ;;  %v12527_v25 = vld [vmem:[%s15984_s11 + $0x5c0] sm:$0xf]  ;;  %v13532_v27 = vld [vmem:[%s15984_s11 + $0x5c4] sm:$0xf0] }
0x210c   : > { %v12344_v19 = vor.u32 %v13486_v58, %v12343_v13  ;;  %v12519_v57 = vld [vmem:[%s15984_s11 + $0x5b0] sm:$0xf]  ;;  %v13530_v52 = vld [vmem:[%s15984_s11 + $0x5b4] sm:$0xf0] }
0x210d   : > { %v12375_v13 = vld [vmem:[%s15984_s11 + $0x490] sm:$0xf]  ;;  %v13494_v58 = vld [vmem:[%s15984_s11 + $0x494] sm:$0xf0] }
0x210e   : > { %9331 = vmatpush.bf16.msra.mxu0 %v12224_v48  ;;  %9344 = vmatpush.bf16.msra.mxu1 %v12288_v49  ;;  %v13490_v48 = vld [vmem:[%s15984_s11 + $0x474] sm:$0xf0]  ;;  %v12423_v49 = vld [vmem:[%s15984_s11 + $0x4f0] sm:$0xf] }
0x210f   : > { %9310 = vmatpush.bf16.msra.mxu2 %v12056_v14  ;;  %9323 = vmatpush.bf16.msra.mxu3 %v12120_v21  ;;  %v12360_v62 = vor.u32 %v13490_v48, %v12359_v46  ;;  %v12424_v2 = vor.u32 %v13506_v51, %v12423_v49  ;;  %v12407_v14 = vld [vmem:[%s15984_s11 + $0x4d0] sm:$0xf]  ;;  %v13514_v48 = vld [vmem:[%s15984_s11 + $0x534] sm:$0xf0] }
0x2110   : > { %v12408_v21 = vor.u32 %v13502_v5, %v12407_v14  ;;  %v12455_v46 = vld [vmem:[%s15984_s11 + $0x530] sm:$0xf] }
0x2112   : > { %9332 = vmatpush.bf16.msra.mxu0 %v12216_v60  ;;  %9345 = vmatpush.bf16.msra.mxu1 %v12280_v37  ;;  %v13488_v60 = vld [vmem:[%s15984_s11 + $0x464] sm:$0xf0] }
0x2113   : > { %9311 = vmatpush.bf16.msra.mxu2 %v12048_v31  ;;  %9324 = vmatpush.bf16.msra.mxu3 %v12112_v33  ;;  %v12352_v50 = vor.u32 %v13488_v60, %v12351_v9  ;;  %v12400_v33 = vor.u32 %v13500_v40, %v12399_v12  ;;  %v12383_v9 = vld [vmem:[%s15984_s11 + $0x4a0] sm:$0xf]  ;;  %v13496_v60 = vld [vmem:[%s15984_s11 + $0x4a4] sm:$0xf0]  ;;  %v12615_v12 = vld [vmem:[%s15984_s11 + $0x670] sm:$0xf] }
0x2114   : > { %v13554_v40 = vld [vmem:[%s15984_s11 + $0x674] sm:$0xf0] }
0x2116   : > { %9333 = vmatpush.bf16.msra.mxu0 %v12208_v34  ;;  %9346 = vmatpush.bf16.msra.mxu1 %v12272_v10  ;;  %v13520_v34 = vld [vmem:[%s15984_s11 + $0x564] sm:$0xf0]  ;;  %v12543_v10 = vld [vmem:[%s15984_s11 + $0x5e0] sm:$0xf] }
0x2117   : > { %v12480_v6 = vor.u32 %v13520_v34, %v12479_v59  ;;  %v12511_v59 = vld [vmem:[%s15984_s11 + $0x5a0] sm:$0xf]  ;;  %v13528_v34 = vld [vmem:[%s15984_s11 + $0x5a4] sm:$0xf0] }
0x2118   : > { %v12512_v5 = vor.u32 %v13528_v34, %v12511_v59  ;;  %v12799_v59 = vld [vmem:[%s15984_s11 + $0x7e0] sm:$0xf]  ;;  %v13600_v34 = vld [vmem:[%s15984_s11 + $0x7e4] sm:$0xf0] }
0x211a   : > { %9334 = vmatpush.bf16.msra.mxu0 %v12200_v47  ;;  %9347 = vmatpush.bf16.msra.mxu1 %v12264_v16  ;;  %v12544_v47 = vor.u32 %v13536_v23, %v12543_v10  ;;  %v12471_v16 = vld [vmem:[%s15984_s11 + $0x550] sm:$0xf]  ;;  %v12384_v23 = vor.u32 %v13496_v60, %v12383_v9  ;;  %v12808_v60 = vor.u32 %v13602_v42, %v12807_v29 }
0x211b   : > { %v12472_v44 = vor.u32 %v13518_v45, %v12471_v16  ;;  %v12503_v16 = vld [vmem:[%s15984_s11 + $0x590] sm:$0xf]  ;;  %v13526_v45 = vld [vmem:[%s15984_s11 + $0x594] sm:$0xf0] }
0x211e   : > { %9335 = vmatpush.bf16.msra.mxu0 %v12192_v22  ;;  %9348 = vmatpush.bf16.msra.mxu1 %v12256_v35  ;;  %v12335_v22 = vld [vmem:[%s15984_s11 + $0x440] sm:$0xf]  ;;  %v13484_v35 = vld [vmem:[%s15984_s11 + $0x444] sm:$0xf0] }
0x211f   : > { %v12336_v32 = vor.u32 %v13484_v35, %v12335_v22  ;;  %v12367_v22 = vld [vmem:[%s15984_s11 + $0x480] sm:$0xf]  ;;  %v13492_v35 = vld [vmem:[%s15984_s11 + $0x484] sm:$0xf0] }
0x2120   : > { %v12368_v38 = vor.u32 %v13492_v35, %v12367_v22  ;;  %v12591_v22 = vld [vmem:[%s15984_s11 + $0x640] sm:$0xf]  ;;  %v13548_v35 = vld [vmem:[%s15984_s11 + $0x644] sm:$0xf0] }
0x2122   : > { %9336 = vmatpush.bf16.msra.mxu0 %v12184_v63  ;;  %9349 = vmatpush.bf16.msra.mxu1 %v12248_v20  ;;  %v12536_v63 = vor.u32 %v13534_v36, %v12535_v17  ;;  %v13516_v20 = vld [vmem:[%s15984_s11 + $0x544] sm:$0xf0]  ;;  %v12303_v17 = vld [vmem:[%s15984_s11 + $0x400] sm:$0xf] }
0x2126   : > { %9337 = vmatpush.bf16.msra.mxu0 %v12176_v43  ;;  %9350 = vmatpush.bf16.msra.mxu1 %v12240_v26  ;;  %v12464_v43 = vor.u32 %v13516_v20, %v12463_v24  ;;  %v12528_v26 = vor.u32 %v13532_v27, %v12527_v25  ;;  %v12504_v24 = vor.u32 %v13526_v45, %v12503_v16  ;;  %v13570_v20 = vld [vmem:[%s15984_s11 + $0x6f4] sm:$0xf0]  ;;  %v12431_v25 = vld [vmem:[%s15984_s11 + $0x500] sm:$0xf]  ;;  %v13508_v27 = vld [vmem:[%s15984_s11 + $0x504] sm:$0xf0] }
0x2127   : > { %v12727_v16 = vld [vmem:[%s15984_s11 + $0x750] sm:$0xf]  ;;  %v13582_v45 = vld [vmem:[%s15984_s11 + $0x754] sm:$0xf0] }
0x2166   : > { %v7443_v54 = vpop.f32.mrf.mxu0  ;;  %v7466_v56 = vpop.f32.mrf.mxu1 }
0x2167   : > { %v7482_v37 = vrot.slane %v7443_v54, 4  ;;  %v15379_v15 = vpack.c.bf16 %v7443_v54, %v7443_v54  ;;  %v7483_v0 = vrot.slane %v7466_v56, 4  ;;  %v15381_v3 = vpack.c.bf16 %v7466_v56, %v7466_v56  ;;  %v12319_v54 = vld [vmem:[%s15984_s11 + $0x420] sm:$0xf] }
0x2169   : > { %v15386_v7 = vpack.c.bf16 %v7482_v37, %v7482_v37  ;;  %v15388_v8 = vpack.c.bf16 %v7483_v0, %v7483_v0  ;;  %9260 = vmatmul.bf16.vlgmr.msrb.gmra.mxu2 %v15379_v15  ;;  %9273 = vmatmul.bf16.vlgmr.msrb.gmra.mxu3 %v15381_v3  ;;  %v12456_v37 = vor.u32 %v13514_v48, %v12455_v46 }
0x216a   : > { %9356 = vmatpush.bf16.msrb.mxu2 %v12360_v62  ;;  %9369 = vmatpush.bf16.msrb.mxu3 %v12424_v2  ;;  %v13480_v2 = vld [vmem:[%s15984_s11 + $0x424] sm:$0xf0]  ;;  %v12520_v0 = vor.u32 %v13530_v52, %v12519_v57  ;;  %v12432_v52 = vor.u32 %v13508_v27, %v12431_v25  ;;  %v12783_v25 = vld [vmem:[%s15984_s11 + $0x7c0] sm:$0xf] }
0x216b   : > { %9286 = vmatmul.bf16.vlgmr.msrb.gmra.mxu0 %v15386_v7  ;;  %9299 = vmatmul.bf16.vlgmr.msrb.gmra.mxu1 %v15388_v8  ;;  %v12320_v10 = vor.u32 %v13480_v2, %v12319_v54  ;;  %v12671_v54 = vld [vmem:[%s15984_s11 + $0x6e0] sm:$0xf]  ;;  %v13568_v2 = vld [vmem:[%s15984_s11 + $0x6e4] sm:$0xf0] }
0x216c   : > { %9382 = vmatpush.bf16.msrb.mxu0 %v12488_v4  ;;  %9395 = vmatpush.bf16.msrb.mxu1 %v12552_v55  ;;  %v13512_v55 = vld [vmem:[%s15984_s11 + $0x524] sm:$0xf0] }
0x216d   : > { %v12448_v14 = vor.u32 %v13512_v55, %v12447_v1  ;;  %v13584_v55 = vld [vmem:[%s15984_s11 + $0x764] sm:$0xf0] }
0x216e   : > { %9357 = vmatpush.bf16.msrb.mxu2 %v12352_v50  ;;  %9370 = vmatpush.bf16.msrb.mxu3 %v12416_v11  ;;  %v7445_v28 = vpop.f32.mrf.mxu0  ;;  %v7468_v31 = vpop.f32.mrf.mxu1  ;;  %v12311_v50 = vld [vmem:[%s15984_s11 + $0x410] sm:$0xf]  ;;  %v13478_v11 = vld [vmem:[%s15984_s11 + $0x414] sm:$0xf0]  ;;  %v13596_v27 = vld [vmem:[%s15984_s11 + $0x7c4] sm:$0xf0] }
0x216f   : > { %v7488_v49 = vrot.slane %v7445_v28, 4  ;;  %v7489_v51 = vrot.slane %v7468_v31, 4  ;;  %v15422_v56 = vpack.c.bf16 %v7445_v28, %v7445_v28  ;;  %v15424_v62 = vpack.c.bf16 %v7468_v31, %v7468_v31  ;;  %v12495_v28 = vld [vmem:[%s15984_s11 + $0x580] sm:$0xf]  ;;  %v13524_v31 = vld [vmem:[%s15984_s11 + $0x584] sm:$0xf0] }
0x2170   : > { %9383 = vmatpush.bf16.msrb.mxu0 %v12480_v6  ;;  %9396 = vmatpush.bf16.msrb.mxu1 %v12544_v47  ;;  %v12439_v6 = vld [vmem:[%s15984_s11 + $0x510] sm:$0xf]  ;;  %v13510_v47 = vld [vmem:[%s15984_s11 + $0x514] sm:$0xf0]  ;;  %v12312_v36 = vor.u32 %v13478_v11, %v12311_v50  ;;  %v12784_v42 = vor.u32 %v13596_v27, %v12783_v25 }
0x2171   : > { %v15430_v61 = vpack.c.bf16 %v7488_v49, %v7488_v49  ;;  %v15432_v4 = vpack.c.bf16 %v7489_v51, %v7489_v51  ;;  %v12607_v49 = vld [vmem:[%s15984_s11 + $0x660] sm:$0xf]  ;;  %v13552_v51 = vld [vmem:[%s15984_s11 + $0x664] sm:$0xf0]  ;;  %v12599_v50 = vld [vmem:[%s15984_s11 + $0x650] sm:$0xf] }
0x2172   : > { %9358 = vmatpush.bf16.msrb.mxu2 %v12344_v19  ;;  %9371 = vmatpush.bf16.msrb.mxu3 %v12408_v21  ;;  %v12376_v19 = vor.u32 %v13494_v58, %v12375_v13  ;;  %v13476_v21 = vld [vmem:[%s15984_s11 + $0x404] sm:$0xf0]  ;;  %v13550_v58 = vld [vmem:[%s15984_s11 + $0x654] sm:$0xf0]  ;;  %v12935_v25 = vld [vmem:[%s15984_s11 + $0x8f0] sm:$0xf] }
0x2173   : > { %v13634_v27 = vld [vmem:[%s15984_s11 + $0x8f4] sm:$0xf0] }
0x2174   : > { %9384 = vmatpush.bf16.msrb.mxu0 %v12472_v44  ;;  %9397 = vmatpush.bf16.msrb.mxu1 %v12536_v63  ;;  %v12679_v44 = vld [vmem:[%s15984_s11 + $0x6f0] sm:$0xf]  ;;  %v12440_v63 = vor.u32 %v13510_v47, %v12439_v6  ;;  %v12800_v47 = vor.u32 %v13600_v34, %v12799_v59 }
0x2175   : > { %v12680_v46 = vor.u32 %v13570_v20, %v12679_v44  ;;  %v12728_v44 = vor.u32 %v13582_v45, %v12727_v16  ;;  %v13580_v20 = vld [vmem:[%s15984_s11 + $0x744] sm:$0xf0]  ;;  %v13574_v45 = vld [vmem:[%s15984_s11 + $0x714] sm:$0xf0] }
0x2176   : > { %9359 = vmatpush.bf16.msrb.mxu2 %v12336_v32  ;;  %9372 = vmatpush.bf16.msrb.mxu3 %v12400_v33  ;;  %v12743_v32 = vld [vmem:[%s15984_s11 + $0x770] sm:$0xf]  ;;  %v12304_v33 = vor.u32 %v13476_v21, %v12303_v17  ;;  %v7471_v48 = vpop.f32.mrf.mxu1 }
0x2177   : > { %v12744_v9 = vor.u32 %v13586_v39, %v12743_v32  ;;  %v15472_v1 = vpack.c.bf16 %v7471_v48, %v7471_v48  ;;  %v12791_v17 = vld [vmem:[%s15984_s11 + $0x7d0] sm:$0xf]  ;;  %v13562_v39 = vld [vmem:[%s15984_s11 + $0x6b4] sm:$0xf0] }
0x2178   : > { %9385 = vmatpush.bf16.msrb.mxu0 %v12464_v43  ;;  %9398 = vmatpush.bf16.msrb.mxu1 %v12528_v26  ;;  %v7448_v43 = vpop.f32.mrf.mxu0  ;;  %v12616_v26 = vor.u32 %v13554_v40, %v12615_v12  ;;  %v12655_v12 = vld [vmem:[%s15984_s11 + $0x6c0] sm:$0xf]  ;;  %v13564_v40 = vld [vmem:[%s15984_s11 + $0x6c4] sm:$0xf0]  ;;  %v12583_v32 = vld [vmem:[%s15984_s11 + $0x630] sm:$0xf] }
0x2179   : > { %9312 = vmatmul.bf16.vlgmr.msra.gmra.mxu2 %v15422_v56  ;;  %9325 = vmatmul.bf16.vlgmr.msra.gmra.mxu3 %v15424_v62  ;;  %v7494_v57 = vrot.slane %v7448_v43, 4 }
0x217a   : > { %9360 = vmatpush.bf16.msrb.mxu2 %v12328_v30  ;;  %9373 = vmatpush.bf16.msrb.mxu3 %v12392_v53  ;;  %v12496_v30 = vor.u32 %v13524_v31, %v12495_v28  ;;  %v7495_v53 = vrot.slane %v7471_v48, 4  ;;  %v12592_v28 = vor.u32 %v13548_v35, %v12591_v22  ;;  %v12656_v31 = vor.u32 %v13564_v40, %v12655_v12  ;;  %v13594_v48 = vld [vmem:[%s15984_s11 + $0x7b4] sm:$0xf0]  ;;  %v12559_v22 = vld [vmem:[%s15984_s11 + $0x600] sm:$0xf] }
0x217b   : > { %9338 = vmatmul.bf16.vlgmr.msra.gmra.mxu0 %v15430_v61  ;;  %9351 = vmatmul.bf16.vlgmr.msra.gmra.mxu1 %v15432_v4  ;;  %v15478_v11 = vpack.c.bf16 %v7494_v57, %v7494_v57  ;;  %v12575_v57 = vld [vmem:[%s15984_s11 + $0x620] sm:$0xf]  ;;  %v13540_v35 = vld [vmem:[%s15984_s11 + $0x604] sm:$0xf0] }
0x217c   : > { %9386 = vmatpush.bf16.msrb.mxu0 %v12456_v37  ;;  %9399 = vmatpush.bf16.msrb.mxu1 %v12520_v0  ;;  %v12735_v37 = vld [vmem:[%s15984_s11 + $0x760] sm:$0xf]  ;;  %v15470_v0 = vpack.c.bf16 %v7448_v43, %v7448_v43  ;;  %v15480_v13 = vpack.c.bf16 %v7495_v53, %v7495_v53  ;;  %v12711_v43 = vld [vmem:[%s15984_s11 + $0x730] sm:$0xf]  ;;  %v13560_v53 = vld [vmem:[%s15984_s11 + $0x6a4] sm:$0xf0] }
0x217d   : > { %v12736_v6 = vor.u32 %v13584_v55, %v12735_v37  ;;  %v12767_v37 = vld [vmem:[%s15984_s11 + $0x7a0] sm:$0xf]  ;;  %v13592_v55 = vld [vmem:[%s15984_s11 + $0x7a4] sm:$0xf0] }
0x217e   : > { %9361 = vmatpush.bf16.msrb.mxu2 %v12320_v10  ;;  %9374 = vmatpush.bf16.msrb.mxu3 %v12384_v23  ;;  %v12608_v10 = vor.u32 %v13552_v51, %v12607_v49  ;;  %v12672_v23 = vor.u32 %v13568_v2, %v12671_v54  ;;  %v15524_v16 = vpop.f32.mrf.mxu1  ;;  %v12623_v12 = vld [vmem:[%s15984_s11 + $0x680] sm:$0xf]  ;;  %v13556_v40 = vld [vmem:[%s15984_s11 + $0x684] sm:$0xf0] }
0x2180   : > { %9387 = vmatpush.bf16.msrb.mxu0 %v12448_v14  ;;  %9400 = vmatpush.bf16.msrb.mxu1 %v12512_v5  ;;  %v12663_v14 = vld [vmem:[%s15984_s11 + $0x6d0] sm:$0xf]  ;;  %v13566_v5 = vld [vmem:[%s15984_s11 + $0x6d4] sm:$0xf0] }
0x2181   : > { %v12664_v21 = vor.u32 %v13566_v5, %v12663_v14  ;;  %v13558_v14 = vld [vmem:[%s15984_s11 + $0x694] sm:$0xf0] }
0x2182   : > { %9362 = vmatpush.bf16.msrb.mxu2 %v12312_v36  ;;  %9375 = vmatpush.bf16.msrb.mxu3 %v12376_v19  ;;  %v13598_v36 = vld [vmem:[%s15984_s11 + $0x7d4] sm:$0xf0]  ;;  %v12600_v19 = vor.u32 %v13550_v58, %v12599_v50  ;;  %v12631_v58 = vld [vmem:[%s15984_s11 + $0x690] sm:$0xf] }
0x2183   : > { %v13542_v50 = vld [vmem:[%s15984_s11 + $0x614] sm:$0xf0] }
0x2184   : > { %9388 = vmatpush.bf16.msrb.mxu0 %v12440_v63  ;;  %9401 = vmatpush.bf16.msrb.mxu1 %v12504_v24  ;;  %v12792_v63 = vor.u32 %v13598_v36, %v12791_v17  ;;  %v12719_v24 = vld [vmem:[%s15984_s11 + $0x740] sm:$0xf]  ;;  %v12759_v17 = vld [vmem:[%s15984_s11 + $0x790] sm:$0xf]  ;;  %v13590_v36 = vld [vmem:[%s15984_s11 + $0x794] sm:$0xf0] }
0x2185   : > { %v12720_v29 = vor.u32 %v13580_v20, %v12719_v24  ;;  %v12760_v20 = vor.u32 %v13590_v36, %v12759_v17  ;;  %v12919_v17 = vld [vmem:[%s15984_s11 + $0x8d0] sm:$0xf]  ;;  %v13630_v36 = vld [vmem:[%s15984_s11 + $0x8d4] sm:$0xf0] }
0x2186   : > { %9363 = vmatpush.bf16.msrb.mxu2 %v12304_v33  ;;  %9376 = vmatpush.bf16.msrb.mxu3 %v12368_v38  ;;  %v13546_v33 = vld [vmem:[%s15984_s11 + $0x634] sm:$0xf0]  ;;  %v12647_v38 = vld [vmem:[%s15984_s11 + $0x6b0] sm:$0xf] }
0x2187   : > { %v12584_v49 = vor.u32 %v13546_v33, %v12583_v32  ;;  %v12648_v51 = vor.u32 %v13562_v39, %v12647_v38  ;;  %v12751_v32 = vld [vmem:[%s15984_s11 + $0x780] sm:$0xf]  ;;  %v13588_v33 = vld [vmem:[%s15984_s11 + $0x784] sm:$0xf0]  ;;  %v12560_v39 = vor.u32 %v13540_v35, %v12559_v22  ;;  %v13357_v22 = vld [vmem:[%s15984_s11 + $0x54] sm:$0xf] }
0x2188   : > { %9389 = vmatpush.bf16.msrb.mxu0 %v12432_v52  ;;  %9402 = vmatpush.bf16.msrb.mxu1 %v12496_v30  ;;  %v13544_v52 = vld [vmem:[%s15984_s11 + $0x624] sm:$0xf0]  ;;  %v12639_v30 = vld [vmem:[%s15984_s11 + $0x6a0] sm:$0xf] }
0x2189   : > { %9364 = vmatmul.bf16.vlgmr.msrb.gmra.mxu2 %v15470_v0  ;;  %9377 = vmatmul.bf16.vlgmr.msrb.gmra.mxu3 %v15472_v1  ;;  %v12576_v59 = vor.u32 %v13544_v52, %v12575_v57  ;;  %v12640_v34 = vor.u32 %v13560_v53, %v12639_v30  ;;  %v7501_v57 = vrot.slane %v15524_v16, 4  ;;  %v12752_v30 = vor.u32 %v13588_v33, %v12751_v32  ;;  %v12863_v53 = vld [vmem:[%s15984_s11 + $0x860] sm:$0xf] }
0x218a   : > { %9408 = vmatpush.bf16.msra.mxu2 %v12616_v26  ;;  %9421 = vmatpush.bf16.msra.mxu3 %v12680_v46  ;;  %v13578_v26 = vld [vmem:[%s15984_s11 + $0x734] sm:$0xf0]  ;;  %v12775_v46 = vld [vmem:[%s15984_s11 + $0x7b0] sm:$0xf] }
0x218b   : > { %9390 = vmatmul.bf16.vlgmr.msrb.gmra.mxu0 %v15478_v11  ;;  %9403 = vmatmul.bf16.vlgmr.msrb.gmra.mxu1 %v15480_v13  ;;  %v12712_v54 = vor.u32 %v13578_v26, %v12711_v43  ;;  %v12776_v2 = vor.u32 %v13594_v48, %v12775_v46  ;;  %v12936_v46 = vor.u32 %v13634_v27, %v12935_v25  ;;  %v11849_v48 = vld [vmem:[%s15984_s11 + $0x78] sm:$0xf0]  ;;  %v13612_v25 = vld [vmem:[%s15984_s11 + $0x844] sm:$0xf0]  ;;  %v12911_v27 = vld [vmem:[%s15984_s11 + $0x8c0] sm:$0xf] }
0x218c   : > { %9434 = vmatpush.bf16.msra.mxu0 %v12744_v9  ;;  %9447 = vmatpush.bf16.msra.mxu1 %v12808_v60  ;;  %v12703_v9 = vld [vmem:[%s15984_s11 + $0x720] sm:$0xf]  ;;  %v13576_v60 = vld [vmem:[%s15984_s11 + $0x724] sm:$0xf0] }
0x218d   : > { %v12704_v5 = vor.u32 %v13576_v60, %v12703_v9  ;;  %v12927_v9 = vld [vmem:[%s15984_s11 + $0x8e0] sm:$0xf]  ;;  %v13632_v60 = vld [vmem:[%s15984_s11 + $0x8e4] sm:$0xf0] }
0x218e   : > { %9409 = vmatpush.bf16.msra.mxu2 %v12608_v10  ;;  %9422 = vmatpush.bf16.msra.mxu3 %v12672_v23  ;;  %v12567_v10 = vld [vmem:[%s15984_s11 + $0x610] sm:$0xf]  ;;  %v15518_v23 = vpop.f32.mrf.mxu0 }
0x218f   : > { %v7500_v38 = vrot.slane %v15518_v23, 4 }
0x2190   : > { %9435 = vmatpush.bf16.msra.mxu0 %v12736_v6  ;;  %9448 = vmatpush.bf16.msra.mxu1 %v12800_v47  ;;  %v12768_v6 = vor.u32 %v13592_v55, %v12767_v37  ;;  %v12695_v47 = vld [vmem:[%s15984_s11 + $0x710] sm:$0xf]  ;;  %v15557_v37 = vpop.f32.mrf.mxu1 }
0x2191   : > { %v12696_v24 = vor.u32 %v13574_v45, %v12695_v47  ;;  %v12855_v47 = vld [vmem:[%s15984_s11 + $0x850] sm:$0xf]  ;;  %v15570_v45 = vpack.c.bf16 %v7501_v57, %v7501_v57  ;;  %v13626_v57 = vld [vmem:[%s15984_s11 + $0x8b4] sm:$0xf0] }
0x2192   : > { %9410 = vmatpush.bf16.msra.mxu2 %v12600_v19  ;;  %9423 = vmatpush.bf16.msra.mxu3 %v12664_v21  ;;  %v12568_v19 = vor.u32 %v13542_v50, %v12567_v10  ;;  %v12632_v21 = vor.u32 %v13558_v14, %v12631_v58  ;;  %v15562_v10 = vpack.c.bf16 %v15524_v16, %v15524_v16  ;;  %v11841_v50 = vld [vmem:[%s15984_s11 + $0x68] sm:$0xf0]  ;;  %v13375_v58 = vld [vmem:[%s15984_s11 + $0xe4] sm:$0xf]  ;;  %v13614_v16 = vld [vmem:[%s15984_s11 + $0x854] sm:$0xf0] }
0x2193   : > { %v11905_v14 = vld [vmem:[%s15984_s11 + $0xe8] sm:$0xf0] }
0x2194   : > { %9436 = vmatpush.bf16.msra.mxu0 %v12728_v44  ;;  %9449 = vmatpush.bf16.msra.mxu1 %v12792_v63  ;;  %v12871_v44 = vld [vmem:[%s15984_s11 + $0x870] sm:$0xf]  ;;  %v13618_v63 = vld [vmem:[%s15984_s11 + $0x874] sm:$0xf0] }
0x2195   : > { %v12872_v26 = vor.u32 %v13618_v63, %v12871_v44  ;;  %v11897_v44 = vld [vmem:[%s15984_s11 + $0xd8] sm:$0xf0]  ;;  %v12856_v63 = vor.u32 %v13614_v16, %v12855_v47  ;;  %v13351_v47 = vld [vmem:[%s15984_s11 + $0x24] sm:$0xf]  ;;  %v11809_v16 = vld [vmem:[%s15984_s11 + $0x28] sm:$0xf0] }
0x2196   : > { %9411 = vmatpush.bf16.msra.mxu2 %v12592_v28  ;;  %9424 = vmatpush.bf16.msra.mxu3 %v12656_v31  ;;  %v12687_v28 = vld [vmem:[%s15984_s11 + $0x700] sm:$0xf]  ;;  %v13572_v31 = vld [vmem:[%s15984_s11 + $0x704] sm:$0xf0]  ;;  %v15543_v43 = vpop.f32.mrf.mxu0 }
0x2197   : > { %v12688_v52 = vor.u32 %v13572_v31, %v12687_v28  ;;  %v13628_v28 = vld [vmem:[%s15984_s11 + $0x8c4] sm:$0xf0] }
0x2198   : > { %9437 = vmatpush.bf16.msra.mxu0 %v12720_v29  ;;  %9450 = vmatpush.bf16.msra.mxu1 %v12784_v42  ;;  %v12624_v29 = vor.u32 %v13556_v40, %v12623_v12  ;;  %v13361_v42 = vld [vmem:[%s15984_s11 + $0x74] sm:$0xf]  ;;  %v11833_v12 = vld [vmem:[%s15984_s11 + $0x58] sm:$0xf0]  ;;  %v7478_v31 = vpop.f32.mrf.mxu1 }
0x2199   : > { %v11852_v55 = vor.u32 %v13361_v42, %v11849_v48  ;;  %v13373_v40 = vld [vmem:[%s15984_s11 + $0xd4] sm:$0xf]  ;;  %v11836_v32 = vor.u32 %v13357_v22, %v11833_v12  ;;  %v11889_v42 = vld [vmem:[%s15984_s11 + $0xc8] sm:$0xf0]  ;;  %v12839_v48 = vld [vmem:[%s15984_s11 + $0x830] sm:$0xf] }
0x219a   : > { %9412 = vmatpush.bf16.msra.mxu2 %v12584_v49  ;;  %9425 = vmatpush.bf16.msra.mxu3 %v12648_v51  ;;  %v13377_v49 = vld [vmem:[%s15984_s11 + $0xf4] sm:$0xf]  ;;  %v11913_v51 = vld [vmem:[%s15984_s11 + $0xf8] sm:$0xf0]  ;;  %v11900_v33 = vor.u32 %v13373_v40, %v11897_v44  ;;  %v12823_v22 = vld [vmem:[%s15984_s11 + $0x810] sm:$0xf]  ;;  %v11812_v44 = vor.u32 %v13351_v47, %v11809_v16 }
0x219b   : > { %v12887_v12 = vld [vmem:[%s15984_s11 + $0x890] sm:$0xf]  ;;  %v13622_v40 = vld [vmem:[%s15984_s11 + $0x894] sm:$0xf0]  ;;  %v11969_v16 = vld [vmem:[%s15984_s11 + $0x168] sm:$0xf0] }
0x219c   : > { %9438 = vmatpush.bf16.msra.mxu0 %v12712_v54  ;;  %9451 = vmatpush.bf16.msra.mxu1 %v12776_v2  ;;  %v15552_v54 = vpack.c.bf16 %v15518_v23, %v15518_v23  ;;  %v13616_v2 = vld [vmem:[%s15984_s11 + $0x864] sm:$0xf0]  ;;  %v15564_v23 = vpack.c.bf16 %v7500_v38, %v7500_v38  ;;  %v13355_v38 = vld [vmem:[%s15984_s11 + $0x44] sm:$0xf]  ;;  %v12888_v31 = vor.u32 %v13622_v40, %v12887_v12  ;;  %v12161_v12 = vld [vmem:[%s15984_s11 + $0x2e8] sm:$0xf0] }
0x219e   : > { %9413 = vmatpush.bf16.msra.mxu2 %v12576_v59  ;;  %9426 = vmatpush.bf16.msra.mxu3 %v12640_v34  ;;  %v11916_v59 = vor.u32 %v13377_v49, %v11913_v51  ;;  %v13359_v34 = vld [vmem:[%s15984_s11 + $0x64] sm:$0xf]  ;;  %v7455_v35 = vpop.f32.mrf.mxu0  ;;  %v13610_v49 = vld [vmem:[%s15984_s11 + $0x834] sm:$0xf0]  ;;  %v12903_v51 = vld [vmem:[%s15984_s11 + $0x8b0] sm:$0xf] }
0x219f   : > { %v13606_v35 = vld [vmem:[%s15984_s11 + $0x814] sm:$0xf0] }
0x21a0   : > { %9439 = vmatpush.bf16.msra.mxu0 %v12704_v5  ;;  %9452 = vmatpush.bf16.msra.mxu1 %v12768_v6  ;;  %v12864_v5 = vor.u32 %v13616_v2, %v12863_v53  ;;  %v12928_v6 = vor.u32 %v13632_v60, %v12927_v9  ;;  %v13353_v53 = vld [vmem:[%s15984_s11 + $0x34] sm:$0xf]  ;;  %v11817_v2 = vld [vmem:[%s15984_s11 + $0x38] sm:$0xf0] }
0x21a1   : > { %v13369_v9 = vld [vmem:[%s15984_s11 + $0xb4] sm:$0xf]  ;;  %v11881_v60 = vld [vmem:[%s15984_s11 + $0xb8] sm:$0xf0] }
0x21a2   : > { %9414 = vmatpush.bf16.msra.mxu2 %v12568_v19  ;;  %9427 = vmatpush.bf16.msra.mxu3 %v12632_v21  ;;  %v11844_v19 = vor.u32 %v13359_v34, %v11841_v50  ;;  %v11908_v21 = vor.u32 %v13375_v58, %v11905_v14  ;;  %v12831_v34 = vld [vmem:[%s15984_s11 + $0x820] sm:$0xf]  ;;  %v13608_v50 = vld [vmem:[%s15984_s11 + $0x824] sm:$0xf0] }
0x21a3   : > { %v12895_v58 = vld [vmem:[%s15984_s11 + $0x8a0] sm:$0xf]  ;;  %v13624_v14 = vld [vmem:[%s15984_s11 + $0x8a4] sm:$0xf0] }
0x21a4   : > { %9440 = vmatpush.bf16.msra.mxu0 %v12696_v24  ;;  %9453 = vmatpush.bf16.msra.mxu1 %v12760_v20  ;;  %v12920_v24 = vor.u32 %v13630_v36, %v12919_v17  ;;  %v12847_v20 = vld [vmem:[%s15984_s11 + $0x840] sm:$0xf]  ;;  %v13367_v17 = vld [vmem:[%s15984_s11 + $0xa4] sm:$0xf]  ;;  %v11873_v36 = vld [vmem:[%s15984_s11 + $0xa8] sm:$0xf0] }
0x21a6   : > { %9415 = vmatpush.bf16.msra.mxu2 %v12560_v39  ;;  %9428 = vmatpush.bf16.msra.mxu3 %v12624_v29  ;;  %v11825_v39 = vld [vmem:[%s15984_s11 + $0x48] sm:$0xf0]  ;;  %v13371_v29 = vld [vmem:[%s15984_s11 + $0xc4] sm:$0xf] }
0x21a8   : > { %9441 = vmatpush.bf16.msra.mxu0 %v12688_v52  ;;  %9454 = vmatpush.bf16.msra.mxu1 %v12752_v30  ;;  %v11828_v52 = vor.u32 %v13355_v38, %v11825_v39  ;;  %v11892_v30 = vor.u32 %v13371_v29, %v11889_v42  ;;  %v12879_v38 = vld [vmem:[%s15984_s11 + $0x880] sm:$0xf]  ;;  %v13620_v39 = vld [vmem:[%s15984_s11 + $0x884] sm:$0xf0]  ;;  %v13393_v29 = vld [vmem:[%s15984_s11 + $0x174] sm:$0xf] }
0x21a9   : > { %9416 = vmatmul.bf16.vlgmr.msra.gmra.mxu2 %v15552_v54  ;;  %9429 = vmatmul.bf16.vlgmr.msra.gmra.mxu3 %v15562_v10  ;;  %v11977_v42 = vld [vmem:[%s15984_s11 + $0x178] sm:$0xf0] }
0x21aa   : > { %9460 = vmatpush.bf16.msrb.mxu2 %v12872_v26  ;;  %9473 = vmatpush.bf16.msrb.mxu3 %v12936_v46  ;;  %v12848_v26 = vor.u32 %v13612_v25, %v12847_v20  ;;  %v12912_v46 = vor.u32 %v13628_v28, %v12911_v27  ;;  %v11801_v20 = vld [vmem:[%s15984_s11 + $0x18] sm:$0xf0]  ;;  %v13365_v25 = vld [vmem:[%s15984_s11 + $0x94] sm:$0xf]  ;;  %v12824_v28 = vor.u32 %v13606_v35, %v12823_v22  ;;  %v13423_v22 = vld [vmem:[%s15984_s11 + $0x264] sm:$0xf] }
0x21ab   : > { %9442 = vmatmul.bf16.vlgmr.msra.gmra.mxu0 %v15564_v23  ;;  %9455 = vmatmul.bf16.vlgmr.msra.gmra.mxu1 %v15570_v45  ;;  %v11865_v27 = vld [vmem:[%s15984_s11 + $0x98] sm:$0xf0]  ;;  %v12097_v35 = vld [vmem:[%s15984_s11 + $0x268] sm:$0xf0] }
0x21ac   : > { %9486 = vmatpush.bf16.msrb.mxu0 %v11852_v55  ;;  %9499 = vmatpush.bf16.msrb.mxu1 %v11916_v59  ;;  %v12840_v55 = vor.u32 %v13610_v49, %v12839_v48  ;;  %v12904_v59 = vor.u32 %v13626_v57, %v12903_v51  ;;  %v13409_v48 = vld [vmem:[%s15984_s11 + $0x1f4] sm:$0xf]  ;;  %v12041_v49 = vld [vmem:[%s15984_s11 + $0x1f8] sm:$0xf0]  ;;  %v13347_v51 = vld [vmem:[%s15984_s11 + $0x4] sm:$0xf] }
0x21ad   : > { %v11793_v57 = vld [vmem:[%s15984_s11 + $0x8] sm:$0xf0] }
0x21ae   : > { %9461 = vmatpush.bf16.msrb.mxu2 %v12864_v5  ;;  %9474 = vmatpush.bf16.msrb.mxu3 %v12928_v6  ;;  %v11820_v5 = vor.u32 %v13353_v53, %v11817_v2  ;;  %v11884_v6 = vor.u32 %v13369_v9, %v11881_v60  ;;  %v12880_v2 = vor.u32 %v13620_v39, %v12879_v38  ;;  %v13425_v9 = vld [vmem:[%s15984_s11 + $0x274] sm:$0xf]  ;;  %v12105_v60 = vld [vmem:[%s15984_s11 + $0x278] sm:$0xf0] }
0x21af   : > { %v12108_v47 = vor.u32 %v13425_v9, %v12105_v60  ;;  %v11945_v9 = vld [vmem:[%s15984_s11 + $0x138] sm:$0xf0]  ;;  %v13401_v60 = vld [vmem:[%s15984_s11 + $0x1b4] sm:$0xf] }
0x21b0   : > { %9487 = vmatpush.bf16.msrb.mxu0 %v11844_v19  ;;  %9500 = vmatpush.bf16.msrb.mxu1 %v11908_v21  ;;  %v12832_v19 = vor.u32 %v13608_v50, %v12831_v34  ;;  %v12896_v21 = vor.u32 %v13624_v14, %v12895_v58  ;;  %v13441_v34 = vld [vmem:[%s15984_s11 + $0x2f4] sm:$0xf]  ;;  %v12169_v50 = vld [vmem:[%s15984_s11 + $0x2f8] sm:$0xf0]  ;;  %v11796_v58 = vor.u32 %v13347_v51, %v11793_v57  ;;  %v13435_v51 = vld [vmem:[%s15984_s11 + $0x2c4] sm:$0xf] }
0x21b1   : > { %v12145_v57 = vld [vmem:[%s15984_s11 + $0x2c8] sm:$0xf0] }
0x21b2   : > { %9462 = vmatpush.bf16.msrb.mxu2 %v12856_v63  ;;  %9475 = vmatpush.bf16.msrb.mxu3 %v12920_v24  ;;  %v11876_v63 = vor.u32 %v13367_v17, %v11873_v36  ;;  %v13349_v24 = vld [vmem:[%s15984_s11 + $0x14] sm:$0xf]  ;;  %v13407_v17 = vld [vmem:[%s15984_s11 + $0x1e4] sm:$0xf]  ;;  %v12033_v36 = vld [vmem:[%s15984_s11 + $0x1e8] sm:$0xf0] }
0x21b4   : > { %9488 = vmatpush.bf16.msrb.mxu0 %v11836_v32  ;;  %9501 = vmatpush.bf16.msrb.mxu1 %v11900_v33  ;;  %v12815_v32 = vld [vmem:[%s15984_s11 + $0x800] sm:$0xf]  ;;  %v13604_v33 = vld [vmem:[%s15984_s11 + $0x804] sm:$0xf0] }
0x21b5   : > { %v12816_v53 = vor.u32 %v13604_v33, %v12815_v32  ;;  %v13437_v32 = vld [vmem:[%s15984_s11 + $0x2d4] sm:$0xf]  ;;  %v12153_v33 = vld [vmem:[%s15984_s11 + $0x2d8] sm:$0xf0] }
0x21b6   : > { %9463 = vmatpush.bf16.msrb.mxu2 %v12848_v26  ;;  %9476 = vmatpush.bf16.msrb.mxu3 %v12912_v46  ;;  %v11804_v26 = vor.u32 %v13349_v24, %v11801_v20  ;;  %v11868_v46 = vor.u32 %v13365_v25, %v11865_v27  ;;  %v11961_v24 = vld [vmem:[%s15984_s11 + $0x158] sm:$0xf0]  ;;  %v13405_v20 = vld [vmem:[%s15984_s11 + $0x1d4] sm:$0xf] }
0x21b7   : > { %v12025_v25 = vld [vmem:[%s15984_s11 + $0x1d8] sm:$0xf0] }
0x21b8   : > { %9489 = vmatpush.bf16.msrb.mxu0 %v11828_v52  ;;  %9502 = vmatpush.bf16.msrb.mxu1 %v11892_v30  ;;  %v13363_v52 = vld [vmem:[%s15984_s11 + $0x84] sm:$0xf]  ;;  %v11857_v30 = vld [vmem:[%s15984_s11 + $0x88] sm:$0xf0]  ;;  %v12028_v39 = vor.u32 %v13405_v20, %v12025_v25  ;;  %v11929_v25 = vld [vmem:[%s15984_s11 + $0x118] sm:$0xf0] }
0x21b9   : > { %v11860_v14 = vor.u32 %v13363_v52, %v11857_v30 }
0x21ba   : > { %9464 = vmatpush.bf16.msrb.mxu2 %v12840_v55  ;;  %9477 = vmatpush.bf16.msrb.mxu3 %v12904_v59  ;;  %v11980_v55 = vor.u32 %v13393_v29, %v11977_v42  ;;  %v12044_v59 = vor.u32 %v13409_v48, %v12041_v49  ;;  %v13387_v29 = vld [vmem:[%s15984_s11 + $0x144] sm:$0xf]  ;;  %v12081_v49 = vld [vmem:[%s15984_s11 + $0x248] sm:$0xf0] }
0x21bb   : > { %v13419_v48 = vld [vmem:[%s15984_s11 + $0x244] sm:$0xf] }
0x21bc   : > { %9490 = vmatpush.bf16.msrb.mxu0 %v11820_v5  ;;  %9503 = vmatpush.bf16.msrb.mxu1 %v11884_v6  ;;  %v13391_v5 = vld [vmem:[%s15984_s11 + $0x164] sm:$0xf]  ;;  %v15634_v6 = vpack.c.bf16 %v15543_v43, %v15543_v43 }
0x21bd   : > { %v13439_v43 = vld [vmem:[%s15984_s11 + $0x2e4] sm:$0xf]  ;;  %v11972_v40 = vor.u32 %v13391_v5, %v11969_v16 }
0x21be   : > { %9465 = vmatpush.bf16.msrb.mxu2 %v12832_v19  ;;  %9478 = vmatpush.bf16.msrb.mxu3 %v12896_v21  ;;  %v15641_v19 = vpack.c.bf16 %v15557_v37, %v15557_v37  ;;  %v12172_v21 = vor.u32 %v13441_v34, %v12169_v50  ;;  %v13389_v37 = vld [vmem:[%s15984_s11 + $0x154] sm:$0xf]  ;;  %v12164_v27 = vor.u32 %v13439_v43, %v12161_v12  ;;  %v12073_v50 = vld [vmem:[%s15984_s11 + $0x238] sm:$0xf0]  ;;  %v13383_v16 = vld [vmem:[%s15984_s11 + $0x124] sm:$0xf] }
0x21bf   : > { %v11964_v38 = vor.u32 %v13389_v37, %v11961_v24  ;;  %v13417_v34 = vld [vmem:[%s15984_s11 + $0x234] sm:$0xf]  ;;  %v13415_v43 = vld [vmem:[%s15984_s11 + $0x224] sm:$0xf]  ;;  %v12065_v12 = vld [vmem:[%s15984_s11 + $0x228] sm:$0xf0] }
0x21c0   : > { %9491 = vmatpush.bf16.msrb.mxu0 %v11812_v44  ;;  %9504 = vmatpush.bf16.msrb.mxu1 %v11876_v63  ;;  %v12036_v44 = vor.u32 %v13407_v17, %v12033_v36  ;;  %v12100_v63 = vor.u32 %v13423_v22, %v12097_v35  ;;  %v12076_v17 = vor.u32 %v13417_v34, %v12073_v50  ;;  %v11937_v36 = vld [vmem:[%s15984_s11 + $0x128] sm:$0xf0]  ;;  %v13381_v24 = vld [vmem:[%s15984_s11 + $0x114] sm:$0xf] }
0x21c1   : > { %v12001_v22 = vld [vmem:[%s15984_s11 + $0x1a8] sm:$0xf0]  ;;  %v11940_v37 = vor.u32 %v13383_v16, %v11937_v36  ;;  %v12068_v20 = vor.u32 %v13415_v43, %v12065_v12  ;;  %v13489_v34 = vld [vmem:[%s15984_s11 + $0x474] sm:$0xf]  ;;  %v13455_v36 = vld [vmem:[%s15984_s11 + $0x364] sm:$0xf] }
0x21c2   : > { %9466 = vmatpush.bf16.msrb.mxu2 %v12824_v28  ;;  %9479 = vmatpush.bf16.msrb.mxu3 %v12888_v31  ;;  %v13421_v28 = vld [vmem:[%s15984_s11 + $0x254] sm:$0xf]  ;;  %v12089_v31 = vld [vmem:[%s15984_s11 + $0x258] sm:$0xf0] }
0x21c3   : > { %v12092_v42 = vor.u32 %v13421_v28, %v12089_v31  ;;  %v11993_v28 = vld [vmem:[%s15984_s11 + $0x198] sm:$0xf0] }
0x21c4   : > { %9492 = vmatpush.bf16.msrb.mxu0 %v11804_v26  ;;  %9505 = vmatpush.bf16.msrb.mxu1 %v11868_v46  ;;  %v11953_v26 = vld [vmem:[%s15984_s11 + $0x148] sm:$0xf0]  ;;  %v13403_v46 = vld [vmem:[%s15984_s11 + $0x1c4] sm:$0xf] }
0x21c5   : > { %v11956_v52 = vor.u32 %v13387_v29, %v11953_v26  ;;  %v11932_v29 = vor.u32 %v13381_v24, %v11929_v25  ;;  %v13379_v26 = vld [vmem:[%s15984_s11 + $0x104] sm:$0xf]  ;;  %v13453_v25 = vld [vmem:[%s15984_s11 + $0x354] sm:$0xf] }
0x21c6   : > { %9467 = vmatpush.bf16.msrb.mxu2 %v12816_v53  ;;  %9480 = vmatpush.bf16.msrb.mxu3 %v12880_v2  ;;  %v13385_v53 = vld [vmem:[%s15984_s11 + $0x134] sm:$0xf]  ;;  %v12084_v2 = vor.u32 %v13419_v48, %v12081_v49  ;;  %v11985_v48 = vld [vmem:[%s15984_s11 + $0x188] sm:$0xf0] }
0x21c7   : > { %v11948_v5 = vor.u32 %v13385_v53, %v11945_v9  ;;  %v13457_v49 = vld [vmem:[%s15984_s11 + $0x374] sm:$0xf]  ;;  %v13411_v53 = vld [vmem:[%s15984_s11 + $0x204] sm:$0xf] }
0x21c8   : > { %9493 = vmatpush.bf16.msrb.mxu0 %v11796_v58  ;;  %9506 = vmatpush.bf16.msrb.mxu1 %v11860_v14  ;;  %v13433_v58 = vld [vmem:[%s15984_s11 + $0x2b4] sm:$0xf]  ;;  %v12137_v14 = vld [vmem:[%s15984_s11 + $0x2b8] sm:$0xf0]  ;;  %v13427_v9 = vld [vmem:[%s15984_s11 + $0x284] sm:$0xf] }
0x21c9   : > { %9468 = vmatmul.bf16.vlgmr.msrb.gmra.mxu2 %v15634_v6  ;;  %9481 = vmatmul.bf16.vlgmr.msrb.gmra.mxu3 %v15641_v19  ;;  %v12140_v35 = vor.u32 %v13433_v58, %v12137_v14  ;;  %v12361_v14 = vld [vmem:[%s15984_s11 + $0x478] sm:$0xf0] }
0x21ca   : > { %9512 = vmatpush.bf16.msra.mxu2 %v11980_v55  ;;  %9525 = vmatpush.bf16.msra.mxu3 %v12044_v59  ;;  %v12009_v55 = vld [vmem:[%s15984_s11 + $0x1b8] sm:$0xf0]  ;;  %v12148_v59 = vor.u32 %v13435_v51, %v12145_v57  ;;  %v12364_v43 = vor.u32 %v13489_v34, %v12361_v14  ;;  %v9250_v34 = vrot.slane %v15219_v41, 4  ;;  %v13481_v14 = vld [vmem:[%s15984_s11 + $0x434] sm:$0xf] }
0x21cb   : > { %9494 = vmatmul.bf16.vlgmr.msrb.gmra.mxu0 %v15379_v15  ;;  %9507 = vmatmul.bf16.vlgmr.msrb.gmra.mxu1 %v15381_v3  ;;  %v12017_v15 = vld [vmem:[%s15984_s11 + $0x1c8] sm:$0xf0]  ;;  %v12156_v3 = vor.u32 %v13437_v32, %v12153_v33  ;;  %v13413_v32 = vld [vmem:[%s15984_s11 + $0x214] sm:$0xf]  ;;  %v12057_v33 = vld [vmem:[%s15984_s11 + $0x218] sm:$0xf0] }
0x21cc   : > { %9538 = vmatpush.bf16.msra.mxu0 %v12108_v47  ;;  %9551 = vmatpush.bf16.msra.mxu1 %v12172_v21  ;;  %v12020_v30 = vor.u32 %v13403_v46, %v12017_v15  ;;  %v12012_v47 = vor.u32 %v13401_v60, %v12009_v55  ;;  %v13399_v21 = vld [vmem:[%s15984_s11 + $0x1a4] sm:$0xf]  ;;  %v11921_v46 = vld [vmem:[%s15984_s11 + $0x108] sm:$0xf0]  ;;  %v12233_v51 = vld [vmem:[%s15984_s11 + $0x378] sm:$0xf0] }
0x21cd   : > { %v13395_v15 = vld [vmem:[%s15984_s11 + $0x184] sm:$0xf]  ;;  %v12113_v60 = vld [vmem:[%s15984_s11 + $0x288] sm:$0xf0]  ;;  %v11924_v55 = vor.u32 %v13379_v26, %v11921_v46  ;;  %v12236_v50 = vor.u32 %v13457_v49, %v12233_v51 }
0x21ce   : > { %9513 = vmatpush.bf16.msra.mxu2 %v11972_v40  ;;  %9526 = vmatpush.bf16.msra.mxu3 %v12036_v44  ;;  %v13431_v40 = vld [vmem:[%s15984_s11 + $0x2a4] sm:$0xf]  ;;  %v12129_v44 = vld [vmem:[%s15984_s11 + $0x2a8] sm:$0xf0] }
0x21cf   : > { %v12132_v31 = vor.u32 %v13431_v40, %v12129_v44  ;;  %v13487_v40 = vld [vmem:[%s15984_s11 + $0x464] sm:$0xf]  ;;  %v12353_v44 = vld [vmem:[%s15984_s11 + $0x468] sm:$0xf0] }
0x21d0   : > { %9539 = vmatpush.bf16.msra.mxu0 %v12100_v63  ;;  %9552 = vmatpush.bf16.msra.mxu1 %v12164_v27  ;;  %v12004_v63 = vor.u32 %v13399_v21, %v12001_v22  ;;  %v13397_v27 = vld [vmem:[%s15984_s11 + $0x194] sm:$0xf]  ;;  %v12225_v21 = vld [vmem:[%s15984_s11 + $0x368] sm:$0xf0]  ;;  %v13471_v22 = vld [vmem:[%s15984_s11 + $0x3e4] sm:$0xf] }
0x21d1   : > { %v12228_v24 = vor.u32 %v13455_v36, %v12225_v21  ;;  %v13451_v26 = vld [vmem:[%s15984_s11 + $0x344] sm:$0xf]  ;;  %v12209_v46 = vld [vmem:[%s15984_s11 + $0x348] sm:$0xf0]  ;;  %v12393_v36 = vld [vmem:[%s15984_s11 + $0x4b8] sm:$0xf0] }
0x21d2   : > { %9514 = vmatpush.bf16.msra.mxu2 %v11964_v38  ;;  %9527 = vmatpush.bf16.msra.mxu3 %v12028_v39  ;;  %v13429_v38 = vld [vmem:[%s15984_s11 + $0x294] sm:$0xf]  ;;  %v12121_v39 = vld [vmem:[%s15984_s11 + $0x298] sm:$0xf0] }
0x21d3   : > { %v12124_v57 = vor.u32 %v13429_v38, %v12121_v39  ;;  %v13485_v38 = vld [vmem:[%s15984_s11 + $0x454] sm:$0xf] }
0x21d4   : > { %9540 = vmatpush.bf16.msra.mxu0 %v12092_v42  ;;  %9553 = vmatpush.bf16.msra.mxu1 %v12156_v3  ;;  %v11996_v42 = vor.u32 %v13397_v27, %v11993_v28  ;;  %v12060_v3 = vor.u32 %v13413_v32, %v12057_v33  ;;  %v12217_v27 = vld [vmem:[%s15984_s11 + $0x358] sm:$0xf0]  ;;  %v13469_v28 = vld [vmem:[%s15984_s11 + $0x3d4] sm:$0xf]  ;;  %v12356_v32 = vor.u32 %v13487_v40, %v12353_v44  ;;  %v13463_v40 = vld [vmem:[%s15984_s11 + $0x3a4] sm:$0xf] }
0x21d5   : > { %v13501_v39 = vld [vmem:[%s15984_s11 + $0x4d4] sm:$0xf]  ;;  %v12257_v44 = vld [vmem:[%s15984_s11 + $0x3a8] sm:$0xf0] }
0x21d6   : > { %9515 = vmatpush.bf16.msra.mxu2 %v11956_v52  ;;  %9528 = vmatpush.bf16.msra.mxu3 %v12020_v30  ;;  %v13473_v52 = vld [vmem:[%s15984_s11 + $0x3f4] sm:$0xf]  ;;  %v12297_v30 = vld [vmem:[%s15984_s11 + $0x3f8] sm:$0xf0] }
0x21d7   : > { %v12300_v58 = vor.u32 %v13473_v52, %v12297_v30  ;;  %v13499_v52 = vld [vmem:[%s15984_s11 + $0x4c4] sm:$0xf]  ;;  %v12401_v30 = vld [vmem:[%s15984_s11 + $0x4c8] sm:$0xf0] }
0x21d8   : > { %9541 = vmatpush.bf16.msra.mxu0 %v12084_v2  ;;  %9554 = vmatpush.bf16.msra.mxu1 %v12148_v59  ;;  %v12049_v2 = vld [vmem:[%s15984_s11 + $0x208] sm:$0xf0]  ;;  %v11988_v59 = vor.u32 %v13395_v15, %v11985_v48  ;;  %v13467_v15 = vld [vmem:[%s15984_s11 + $0x3c4] sm:$0xf] }
0x21d9   : > { %v12052_v16 = vor.u32 %v13411_v53, %v12049_v2  ;;  %v13483_v48 = vld [vmem:[%s15984_s11 + $0x444] sm:$0xf]  ;;  %v12212_v53 = vor.u32 %v13451_v26, %v12209_v46 }
0x21da   : > { %9516 = vmatpush.bf16.msra.mxu2 %v11948_v5  ;;  %9529 = vmatpush.bf16.msra.mxu3 %v12012_v47  ;;  %v13505_v5 = vld [vmem:[%s15984_s11 + $0x4f4] sm:$0xf]  ;;  %v12425_v47 = vld [vmem:[%s15984_s11 + $0x4f8] sm:$0xf0] }
0x21db   : > { %v12428_v12 = vor.u32 %v13505_v5, %v12425_v47 }
0x21dc   : > { %9542 = vmatpush.bf16.msra.mxu0 %v12076_v17  ;;  %9555 = vmatpush.bf16.msra.mxu1 %v12140_v35  ;;  %v12116_v17 = vor.u32 %v13427_v9, %v12113_v60  ;;  %v12289_v35 = vld [vmem:[%s15984_s11 + $0x3e8] sm:$0xf0]  ;;  %v13449_v9 = vld [vmem:[%s15984_s11 + $0x334] sm:$0xf]  ;;  %v12201_v60 = vld [vmem:[%s15984_s11 + $0x338] sm:$0xf0] }
0x21de   : > { %9517 = vmatpush.bf16.msra.mxu2 %v11940_v37  ;;  %9530 = vmatpush.bf16.msra.mxu3 %v12004_v63  ;;  %v13503_v37 = vld [vmem:[%s15984_s11 + $0x4e4] sm:$0xf]  ;;  %v12417_v63 = vld [vmem:[%s15984_s11 + $0x4e8] sm:$0xf0] }
0x21df   : > { %v12420_v33 = vor.u32 %v13503_v37, %v12417_v63 }
0x21e0   : > { %9543 = vmatpush.bf16.msra.mxu0 %v12068_v20  ;;  %9556 = vmatpush.bf16.msra.mxu1 %v12132_v31  ;;  %v12292_v20 = vor.u32 %v13471_v22, %v12289_v35  ;;  %v12281_v31 = vld [vmem:[%s15984_s11 + $0x3d8] sm:$0xf0]  ;;  %v12204_v22 = vor.u32 %v13449_v9, %v12201_v60  ;;  %v13459_v9 = vld [vmem:[%s15984_s11 + $0x384] sm:$0xf]  ;;  %v12241_v60 = vld [vmem:[%s15984_s11 + $0x388] sm:$0xf0] }
0x21e2   : > { %9518 = vmatpush.bf16.msra.mxu2 %v11932_v29  ;;  %9531 = vmatpush.bf16.msra.mxu3 %v11996_v42  ;;  %v12220_v29 = vor.u32 %v13453_v25, %v12217_v27  ;;  %v12284_v42 = vor.u32 %v13469_v28, %v12281_v31  ;;  %v12321_v28 = vld [vmem:[%s15984_s11 + $0x428] sm:$0xf0]  ;;  %v13495_v31 = vld [vmem:[%s15984_s11 + $0x4a4] sm:$0xf] }
0x21e4   : > { %9544 = vmatpush.bf16.msra.mxu0 %v12060_v3  ;;  %9557 = vmatpush.bf16.msra.mxu1 %v12124_v57  ;;  %v12273_v3 = vld [vmem:[%s15984_s11 + $0x3c8] sm:$0xf0] }
0x21e5   : > { %v12337_v57 = vld [vmem:[%s15984_s11 + $0x448] sm:$0xf0]  ;;  %v12276_v2 = vor.u32 %v13467_v15, %v12273_v3  ;;  %v13477_v15 = vld [vmem:[%s15984_s11 + $0x414] sm:$0xf] }
0x21e6   : > { %9519 = vmatpush.bf16.msra.mxu2 %v11924_v55  ;;  %9532 = vmatpush.bf16.msra.mxu3 %v11988_v59  ;;  %v13465_v55 = vld [vmem:[%s15984_s11 + $0x3b4] sm:$0xf]  ;;  %v12265_v59 = vld [vmem:[%s15984_s11 + $0x3b8] sm:$0xf0] }
0x21e7   : > { %v12268_v35 = vor.u32 %v13465_v55, %v12265_v59  ;;  %v12489_v55 = vld [vmem:[%s15984_s11 + $0x578] sm:$0xf0] }
0x21e8   : > { %9545 = vmatpush.bf16.msra.mxu0 %v12052_v16  ;;  %9558 = vmatpush.bf16.msra.mxu1 %v12116_v17  ;;  %v9287_v49 = vpop.f32.mrf.mxu0  ;;  %v9300_v51 = vpop.f32.mrf.mxu1  ;;  %v12329_v16 = vld [vmem:[%s15984_s11 + $0x438] sm:$0xf0]  ;;  %v13497_v17 = vld [vmem:[%s15984_s11 + $0x4b4] sm:$0xf] }
0x21e9   : > { %9520 = vmatmul.bf16.vlgmr.msra.gmra.mxu2 %v15386_v7  ;;  %9533 = vmatmul.bf16.vlgmr.msra.gmra.mxu3 %v15388_v8  ;;  %v12345_v7 = vld [vmem:[%s15984_s11 + $0x458] sm:$0xf0]  ;;  %v12332_v63 = vor.u32 %v13481_v14, %v12329_v16 }
0x21ea   : > { %9564 = vmatpush.bf16.msrb.mxu2 %v12236_v50  ;;  %9577 = vmatpush.bf16.msrb.mxu3 %v12300_v58  ;;  %v12409_v8 = vld [vmem:[%s15984_s11 + $0x4d8] sm:$0xf0]  ;;  %v12340_v50 = vor.u32 %v13483_v48, %v12337_v57  ;;  %v12404_v58 = vor.u32 %v13499_v52, %v12401_v30 }
0x21eb   : > { %9546 = vmatmul.bf16.vlgmr.msra.gmra.mxu0 %v15422_v56  ;;  %9559 = vmatmul.bf16.vlgmr.msra.gmra.mxu1 %v15424_v62  ;;  %v12348_v56 = vor.u32 %v13485_v38, %v12345_v7  ;;  %v12412_v62 = vor.u32 %v13501_v39, %v12409_v8  ;;  %v12260_v7 = vor.u32 %v13463_v40, %v12257_v44  ;;  %v13445_v39 = vld [vmem:[%s15984_s11 + $0x314] sm:$0xf]  ;;  %v12185_v8 = vld [vmem:[%s15984_s11 + $0x318] sm:$0xf0] }
0x21ec   : > { %9590 = vmatpush.bf16.msrb.mxu0 %v12364_v43  ;;  %9603 = vmatpush.bf16.msrb.mxu1 %v12428_v12  ;;  %v9261_v5 = vpop.f32.mrf.mxu2  ;;  %v9274_v47 = vpop.f32.mrf.mxu3  ;;  %v13447_v43 = vld [vmem:[%s15984_s11 + $0x324] sm:$0xf]  ;;  %v12193_v12 = vld [vmem:[%s15984_s11 + $0x328] sm:$0xf0]  ;;  %v12313_v48 = vld [vmem:[%s15984_s11 + $0x418] sm:$0xf0]  ;;  %v12188_v52 = vor.u32 %v13445_v39, %v12185_v8 }
0x21ed   : > { %v9262_v21 = vadd.f32 %v9261_v5, %v9250_v34  ;;  %v12196_v38 = vor.u32 %v13447_v43, %v12193_v12  ;;  %v12377_v57 = vld [vmem:[%s15984_s11 + $0x498] sm:$0xf0]  ;;  %v12316_v59 = vor.u32 %v13477_v15, %v12313_v48  ;;  %v13475_v5 = vld [vmem:[%s15984_s11 + $0x404] sm:$0xf]  ;;  %v13553_v43 = vld [vmem:[%s15984_s11 + $0x674] sm:$0xf] }
0x21ee   : > { %9565 = vmatpush.bf16.msrb.mxu2 %v12228_v24  ;;  %9578 = vmatpush.bf16.msrb.mxu3 %v12292_v20  ;;  %v12396_v24 = vor.u32 %v13497_v17, %v12393_v36  ;;  %v13479_v20 = vld [vmem:[%s15984_s11 + $0x424] sm:$0xf]  ;;  %v12553_v14 = vld [vmem:[%s15984_s11 + $0x5f8] sm:$0xf0]  ;;  %v12305_v17 = vld [vmem:[%s15984_s11 + $0x408] sm:$0xf0] }
0x21ef   : > { %v9275_v37 = vadd.f32 %v9274_v47, %v9262_v21  ;;  %v12324_v26 = vor.u32 %v13479_v20, %v12321_v28  ;;  %v13491_v36 = vld [vmem:[%s15984_s11 + $0x484] sm:$0xf]  ;;  %v12369_v21 = vld [vmem:[%s15984_s11 + $0x488] sm:$0xf0]  ;;  %v12617_v44 = vld [vmem:[%s15984_s11 + $0x678] sm:$0xf0] }
0x21f0   : > { %9591 = vmatpush.bf16.msrb.mxu0 %v12356_v32  ;;  %9604 = vmatpush.bf16.msrb.mxu1 %v12420_v33  ;;  %v9289_v25 = vpop.f32.mrf.mxu0  ;;  %v9302_v27 = vpop.f32.mrf.mxu1  ;;  %v12385_v32 = vld [vmem:[%s15984_s11 + $0x4a8] sm:$0xf0]  ;;  %v12372_v20 = vor.u32 %v13491_v36, %v12369_v21  ;;  %v13551_v8 = vld [vmem:[%s15984_s11 + $0x664] sm:$0xf] }
0x21f1   : > { %v9288_v33 = vadd.f32 %v9287_v49, %v9275_v37  ;;  %v12388_v46 = vor.u32 %v13495_v31, %v12385_v32  ;;  %v13493_v49 = vld [vmem:[%s15984_s11 + $0x494] sm:$0xf]  ;;  %v13519_v25 = vld [vmem:[%s15984_s11 + $0x564] sm:$0xf]  ;;  %v12481_v31 = vld [vmem:[%s15984_s11 + $0x568] sm:$0xf0] }
0x21f2   : > { %9566 = vmatpush.bf16.msrb.mxu2 %v12220_v29  ;;  %9579 = vmatpush.bf16.msrb.mxu3 %v12284_v42  ;;  %v13461_v29 = vld [vmem:[%s15984_s11 + $0x394] sm:$0xf]  ;;  %v12249_v42 = vld [vmem:[%s15984_s11 + $0x398] sm:$0xf0]  ;;  %v13535_v32 = vld [vmem:[%s15984_s11 + $0x5e4] sm:$0xf]  ;;  %v12484_v15 = vor.u32 %v13519_v25, %v12481_v31 }
0x21f3   : > { %v9301_v3 = vadd.f32 %v9300_v51, %v9288_v33  ;;  %v12252_v30 = vor.u32 %v13461_v29, %v12249_v42  ;;  %v13521_v51 = vld [vmem:[%s15984_s11 + $0x574] sm:$0xf]  ;;  %v12545_v33 = vld [vmem:[%s15984_s11 + $0x5e8] sm:$0xf0]  ;;  %v13567_v42 = vld [vmem:[%s15984_s11 + $0x6e4] sm:$0xf] }
0x21f4   : > { %9592 = vmatpush.bf16.msrb.mxu0 %v12348_v56  ;;  %9605 = vmatpush.bf16.msrb.mxu1 %v12412_v62  ;;  %v9263_v56 = vpop.f32.mrf.mxu2  ;;  %v9276_v62 = vpop.f32.mrf.mxu3  ;;  %v12492_v12 = vor.u32 %v13521_v51, %v12489_v55  ;;  %v13569_v37 = vld [vmem:[%s15984_s11 + $0x6f4] sm:$0xf]  ;;  %v12609_v29 = vld [vmem:[%s15984_s11 + $0x668] sm:$0xf0]  ;;  %v13547_v36 = vld [vmem:[%s15984_s11 + $0x644] sm:$0xf] }
0x21f5   : > { %v12548_v56 = vor.u32 %v13535_v32, %v12545_v33  ;;  %v13517_v62 = vld [vmem:[%s15984_s11 + $0x554] sm:$0xf]  ;;  %v12593_v21 = vld [vmem:[%s15984_s11 + $0x648] sm:$0xf0]  ;;  %v12649_v32 = vld [vmem:[%s15984_s11 + $0x6b8] sm:$0xf0] }
0x21f6   : > { %9567 = vmatpush.bf16.msrb.mxu2 %v12212_v53  ;;  %9580 = vmatpush.bf16.msrb.mxu3 %v12276_v2  ;;  %v13443_v53 = vld [vmem:[%s15984_s11 + $0x304] sm:$0xf]  ;;  %v12177_v2 = vld [vmem:[%s15984_s11 + $0x308] sm:$0xf0]  ;;  %v13561_v31 = vld [vmem:[%s15984_s11 + $0x6b4] sm:$0xf] }
0x21f8   : > { %9593 = vmatpush.bf16.msrb.mxu0 %v12340_v50  ;;  %9606 = vmatpush.bf16.msrb.mxu1 %v12404_v58  ;;  %v12380_v50 = vor.u32 %v13493_v49, %v12377_v57  ;;  %v13537_v58 = vld [vmem:[%s15984_s11 + $0x5f4] sm:$0xf]  ;;  %v9339_v47 = vpop.f32.mrf.mxu0  ;;  %v15771_v16 = vpop.f32.mrf.mxu1  ;;  %v12473_v49 = vld [vmem:[%s15984_s11 + $0x558] sm:$0xf0] }
0x21f9   : > { %v12556_v40 = vor.u32 %v13537_v58, %v12553_v14  ;;  %v13533_v57 = vld [vmem:[%s15984_s11 + $0x5d4] sm:$0xf]  ;;  %v12476_v51 = vor.u32 %v13517_v62, %v12473_v49  ;;  %v12641_v49 = vld [vmem:[%s15984_s11 + $0x6a8] sm:$0xf0] }
0x21fa   : > { %9568 = vmatpush.bf16.msrb.mxu2 %v12204_v22  ;;  %9581 = vmatpush.bf16.msrb.mxu3 %v12268_v35  ;;  %v12180_v22 = vor.u32 %v13443_v53, %v12177_v2  ;;  %v12244_v35 = vor.u32 %v13459_v9, %v12241_v60  ;;  %v12612_v53 = vor.u32 %v13551_v8, %v12609_v29  ;;  %v13549_v9 = vld [vmem:[%s15984_s11 + $0x654] sm:$0xf]  ;;  %v12665_v60 = vld [vmem:[%s15984_s11 + $0x6d8] sm:$0xf0]  ;;  %v13527_v8 = vld [vmem:[%s15984_s11 + $0x5a4] sm:$0xf] }
0x21fb   : > { %v12513_v29 = vld [vmem:[%s15984_s11 + $0x5a8] sm:$0xf0] }
0x21fc   : > { %9594 = vmatpush.bf16.msrb.mxu0 %v12332_v63  ;;  %9607 = vmatpush.bf16.msrb.mxu1 %v12396_v24  ;;  %v12681_v63 = vld [vmem:[%s15984_s11 + $0x6f8] sm:$0xf0]  ;;  %v12308_v24 = vor.u32 %v13475_v5, %v12305_v17  ;;  %v9313_v27 = vpop.f32.mrf.mxu2  ;;  %v9326_v28 = vpop.f32.mrf.mxu3  ;;  %v12529_v5 = vld [vmem:[%s15984_s11 + $0x5c8] sm:$0xf0] }
0x21fd   : > { %v12684_v39 = vor.u32 %v13569_v37, %v12681_v63  ;;  %v12521_v37 = vld [vmem:[%s15984_s11 + $0x5b8] sm:$0xf0]  ;;  %v12596_v63 = vor.u32 %v13547_v36, %v12593_v21  ;;  %v13523_v36 = vld [vmem:[%s15984_s11 + $0x584] sm:$0xf] }
0x21fe   : > { %9569 = vmatpush.bf16.msrb.mxu2 %v12196_v38  ;;  %9582 = vmatpush.bf16.msrb.mxu3 %v12260_v7  ;;  %v9314_v38 = vadd.f32 %v9313_v27, %v9301_v3  ;;  %v12620_v7 = vor.u32 %v13553_v43, %v12617_v44  ;;  %v13529_v44 = vld [vmem:[%s15984_s11 + $0x5b4] sm:$0xf] }
0x2200   : > { %9595 = vmatpush.bf16.msrb.mxu0 %v12324_v26  ;;  %9608 = vmatpush.bf16.msrb.mxu1 %v12388_v46  ;;  %v12673_v26 = vld [vmem:[%s15984_s11 + $0x6e8] sm:$0xf0]  ;;  %v9327_v46 = vadd.f32 %v9326_v28, %v9314_v38  ;;  %v9341_v3 = vpop.f32.mrf.mxu0  ;;  %v9354_v48 = vpop.f32.mrf.mxu1  ;;  %v12585_v28 = vld [vmem:[%s15984_s11 + $0x638] sm:$0xf0]  ;;  %v12524_v38 = vor.u32 %v13529_v44, %v12521_v37  ;;  %v13539_v37 = vld [vmem:[%s15984_s11 + $0x604] sm:$0xf] }
0x2201   : > { %v12676_v2 = vor.u32 %v13567_v42, %v12673_v26  ;;  %v12577_v3 = vld [vmem:[%s15984_s11 + $0x628] sm:$0xf0]  ;;  %v13559_v48 = vld [vmem:[%s15984_s11 + $0x6a4] sm:$0xf]  ;;  %v12809_v44 = vld [vmem:[%s15984_s11 + $0x7f8] sm:$0xf0] }
0x2202   : > { %9570 = vmatpush.bf16.msrb.mxu2 %v12188_v52  ;;  %9583 = vmatpush.bf16.msrb.mxu3 %v12252_v30  ;;  %v12537_v52 = vld [vmem:[%s15984_s11 + $0x5d8] sm:$0xf0]  ;;  %v9340_v30 = vadd.f32 %v9339_v47, %v9327_v46  ;;  %v12652_v46 = vor.u32 %v13561_v31, %v12649_v32  ;;  %v13617_v32 = vld [vmem:[%s15984_s11 + $0x874] sm:$0xf] }
0x2203   : > { %v12540_v55 = vor.u32 %v13533_v57, %v12537_v52  ;;  %v12516_v52 = vor.u32 %v13527_v8, %v12513_v29  ;;  %v12937_v8 = vld [vmem:[%s15984_s11 + $0x8f8] sm:$0xf0] }
0x2204   : > { %9596 = vmatpush.bf16.msrb.mxu0 %v12316_v59  ;;  %9609 = vmatpush.bf16.msrb.mxu1 %v12380_v50  ;;  %v13515_v59 = vld [vmem:[%s15984_s11 + $0x544] sm:$0xf]  ;;  %v9353_v50 = vadd.f32 %v15771_v16, %v9340_v30  ;;  %v9315_v58 = vpop.f32.mrf.mxu2  ;;  %v9328_v14 = vpop.f32.mrf.mxu3  ;;  %v13509_v30 = vld [vmem:[%s15984_s11 + $0x514] sm:$0xf] }
0x2205   : > { %v12569_v58 = vld [vmem:[%s15984_s11 + $0x618] sm:$0xf0]  ;;  %v13557_v14 = vld [vmem:[%s15984_s11 + $0x694] sm:$0xf] }
0x2206   : > { %9571 = vmatpush.bf16.msrb.mxu2 %v12180_v22  ;;  %9584 = vmatpush.bf16.msrb.mxu3 %v12244_v35  ;;  %v13563_v22 = vld [vmem:[%s15984_s11 + $0x6c4] sm:$0xf]  ;;  %v12657_v35 = vld [vmem:[%s15984_s11 + $0x6c8] sm:$0xf0] }
0x2208   : > { %9597 = vmatpush.bf16.msrb.mxu0 %v12308_v24  ;;  %9610 = vmatpush.bf16.msrb.mxu1 %v12372_v20  ;;  %v12660_v24 = vor.u32 %v13563_v22, %v12657_v35  ;;  %v13545_v20 = vld [vmem:[%s15984_s11 + $0x634] sm:$0xf]  ;;  %v9391_v25 = vpop.f32.mrf.mxu0  ;;  %v9404_v27 = vpop.f32.mrf.mxu1  ;;  %v12497_v22 = vld [vmem:[%s15984_s11 + $0x588] sm:$0xf0] }
0x2209   : > { %9572 = vmatmul.bf16.vlgmr.msrb.gmra.mxu2 %v15430_v61  ;;  %9585 = vmatmul.bf16.vlgmr.msrb.gmra.mxu3 %v15432_v4  ;;  %v12601_v61 = vld [vmem:[%s15984_s11 + $0x658] sm:$0xf0]  ;;  %v13565_v4 = vld [vmem:[%s15984_s11 + $0x6d4] sm:$0xf]  ;;  %v12588_v26 = vor.u32 %v13545_v20, %v12585_v28  ;;  %v12561_v20 = vld [vmem:[%s15984_s11 + $0x608] sm:$0xf0]  ;;  %v12500_v31 = vor.u32 %v13523_v36, %v12497_v22 }
0x220a   : > { %9616 = vmatpush.bf16.msra.mxu2 %v12492_v12  ;;  %9629 = vmatpush.bf16.msra.mxu3 %v12556_v40  ;;  %v12604_v47 = vor.u32 %v13549_v9, %v12601_v61  ;;  %v12668_v17 = vor.u32 %v13565_v4, %v12665_v60  ;;  %v13513_v12 = vld [vmem:[%s15984_s11 + $0x534] sm:$0xf]  ;;  %v12457_v40 = vld [vmem:[%s15984_s11 + $0x538] sm:$0xf0]  ;;  %v12644_v60 = vor.u32 %v13559_v48, %v12641_v49  ;;  %v13615_v48 = vld [vmem:[%s15984_s11 + $0x864] sm:$0xf] }
0x220b   : > { %9598 = vmatmul.bf16.vlgmr.msrb.gmra.mxu0 %v15470_v0  ;;  %9611 = vmatmul.bf16.vlgmr.msrb.gmra.mxu1 %v15472_v1  ;;  %v12465_v0 = vld [vmem:[%s15984_s11 + $0x548] sm:$0xf0]  ;;  %v13531_v1 = vld [vmem:[%s15984_s11 + $0x5c4] sm:$0xf]  ;;  %v12460_v33 = vor.u32 %v13513_v12, %v12457_v40  ;;  %v13525_v9 = vld [vmem:[%s15984_s11 + $0x594] sm:$0xf]  ;;  %v12564_v29 = vor.u32 %v13539_v37, %v12561_v20 }
0x220c   : > { %9642 = vmatpush.bf16.msra.mxu0 %v12620_v7  ;;  %9655 = vmatpush.bf16.msra.mxu1 %v12684_v39  ;;  %v12468_v16 = vor.u32 %v13515_v59, %v12465_v0  ;;  %v12532_v43 = vor.u32 %v13531_v1, %v12529_v5  ;;  %v13511_v7 = vld [vmem:[%s15984_s11 + $0x524] sm:$0xf]  ;;  %v12449_v39 = vld [vmem:[%s15984_s11 + $0x528] sm:$0xf0]  ;;  %v9365_v42 = vpop.f32.mrf.mxu2  ;;  %v12505_v61 = vld [vmem:[%s15984_s11 + $0x598] sm:$0xf0] }
0x220d   : > { %v9366_v62 = vadd.f32 %v9365_v42, %v9353_v50  ;;  %v12452_v57 = vor.u32 %v13511_v7, %v12449_v39  ;;  %v12633_v0 = vld [vmem:[%s15984_s11 + $0x698] sm:$0xf0]  ;;  %v12508_v5 = vor.u32 %v13525_v9, %v12505_v61  ;;  %v13585_v35 = vld [vmem:[%s15984_s11 + $0x774] sm:$0xf]  ;;  %v12865_v49 = vld [vmem:[%s15984_s11 + $0x868] sm:$0xf0] }
0x220e   : > { %9617 = vmatpush.bf16.msra.mxu2 %v12484_v15  ;;  %9630 = vmatpush.bf16.msra.mxu3 %v12548_v56  ;;  %v9378_v15 = vpop.f32.mrf.mxu3  ;;  %v13543_v56 = vld [vmem:[%s15984_s11 + $0x624] sm:$0xf]  ;;  %v12636_v12 = vor.u32 %v13557_v14, %v12633_v0  ;;  %v13601_v40 = vld [vmem:[%s15984_s11 + $0x7f4] sm:$0xf]  ;;  %v12873_v7 = vld [vmem:[%s15984_s11 + $0x878] sm:$0xf0] }
0x220f   : > { %v12580_v4 = vor.u32 %v13543_v56, %v12577_v3  ;;  %v13633_v39 = vld [vmem:[%s15984_s11 + $0x8f4] sm:$0xf]  ;;  %v12801_v56 = vld [vmem:[%s15984_s11 + $0x7e8] sm:$0xf0]  ;;  %v12729_v9 = vld [vmem:[%s15984_s11 + $0x758] sm:$0xf0] }
0x2210   : > { %9643 = vmatpush.bf16.msra.mxu0 %v12612_v53  ;;  %9656 = vmatpush.bf16.msra.mxu1 %v12676_v2  ;;  %v9379_v53 = vadd.f32 %v9378_v15, %v9366_v62  ;;  %v12441_v2 = vld [vmem:[%s15984_s11 + $0x518] sm:$0xf0]  ;;  %v9406_v59 = vpop.f32.mrf.mxu1  ;;  %v13599_v15 = vld [vmem:[%s15984_s11 + $0x7e4] sm:$0xf]  ;;  %v12876_v62 = vor.u32 %v13617_v32, %v12873_v7  ;;  %v12940_v3 = vor.u32 %v13633_v39, %v12937_v8  ;;  %v13597_v61 = vld [vmem:[%s15984_s11 + $0x7d4] sm:$0xf] }
0x2211   : > { %v12444_v1 = vor.u32 %v13509_v30, %v12441_v2  ;;  %v13581_v2 = vld [vmem:[%s15984_s11 + $0x754] sm:$0xf]  ;;  %v12921_v59 = vld [vmem:[%s15984_s11 + $0x8d8] sm:$0xf0]  ;;  %v13579_v14 = vld [vmem:[%s15984_s11 + $0x744] sm:$0xf] }
0x2212   : > { %9618 = vmatpush.bf16.msra.mxu2 %v12476_v51  ;;  %9631 = vmatpush.bf16.msra.mxu3 %v12540_v55  ;;  %v13541_v51 = vld [vmem:[%s15984_s11 + $0x614] sm:$0xf]  ;;  %v9393_v55 = vpop.f32.mrf.mxu0  ;;  %v9392_v50 = vadd.f32 %v9391_v25, %v9379_v53  ;;  %v13555_v25 = vld [vmem:[%s15984_s11 + $0x684] sm:$0xf]  ;;  %v12804_v53 = vor.u32 %v13599_v15, %v12801_v56  ;;  %v12721_v0 = vld [vmem:[%s15984_s11 + $0x748] sm:$0xf0] }
0x2213   : > { %v13613_v55 = vld [vmem:[%s15984_s11 + $0x854] sm:$0xf]  ;;  %v13627_v36 = vld [vmem:[%s15984_s11 + $0x8c4] sm:$0xf]  ;;  %v12913_v22 = vld [vmem:[%s15984_s11 + $0x8c8] sm:$0xf0] }
0x2214   : > { %9644 = vmatpush.bf16.msra.mxu0 %v12604_v47  ;;  %9657 = vmatpush.bf16.msra.mxu1 %v12668_v17  ;;  %v13507_v47 = vld [vmem:[%s15984_s11 + $0x504] sm:$0xf]  ;;  %v12433_v17 = vld [vmem:[%s15984_s11 + $0x508] sm:$0xf0]  ;;  %v15836_v21 = vadd.f32 %v9404_v27, %v9392_v50  ;;  %v12732_v50 = vor.u32 %v13581_v2, %v12729_v9  ;;  %v13593_v37 = vld [vmem:[%s15984_s11 + $0x7b4] sm:$0xf]  ;;  %v12916_v20 = vor.u32 %v13627_v36, %v12913_v22 }
0x2215   : > { %v12625_v27 = vld [vmem:[%s15984_s11 + $0x688] sm:$0xf0]  ;;  %v12436_v28 = vor.u32 %v13507_v47, %v12433_v17  ;;  %v13611_v47 = vld [vmem:[%s15984_s11 + $0x844] sm:$0xf]  ;;  %v12697_v9 = vld [vmem:[%s15984_s11 + $0x718] sm:$0xf0] }
0x2216   : > { %9619 = vmatpush.bf16.msra.mxu2 %v12468_v16  ;;  %9632 = vmatpush.bf16.msra.mxu3 %v12532_v43  ;;  %v12745_v16 = vld [vmem:[%s15984_s11 + $0x778] sm:$0xf0]  ;;  %v12572_v43 = vor.u32 %v13541_v51, %v12569_v58  ;;  %v12628_v42 = vor.u32 %v13555_v25, %v12625_v27  ;;  %v12849_v17 = vld [vmem:[%s15984_s11 + $0x848] sm:$0xf0]  ;;  %v13609_v25 = vld [vmem:[%s15984_s11 + $0x834] sm:$0xf] }
0x2217   : > { %v12841_v27 = vld [vmem:[%s15984_s11 + $0x838] sm:$0xf0]  ;;  %v13575_v39 = vld [vmem:[%s15984_s11 + $0x724] sm:$0xf]  ;;  %v13273_v36 = vld [vmem:[#allocation7 + $0x34] sm:$0xf] }
0x2218   : > { %9645 = vmatpush.bf16.msra.mxu0 %v12596_v63  ;;  %9658 = vmatpush.bf16.msra.mxu1 %v12660_v24  ;;  %v9367_v63 = vpop.f32.mrf.mxu2  ;;  %v9380_v24 = vpop.f32.mrf.mxu3  ;;  %v13607_v56 = vld [vmem:[%s15984_s11 + $0x824] sm:$0xf] }
0x2219   : > { %v12777_v63 = vld [vmem:[%s15984_s11 + $0x7b8] sm:$0xf0]  ;;  %v12852_v24 = vor.u32 %v13611_v47, %v12849_v17  ;;  %v12753_v47 = vld [vmem:[%s15984_s11 + $0x788] sm:$0xf0]  ;;  %v13603_v17 = vld [vmem:[%s15984_s11 + $0x804] sm:$0xf] }
0x221a   : > { %9620 = vmatpush.bf16.msra.mxu2 %v12460_v33  ;;  %9633 = vmatpush.bf16.msra.mxu3 %v12524_v38  ;;  %v12748_v33 = vor.u32 %v13585_v35, %v12745_v16  ;;  %v12812_v38 = vor.u32 %v13601_v40, %v12809_v44  ;;  %v12724_v35 = vor.u32 %v13579_v14, %v12721_v0  ;;  %v13577_v40 = vld [vmem:[%s15984_s11 + $0x734] sm:$0xf]  ;;  %v12713_v44 = vld [vmem:[%s15984_s11 + $0x738] sm:$0xf0] }
0x221b   : > { %v12716_v32 = vor.u32 %v13577_v40, %v12713_v44  ;;  %v12817_v40 = vld [vmem:[%s15984_s11 + $0x808] sm:$0xf0]  ;;  %v13619_v44 = vld [vmem:[%s15984_s11 + $0x884] sm:$0xf] }
0x221c   : > { %9646 = vmatpush.bf16.msra.mxu0 %v12588_v26  ;;  %9659 = vmatpush.bf16.msra.mxu1 %v12652_v46  ;;  %v13583_v26 = vld [vmem:[%s15984_s11 + $0x764] sm:$0xf]  ;;  %v12737_v46 = vld [vmem:[%s15984_s11 + $0x768] sm:$0xf0] }
0x221d   : > { %v12740_v30 = vor.u32 %v13583_v26, %v12737_v46  ;;  %v12769_v26 = vld [vmem:[%s15984_s11 + $0x7a8] sm:$0xf0]  ;;  %v12844_v46 = vor.u32 %v13609_v25, %v12841_v27  ;;  %v12820_v27 = vor.u32 %v13603_v17, %v12817_v40 }
0x221e   : > { %9621 = vmatpush.bf16.msra.mxu2 %v12452_v57  ;;  %9634 = vmatpush.bf16.msra.mxu3 %v12516_v52  ;;  %v13631_v57 = vld [vmem:[%s15984_s11 + $0x8e4] sm:$0xf]  ;;  %v12929_v52 = vld [vmem:[%s15984_s11 + $0x8e8] sm:$0xf0] }
0x221f   : > { %v12932_v51 = vor.u32 %v13631_v57, %v12929_v52 }
0x2220   : > { %9647 = vmatpush.bf16.msra.mxu0 %v12580_v4  ;;  %9660 = vmatpush.bf16.msra.mxu1 %v12644_v60  ;;  %v12793_v4 = vld [vmem:[%s15984_s11 + $0x7d8] sm:$0xf0]  ;;  %v12868_v60 = vor.u32 %v13615_v48, %v12865_v49  ;;  %v13623_v48 = vld [vmem:[%s15984_s11 + $0x8a4] sm:$0xf]  ;;  %v12897_v49 = vld [vmem:[%s15984_s11 + $0x8a8] sm:$0xf0] }
0x2221   : > { %v12796_v58 = vor.u32 %v13597_v61, %v12793_v4  ;;  %v13589_v61 = vld [vmem:[%s15984_s11 + $0x794] sm:$0xf]  ;;  %v12761_v4 = vld [vmem:[%s15984_s11 + $0x798] sm:$0xf0] }
0x2222   : > { %9622 = vmatpush.bf16.msra.mxu2 %v12444_v1  ;;  %9635 = vmatpush.bf16.msra.mxu3 %v12508_v5  ;;  %v13595_v1 = vld [vmem:[%s15984_s11 + $0x7c4] sm:$0xf]  ;;  %v12785_v5 = vld [vmem:[%s15984_s11 + $0x7c8] sm:$0xf0]  ;;  %v12764_v14 = vor.u32 %v13589_v61, %v12761_v4 }
0x2223   : > { %v12788_v16 = vor.u32 %v13595_v1, %v12785_v5  ;;  %v13571_v5 = vld [vmem:[%s15984_s11 + $0x704] sm:$0xf] }
0x2224   : > { %9648 = vmatpush.bf16.msra.mxu0 %v12572_v43  ;;  %9661 = vmatpush.bf16.msra.mxu1 %v12636_v12 }
0x2226   : > { %9623 = vmatpush.bf16.msra.mxu2 %v12436_v28  ;;  %9636 = vmatpush.bf16.msra.mxu3 %v12500_v31  ;;  %v13625_v28 = vld [vmem:[%s15984_s11 + $0x8b4] sm:$0xf]  ;;  %v12905_v31 = vld [vmem:[%s15984_s11 + $0x8b8] sm:$0xf0] }
0x2227   : > { %v12908_v15 = vor.u32 %v13625_v28, %v12905_v31  ;;  %v13271_v31 = vld [vmem:[#allocation7 + $0x24] sm:$0xf] }
0x2228   : > { %9649 = vmatpush.bf16.msra.mxu0 %v12564_v29  ;;  %9662 = vmatpush.bf16.msra.mxu1 %v12628_v42  ;;  %v9443_v43 = vpop.f32.mrf.mxu0  ;;  %v9456_v12 = vpop.f32.mrf.mxu1  ;;  %v12705_v29 = vld [vmem:[%s15984_s11 + $0x728] sm:$0xf0]  ;;  %v13591_v42 = vld [vmem:[%s15984_s11 + $0x7a4] sm:$0xf] }
0x2229   : > { %9624 = vmatmul.bf16.vlgmr.msra.gmra.mxu2 %v15478_v11  ;;  %9637 = vmatmul.bf16.vlgmr.msra.gmra.mxu3 %v15480_v13  ;;  %v12857_v11 = vld [vmem:[%s15984_s11 + $0x858] sm:$0xf0]  ;;  %v13629_v13 = vld [vmem:[%s15984_s11 + $0x8d4] sm:$0xf]  ;;  %v12772_v57 = vor.u32 %v13591_v42, %v12769_v26  ;;  %v12951_v42 = vld [vmem:[#allocation7 + $0x10] sm:$0xf] }
0x222a   : > { %9668 = vmatpush.bf16.msrb.mxu2 %v12748_v33  ;;  %9681 = vmatpush.bf16.msrb.mxu3 %v12812_v38  ;;  %v12780_v33 = vor.u32 %v13593_v37, %v12777_v63  ;;  %v12881_v37 = vld [vmem:[%s15984_s11 + $0x888] sm:$0xf0]  ;;  %v13270_v26 = vld [vmem:[#allocation7 + $0x14] sm:$0xf0] }
0x222b   : > { %9650 = vmatmul.bf16.vlgmr.msra.gmra.mxu0 %v15552_v54  ;;  %9663 = vmatmul.bf16.vlgmr.msra.gmra.mxu1 %v15562_v10  ;;  %v12860_v54 = vor.u32 %v13613_v55, %v12857_v11  ;;  %v12924_v10 = vor.u32 %v13629_v13, %v12921_v59  ;;  %v13605_v55 = vld [vmem:[%s15984_s11 + $0x814] sm:$0xf]  ;;  %v12825_v11 = vld [vmem:[%s15984_s11 + $0x818] sm:$0xf0]  ;;  %v12884_v28 = vor.u32 %v13619_v44, %v12881_v37 }
0x222c   : > { %9694 = vmatpush.bf16.msrb.mxu0 %v12876_v62  ;;  %9707 = vmatpush.bf16.msrb.mxu1 %v12940_v3  ;;  %v9417_v38 = vpop.f32.mrf.mxu2  ;;  %v9430_v7 = vpop.f32.mrf.mxu3  ;;  %v12833_v3 = vld [vmem:[%s15984_s11 + $0x828] sm:$0xf0]  ;;  %v13621_v13 = vld [vmem:[%s15984_s11 + $0x894] sm:$0xf]  ;;  %v12889_v59 = vld [vmem:[%s15984_s11 + $0x898] sm:$0xf0]  ;;  %v12828_v22 = vor.u32 %v13605_v55, %v12825_v11 }
0x222d   : > { %v9418_v8 = vadd.f32 %v9417_v38, %v15836_v21  ;;  %v12708_v21 = vor.u32 %v13575_v39, %v12705_v29  ;;  %v13272_v38 = vld [vmem:[#allocation7 + $0x24] sm:$0xf0]  ;;  %v12953_v29 = vld [vmem:[#allocation7 + $0x18] sm:$0xf0] }
0x222e   : > { %9669 = vmatpush.bf16.msrb.mxu2 %v12740_v30  ;;  %9682 = vmatpush.bf16.msrb.mxu3 %v12804_v53  ;;  %v13573_v53 = vld [vmem:[%s15984_s11 + $0x714] sm:$0xf] }
0x222f   : > { %v9431_v62 = vadd.f32 %v9430_v7, %v9418_v8  ;;  %v13269_v8 = vld [vmem:[#allocation7 + $0x14] sm:$0xf] }
0x2230   : > { %9695 = vmatpush.bf16.msrb.mxu0 %v12868_v60  ;;  %9708 = vmatpush.bf16.msrb.mxu1 %v12932_v51  ;;  %v9445_v52 = vpop.f32.mrf.mxu0  ;;  %v9458_v30 = vpop.f32.mrf.mxu1  ;;  %v12836_v60 = vor.u32 %v13607_v56, %v12833_v3  ;;  %v12900_v51 = vor.u32 %v13623_v48, %v12897_v49  ;;  %v13267_v56 = vld [vmem:[#allocation7 + $0x4] sm:$0xf]  ;;  %v12943_v3 = vld [vmem:[#allocation7] sm:$0xf]  ;;  %v13268_v48 = vld [vmem:[#allocation7 + $0x4] sm:$0xf0] }
0x2231   : > { %v9444_v2 = vadd.f32 %v9443_v43, %v9431_v62  ;;  %v12967_v43 = vld [vmem:[#allocation7 + $0x30] sm:$0xf]  ;;  %v12945_v62 = vld [vmem:[#allocation7 + $0x8] sm:$0xf0] }
0x2232   : > { %9670 = vmatpush.bf16.msrb.mxu2 %v12732_v50  ;;  %9683 = vmatpush.bf16.msrb.mxu3 %v12796_v58  ;;  %v12700_v58 = vor.u32 %v13573_v53, %v12697_v9  ;;  %v6486_v53 = vpack.c.bf16 %v15184_v18, %v15184_v18 }
0x2233   : > { %v15904_v50 = vadd.f32 %v9456_v12, %v9444_v2  ;;  %v13274_v12 = vld [vmem:[#allocation7 + $0x34] sm:$0xf0] }
0x2234   : > { %9696 = vmatpush.bf16.msrb.mxu0 %v12860_v54  ;;  %9709 = vmatpush.bf16.msrb.mxu1 %v12924_v10  ;;  %v9419_v0 = vpop.f32.mrf.mxu2  ;;  %v9432_v1 = vpop.f32.mrf.mxu3  ;;  %v12689_v54 = vld [vmem:[%s15984_s11 + $0x708] sm:$0xf0]  ;;  %v13587_v10 = vld [vmem:[%s15984_s11 + $0x784] sm:$0xf]  ;;  %v12968_v25 = vor.u32 %v13274_v12, %v12967_v43 }
0x2235   : > { %v12692_v63 = vor.u32 %v13571_v5, %v12689_v54 }
0x2236   : > { %9671 = vmatpush.bf16.msrb.mxu2 %v12724_v35  ;;  %9684 = vmatpush.bf16.msrb.mxu3 %v12788_v16  ;;  %v12892_v35 = vor.u32 %v13621_v13, %v12889_v59  ;;  %v12969_v16 = vld [vmem:[#allocation7 + $0x38] sm:$0xf0] }
0x2238   : > { %9697 = vmatpush.bf16.msrb.mxu0 %v12852_v24  ;;  %9710 = vmatpush.bf16.msrb.mxu1 %v12916_v20  ;;  %v12756_v24 = vor.u32 %v13587_v10, %v12753_v47  ;;  %v12972_v20 = vor.u32 %v13273_v36, %v12969_v16 }
0x223a   : > { %9672 = vmatpush.bf16.msrb.mxu2 %v12716_v32  ;;  %9685 = vmatpush.bf16.msrb.mxu3 %v12780_v33  ;;  %v12961_v32 = vld [vmem:[#allocation7 + $0x28] sm:$0xf0]  ;;  %v12959_v33 = vld [vmem:[#allocation7 + $0x20] sm:$0xf] }
0x223b   : > { %v12964_v7 = vor.u32 %v13271_v31, %v12961_v32  ;;  %v12960_v39 = vor.u32 %v13272_v38, %v12959_v33 }
0x223c   : > { %9698 = vmatpush.bf16.msrb.mxu0 %v12844_v46  ;;  %9711 = vmatpush.bf16.msrb.mxu1 %v12908_v15  ;;  %v12956_v46 = vor.u32 %v13269_v8, %v12953_v29  ;;  %v12952_v15 = vor.u32 %v13270_v26, %v12951_v42 }
0x223e   : > { %9673 = vmatpush.bf16.msrb.mxu2 %v12708_v21  ;;  %9686 = vmatpush.bf16.msrb.mxu3 %v12772_v57  ;;  %v12944_v21 = vor.u32 %v13268_v48, %v12943_v3 }
0x2240   : > { %9699 = vmatpush.bf16.msrb.mxu0 %v12836_v60  ;;  %9712 = vmatpush.bf16.msrb.mxu1 %v12900_v51 }
0x2242   : > { %9674 = vmatpush.bf16.msrb.mxu2 %v12700_v58  ;;  %9687 = vmatpush.bf16.msrb.mxu3 %v12764_v14 }
0x2244   : > { %9700 = vmatpush.bf16.msrb.mxu0 %v12828_v22  ;;  %9713 = vmatpush.bf16.msrb.mxu1 %v12892_v35 }
0x2246   : > { %9675 = vmatpush.bf16.msrb.mxu2 %v12692_v63  ;;  %9688 = vmatpush.bf16.msrb.mxu3 %v12756_v24 }
0x2248   : > { %9701 = vmatpush.bf16.msrb.mxu0 %v12820_v27  ;;  %9714 = vmatpush.bf16.msrb.mxu1 %v12884_v28  ;;  %v9508_v49 = vpop.f32.mrf.mxu1 }
0x2249   : > { %9676 = vmatmul.bf16.vlgmr.msrb.gmra.mxu2 %v15564_v23  ;;  %9689 = vmatmul.bf16.vlgmr.msrb.gmra.mxu3 %v15570_v45  ;;  %v9495_v23 = vpop.f32.mrf.mxu0  ;;  %v12948_v45 = vor.u32 %v13267_v56, %v12945_v62 }
0x224a   : > { %9780 = vmatpush.bf16.msra.mxu3 %v12972_v20  ;;  %9767 = vmatpush.bf16.msra.mxu2 %v12968_v25  ;;  %v9496_v57 = vadd.f32 %v9495_v23, %v9250_v34 }
0x224b   : > { %9702 = vmatmul.bf16.vlgmr.msrb.gmra.mxu0 %v15634_v6  ;;  %9715 = vmatmul.bf16.vlgmr.msrb.gmra.mxu1 %v15641_v19 }
0x224c   : > { %v9509_v6 = vadd.f32 %v9508_v49, %v9496_v57  ;;  %v9469_v19 = vpop.f32.mrf.mxu2  ;;  %v9482_v30 = vpop.f32.mrf.mxu3 }
0x224d   : > { %v9470_v52 = vadd.f32 %v9469_v19, %v15904_v50 }
0x224e   : > { %9781 = vmatpush.bf16.msra.mxu3 %v12964_v7  ;;  %9768 = vmatpush.bf16.msra.mxu2 %v12960_v39 }
0x224f   : > { %v9483_v2 = vadd.f32 %v9482_v30, %v9470_v52 }
0x2250   : > { %v9510_v61 = vpop.f32.mrf.mxu1 }
0x2251   : > { %v9497_v9 = vpop.f32.mrf.mxu0 }
0x2252   : > { %9782 = vmatpush.bf16.msra.mxu3 %v12956_v46  ;;  %9769 = vmatpush.bf16.msra.mxu2 %v12952_v15 }
0x2254   : > { %v9471_v4 = vpop.f32.mrf.mxu2  ;;  %v9484_v41 = vpop.f32.mrf.mxu3 }
0x2256   : > { %9783 = vmatpush.bf16.msra.mxu3 %v12948_v45  ;;  %9770 = vmatpush.bf16.msra.mxu2 %v12944_v21 }
0x2259   : > { %12973 = vmatmul.msk.bf16.vlgmr.msra.gmra.mxu2 %vm2658_vm11, %v6486_v53  ;;  %12974 = vmatmul.msk.bf16.vlgmr.msra.gmra.mxu3 %vm2658_vm11, %v6486_v53 }
0x2268   : > { %v9547_v34 = vpop.f32.mrf.mxu0  ;;  %v9560_v60 = vpop.f32.mrf.mxu1 }
0x226c   : > { %v9521_v51 = vpop.f32.mrf.mxu2  ;;  %v9534_v55 = vpop.f32.mrf.mxu3 }
0x226d   : > { %v9522_v11 = vadd.f32 %v9521_v51, %v9509_v6 }
0x226f   : > { %v9535_v13 = vadd.f32 %v9534_v55, %v9522_v11 }
0x2270   : > { %v9549_v59 = vpop.f32.mrf.mxu0  ;;  %v9562_v50 = vpop.f32.mrf.mxu1 }
0x2271   : > { %v9548_v58 = vadd.f32 %v9547_v34, %v9535_v13 }
0x2273   : > { %v9561_v14 = vadd.f32 %v9560_v60, %v9548_v58 }
0x2274   : > { %v9523_v18 = vpop.f32.mrf.mxu2  ;;  %v9536_v0 = vpop.f32.mrf.mxu3 }
0x2288   : > { %v9599_v1 = vpop.f32.mrf.mxu0  ;;  %v9612_v5 = vpop.f32.mrf.mxu1 }
0x228c   : > { %v9573_v54 = vpop.f32.mrf.mxu2  ;;  %v9586_v10 = vpop.f32.mrf.mxu3 }
0x228d   : > { %v9574_v37 = vadd.f32 %v9573_v54, %v9561_v14 }
0x228f   : > { %v9587_v20 = vadd.f32 %v9586_v10, %v9574_v37 }
0x2290   : > { %v9601_v47 = vpop.f32.mrf.mxu0  ;;  %v9614_v17 = vpop.f32.mrf.mxu1 }
0x2291   : > { %v9600_v25 = vadd.f32 %v9599_v1, %v9587_v20 }
0x2293   : > { %v9613_v27 = vadd.f32 %v9612_v5, %v9600_v25 }
0x2294   : > { %v9575_v36 = vpop.f32.mrf.mxu2  ;;  %v9588_v22 = vpop.f32.mrf.mxu3 }
0x22a8   : > { %v9651_v35 = vpop.f32.mrf.mxu0  ;;  %v9664_v16 = vpop.f32.mrf.mxu1 }
0x22ac   : > { %v9625_v43 = vpop.f32.mrf.mxu2  ;;  %v9638_v12 = vpop.f32.mrf.mxu3 }
0x22ad   : > { %v9626_v28 = vadd.f32 %v9625_v43, %v9613_v27 }
0x22af   : > { %v9639_v31 = vadd.f32 %v9638_v12, %v9626_v28 }
0x22b0   : > { %v9653_v40 = vpop.f32.mrf.mxu0  ;;  %v9666_v44 = vpop.f32.mrf.mxu1 }
0x22b1   : > { %v9652_v38 = vadd.f32 %v9651_v35, %v9639_v31 }
0x22b3   : > { %v9665_v8 = vadd.f32 %v9664_v16, %v9652_v38 }
0x22b4   : > { %v9627_v63 = vpop.f32.mrf.mxu2  ;;  %v9640_v24 = vpop.f32.mrf.mxu3 }
0x22c8   : > { %v9703_v32 = vpop.f32.mrf.mxu0  ;;  %v9716_v33 = vpop.f32.mrf.mxu1 }
0x22cc   : > { %v9677_v7 = vpop.f32.mrf.mxu2  ;;  %v9690_v39 = vpop.f32.mrf.mxu3 }
0x22cd   : > { %v9678_v29 = vadd.f32 %v9677_v7, %v9665_v8 }
0x22cf   : > { %v9691_v46 = vadd.f32 %v9690_v39, %v9678_v29 }
0x22d0   : > { %v9705_v42 = vpop.f32.mrf.mxu0  ;;  %v9718_v26 = vpop.f32.mrf.mxu1 }
0x22d1   : > { %v9704_v62 = vadd.f32 %v9703_v32, %v9691_v46 }
0x22d3   : > { %v9717_v3 = vadd.f32 %v9716_v33, %v9704_v62 }
0x22d4   : > { %v9679_v15 = vpop.f32.mrf.mxu2  ;;  %v9692_v56 = vpop.f32.mrf.mxu3 }
0x22dc   : > { %v9772_v48 = vpop.f32.mrf.mxu2  ;;  %v9785_v23 = vpop.f32.mrf.mxu3 }
0x22dd   : > { %v9773_v49 = vadd.f32 %v9772_v48, %v9483_v2  ;;  %v9786_v45 = vadd.f32 %v9785_v23, %v9717_v3 }
0x22df   : > { %v12975_v21 = vmul.f32 -0.70710677, %v9773_v49  ;;  %v12976_v57 = vmul.f32 -0.70710677, %v9786_v45 }
0x22e1   : > { %v9793_v6 = vmul.f32 1.442695, %v12975_v21  ;;  %v9795_v19 = vmul.f32 1.442695, %v12976_v57 }
0x22e3   : > { %13806 = vpow2.f32 %v9793_v6 }
0x22e4   : > { %13808 = vpow2.f32 %v9795_v19  ;;  %v9774_v52 = vpop.f32.mrf.mxu2  ;;  %v9787_v30 = vpop.f32.mrf.mxu3 }
0x22e9   : > { %v13807_v53 = vpop.eup %13806 }
0x22ea   : > { %v13809_v9 = vpop.eup %13808  ;;  %v9797_v61 = vadd.f32 1.0, %v13807_v53 }
0x22eb   : > { %v9798_v4 = vadd.f32 1.0, %v13809_v9 }
0x22ec   : > { %13810 = vrcp.f32 %v9797_v61  ;;  %vm9804_vm15 = vweird.f32 %v9797_v61  ;;  %v9810_v14 = vand.u32 2147483648, %v9797_v61  ;;  %v9808_v0 = vand.u32 2147483647, %v9797_v61 }
0x22ed   : > { %13812 = vrcp.f32 %v9798_v4  ;;  %v9825_v13 = vand.u32 2147483648, %v9798_v4  ;;  %v9823_v50 = vand.u32 2147483647, %v9798_v4  ;;  %vm9819_vm7 = vweird.f32 %v9798_v4 }
0x22ee   : > { %v9811_v47 = vor.u32 1.1754944e-38, %v9810_v14  ;;  %vm9809_vm1 = vcmp.eq.f32.partialorder %v9808_v0, 8.507059e+37 }
0x22ef   : > { %v9826_v5 = vor.u32 1.1754944e-38, %v9825_v13  ;;  %vm9824_vm10 = vcmp.eq.f32.partialorder %v9823_v50, 8.507059e+37 }
0x22f2   : > { %v13811_v41 = vpop.eup %13810 }
0x22f3   : > { %v13813_v34 = vpop.eup %13812  ;;  %v9800_v60 = vmul.f32 %v13811_v41, %v9797_v61  ;;  %vm9805_vm11 = vweird.f32 %v13811_v41 }
0x22f4   : > { %v9815_v51 = vmul.f32 %v13813_v34, %v9798_v4  ;;  %vm9820_vm5 = vweird.f32 %v13813_v34  ;;  %vm15925_vm13 = vmor %vm9804_vm15, %vm9805_vm11 }
0x22f5   : > { %v9801_v2 = vsub.f32 1.0, %v9800_v60  ;;  %vm9821_vm8 = vmor %vm9819_vm7, %vm9820_vm5 }
0x22f6   : > { %v9816_v55 = vsub.f32 1.0, %v9815_v51 }
0x22f7   : > { %v9802_v11 = vmul.f32 %v13811_v41, %v9801_v2 }
0x22f8   : > { %v9817_v59 = vmul.f32 %v13813_v34, %v9816_v55 }
0x22f9   : > { %v9803_v58 = vadd.f32 %v13811_v41, %v9802_v11 }
0x22fa   : > { %v9818_v1 = vadd.f32 %v13813_v34, %v9817_v59 }
0x22fb   : > { %v9807_v54 = vsel %vm15925_vm13, %v13811_v41, %v9803_v58 }
0x22fc   : > { %v9822_v10 = vsel %vm9821_vm8, %v13813_v34, %v9818_v1  ;;  %v9812_v22 = vsel %vm9809_vm1, %v9811_v47, %v9807_v54 }
0x22fd   : > { %v9827_v17 = vsel %vm9824_vm10, %v9826_v5, %v9822_v10 }
0x22fe   : > { %v9831_v36 = vrot.slane %v9827_v17, 4 }
0x2300   : > { %v9832_v35 = vsel %vm1003_vm9, %v9812_v22, %v9831_v36 }
0x2301   : > { %9834 = vst [vmem:[%s969_s2] sm:$0xff] %v9832_v35 }
0x2302 PF: > { %s72_s7 = sadd.s32 1, %s13991_s7  }
0x2303   : > { %p69_p2 = scmp.ge.s32.totalorder %s72_s7, 4  }
0x2305   :  { %71 = sbr.rel (!%p69_p2) target bundleno = 49 (0x31), region = 276 }
0x230a   :  { %9856 = vsyncpa [#allocation3], 1 }
0x230b   :  { %9858 = vsyncpa [#allocation3 + $0x1], 1 }
0x230c   :  { %9859 = vsyncpa [#allocation5], 1 }
0x230d   :  { %9860 = vsyncpa [#allocation8], 1 }

</bundles_post_ra>
